<compile_context>
chip_gen: v6e
topology: v6e:2x2x1
jax: 0.10.0
libtpu: 0.0.40
codegen_flags: <defaults>
</compile_context>

<pallas_src>
import functools

import jax
import jax.numpy as jnp
from jax import lax
from jax.experimental import pallas as pl
from jax.experimental.pallas import tpu as pltpu

EPS = 1e-5  # nn.BatchNorm2d default eps


# ---------------------------------------------------------------------------
# Pallas kernels
# ---------------------------------------------------------------------------
def _conv3x3_kernel(*refs, pre_mode, emit_act):
    """3x3 'same' conv on one (row-tile, W) slab of one image.

    pre_mode selects what is applied (in f32) to the input and its 1-row halos
    on load:
      "none"         x
      "bn_relu"      relu(x * scale + shift)                    (bn1 fusion)
      "bn_res_relu"  relu(x * scale + shift + res)     (bn2 + identity fusion)
    When pre_mode == "bn_res_relu" the fused activation is also written out
    (emit_act) because it is the identity of the block being started.
    """
    it = iter(refs)
    x_ref, xt_ref, xb_ref = next(it), next(it), next(it)
    if pre_mode == "bn_res_relu":
        r_ref, rt_ref, rb_ref = next(it), next(it), next(it)
    if pre_mode != "none":
        sc_ref, sh_ref = next(it), next(it)
    w_ref = next(it)
    y_ref = next(it)
    a_ref = next(it) if emit_act else None
    s_ref, ss_ref = next(it), next(it)

    h = pl.program_id(1)
    nh = pl.num_programs(1)

    def pre(xr, rr):
        v = xr[0].astype(jnp.float32)                       # (rows, W, c)
        if pre_mode == "none":
            return v
        c = v.shape[-1]
        v = v * sc_ref[...].reshape(1, 1, c) + sh_ref[...].reshape(1, 1, c)
        if pre_mode == "bn_res_relu":
            v = v + rr[0].astype(jnp.float32)               # broadcasts if 1-ch
        return jnp.maximum(v, 0.0)

    if pre_mode == "bn_res_relu":
        xm = pre(x_ref, r_ref)
        xt = pre(xt_ref, rt_ref)
        xb = pre(xb_ref, rb_ref)
    else:
        xm = pre(x_ref, None)
        xt = pre(xt_ref, None)
        xb = pre(xb_ref, None)

    # Out-of-image halo rows are zero (PyTorch zero-pads the conv input);
    # only the two halo rows are touched.
    xt = xt * (h > 0).astype(xt.dtype)
    xb = xb * (h < nh - 1).astype(xb.dtype)

    if emit_act:
        a_ref[0] = xm.astype(a_ref.dtype)

    th, width, cin = xm.shape
    cout = w_ref.shape[-1]

    # Halo-extend (rows) and zero-pad (columns); quantize the operand to bf16.
    xh = jnp.concatenate([xt, xm, xb], axis=0).astype(jnp.bfloat16)
    zc = jnp.zeros((th + 2, 1, cin), jnp.bfloat16)
    xp = jnp.concatenate([zc, xh, zc], axis=1)              # (th+2, W+2, cin)

    if cin == 1:
        # Degenerate K: broadcast-multiply on the VPU instead of a K=1 matmul.
        acc = jnp.zeros((th * width, cout), jnp.float32)
        for k in range(9):
            dy, dx = divmod(k, 3)
            patch = xp[dy:dy + th, dx:dx + width, :].reshape(th * width, 1)
            acc = acc + patch.astype(jnp.float32) * w_ref[k:k + 1, :].astype(
                jnp.float32)
    else:
        # Single K = 9*Cin MXU matmul (instead of nine K=Cin pushes).
        cols = [xp[dy:dy + th, dx:dx + width, :]
                for dy in range(3) for dx in range(3)]
        patches = jnp.concatenate(cols, axis=-1).reshape(th * width, 9 * cin)
        acc = jnp.dot(patches, w_ref[...], preferred_element_type=jnp.float32)

    # Per-tile BatchNorm partials: 8 interleaved group sums plus the sum of
    # squared deviations from the tile mean (chunked-Welford combine in JAX).
    s8 = jnp.sum(acc.reshape(-1, 8, cout), axis=0)          # (8, cout)
    mean_t = jnp.sum(s8, axis=0, keepdims=True) / (th * width)
    dev = acc - mean_t
    m2_8 = jnp.sum((dev * dev).reshape(-1, 8, cout), axis=0)
    s_ref[0, 0] = s8
    ss_ref[0, 0] = m2_8

    # bf16 storage of the conv output (consumer re-quantizes for the MXU anyway)
    y_ref[0] = acc.reshape(th, width, cout).astype(y_ref.dtype)


def _tail_kernel(y_ref, sc_ref, sh_ref, r_ref, wc1_ref, wc2_ref, wc3_ref,
                 mask_ref, ximg_ref, out_ref):
    """Fused T-iteration tail for one tile:
       relu(bn2(y2)+identity) -> 1x1 -> relu -> 1x1 -> relu -> 1x1 -> DC."""
    y = y_ref[0].astype(jnp.float32)                        # (th, W, C)
    r = r_ref[0].astype(jnp.float32)                        # (th, W, 1 or C)
    c = y.shape[-1]
    xblk = jnp.maximum(
        y * sc_ref[...].reshape(1, 1, c) + sh_ref[...].reshape(1, 1, c) + r,
        0.0)
    th, width, _ = xblk.shape
    a = xblk.reshape(th * width, c).astype(jnp.bfloat16)
    z = jnp.dot(a, wc1_ref[...], preferred_element_type=jnp.float32)
    z = jnp.maximum(z, 0.0).astype(jnp.bfloat16)
    z = jnp.dot(z, wc2_ref[...], preferred_element_type=jnp.float32)
    z = jnp.maximum(z, 0.0)
    # C -> 1 projection on VPU + XLU lane reduction (no width-1 MXU matmul).
    z = jnp.sum(z * wc3_ref[...], axis=-1).reshape(th, width)
    m = mask_ref[0]
    out_ref[0] = (1.0 - m) * z + ximg_ref[0] * m            # x0 = x*mask folded


# ---------------------------------------------------------------------------
# pallas_call wrappers
# ---------------------------------------------------------------------------
def _const_spec(arr):
    zeros = (0,) * arr.ndim
    return pl.BlockSpec(arr.shape, lambda n, h: zeros)


def _conv3x3(x, w, scale=None, shift=None, res=None, *,
             pre_mode, th, compiler_params):
    """x: (N,H,W,Cx).  w: (9*Cin, Cout) bf16.  res: (N,H,W,Cr) or None.
    Returns (y_bf16[, act_bf16], sums_f32, m2_f32)."""
    N, H, W, cx = x.shape
    cin = w.shape[0] // 9
    cout = w.shape[1]
    hb = H // th
    emit_act = pre_mode == "bn_res_relu"

    main_map = lambda n, h: (n, h, 0, 0)
    top_map = lambda n, h: (n, jnp.maximum(h * th - 1, 0), 0, 0)
    bot_map = lambda n, h: (n, jnp.minimum((h + 1) * th, H - 1), 0, 0)

    in_specs = [pl.BlockSpec((1, th, W, cx), main_map),
                pl.BlockSpec((1, 1, W, cx), top_map),       # 1-row halos
                pl.BlockSpec((1, 1, W, cx), bot_map)]
    args = [x, x, x]
    if pre_mode == "bn_res_relu":
        cr = res.shape[-1]
        in_specs += [pl.BlockSpec((1, th, W, cr), main_map),
                     pl.BlockSpec((1, 1, W, cr), top_map),
                     pl.BlockSpec((1, 1, W, cr), bot_map)]
        args += [res, res, res]
    if pre_mode != "none":
        in_specs += [_const_spec(scale), _const_spec(shift)]
        args += [scale, shift]
    in_specs.append(_const_spec(w))
    args.append(w)

    out_specs = [pl.BlockSpec((1, th, W, cout), main_map)]
    out_shape = [jax.ShapeDtypeStruct((N, H, W, cout), jnp.bfloat16)]
    if emit_act:
        out_specs.append(pl.BlockSpec((1, th, W, cin), main_map))
        out_shape.append(jax.ShapeDtypeStruct((N, H, W, cin), jnp.bfloat16))
    stat_spec = pl.BlockSpec((1, 1, 8, cout), lambda n, h: (n, h, 0, 0))
    out_specs += [stat_spec, stat_spec]
    out_shape += [jax.ShapeDtypeStruct((N, hb, 8, cout), jnp.float32)] * 2

    # TODO(synk): pack bf16 channel pairs into u32 via pltpu.bitcast for the
    # y/act stores if store-slot pressure ever shows up at C=32.
    flops = 2 * 9 * N * H * W * cin * cout
    bytes_accessed = (x.size * x.dtype.itemsize
                      + (res.size * res.dtype.itemsize if res is not None else 0)
                      + N * H * W * cout * 2
                      + (N * H * W * cin * 2 if emit_act else 0)
                      + 2 * N * hb * 8 * cout * 4
                      + w.size * 2)

    return pl.pallas_call(
        functools.partial(_conv3x3_kernel, pre_mode=pre_mode,
                          emit_act=emit_act),
        grid=(N, hb),
        in_specs=in_specs,
        out_specs=tuple(out_specs),
        out_shape=tuple(out_shape),
        compiler_params=compiler_params,
        cost_estimate=pl.CostEstimate(flops=flops, transcendentals=0,
                                      bytes_accessed=bytes_accessed),
    )(*args)


def _tail(y, scale, shift, res, wc1, wc2, wc3, mask, ximg, *, th,
          compiler_params):
    N, H, W, C = y.shape
    hb = H // th
    m4 = lambda n, h: (n, h, 0, 0)
    m3 = lambda n, h: (n, h, 0)
    return pl.pallas_call(
        _tail_kernel,
        grid=(N, hb),
        in_specs=[pl.BlockSpec((1, th, W, C), m4),
                  _const_spec(scale), _const_spec(shift),
                  pl.BlockSpec((1, th, W, res.shape[-1]), m4),
                  _const_spec(wc1), _const_spec(wc2), _const_spec(wc3),
                  pl.BlockSpec((1, th, W), m3),
                  pl.BlockSpec((1, th, W), m3)],
        out_specs=pl.BlockSpec((1, th, W), m3),
        out_shape=jax.ShapeDtypeStruct((N, H, W), jnp.float32),
        compiler_params=compiler_params,
    )(y, scale, shift, res, wc1, wc2, wc3, mask, ximg)


# ---------------------------------------------------------------------------
# JAX glue
# ---------------------------------------------------------------------------
def _bn_affine(s, m2, g, b, count, n_tile):
    """Chunked-Welford combine of per-tile partials -> fused BN (scale, shift).

    s, m2: (N, hb, 8, C) f32.  Per tile: sum(s over axis 2) is the tile sum and
    sum(m2 over axis 2) is the sum of squared deviations from the tile mean.
    """
    tile_sum = jnp.sum(s, axis=2)                           # (N, hb, C)
    tile_mean = tile_sum / n_tile
    mean = jnp.sum(tile_sum, axis=(0, 1)) / count           # (C,)
    d = tile_mean - mean
    m2_tot = jnp.sum(m2, axis=(0, 1, 2)) + n_tile * jnp.sum(d * d, axis=(0, 1))
    var = jnp.maximum(m2_tot / count, 0.0)
    scale = g[0] * lax.rsqrt(var + EPS)
    shift = b[0] - mean * scale
    return scale[None, :], shift[None, :]


def _tpu_vmem_budget():
    """(row-tile pixel cap, vmem_limit_bytes) chosen per TPU generation.

    Per-step VMEM is dominated by the im2col operand (px * 9*C * 2 B); the caps
    keep a double-buffered working set well inside the limit.
    """
    kind = ""
    try:
        kind = jax.devices()[0].device_kind.lower()
    except Exception:
        pass
    if ("v5" in kind) or ("v6" in kind):
        return 16384, 96 * 1024 * 1024      # 128 MiB parts: larger tiles/limit
    return 8192, 32 * 1024 * 1024           # v7x (64 MiB) / unknown: conservative


def _pick_tile_h(H, W, px_cap):
    """Largest multiple-of-8 row tile dividing H under the pixel cap, keeping
    at least two row tiles when possible (halo path, pipelining, v7x 2-TC)."""
    assert H % 8 == 0, "H must be a multiple of 8"
    # TODO(synk): pad H spatially for image heights that are not multiples of 8.
    max_rows = max(8, (px_cap // max(W, 1)) // 8 * 8)
    best = 8
    for cand in range(8, H + 1, 8):
        if H % cand == 0 and cand <= max_rows:
            best = cand
    if best == H and H > 8:
        for cand in range(best - 8, 7, -8):
            if H % cand == 0:
                best = cand
                break
    return best


def init_params(key, nblocks, max_channel):
    params = {"blocks": []}
    cin = 1
    for _ in range(nblocks):
        key, *ks = jax.random.split(key, 7)
        blk = dict(
            w1=0.1 * jax.random.normal(ks[0], (3, 3, cin, max_channel), jnp.float32),
            g1=1.0 + 0.1 * jax.random.normal(ks[1], (1, max_channel), jnp.float32),
            b1=0.1 * jax.random.normal(ks[2], (1, max_channel), jnp.float32),
            w2=0.1 * jax.random.normal(ks[3], (3, 3, max_channel, max_channel), jnp.float32),
            g2=1.0 + 0.1 * jax.random.normal(ks[4], (1, max_channel), jnp.float32),
            b2=0.1 * jax.random.normal(ks[5], (1, max_channel), jnp.float32),
        )
        params["blocks"].append(blk)
        cin = max_channel
    key, k1, k2, k3 = jax.random.split(key, 4)
    params["w_c1"] = 0.1 * jax.random.normal(k1, (max_channel, max_channel), jnp.float32)
    params["w_c2"] = 0.1 * jax.random.normal(k2, (max_channel, max_channel), jnp.float32)
    params["w_c3"] = 0.1 * jax.random.normal(k3, (max_channel, 1), jnp.float32)
    return params


def resnet_dc_forward(x_nchw, mask_nchw, params, *, nblocks, T):
    N, _, H, W = x_nchw.shape
    x_img = x_nchw[:, 0].astype(jnp.float32)                # (N, H, W)
    mask = mask_nchw[:, 0].astype(jnp.float32)
    px_cap, vmem_limit = _tpu_vmem_budget()
    th = _pick_tile_h(H, W, px_cap)
    cp = pltpu.CompilerParams(dimension_semantics=("parallel", "parallel"),
                              vmem_limit_bytes=vmem_limit)
    count = N * H * W
    n_tile = th * W
    C = params["w_c1"].shape[0]

    wc1 = params["w_c1"].astype(jnp.bfloat16)
    wc2 = params["w_c2"].astype(jnp.bfloat16)
    wc3 = params["w_c3"].astype(jnp.float32).reshape(1, C)
    conv_w = []
    for blk in params["blocks"]:
        cin = blk["w1"].shape[2]
        conv_w.append((blk["w1"].reshape(9 * cin, C).astype(jnp.bfloat16),
                       blk["w2"].reshape(9 * C, C).astype(jnp.bfloat16)))

    out = x_img
    x = x_img[..., None]                                    # (N, H, W, 1) f32
    for _ in range(T):
        pend = None          # (y2, scale2, shift2, identity) awaiting fusion
        for i in range(nblocks):
            blk = params["blocks"][i]
            w1, w2 = conv_w[i]
            if pend is None:
                # Block 0: raw (1-channel) input, no fused prologue.
                y1, s1, m21 = _conv3x3(x, w1, pre_mode="none", th=th,
                                       compiler_params=cp)
                identity = x
            else:
                # bn2 + residual + ReLU of the previous block fused on load;
                # the fused activation comes back as this block's identity.
                y2p, sc2p, sh2p, idp = pend
                y1, identity, s1, m21 = _conv3x3(
                    y2p, w1, scale=sc2p, shift=sh2p, res=idp,
                    pre_mode="bn_res_relu", th=th, compiler_params=cp)
            sc1, sh1 = _bn_affine(s1, m21, blk["g1"], blk["b1"], count, n_tile)
            # conv2 with bn1 + ReLU fused on load.
            y2, s2, m22 = _conv3x3(y1, w2, scale=sc1, shift=sh1,
                                   pre_mode="bn_relu", th=th,
                                   compiler_params=cp)
            sc2, sh2 = _bn_affine(s2, m22, blk["g2"], blk["b2"], count, n_tile)
            pend = (y2, sc2, sh2, identity)
        y2, sc2, sh2, identity = pend
        out = _tail(y2, sc2, sh2, identity, wc1, wc2, wc3, mask, x_img,
                    th=th, compiler_params=cp)
        x = out[..., None]
    return out[:, None, :, :]


# ---------------------------------------------------------------------------
# Pure-JAX mirror of the same math (correctness self-check)
# ---------------------------------------------------------------------------
def reference_forward(x_nchw, mask_nchw, params, *, nblocks, T):
    f32 = jnp.float32
    q = lambda v: v.astype(jnp.bfloat16).astype(f32)   # bf16 storage round-trip
    x_img = x_nchw[:, 0].astype(f32)
    mask = mask_nchw[:, 0].astype(f32)
    N, H, W = x_img.shape
    C = params["w_c1"].shape[0]

    def conv3x3(a, wflat):
        cin = a.shape[-1]
        cout = wflat.shape[-1]
        ab = a.astype(jnp.bfloat16)
        ap = jnp.pad(ab, ((0, 0), (1, 1), (1, 1), (0, 0)))
        if cin == 1:
            acc = jnp.zeros((N * H * W, cout), f32)
            for k in range(9):
                dy, dx = divmod(k, 3)
                patch = ap[:, dy:dy + H, dx:dx + W, :].reshape(-1, 1)
                acc = acc + patch.astype(f32) * wflat[k:k + 1, :].astype(f32)
        else:
            cols = [ap[:, dy:dy + H, dx:dx + W, :]
                    for dy in range(3) for dx in range(3)]
            patches = jnp.concatenate(cols, axis=-1).reshape(-1, 9 * cin)
            acc = jnp.dot(patches, wflat, preferred_element_type=f32)
        return acc.reshape(N, H, W, cout)

    def bn_affine(y, g, b):
        mean = jnp.mean(y, axis=(0, 1, 2))
        var = jnp.mean(jnp.square(y - mean), axis=(0, 1, 2))
        scale = g[0] * lax.rsqrt(var + EPS)
        shift = b[0] - mean * scale
        return scale, shift

    wc1 = params["w_c1"].astype(jnp.bfloat16)
    wc2 = params["w_c2"].astype(jnp.bfloat16)
    wc3 = params["w_c3"].astype(f32).reshape(C)

    out = x_img
    x = x_img[..., None]
    for _ in range(T):
        a_conv = x
        identity = x
        a_next = None
        for i in range(nblocks):
            blk = params["blocks"][i]
            cin = blk["w1"].shape[2]
            w1 = blk["w1"].reshape(9 * cin, C).astype(jnp.bfloat16)
            w2 = blk["w2"].reshape(9 * C, C).astype(jnp.bfloat16)
            y1 = conv3x3(a_conv, w1)
            sc1, sh1 = bn_affine(y1, blk["g1"], blk["b1"])
            z1 = jnp.maximum(q(y1) * sc1 + sh1, 0.0)
            y2 = conv3x3(z1, w2)
            sc2, sh2 = bn_affine(y2, blk["g2"], blk["b2"])
            a_next = jnp.maximum(q(y2) * sc2 + sh2 + identity, 0.0)
            a_conv = a_next            # conv quantizes this to bf16 internally
            identity = q(a_next)       # stored (bf16) copy is the next residual
        zz = a_next.reshape(-1, C).astype(jnp.bfloat16)
        zz = jnp.maximum(jnp.dot(zz, wc1, preferred_element_type=f32), 0.0)
        zz = jnp.maximum(jnp.dot(zz.astype(jnp.bfloat16), wc2,
                                 preferred_element_type=f32), 0.0)
        zz = jnp.sum(zz * wc3[None, :], axis=-1).reshape(N, H, W)
        out = (1.0 - mask) * zz + x_img * mask
        x = out[..., None]
    return out[:, None, :, :]


if __name__ == "__main__":
    key = jax.random.PRNGKey(0)
    kx, km, kp = jax.random.split(key, 3)

    N, H, W = 2, 16, 16
    nblocks, max_channel, T = 2, 32, 2

    x = jax.random.normal(kx, (N, 1, H, W), jnp.float32)
    mask = (jax.random.uniform(km, (N, 1, H, W)) > 0.5).astype(jnp.float32)
    params = init_params(kp, nblocks, max_channel)

    fwd = jax.jit(functools.partial(resnet_dc_forward, nblocks=nblocks, T=T))
    out = fwd(x, mask, params)
    jax.block_until_ready(out)

    assert out.shape == (N, 1, H, W)
    assert bool(jnp.isfinite(out).all())

    # Self-check against a pure-JAX mirror of the same math (same bf16 storage
    # quantization, same bf16 MXU matmuls, same batch-statistic BatchNorm);
    # validates the halo / tiling / fusion plumbing.
    ref = jax.jit(functools.partial(reference_forward, nblocks=nblocks, T=T))(
        x, mask, params)
    err = float(jnp.max(jnp.abs(out - ref)))
    tol = 1e-2 * (1.0 + float(jnp.max(jnp.abs(ref))))
    assert err < tol, f"mismatch vs reference: {err} (tol {tol})"

    print("KERNEL_OK")
</pallas_src>

<mosaic_0001>
module attributes {stable_mosaic.version = 11 : i64} {
  func.func @_conv3x3_kernel(%arg0: i32, %arg1: i32, %arg2: memref<1x8x16x1xf32, #tpu.memory_space<vmem>>, %arg3: memref<1x1x16x1xf32, #tpu.memory_space<vmem>>, %arg4: memref<1x1x16x1xf32, #tpu.memory_space<vmem>>, %arg5: memref<9x32xbf16, #tpu.memory_space<vmem>>, %arg6: memref<1x8x16x32xbf16, #tpu.memory_space<vmem>>, %arg7: memref<1x1x8x32xf32, #tpu.memory_space<vmem>>, %arg8: memref<1x1x8x32xf32, #tpu.memory_space<vmem>>) attributes {dimension_semantics = [#tpu.dimension_semantics<parallel>, #tpu.dimension_semantics<parallel>], iteration_bounds = array<i64: 2, 2>, scalar_prefetch = 0 : i64, scratch_operands = 0 : i64, tpu.core_type = #tpu.core_type<tc>, window_params = [{transform_indices = @transform_0, window_bounds = array<i64: 1, 8, 16, 1>}, {transform_indices = @transform_1, window_bounds = array<i64: 1, 1, 16, 1>}, {transform_indices = @transform_2, window_bounds = array<i64: 1, 1, 16, 1>}, {pipeline_mode = #tpu.pipeline_mode<synchronous>, transform_indices = @transform_3, window_bounds = array<i64: 9, 32>}, {transform_indices = @transform_4, window_bounds = array<i64: 1, 8, 16, 32>}, {transform_indices = @transform_5, window_bounds = array<i64: 1, 1, 8, 32>}, {transform_indices = @transform_6, window_bounds = array<i64: 1, 1, 8, 32>}]} {
    %c0 = arith.constant 0 : index
    %c0_0 = arith.constant 0 : index
    %c0_1 = arith.constant 0 : index
    %c0_2 = arith.constant 0 : index
    %0 = vector.load %arg2[%c0, %c0_0, %c0_1, %c0_2] : memref<1x8x16x1xf32, #tpu.memory_space<vmem>>, vector<1x8x16x1xf32>
    %1 = vector.shape_cast %0 : vector<1x8x16x1xf32> to vector<8x16x1xf32>
    %c0_3 = arith.constant 0 : index
    %c0_4 = arith.constant 0 : index
    %c0_5 = arith.constant 0 : index
    %c0_6 = arith.constant 0 : index
    %2 = vector.load %arg3[%c0_3, %c0_4, %c0_5, %c0_6] : memref<1x1x16x1xf32, #tpu.memory_space<vmem>>, vector<1x1x16x1xf32>
    %3 = vector.shape_cast %2 : vector<1x1x16x1xf32> to vector<1x16x1xf32>
    %c0_7 = arith.constant 0 : index
    %c0_8 = arith.constant 0 : index
    %c0_9 = arith.constant 0 : index
    %c0_10 = arith.constant 0 : index
    %4 = vector.load %arg4[%c0_7, %c0_8, %c0_9, %c0_10] : memref<1x1x16x1xf32, #tpu.memory_space<vmem>>, vector<1x1x16x1xf32>
    %5 = vector.shape_cast %4 : vector<1x1x16x1xf32> to vector<1x16x1xf32>
    %c0_i32 = arith.constant 0 : i32
    %6 = arith.cmpi sgt, %arg1, %c0_i32 : i32
    %7 = arith.extui %6 : i1 to i32
    %8 = arith.sitofp %7 : i32 to f32
    %9 = vector.broadcast %8 : f32 to vector<1x16x1xf32>
    %10 = arith.mulf %3, %9 : vector<1x16x1xf32>
    %c1_i32 = arith.constant 1 : i32
    %11 = arith.cmpi slt, %arg1, %c1_i32 : i32
    %12 = arith.extui %11 : i1 to i32
    %13 = arith.sitofp %12 : i32 to f32
    %14 = vector.broadcast %13 : f32 to vector<1x16x1xf32>
    %15 = arith.mulf %5, %14 : vector<1x16x1xf32>
    %16 = tpu.concatenate %10, %1, %15 in 0 : vector<1x16x1xf32>, vector<8x16x1xf32>, vector<1x16x1xf32> -> vector<10x16x1xf32>
    %17 = arith.truncf %16 : vector<10x16x1xf32> to vector<10x16x1xbf16>
    %cst = arith.constant 0.000000e+00 : bf16
    %18 = vector.broadcast %cst : bf16 to vector<10x1x1xbf16>
    %19 = tpu.concatenate %18, %17, %18 in 1 : vector<10x1x1xbf16>, vector<10x16x1xbf16>, vector<10x1x1xbf16> -> vector<10x18x1xbf16>
    %cst_11 = arith.constant 0.000000e+00 : f32
    %20 = vector.broadcast %cst_11 : f32 to vector<128x32xf32>
    %21 = vector.extract_strided_slice %19 {offsets = [0, 0, 0], sizes = [8, 16, 1], strides = [1, 1, 1]} : vector<10x18x1xbf16> to vector<8x16x1xbf16>
    %22 = vector.shape_cast %21 : vector<8x16x1xbf16> to vector<128x1xbf16>
    %23 = arith.extf %22 : vector<128x1xbf16> to vector<128x1xf32>
    %c0_12 = arith.constant 0 : index
    %c0_13 = arith.constant 0 : index
    %24 = vector.load %arg5[%c0_12, %c0_13] : memref<9x32xbf16, #tpu.memory_space<vmem>>, vector<1x32xbf16>
    %25 = arith.extf %24 : vector<1x32xbf16> to vector<1x32xf32>
    %26 = vector.broadcast %23 : vector<128x1xf32> to vector<128x32xf32>
    %27 = vector.broadcast %25 : vector<1x32xf32> to vector<128x32xf32>
    %28 = arith.mulf %26, %27 : vector<128x32xf32>
    %29 = arith.addf %20, %28 : vector<128x32xf32>
    %30 = vector.extract_strided_slice %19 {offsets = [0, 1, 0], sizes = [8, 16, 1], strides = [1, 1, 1]} : vector<10x18x1xbf16> to vector<8x16x1xbf16>
    %31 = vector.shape_cast %30 : vector<8x16x1xbf16> to vector<128x1xbf16>
    %32 = arith.extf %31 : vector<128x1xbf16> to vector<128x1xf32>
    %c1 = arith.constant 1 : index
    %c0_14 = arith.constant 0 : index
    %33 = vector.load %arg5[%c1, %c0_14] : memref<9x32xbf16, #tpu.memory_space<vmem>>, vector<1x32xbf16>
    %34 = arith.extf %33 : vector<1x32xbf16> to vector<1x32xf32>
    %35 = vector.broadcast %32 : vector<128x1xf32> to vector<128x32xf32>
    %36 = vector.broadcast %34 : vector<1x32xf32> to vector<128x32xf32>
    %37 = arith.mulf %35, %36 : vector<128x32xf32>
    %38 = arith.addf %29, %37 : vector<128x32xf32>
    %39 = vector.extract_strided_slice %19 {offsets = [0, 2, 0], sizes = [8, 16, 1], strides = [1, 1, 1]} : vector<10x18x1xbf16> to vector<8x16x1xbf16>
    %40 = vector.shape_cast %39 : vector<8x16x1xbf16> to vector<128x1xbf16>
    %41 = arith.extf %40 : vector<128x1xbf16> to vector<128x1xf32>
    %c2 = arith.constant 2 : index
    %c0_15 = arith.constant 0 : index
    %42 = vector.load %arg5[%c2, %c0_15] : memref<9x32xbf16, #tpu.memory_space<vmem>>, vector<1x32xbf16>
    %43 = arith.extf %42 : vector<1x32xbf16> to vector<1x32xf32>
    %44 = vector.broadcast %41 : vector<128x1xf32> to vector<128x32xf32>
    %45 = vector.broadcast %43 : vector<1x32xf32> to vector<128x32xf32>
    %46 = arith.mulf %44, %45 : vector<128x32xf32>
    %47 = arith.addf %38, %46 : vector<128x32xf32>
    %48 = vector.extract_strided_slice %19 {offsets = [1, 0, 0], sizes = [8, 16, 1], strides = [1, 1, 1]} : vector<10x18x1xbf16> to vector<8x16x1xbf16>
    %49 = vector.shape_cast %48 : vector<8x16x1xbf16> to vector<128x1xbf16>
    %50 = arith.extf %49 : vector<128x1xbf16> to vector<128x1xf32>
    %c3 = arith.constant 3 : index
    %c0_16 = arith.constant 0 : index
    %51 = vector.load %arg5[%c3, %c0_16] : memref<9x32xbf16, #tpu.memory_space<vmem>>, vector<1x32xbf16>
    %52 = arith.extf %51 : vector<1x32xbf16> to vector<1x32xf32>
    %53 = vector.broadcast %50 : vector<128x1xf32> to vector<128x32xf32>
    %54 = vector.broadcast %52 : vector<1x32xf32> to vector<128x32xf32>
    %55 = arith.mulf %53, %54 : vector<128x32xf32>
    %56 = arith.addf %47, %55 : vector<128x32xf32>
    %57 = vector.extract_strided_slice %19 {offsets = [1, 1, 0], sizes = [8, 16, 1], strides = [1, 1, 1]} : vector<10x18x1xbf16> to vector<8x16x1xbf16>
    %58 = vector.shape_cast %57 : vector<8x16x1xbf16> to vector<128x1xbf16>
    %59 = arith.extf %58 : vector<128x1xbf16> to vector<128x1xf32>
    %c4 = arith.constant 4 : index
    %c0_17 = arith.constant 0 : index
    %60 = vector.load %arg5[%c4, %c0_17] : memref<9x32xbf16, #tpu.memory_space<vmem>>, vector<1x32xbf16>
    %61 = arith.extf %60 : vector<1x32xbf16> to vector<1x32xf32>
    %62 = vector.broadcast %59 : vector<128x1xf32> to vector<128x32xf32>
    %63 = vector.broadcast %61 : vector<1x32xf32> to vector<128x32xf32>
    %64 = arith.mulf %62, %63 : vector<128x32xf32>
    %65 = arith.addf %56, %64 : vector<128x32xf32>
    %66 = vector.extract_strided_slice %19 {offsets = [1, 2, 0], sizes = [8, 16, 1], strides = [1, 1, 1]} : vector<10x18x1xbf16> to vector<8x16x1xbf16>
    %67 = vector.shape_cast %66 : vector<8x16x1xbf16> to vector<128x1xbf16>
    %68 = arith.extf %67 : vector<128x1xbf16> to vector<128x1xf32>
    %c5 = arith.constant 5 : index
    %c0_18 = arith.constant 0 : index
    %69 = vector.load %arg5[%c5, %c0_18] : memref<9x32xbf16, #tpu.memory_space<vmem>>, vector<1x32xbf16>
    %70 = arith.extf %69 : vector<1x32xbf16> to vector<1x32xf32>
    %71 = vector.broadcast %68 : vector<128x1xf32> to vector<128x32xf32>
    %72 = vector.broadcast %70 : vector<1x32xf32> to vector<128x32xf32>
    %73 = arith.mulf %71, %72 : vector<128x32xf32>
    %74 = arith.addf %65, %73 : vector<128x32xf32>
    %75 = vector.extract_strided_slice %19 {offsets = [2, 0, 0], sizes = [8, 16, 1], strides = [1, 1, 1]} : vector<10x18x1xbf16> to vector<8x16x1xbf16>
    %76 = vector.shape_cast %75 : vector<8x16x1xbf16> to vector<128x1xbf16>
    %77 = arith.extf %76 : vector<128x1xbf16> to vector<128x1xf32>
    %c6 = arith.constant 6 : index
    %c0_19 = arith.constant 0 : index
    %78 = vector.load %arg5[%c6, %c0_19] : memref<9x32xbf16, #tpu.memory_space<vmem>>, vector<1x32xbf16>
    %79 = arith.extf %78 : vector<1x32xbf16> to vector<1x32xf32>
    %80 = vector.broadcast %77 : vector<128x1xf32> to vector<128x32xf32>
    %81 = vector.broadcast %79 : vector<1x32xf32> to vector<128x32xf32>
    %82 = arith.mulf %80, %81 : vector<128x32xf32>
    %83 = arith.addf %74, %82 : vector<128x32xf32>
    %84 = vector.extract_strided_slice %19 {offsets = [2, 1, 0], sizes = [8, 16, 1], strides = [1, 1, 1]} : vector<10x18x1xbf16> to vector<8x16x1xbf16>
    %85 = vector.shape_cast %84 : vector<8x16x1xbf16> to vector<128x1xbf16>
    %86 = arith.extf %85 : vector<128x1xbf16> to vector<128x1xf32>
    %c7 = arith.constant 7 : index
    %c0_20 = arith.constant 0 : index
    %87 = vector.load %arg5[%c7, %c0_20] : memref<9x32xbf16, #tpu.memory_space<vmem>>, vector<1x32xbf16>
    %88 = arith.extf %87 : vector<1x32xbf16> to vector<1x32xf32>
    %89 = vector.broadcast %86 : vector<128x1xf32> to vector<128x32xf32>
    %90 = vector.broadcast %88 : vector<1x32xf32> to vector<128x32xf32>
    %91 = arith.mulf %89, %90 : vector<128x32xf32>
    %92 = arith.addf %83, %91 : vector<128x32xf32>
    %93 = vector.extract_strided_slice %19 {offsets = [2, 2, 0], sizes = [8, 16, 1], strides = [1, 1, 1]} : vector<10x18x1xbf16> to vector<8x16x1xbf16>
    %94 = vector.shape_cast %93 : vector<8x16x1xbf16> to vector<128x1xbf16>
    %95 = arith.extf %94 : vector<128x1xbf16> to vector<128x1xf32>
    %c8 = arith.constant 8 : index
    %c0_21 = arith.constant 0 : index
    %96 = vector.load %arg5[%c8, %c0_21] : memref<9x32xbf16, #tpu.memory_space<vmem>>, vector<1x32xbf16>
    %97 = arith.extf %96 : vector<1x32xbf16> to vector<1x32xf32>
    %98 = vector.broadcast %95 : vector<128x1xf32> to vector<128x32xf32>
    %99 = vector.broadcast %97 : vector<1x32xf32> to vector<128x32xf32>
    %100 = arith.mulf %98, %99 : vector<128x32xf32>
    %101 = arith.addf %92, %100 : vector<128x32xf32>
    %102 = vector.shape_cast %101 : vector<128x32xf32> to vector<16x8x32xf32>
    %cst_22 = arith.constant dense<0.000000e+00> : vector<8x32xf32>
    %103 = vector.multi_reduction <add>, %102, %cst_22 [0] : vector<16x8x32xf32> to vector<8x32xf32>
    %cst_23 = arith.constant dense<0.000000e+00> : vector<32xf32>
    %104 = vector.multi_reduction <add>, %103, %cst_23 [0] : vector<8x32xf32> to vector<32xf32>
    %105 = vector.shape_cast %104 : vector<32xf32> to vector<1x32xf32>
    %cst_24 = arith.constant 1.280000e+02 : f32
    %106 = vector.broadcast %cst_24 : f32 to vector<1x32xf32>
    %107 = arith.divf %105, %106 : vector<1x32xf32>
    %108 = vector.broadcast %107 : vector<1x32xf32> to vector<128x32xf32>
    %109 = arith.subf %101, %108 : vector<128x32xf32>
    %110 = arith.mulf %109, %109 : vector<128x32xf32>
    %111 = vector.shape_cast %110 : vector<128x32xf32> to vector<16x8x32xf32>
    %cst_25 = arith.constant dense<0.000000e+00> : vector<8x32xf32>
    %112 = vector.multi_reduction <add>, %111, %cst_25 [0] : vector<16x8x32xf32> to vector<8x32xf32>
    %c0_26 = arith.constant 0 : index
    %c0_27 = arith.constant 0 : index
    %c0_28 = arith.constant 0 : index
    %c0_29 = arith.constant 0 : index
    %113 = vector.load %arg7[%c0_26, %c0_27, %c0_28, %c0_29] : memref<1x1x8x32xf32, #tpu.memory_space<vmem>>, vector<1x1x8x32xf32>
    %114 = vector.shape_cast %113 : vector<1x1x8x32xf32> to vector<8x32xf32>
    %115 = vector.shape_cast %103 : vector<8x32xf32> to vector<1x1x8x32xf32>
    tpu.vector_store %arg7[%c0_26, %c0_27, %c0_28, %c0_29], %115 {strides = array<i32>} : memref<1x1x8x32xf32, #tpu.memory_space<vmem>>, vector<1x1x8x32xf32>,
    %c0_30 = arith.constant 0 : index
    %c0_31 = arith.constant 0 : index
    %c0_32 = arith.constant 0 : index
    %c0_33 = arith.constant 0 : index
    %116 = vector.load %arg8[%c0_30, %c0_31, %c0_32, %c0_33] : memref<1x1x8x32xf32, #tpu.memory_space<vmem>>, vector<1x1x8x32xf32>
    %117 = vector.shape_cast %116 : vector<1x1x8x32xf32> to vector<8x32xf32>
    %118 = vector.shape_cast %112 : vector<8x32xf32> to vector<1x1x8x32xf32>
    tpu.vector_store %arg8[%c0_30, %c0_31, %c0_32, %c0_33], %118 {strides = array<i32>} : memref<1x1x8x32xf32, #tpu.memory_space<vmem>>, vector<1x1x8x32xf32>,
    %119 = vector.shape_cast %101 : vector<128x32xf32> to vector<8x16x32xf32>
    %120 = arith.truncf %119 : vector<8x16x32xf32> to vector<8x16x32xbf16>
    %c0_34 = arith.constant 0 : index
    %c0_35 = arith.constant 0 : index
    %c0_36 = arith.constant 0 : index
    %c0_37 = arith.constant 0 : index
    %121 = vector.load %arg6[%c0_34, %c0_35, %c0_36, %c0_37] : memref<1x8x16x32xbf16, #tpu.memory_space<vmem>>, vector<1x8x16x32xbf16>
    %122 = vector.shape_cast %121 : vector<1x8x16x32xbf16> to vector<8x16x32xbf16>
    %123 = vector.shape_cast %120 : vector<8x16x32xbf16> to vector<1x8x16x32xbf16>
    tpu.vector_store %arg6[%c0_34, %c0_35, %c0_36, %c0_37], %123 {strides = array<i32>} : memref<1x8x16x32xbf16, #tpu.memory_space<vmem>>, vector<1x8x16x32xbf16>,
    return
  }
  func.func @transform_0(%arg0: i32, %arg1: i32) -> (i32, i32, i32, i32) {
    %c0_i32 = arith.constant 0 : i32
    %c0_i32_0 = arith.constant 0 : i32
    %c0_i32_1 = arith.constant 0 : i32
    return %arg0, %arg1, %c0_i32, %c0_i32_0 : i32, i32, i32, i32
  }
  func.func @transform_1(%arg0: i32, %arg1: i32) -> (i32, i32, i32, i32) {
    %c8_i32 = arith.constant 8 : i32
    %0 = arith.muli %arg1, %c8_i32 : i32
    %c1_i32 = arith.constant 1 : i32
    %1 = arith.subi %0, %c1_i32 : i32
    %c0_i32 = arith.constant 0 : i32
    %2 = arith.maxsi %1, %c0_i32 : i32
    %c0_i32_0 = arith.constant 0 : i32
    %c0_i32_1 = arith.constant 0 : i32
    %c0_i32_2 = arith.constant 0 : i32
    return %arg0, %2, %c0_i32_0, %c0_i32_1 : i32, i32, i32, i32
  }
  func.func @transform_2(%arg0: i32, %arg1: i32) -> (i32, i32, i32, i32) {
    %c1_i32 = arith.constant 1 : i32
    %0 = arith.addi %arg1, %c1_i32 : i32
    %c8_i32 = arith.constant 8 : i32
    %1 = arith.muli %0, %c8_i32 : i32
    %c15_i32 = arith.constant 15 : i32
    %2 = arith.minsi %1, %c15_i32 : i32
    %c0_i32 = arith.constant 0 : i32
    %c0_i32_0 = arith.constant 0 : i32
    %c0_i32_1 = arith.constant 0 : i32
    return %arg0, %2, %c0_i32, %c0_i32_0 : i32, i32, i32, i32
  }
  func.func @transform_3(%arg0: i32, %arg1: i32) -> (i32, i32) {
    %c0_i32 = arith.constant 0 : i32
    %c0_i32_0 = arith.constant 0 : i32
    %c0_i32_1 = arith.constant 0 : i32
    return %c0_i32, %c0_i32_0 : i32, i32
  }
  func.func @transform_4(%arg0: i32, %arg1: i32) -> (i32, i32, i32, i32) {
    %c0_i32 = arith.constant 0 : i32
    %c0_i32_0 = arith.constant 0 : i32
    %c0_i32_1 = arith.constant 0 : i32
    return %arg0, %arg1, %c0_i32, %c0_i32_0 : i32, i32, i32, i32
  }
  func.func @transform_5(%arg0: i32, %arg1: i32) -> (i32, i32, i32, i32) {
    %c0_i32 = arith.constant 0 : i32
    %c0_i32_0 = arith.constant 0 : i32
    %c0_i32_1 = arith.constant 0 : i32
    return %arg0, %arg1, %c0_i32, %c0_i32_0 : i32, i32, i32, i32
  }
  func.func @transform_6(%arg0: i32, %arg1: i32) -> (i32, i32, i32, i32) {
    %c0_i32 = arith.constant 0 : i32
    %c0_i32_0 = arith.constant 0 : i32
    %c0_i32_1 = arith.constant 0 : i32
    return %arg0, %arg1, %c0_i32, %c0_i32_0 : i32, i32, i32, i32
  }
}

module attributes {stable_mosaic.version = 11 : i64} {
  func.func @_conv3x3_kernel(%arg0: i32, %arg1: i32, %arg2: memref<1x8x16x32xbf16, #tpu.memory_space<vmem>>, %arg3: memref<1x1x16x32xbf16, #tpu.memory_space<vmem>>, %arg4: memref<1x1x16x32xbf16, #tpu.memory_space<vmem>>, %arg5: memref<1x32xf32, #tpu.memory_space<vmem>>, %arg6: memref<1x32xf32, #tpu.memory_space<vmem>>, %arg7: memref<288x32xbf16, #tpu.memory_space<vmem>>, %arg8: memref<1x8x16x32xbf16, #tpu.memory_space<vmem>>, %arg9: memref<1x1x8x32xf32, #tpu.memory_space<vmem>>, %arg10: memref<1x1x8x32xf32, #tpu.memory_space<vmem>>) attributes {dimension_semantics = [#tpu.dimension_semantics<parallel>, #tpu.dimension_semantics<parallel>], iteration_bounds = array<i64: 2, 2>, scalar_prefetch = 0 : i64, scratch_operands = 0 : i64, tpu.core_type = #tpu.core_type<tc>, window_params = [{transform_indices = @transform_0, window_bounds = array<i64: 1, 8, 16, 32>}, {transform_indices = @transform_1, window_bounds = array<i64: 1, 1, 16, 32>}, {transform_indices = @transform_2, window_bounds = array<i64: 1, 1, 16, 32>}, {pipeline_mode = #tpu.pipeline_mode<synchronous>, transform_indices = @transform_3, window_bounds = array<i64: 1, 32>}, {pipeline_mode = #tpu.pipeline_mode<synchronous>, transform_indices = @transform_4, window_bounds = array<i64: 1, 32>}, {pipeline_mode = #tpu.pipeline_mode<synchronous>, transform_indices = @transform_5, window_bounds = array<i64: 288, 32>}, {transform_indices = @transform_6, window_bounds = array<i64: 1, 8, 16, 32>}, {transform_indices = @transform_7, window_bounds = array<i64: 1, 1, 8, 32>}, {transform_indices = @transform_8, window_bounds = array<i64: 1, 1, 8, 32>}]} {
    %c0 = arith.constant 0 : index
    %c0_0 = arith.constant 0 : index
    %c0_1 = arith.constant 0 : index
    %c0_2 = arith.constant 0 : index
    %0 = vector.load %arg2[%c0, %c0_0, %c0_1, %c0_2] : memref<1x8x16x32xbf16, #tpu.memory_space<vmem>>, vector<1x8x16x32xbf16>
    %1 = vector.shape_cast %0 : vector<1x8x16x32xbf16> to vector<8x16x32xbf16>
    %2 = arith.extf %1 : vector<8x16x32xbf16> to vector<8x16x32xf32>
    %c0_3 = arith.constant 0 : index
    %c0_4 = arith.constant 0 : index
    %3 = vector.load %arg5[%c0_3, %c0_4] : memref<1x32xf32, #tpu.memory_space<vmem>>, vector<1x32xf32>
    %4 = vector.shape_cast %3 : vector<1x32xf32> to vector<1x1x32xf32>
    %5 = vector.broadcast %4 : vector<1x1x32xf32> to vector<8x16x32xf32>
    %6 = arith.mulf %2, %5 : vector<8x16x32xf32>
    %c0_5 = arith.constant 0 : index
    %c0_6 = arith.constant 0 : index
    %7 = vector.load %arg6[%c0_5, %c0_6] : memref<1x32xf32, #tpu.memory_space<vmem>>, vector<1x32xf32>
    %8 = vector.shape_cast %7 : vector<1x32xf32> to vector<1x1x32xf32>
    %9 = vector.broadcast %8 : vector<1x1x32xf32> to vector<8x16x32xf32>
    %10 = arith.addf %6, %9 : vector<8x16x32xf32>
    %cst = arith.constant 0.000000e+00 : f32
    %11 = vector.broadcast %cst : f32 to vector<8x16x32xf32>
    %12 = arith.maximumf %10, %11 : vector<8x16x32xf32>
    %c0_7 = arith.constant 0 : index
    %c0_8 = arith.constant 0 : index
    %c0_9 = arith.constant 0 : index
    %c0_10 = arith.constant 0 : index
    %13 = vector.load %arg3[%c0_7, %c0_8, %c0_9, %c0_10] : memref<1x1x16x32xbf16, #tpu.memory_space<vmem>>, vector<1x1x16x32xbf16>
    %14 = vector.shape_cast %13 : vector<1x1x16x32xbf16> to vector<1x16x32xbf16>
    %15 = arith.extf %14 : vector<1x16x32xbf16> to vector<1x16x32xf32>
    %c0_11 = arith.constant 0 : index
    %c0_12 = arith.constant 0 : index
    %16 = vector.load %arg5[%c0_11, %c0_12] : memref<1x32xf32, #tpu.memory_space<vmem>>, vector<1x32xf32>
    %17 = vector.shape_cast %16 : vector<1x32xf32> to vector<1x1x32xf32>
    %18 = vector.broadcast %17 : vector<1x1x32xf32> to vector<1x16x32xf32>
    %19 = arith.mulf %15, %18 : vector<1x16x32xf32>
    %c0_13 = arith.constant 0 : index
    %c0_14 = arith.constant 0 : index
    %20 = vector.load %arg6[%c0_13, %c0_14] : memref<1x32xf32, #tpu.memory_space<vmem>>, vector<1x32xf32>
    %21 = vector.shape_cast %20 : vector<1x32xf32> to vector<1x1x32xf32>
    %22 = vector.broadcast %21 : vector<1x1x32xf32> to vector<1x16x32xf32>
    %23 = arith.addf %19, %22 : vector<1x16x32xf32>
    %cst_15 = arith.constant 0.000000e+00 : f32
    %24 = vector.broadcast %cst_15 : f32 to vector<1x16x32xf32>
    %25 = arith.maximumf %23, %24 : vector<1x16x32xf32>
    %c0_16 = arith.constant 0 : index
    %c0_17 = arith.constant 0 : index
    %c0_18 = arith.constant 0 : index
    %c0_19 = arith.constant 0 : index
    %26 = vector.load %arg4[%c0_16, %c0_17, %c0_18, %c0_19] : memref<1x1x16x32xbf16, #tpu.memory_space<vmem>>, vector<1x1x16x32xbf16>
    %27 = vector.shape_cast %26 : vector<1x1x16x32xbf16> to vector<1x16x32xbf16>
    %28 = arith.extf %27 : vector<1x16x32xbf16> to vector<1x16x32xf32>
    %c0_20 = arith.constant 0 : index
    %c0_21 = arith.constant 0 : index
    %29 = vector.load %arg5[%c0_20, %c0_21] : memref<1x32xf32, #tpu.memory_space<vmem>>, vector<1x32xf32>
    %30 = vector.shape_cast %29 : vector<1x32xf32> to vector<1x1x32xf32>
    %31 = vector.broadcast %30 : vector<1x1x32xf32> to vector<1x16x32xf32>
    %32 = arith.mulf %28, %31 : vector<1x16x32xf32>
    %c0_22 = arith.constant 0 : index
    %c0_23 = arith.constant 0 : index
    %33 = vector.load %arg6[%c0_22, %c0_23] : memref<1x32xf32, #tpu.memory_space<vmem>>, vector<1x32xf32>
    %34 = vector.shape_cast %33 : vector<1x32xf32> to vector<1x1x32xf32>
    %35 = vector.broadcast %34 : vector<1x1x32xf32> to vector<1x16x32xf32>
    %36 = arith.addf %32, %35 : vector<1x16x32xf32>
    %cst_24 = arith.constant 0.000000e+00 : f32
    %37 = vector.broadcast %cst_24 : f32 to vector<1x16x32xf32>
    %38 = arith.maximumf %36, %37 : vector<1x16x32xf32>
    %c0_i32 = arith.constant 0 : i32
    %39 = arith.cmpi sgt, %arg1, %c0_i32 : i32
    %40 = arith.extui %39 : i1 to i32
    %41 = arith.sitofp %40 : i32 to f32
    %42 = vector.broadcast %41 : f32 to vector<1x16x32xf32>
    %43 = arith.mulf %25, %42 : vector<1x16x32xf32>
    %c1_i32 = arith.constant 1 : i32
    %44 = arith.cmpi slt, %arg1, %c1_i32 : i32
    %45 = arith.extui %44 : i1 to i32
    %46 = arith.sitofp %45 : i32 to f32
    %47 = vector.broadcast %46 : f32 to vector<1x16x32xf32>
    %48 = arith.mulf %38, %47 : vector<1x16x32xf32>
    %49 = tpu.concatenate %43, %12, %48 in 0 : vector<1x16x32xf32>, vector<8x16x32xf32>, vector<1x16x32xf32> -> vector<10x16x32xf32>
    %50 = arith.truncf %49 : vector<10x16x32xf32> to vector<10x16x32xbf16>
    %cst_25 = arith.constant 0.000000e+00 : bf16
    %51 = vector.broadcast %cst_25 : bf16 to vector<10x1x32xbf16>
    %52 = tpu.concatenate %51, %50, %51 in 1 : vector<10x1x32xbf16>, vector<10x16x32xbf16>, vector<10x1x32xbf16> -> vector<10x18x32xbf16>
    %53 = vector.extract_strided_slice %52 {offsets = [0, 0, 0], sizes = [8, 16, 32], strides = [1, 1, 1]} : vector<10x18x32xbf16> to vector<8x16x32xbf16>
    %54 = vector.extract_strided_slice %52 {offsets = [0, 1, 0], sizes = [8, 16, 32], strides = [1, 1, 1]} : vector<10x18x32xbf16> to vector<8x16x32xbf16>
    %55 = vector.extract_strided_slice %52 {offsets = [0, 2, 0], sizes = [8, 16, 32], strides = [1, 1, 1]} : vector<10x18x32xbf16> to vector<8x16x32xbf16>
    %56 = vector.extract_strided_slice %52 {offsets = [1, 0, 0], sizes = [8, 16, 32], strides = [1, 1, 1]} : vector<10x18x32xbf16> to vector<8x16x32xbf16>
    %57 = vector.extract_strided_slice %52 {offsets = [1, 1, 0], sizes = [8, 16, 32], strides = [1, 1, 1]} : vector<10x18x32xbf16> to vector<8x16x32xbf16>
    %58 = vector.extract_strided_slice %52 {offsets = [1, 2, 0], sizes = [8, 16, 32], strides = [1, 1, 1]} : vector<10x18x32xbf16> to vector<8x16x32xbf16>
    %59 = vector.extract_strided_slice %52 {offsets = [2, 0, 0], sizes = [8, 16, 32], strides = [1, 1, 1]} : vector<10x18x32xbf16> to vector<8x16x32xbf16>
    %60 = vector.extract_strided_slice %52 {offsets = [2, 1, 0], sizes = [8, 16, 32], strides = [1, 1, 1]} : vector<10x18x32xbf16> to vector<8x16x32xbf16>
    %61 = vector.extract_strided_slice %52 {offsets = [2, 2, 0], sizes = [8, 16, 32], strides = [1, 1, 1]} : vector<10x18x32xbf16> to vector<8x16x32xbf16>
    %62 = tpu.concatenate %53, %54, %55, %56, %57, %58, %59, %60, %61 in 2 : vector<8x16x32xbf16>, vector<8x16x32xbf16>, vector<8x16x32xbf16>, vector<8x16x32xbf16>, vector<8x16x32xbf16>, vector<8x16x32xbf16>, vector<8x16x32xbf16>, vector<8x16x32xbf16>, vector<8x16x32xbf16> -> vector<8x16x288xbf16>
    %63 = vector.shape_cast %62 : vector<8x16x288xbf16> to vector<128x288xbf16>
    %c0_26 = arith.constant 0 : index
    %c0_27 = arith.constant 0 : index
    %64 = vector.load %arg7[%c0_26, %c0_27] : memref<288x32xbf16, #tpu.memory_space<vmem>>, vector<288x32xbf16>
    %cst_28 = arith.constant dense<0.000000e+00> : vector<128x32xf32>
    %65 = tpu.matmul %63, %64, %cst_28 {dimension_numbers = #tpu.dot_dimension_numbers<[1], [0], [0], [1], [0, 0, 1, 1], [], []>} : vector<128x288xbf16>, vector<288x32xbf16>, vector<128x32xf32> -> vector<128x32xf32>
    %66 = vector.shape_cast %65 : vector<128x32xf32> to vector<16x8x32xf32>
    %cst_29 = arith.constant dense<0.000000e+00> : vector<8x32xf32>
    %67 = vector.multi_reduction <add>, %66, %cst_29 [0] : vector<16x8x32xf32> to vector<8x32xf32>
    %cst_30 = arith.constant dense<0.000000e+00> : vector<32xf32>
    %68 = vector.multi_reduction <add>, %67, %cst_30 [0] : vector<8x32xf32> to vector<32xf32>
    %69 = vector.shape_cast %68 : vector<32xf32> to vector<1x32xf32>
    %cst_31 = arith.constant 1.280000e+02 : f32
    %70 = vector.broadcast %cst_31 : f32 to vector<1x32xf32>
    %71 = arith.divf %69, %70 : vector<1x32xf32>
    %72 = vector.broadcast %71 : vector<1x32xf32> to vector<128x32xf32>
    %73 = arith.subf %65, %72 : vector<128x32xf32>
    %74 = arith.mulf %73, %73 : vector<128x32xf32>
    %75 = vector.shape_cast %74 : vector<128x32xf32> to vector<16x8x32xf32>
    %cst_32 = arith.constant dense<0.000000e+00> : vector<8x32xf32>
    %76 = vector.multi_reduction <add>, %75, %cst_32 [0] : vector<16x8x32xf32> to vector<8x32xf32>
    %c0_33 = arith.constant 0 : index
    %c0_34 = arith.constant 0 : index
    %c0_35 = arith.constant 0 : index
    %c0_36 = arith.constant 0 : index
    %77 = vector.load %arg9[%c0_33, %c0_34, %c0_35, %c0_36] : memref<1x1x8x32xf32, #tpu.memory_space<vmem>>, vector<1x1x8x32xf32>
    %78 = vector.shape_cast %77 : vector<1x1x8x32xf32> to vector<8x32xf32>
    %79 = vector.shape_cast %67 : vector<8x32xf32> to vector<1x1x8x32xf32>
    tpu.vector_store %arg9[%c0_33, %c0_34, %c0_35, %c0_36], %79 {strides = array<i32>} : memref<1x1x8x32xf32, #tpu.memory_space<vmem>>, vector<1x1x8x32xf32>,
    %c0_37 = arith.constant 0 : index
    %c0_38 = arith.constant 0 : index
    %c0_39 = arith.constant 0 : index
    %c0_40 = arith.constant 0 : index
    %80 = vector.load %arg10[%c0_37, %c0_38, %c0_39, %c0_40] : memref<1x1x8x32xf32, #tpu.memory_space<vmem>>, vector<1x1x8x32xf32>
    %81 = vector.shape_cast %80 : vector<1x1x8x32xf32> to vector<8x32xf32>
    %82 = vector.shape_cast %76 : vector<8x32xf32> to vector<1x1x8x32xf32>
    tpu.vector_store %arg10[%c0_37, %c0_38, %c0_39, %c0_40], %82 {strides = array<i32>} : memref<1x1x8x32xf32, #tpu.memory_space<vmem>>, vector<1x1x8x32xf32>,
    %83 = vector.shape_cast %65 : vector<128x32xf32> to vector<8x16x32xf32>
    %84 = arith.truncf %83 : vector<8x16x32xf32> to vector<8x16x32xbf16>
    %c0_41 = arith.constant 0 : index
    %c0_42 = arith.constant 0 : index
    %c0_43 = arith.constant 0 : index
    %c0_44 = arith.constant 0 : index
    %85 = vector.load %arg8[%c0_41, %c0_42, %c0_43, %c0_44] : memref<1x8x16x32xbf16, #tpu.memory_space<vmem>>, vector<1x8x16x32xbf16>
    %86 = vector.shape_cast %85 : vector<1x8x16x32xbf16> to vector<8x16x32xbf16>
    %87 = vector.shape_cast %84 : vector<8x16x32xbf16> to vector<1x8x16x32xbf16>
    tpu.vector_store %arg8[%c0_41, %c0_42, %c0_43, %c0_44], %87 {strides = array<i32>} : memref<1x8x16x32xbf16, #tpu.memory_space<vmem>>, vector<1x8x16x32xbf16>,
    return
  }
  func.func @transform_0(%arg0: i32, %arg1: i32) -> (i32, i32, i32, i32) {
    %c0_i32 = arith.constant 0 : i32
    %c0_i32_0 = arith.constant 0 : i32
    %c0_i32_1 = arith.constant 0 : i32
    return %arg0, %arg1, %c0_i32, %c0_i32_0 : i32, i32, i32, i32
  }
  func.func @transform_1(%arg0: i32, %arg1: i32) -> (i32, i32, i32, i32) {
    %c8_i32 = arith.constant 8 : i32
    %0 = arith.muli %arg1, %c8_i32 : i32
    %c1_i32 = arith.constant 1 : i32
    %1 = arith.subi %0, %c1_i32 : i32
    %c0_i32 = arith.constant 0 : i32
    %2 = arith.maxsi %1, %c0_i32 : i32
    %c0_i32_0 = arith.constant 0 : i32
    %c0_i32_1 = arith.constant 0 : i32
    %c0_i32_2 = arith.constant 0 : i32
    return %arg0, %2, %c0_i32_0, %c0_i32_1 : i32, i32, i32, i32
  }
  func.func @transform_2(%arg0: i32, %arg1: i32) -> (i32, i32, i32, i32) {
    %c1_i32 = arith.constant 1 : i32
    %0 = arith.addi %arg1, %c1_i32 : i32
    %c8_i32 = arith.constant 8 : i32
    %1 = arith.muli %0, %c8_i32 : i32
    %c15_i32 = arith.constant 15 : i32
    %2 = arith.minsi %1, %c15_i32 : i32
    %c0_i32 = arith.constant 0 : i32
    %c0_i32_0 = arith.constant 0 : i32
    %c0_i32_1 = arith.constant 0 : i32
    return %arg0, %2, %c0_i32, %c0_i32_0 : i32, i32, i32, i32
  }
  func.func @transform_3(%arg0: i32, %arg1: i32) -> (i32, i32) {
    %c0_i32 = arith.constant 0 : i32
    %c0_i32_0 = arith.constant 0 : i32
    %c0_i32_1 = arith.constant 0 : i32
    return %c0_i32, %c0_i32_0 : i32, i32
  }
  func.func @transform_4(%arg0: i32, %arg1: i32) -> (i32, i32) {
    %c0_i32 = arith.constant 0 : i32
    %c0_i32_0 = arith.constant 0 : i32
    %c0_i32_1 = arith.constant 0 : i32
    return %c0_i32, %c0_i32_0 : i32, i32
  }
  func.func @transform_5(%arg0: i32, %arg1: i32) -> (i32, i32) {
    %c0_i32 = arith.constant 0 : i32
    %c0_i32_0 = arith.constant 0 : i32
    %c0_i32_1 = arith.constant 0 : i32
    return %c0_i32, %c0_i32_0 : i32, i32
  }
  func.func @transform_6(%arg0: i32, %arg1: i32) -> (i32, i32, i32, i32) {
    %c0_i32 = arith.constant 0 : i32
    %c0_i32_0 = arith.constant 0 : i32
    %c0_i32_1 = arith.constant 0 : i32
    return %arg0, %arg1, %c0_i32, %c0_i32_0 : i32, i32, i32, i32
  }
  func.func @transform_7(%arg0: i32, %arg1: i32) -> (i32, i32, i32, i32) {
    %c0_i32 = arith.constant 0 : i32
    %c0_i32_0 = arith.constant 0 : i32
    %c0_i32_1 = arith.constant 0 : i32
    return %arg0, %arg1, %c0_i32, %c0_i32_0 : i32, i32, i32, i32
  }
  func.func @transform_8(%arg0: i32, %arg1: i32) -> (i32, i32, i32, i32) {
    %c0_i32 = arith.constant 0 : i32
    %c0_i32_0 = arith.constant 0 : i32
    %c0_i32_1 = arith.constant 0 : i32
    return %arg0, %arg1, %c0_i32, %c0_i32_0 : i32, i32, i32, i32
  }
}

module attributes {stable_mosaic.version = 11 : i64} {
  func.func @_conv3x3_kernel(%arg0: i32, %arg1: i32, %arg2: memref<1x8x16x32xbf16, #tpu.memory_space<vmem>>, %arg3: memref<1x1x16x32xbf16, #tpu.memory_space<vmem>>, %arg4: memref<1x1x16x32xbf16, #tpu.memory_space<vmem>>, %arg5: memref<1x8x16x1xf32, #tpu.memory_space<vmem>>, %arg6: memref<1x1x16x1xf32, #tpu.memory_space<vmem>>, %arg7: memref<1x1x16x1xf32, #tpu.memory_space<vmem>>, %arg8: memref<1x32xf32, #tpu.memory_space<vmem>>, %arg9: memref<1x32xf32, #tpu.memory_space<vmem>>, %arg10: memref<288x32xbf16, #tpu.memory_space<vmem>>, %arg11: memref<1x8x16x32xbf16, #tpu.memory_space<vmem>>, %arg12: memref<1x8x16x32xbf16, #tpu.memory_space<vmem>>, %arg13: memref<1x1x8x32xf32, #tpu.memory_space<vmem>>, %arg14: memref<1x1x8x32xf32, #tpu.memory_space<vmem>>) attributes {dimension_semantics = [#tpu.dimension_semantics<parallel>, #tpu.dimension_semantics<parallel>], iteration_bounds = array<i64: 2, 2>, scalar_prefetch = 0 : i64, scratch_operands = 0 : i64, tpu.core_type = #tpu.core_type<tc>, window_params = [{transform_indices = @transform_0, window_bounds = array<i64: 1, 8, 16, 32>}, {transform_indices = @transform_1, window_bounds = array<i64: 1, 1, 16, 32>}, {transform_indices = @transform_2, window_bounds = array<i64: 1, 1, 16, 32>}, {transform_indices = @transform_3, window_bounds = array<i64: 1, 8, 16, 1>}, {transform_indices = @transform_4, window_bounds = array<i64: 1, 1, 16, 1>}, {transform_indices = @transform_5, window_bounds = array<i64: 1, 1, 16, 1>}, {pipeline_mode = #tpu.pipeline_mode<synchronous>, transform_indices = @transform_6, window_bounds = array<i64: 1, 32>}, {pipeline_mode = #tpu.pipeline_mode<synchronous>, transform_indices = @transform_7, window_bounds = array<i64: 1, 32>}, {pipeline_mode = #tpu.pipeline_mode<synchronous>, transform_indices = @transform_8, window_bounds = array<i64: 288, 32>}, {transform_indices = @transform_9, window_bounds = array<i64: 1, 8, 16, 32>}, {transform_indices = @transform_10, window_bounds = array<i64: 1, 8, 16, 32>}, {transform_indices = @transform_11, window_bounds = array<i64: 1, 1, 8, 32>}, {transform_indices = @transform_12, window_bounds = array<i64: 1, 1, 8, 32>}]} {
    %c0 = arith.constant 0 : index
    %c0_0 = arith.constant 0 : index
    %c0_1 = arith.constant 0 : index
    %c0_2 = arith.constant 0 : index
    %0 = vector.load %arg2[%c0, %c0_0, %c0_1, %c0_2] : memref<1x8x16x32xbf16, #tpu.memory_space<vmem>>, vector<1x8x16x32xbf16>
    %1 = vector.shape_cast %0 : vector<1x8x16x32xbf16> to vector<8x16x32xbf16>
    %2 = arith.extf %1 : vector<8x16x32xbf16> to vector<8x16x32xf32>
    %c0_3 = arith.constant 0 : index
    %c0_4 = arith.constant 0 : index
    %3 = vector.load %arg8[%c0_3, %c0_4] : memref<1x32xf32, #tpu.memory_space<vmem>>, vector<1x32xf32>
    %4 = vector.shape_cast %3 : vector<1x32xf32> to vector<1x1x32xf32>
    %5 = vector.broadcast %4 : vector<1x1x32xf32> to vector<8x16x32xf32>
    %6 = arith.mulf %2, %5 : vector<8x16x32xf32>
    %c0_5 = arith.constant 0 : index
    %c0_6 = arith.constant 0 : index
    %7 = vector.load %arg9[%c0_5, %c0_6] : memref<1x32xf32, #tpu.memory_space<vmem>>, vector<1x32xf32>
    %8 = vector.shape_cast %7 : vector<1x32xf32> to vector<1x1x32xf32>
    %9 = vector.broadcast %8 : vector<1x1x32xf32> to vector<8x16x32xf32>
    %10 = arith.addf %6, %9 : vector<8x16x32xf32>
    %c0_7 = arith.constant 0 : index
    %c0_8 = arith.constant 0 : index
    %c0_9 = arith.constant 0 : index
    %c0_10 = arith.constant 0 : index
    %11 = vector.load %arg5[%c0_7, %c0_8, %c0_9, %c0_10] : memref<1x8x16x1xf32, #tpu.memory_space<vmem>>, vector<1x8x16x1xf32>
    %12 = vector.shape_cast %11 : vector<1x8x16x1xf32> to vector<8x16x1xf32>
    %13 = vector.broadcast %12 : vector<8x16x1xf32> to vector<8x16x32xf32>
    %14 = arith.addf %10, %13 : vector<8x16x32xf32>
    %cst = arith.constant 0.000000e+00 : f32
    %15 = vector.broadcast %cst : f32 to vector<8x16x32xf32>
    %16 = arith.maximumf %14, %15 : vector<8x16x32xf32>
    %c0_11 = arith.constant 0 : index
    %c0_12 = arith.constant 0 : index
    %c0_13 = arith.constant 0 : index
    %c0_14 = arith.constant 0 : index
    %17 = vector.load %arg3[%c0_11, %c0_12, %c0_13, %c0_14] : memref<1x1x16x32xbf16, #tpu.memory_space<vmem>>, vector<1x1x16x32xbf16>
    %18 = vector.shape_cast %17 : vector<1x1x16x32xbf16> to vector<1x16x32xbf16>
    %19 = arith.extf %18 : vector<1x16x32xbf16> to vector<1x16x32xf32>
    %c0_15 = arith.constant 0 : index
    %c0_16 = arith.constant 0 : index
    %20 = vector.load %arg8[%c0_15, %c0_16] : memref<1x32xf32, #tpu.memory_space<vmem>>, vector<1x32xf32>
    %21 = vector.shape_cast %20 : vector<1x32xf32> to vector<1x1x32xf32>
    %22 = vector.broadcast %21 : vector<1x1x32xf32> to vector<1x16x32xf32>
    %23 = arith.mulf %19, %22 : vector<1x16x32xf32>
    %c0_17 = arith.constant 0 : index
    %c0_18 = arith.constant 0 : index
    %24 = vector.load %arg9[%c0_17, %c0_18] : memref<1x32xf32, #tpu.memory_space<vmem>>, vector<1x32xf32>
    %25 = vector.shape_cast %24 : vector<1x32xf32> to vector<1x1x32xf32>
    %26 = vector.broadcast %25 : vector<1x1x32xf32> to vector<1x16x32xf32>
    %27 = arith.addf %23, %26 : vector<1x16x32xf32>
    %c0_19 = arith.constant 0 : index
    %c0_20 = arith.constant 0 : index
    %c0_21 = arith.constant 0 : index
    %c0_22 = arith.constant 0 : index
    %28 = vector.load %arg6[%c0_19, %c0_20, %c0_21, %c0_22] : memref<1x1x16x1xf32, #tpu.memory_space<vmem>>, vector<1x1x16x1xf32>
    %29 = vector.shape_cast %28 : vector<1x1x16x1xf32> to vector<1x16x1xf32>
    %30 = vector.broadcast %29 : vector<1x16x1xf32> to vector<1x16x32xf32>
    %31 = arith.addf %27, %30 : vector<1x16x32xf32>
    %cst_23 = arith.constant 0.000000e+00 : f32
    %32 = vector.broadcast %cst_23 : f32 to vector<1x16x32xf32>
    %33 = arith.maximumf %31, %32 : vector<1x16x32xf32>
    %c0_24 = arith.constant 0 : index
    %c0_25 = arith.constant 0 : index
    %c0_26 = arith.constant 0 : index
    %c0_27 = arith.constant 0 : index
    %34 = vector.load %arg4[%c0_24, %c0_25, %c0_26, %c0_27] : memref<1x1x16x32xbf16, #tpu.memory_space<vmem>>, vector<1x1x16x32xbf16>
    %35 = vector.shape_cast %34 : vector<1x1x16x32xbf16> to vector<1x16x32xbf16>
    %36 = arith.extf %35 : vector<1x16x32xbf16> to vector<1x16x32xf32>
    %c0_28 = arith.constant 0 : index
    %c0_29 = arith.constant 0 : index
    %37 = vector.load %arg8[%c0_28, %c0_29] : memref<1x32xf32, #tpu.memory_space<vmem>>, vector<1x32xf32>
    %38 = vector.shape_cast %37 : vector<1x32xf32> to vector<1x1x32xf32>
    %39 = vector.broadcast %38 : vector<1x1x32xf32> to vector<1x16x32xf32>
    %40 = arith.mulf %36, %39 : vector<1x16x32xf32>
    %c0_30 = arith.constant 0 : index
    %c0_31 = arith.constant 0 : index
    %41 = vector.load %arg9[%c0_30, %c0_31] : memref<1x32xf32, #tpu.memory_space<vmem>>, vector<1x32xf32>
    %42 = vector.shape_cast %41 : vector<1x32xf32> to vector<1x1x32xf32>
    %43 = vector.broadcast %42 : vector<1x1x32xf32> to vector<1x16x32xf32>
    %44 = arith.addf %40, %43 : vector<1x16x32xf32>
    %c0_32 = arith.constant 0 : index
    %c0_33 = arith.constant 0 : index
    %c0_34 = arith.constant 0 : index
    %c0_35 = arith.constant 0 : index
    %45 = vector.load %arg7[%c0_32, %c0_33, %c0_34, %c0_35] : memref<1x1x16x1xf32, #tpu.memory_space<vmem>>, vector<1x1x16x1xf32>
    %46 = vector.shape_cast %45 : vector<1x1x16x1xf32> to vector<1x16x1xf32>
    %47 = vector.broadcast %46 : vector<1x16x1xf32> to vector<1x16x32xf32>
    %48 = arith.addf %44, %47 : vector<1x16x32xf32>
    %cst_36 = arith.constant 0.000000e+00 : f32
    %49 = vector.broadcast %cst_36 : f32 to vector<1x16x32xf32>
    %50 = arith.maximumf %48, %49 : vector<1x16x32xf32>
    %c0_i32 = arith.constant 0 : i32
    %51 = arith.cmpi sgt, %arg1, %c0_i32 : i32
    %52 = arith.extui %51 : i1 to i32
    %53 = arith.sitofp %52 : i32 to f32
    %54 = vector.broadcast %53 : f32 to vector<1x16x32xf32>
    %55 = arith.mulf %33, %54 : vector<1x16x32xf32>
    %c1_i32 = arith.constant 1 : i32
    %56 = arith.cmpi slt, %arg1, %c1_i32 : i32
    %57 = arith.extui %56 : i1 to i32
    %58 = arith.sitofp %57 : i32 to f32
    %59 = vector.broadcast %58 : f32 to vector<1x16x32xf32>
    %60 = arith.mulf %50, %59 : vector<1x16x32xf32>
    %61 = arith.truncf %16 : vector<8x16x32xf32> to vector<8x16x32xbf16>
    %c0_37 = arith.constant 0 : index
    %c0_38 = arith.constant 0 : index
    %c0_39 = arith.constant 0 : index
    %c0_40 = arith.constant 0 : index
    %62 = vector.load %arg12[%c0_37, %c0_38, %c0_39, %c0_40] : memref<1x8x16x32xbf16, #tpu.memory_space<vmem>>, vector<1x8x16x32xbf16>
    %63 = vector.shape_cast %62 : vector<1x8x16x32xbf16> to vector<8x16x32xbf16>
    %64 = vector.shape_cast %61 : vector<8x16x32xbf16> to vector<1x8x16x32xbf16>
    tpu.vector_store %arg12[%c0_37, %c0_38, %c0_39, %c0_40], %64 {strides = array<i32>} : memref<1x8x16x32xbf16, #tpu.memory_space<vmem>>, vector<1x8x16x32xbf16>,
    %65 = tpu.concatenate %55, %16, %60 in 0 : vector<1x16x32xf32>, vector<8x16x32xf32>, vector<1x16x32xf32> -> vector<10x16x32xf32>
    %66 = arith.truncf %65 : vector<10x16x32xf32> to vector<10x16x32xbf16>
    %cst_41 = arith.constant 0.000000e+00 : bf16
    %67 = vector.broadcast %cst_41 : bf16 to vector<10x1x32xbf16>
    %68 = tpu.concatenate %67, %66, %67 in 1 : vector<10x1x32xbf16>, vector<10x16x32xbf16>, vector<10x1x32xbf16> -> vector<10x18x32xbf16>
    %69 = vector.extract_strided_slice %68 {offsets = [0, 0, 0], sizes = [8, 16, 32], strides = [1, 1, 1]} : vector<10x18x32xbf16> to vector<8x16x32xbf16>
    %70 = vector.extract_strided_slice %68 {offsets = [0, 1, 0], sizes = [8, 16, 32], strides = [1, 1, 1]} : vector<10x18x32xbf16> to vector<8x16x32xbf16>
    %71 = vector.extract_strided_slice %68 {offsets = [0, 2, 0], sizes = [8, 16, 32], strides = [1, 1, 1]} : vector<10x18x32xbf16> to vector<8x16x32xbf16>
    %72 = vector.extract_strided_slice %68 {offsets = [1, 0, 0], sizes = [8, 16, 32], strides = [1, 1, 1]} : vector<10x18x32xbf16> to vector<8x16x32xbf16>
    %73 = vector.extract_strided_slice %68 {offsets = [1, 1, 0], sizes = [8, 16, 32], strides = [1, 1, 1]} : vector<10x18x32xbf16> to vector<8x16x32xbf16>
    %74 = vector.extract_strided_slice %68 {offsets = [1, 2, 0], sizes = [8, 16, 32], strides = [1, 1, 1]} : vector<10x18x32xbf16> to vector<8x16x32xbf16>
    %75 = vector.extract_strided_slice %68 {offsets = [2, 0, 0], sizes = [8, 16, 32], strides = [1, 1, 1]} : vector<10x18x32xbf16> to vector<8x16x32xbf16>
    %76 = vector.extract_strided_slice %68 {offsets = [2, 1, 0], sizes = [8, 16, 32], strides = [1, 1, 1]} : vector<10x18x32xbf16> to vector<8x16x32xbf16>
    %77 = vector.extract_strided_slice %68 {offsets = [2, 2, 0], sizes = [8, 16, 32], strides = [1, 1, 1]} : vector<10x18x32xbf16> to vector<8x16x32xbf16>
    %78 = tpu.concatenate %69, %70, %71, %72, %73, %74, %75, %76, %77 in 2 : vector<8x16x32xbf16>, vector<8x16x32xbf16>, vector<8x16x32xbf16>, vector<8x16x32xbf16>, vector<8x16x32xbf16>, vector<8x16x32xbf16>, vector<8x16x32xbf16>, vector<8x16x32xbf16>, vector<8x16x32xbf16> -> vector<8x16x288xbf16>
    %79 = vector.shape_cast %78 : vector<8x16x288xbf16> to vector<128x288xbf16>
    %c0_42 = arith.constant 0 : index
    %c0_43 = arith.constant 0 : index
    %80 = vector.load %arg10[%c0_42, %c0_43] : memref<288x32xbf16, #tpu.memory_space<vmem>>, vector<288x32xbf16>
    %cst_44 = arith.constant dense<0.000000e+00> : vector<128x32xf32>
    %81 = tpu.matmul %79, %80, %cst_44 {dimension_numbers = #tpu.dot_dimension_numbers<[1], [0], [0], [1], [0, 0, 1, 1], [], []>} : vector<128x288xbf16>, vector<288x32xbf16>, vector<128x32xf32> -> vector<128x32xf32>
    %82 = vector.shape_cast %81 : vector<128x32xf32> to vector<16x8x32xf32>
    %cst_45 = arith.constant dense<0.000000e+00> : vector<8x32xf32>
    %83 = vector.multi_reduction <add>, %82, %cst_45 [0] : vector<16x8x32xf32> to vector<8x32xf32>
    %cst_46 = arith.constant dense<0.000000e+00> : vector<32xf32>
    %84 = vector.multi_reduction <add>, %83, %cst_46 [0] : vector<8x32xf32> to vector<32xf32>
    %85 = vector.shape_cast %84 : vector<32xf32> to vector<1x32xf32>
    %cst_47 = arith.constant 1.280000e+02 : f32
    %86 = vector.broadcast %cst_47 : f32 to vector<1x32xf32>
    %87 = arith.divf %85, %86 : vector<1x32xf32>
    %88 = vector.broadcast %87 : vector<1x32xf32> to vector<128x32xf32>
    %89 = arith.subf %81, %88 : vector<128x32xf32>
    %90 = arith.mulf %89, %89 : vector<128x32xf32>
    %91 = vector.shape_cast %90 : vector<128x32xf32> to vector<16x8x32xf32>
    %cst_48 = arith.constant dense<0.000000e+00> : vector<8x32xf32>
    %92 = vector.multi_reduction <add>, %91, %cst_48 [0] : vector<16x8x32xf32> to vector<8x32xf32>
    %c0_49 = arith.constant 0 : index
    %c0_50 = arith.constant 0 : index
    %c0_51 = arith.constant 0 : index
    %c0_52 = arith.constant 0 : index
    %93 = vector.load %arg13[%c0_49, %c0_50, %c0_51, %c0_52] : memref<1x1x8x32xf32, #tpu.memory_space<vmem>>, vector<1x1x8x32xf32>
    %94 = vector.shape_cast %93 : vector<1x1x8x32xf32> to vector<8x32xf32>
    %95 = vector.shape_cast %83 : vector<8x32xf32> to vector<1x1x8x32xf32>
    tpu.vector_store %arg13[%c0_49, %c0_50, %c0_51, %c0_52], %95 {strides = array<i32>} : memref<1x1x8x32xf32, #tpu.memory_space<vmem>>, vector<1x1x8x32xf32>,
    %c0_53 = arith.constant 0 : index
    %c0_54 = arith.constant 0 : index
    %c0_55 = arith.constant 0 : index
    %c0_56 = arith.constant 0 : index
    %96 = vector.load %arg14[%c0_53, %c0_54, %c0_55, %c0_56] : memref<1x1x8x32xf32, #tpu.memory_space<vmem>>, vector<1x1x8x32xf32>
    %97 = vector.shape_cast %96 : vector<1x1x8x32xf32> to vector<8x32xf32>
    %98 = vector.shape_cast %92 : vector<8x32xf32> to vector<1x1x8x32xf32>
    tpu.vector_store %arg14[%c0_53, %c0_54, %c0_55, %c0_56], %98 {strides = array<i32>} : memref<1x1x8x32xf32, #tpu.memory_space<vmem>>, vector<1x1x8x32xf32>,
    %99 = vector.shape_cast %81 : vector<128x32xf32> to vector<8x16x32xf32>
    %100 = arith.truncf %99 : vector<8x16x32xf32> to vector<8x16x32xbf16>
    %c0_57 = arith.constant 0 : index
    %c0_58 = arith.constant 0 : index
    %c0_59 = arith.constant 0 : index
    %c0_60 = arith.constant 0 : index
    %101 = vector.load %arg11[%c0_57, %c0_58, %c0_59, %c0_60] : memref<1x8x16x32xbf16, #tpu.memory_space<vmem>>, vector<1x8x16x32xbf16>
    %102 = vector.shape_cast %101 : vector<1x8x16x32xbf16> to vector<8x16x32xbf16>
    %103 = vector.shape_cast %100 : vector<8x16x32xbf16> to vector<1x8x16x32xbf16>
    tpu.vector_store %arg11[%c0_57, %c0_58, %c0_59, %c0_60], %103 {strides = array<i32>} : memref<1x8x16x32xbf16, #tpu.memory_space<vmem>>, vector<1x8x16x32xbf16>,
    return
  }
  func.func @transform_0(%arg0: i32, %arg1: i32) -> (i32, i32, i32, i32) {
    %c0_i32 = arith.constant 0 : i32
    %c0_i32_0 = arith.constant 0 : i32
    %c0_i32_1 = arith.constant 0 : i32
    return %arg0, %arg1, %c0_i32, %c0_i32_0 : i32, i32, i32, i32
  }
  func.func @transform_1(%arg0: i32, %arg1: i32) -> (i32, i32, i32, i32) {
    %c8_i32 = arith.constant 8 : i32
    %0 = arith.muli %arg1, %c8_i32 : i32
    %c1_i32 = arith.constant 1 : i32
    %1 = arith.subi %0, %c1_i32 : i32
    %c0_i32 = arith.constant 0 : i32
    %2 = arith.maxsi %1, %c0_i32 : i32
    %c0_i32_0 = arith.constant 0 : i32
    %c0_i32_1 = arith.constant 0 : i32
    %c0_i32_2 = arith.constant 0 : i32
    return %arg0, %2, %c0_i32_0, %c0_i32_1 : i32, i32, i32, i32
  }
  func.func @transform_2(%arg0: i32, %arg1: i32) -> (i32, i32, i32, i32) {
    %c1_i32 = arith.constant 1 : i32
    %0 = arith.addi %arg1, %c1_i32 : i32
    %c8_i32 = arith.constant 8 : i32
    %1 = arith.muli %0, %c8_i32 : i32
    %c15_i32 = arith.constant 15 : i32
    %2 = arith.minsi %1, %c15_i32 : i32
    %c0_i32 = arith.constant 0 : i32
    %c0_i32_0 = arith.constant 0 : i32
    %c0_i32_1 = arith.constant 0 : i32
    return %arg0, %2, %c0_i32, %c0_i32_0 : i32, i32, i32, i32
  }
  func.func @transform_3(%arg0: i32, %arg1: i32) -> (i32, i32, i32, i32) {
    %c0_i32 = arith.constant 0 : i32
    %c0_i32_0 = arith.constant 0 : i32
    %c0_i32_1 = arith.constant 0 : i32
    return %arg0, %arg1, %c0_i32, %c0_i32_0 : i32, i32, i32, i32
  }
  func.func @transform_4(%arg0: i32, %arg1: i32) -> (i32, i32, i32, i32) {
    %c8_i32 = arith.constant 8 : i32
    %0 = arith.muli %arg1, %c8_i32 : i32
    %c1_i32 = arith.constant 1 : i32
    %1 = arith.subi %0, %c1_i32 : i32
    %c0_i32 = arith.constant 0 : i32
    %2 = arith.maxsi %1, %c0_i32 : i32
    %c0_i32_0 = arith.constant 0 : i32
    %c0_i32_1 = arith.constant 0 : i32
    %c0_i32_2 = arith.constant 0 : i32
    return %arg0, %2, %c0_i32_0, %c0_i32_1 : i32, i32, i32, i32
  }
  func.func @transform_5(%arg0: i32, %arg1: i32) -> (i32, i32, i32, i32) {
    %c1_i32 = arith.constant 1 : i32
    %0 = arith.addi %arg1, %c1_i32 : i32
    %c8_i32 = arith.constant 8 : i32
    %1 = arith.muli %0, %c8_i32 : i32
    %c15_i32 = arith.constant 15 : i32
    %2 = arith.minsi %1, %c15_i32 : i32
    %c0_i32 = arith.constant 0 : i32
    %c0_i32_0 = arith.constant 0 : i32
    %c0_i32_1 = arith.constant 0 : i32
    return %arg0, %2, %c0_i32, %c0_i32_0 : i32, i32, i32, i32
  }
  func.func @transform_6(%arg0: i32, %arg1: i32) -> (i32, i32) {
    %c0_i32 = arith.constant 0 : i32
    %c0_i32_0 = arith.constant 0 : i32
    %c0_i32_1 = arith.constant 0 : i32
    return %c0_i32, %c0_i32_0 : i32, i32
  }
  func.func @transform_7(%arg0: i32, %arg1: i32) -> (i32, i32) {
    %c0_i32 = arith.constant 0 : i32
    %c0_i32_0 = arith.constant 0 : i32
    %c0_i32_1 = arith.constant 0 : i32
    return %c0_i32, %c0_i32_0 : i32, i32
  }
  func.func @transform_8(%arg0: i32, %arg1: i32) -> (i32, i32) {
    %c0_i32 = arith.constant 0 : i32
    %c0_i32_0 = arith.constant 0 : i32
    %c0_i32_1 = arith.constant 0 : i32
    return %c0_i32, %c0_i32_0 : i32, i32
  }
  func.func @transform_9(%arg0: i32, %arg1: i32) -> (i32, i32, i32, i32) {
    %c0_i32 = arith.constant 0 : i32
    %c0_i32_0 = arith.constant 0 : i32
    %c0_i32_1 = arith.constant 0 : i32
    return %arg0, %arg1, %c0_i32, %c0_i32_0 : i32, i32, i32, i32
  }
  func.func @transform_10(%arg0: i32, %arg1: i32) -> (i32, i32, i32, i32) {
    %c0_i32 = arith.constant 0 : i32
    %c0_i32_0 = arith.constant 0 : i32
    %c0_i32_1 = arith.constant 0 : i32
    return %arg0, %arg1, %c0_i32, %c0_i32_0 : i32, i32, i32, i32
  }
  func.func @transform_11(%arg0: i32, %arg1: i32) -> (i32, i32, i32, i32) {
    %c0_i32 = arith.constant 0 : i32
    %c0_i32_0 = arith.constant 0 : i32
    %c0_i32_1 = arith.constant 0 : i32
    return %arg0, %arg1, %c0_i32, %c0_i32_0 : i32, i32, i32, i32
  }
  func.func @transform_12(%arg0: i32, %arg1: i32) -> (i32, i32, i32, i32) {
    %c0_i32 = arith.constant 0 : i32
    %c0_i32_0 = arith.constant 0 : i32
    %c0_i32_1 = arith.constant 0 : i32
    return %arg0, %arg1, %c0_i32, %c0_i32_0 : i32, i32, i32, i32
  }
}

module attributes {stable_mosaic.version = 11 : i64} {
  func.func @_tail_kernel(%arg0: i32, %arg1: i32, %arg2: memref<1x8x16x32xbf16, #tpu.memory_space<vmem>>, %arg3: memref<1x32xf32, #tpu.memory_space<vmem>>, %arg4: memref<1x32xf32, #tpu.memory_space<vmem>>, %arg5: memref<1x8x16x32xbf16, #tpu.memory_space<vmem>>, %arg6: memref<32x32xbf16, #tpu.memory_space<vmem>>, %arg7: memref<32x32xbf16, #tpu.memory_space<vmem>>, %arg8: memref<1x32xf32, #tpu.memory_space<vmem>>, %arg9: memref<1x8x16xf32, #tpu.memory_space<vmem>>, %arg10: memref<1x8x16xf32, #tpu.memory_space<vmem>>, %arg11: memref<1x8x16xf32, #tpu.memory_space<vmem>>) attributes {dimension_semantics = [#tpu.dimension_semantics<parallel>, #tpu.dimension_semantics<parallel>], iteration_bounds = array<i64: 2, 2>, scalar_prefetch = 0 : i64, scratch_operands = 0 : i64, tpu.core_type = #tpu.core_type<tc>, window_params = [{transform_indices = @transform_0, window_bounds = array<i64: 1, 8, 16, 32>}, {pipeline_mode = #tpu.pipeline_mode<synchronous>, transform_indices = @transform_1, window_bounds = array<i64: 1, 32>}, {pipeline_mode = #tpu.pipeline_mode<synchronous>, transform_indices = @transform_2, window_bounds = array<i64: 1, 32>}, {transform_indices = @transform_3, window_bounds = array<i64: 1, 8, 16, 32>}, {pipeline_mode = #tpu.pipeline_mode<synchronous>, transform_indices = @transform_4, window_bounds = array<i64: 32, 32>}, {pipeline_mode = #tpu.pipeline_mode<synchronous>, transform_indices = @transform_5, window_bounds = array<i64: 32, 32>}, {pipeline_mode = #tpu.pipeline_mode<synchronous>, transform_indices = @transform_6, window_bounds = array<i64: 1, 32>}, {transform_indices = @transform_7, window_bounds = array<i64: 1, 8, 16>}, {transform_indices = @transform_8, window_bounds = array<i64: 1, 8, 16>}, {transform_indices = @transform_9, window_bounds = array<i64: 1, 8, 16>}]} {
    %c0 = arith.constant 0 : index
    %c0_0 = arith.constant 0 : index
    %c0_1 = arith.constant 0 : index
    %c0_2 = arith.constant 0 : index
    %0 = vector.load %arg2[%c0, %c0_0, %c0_1, %c0_2] : memref<1x8x16x32xbf16, #tpu.memory_space<vmem>>, vector<1x8x16x32xbf16>
    %1 = vector.shape_cast %0 : vector<1x8x16x32xbf16> to vector<8x16x32xbf16>
    %2 = arith.extf %1 : vector<8x16x32xbf16> to vector<8x16x32xf32>
    %c0_3 = arith.constant 0 : index
    %c0_4 = arith.constant 0 : index
    %c0_5 = arith.constant 0 : index
    %c0_6 = arith.constant 0 : index
    %3 = vector.load %arg5[%c0_3, %c0_4, %c0_5, %c0_6] : memref<1x8x16x32xbf16, #tpu.memory_space<vmem>>, vector<1x8x16x32xbf16>
    %4 = vector.shape_cast %3 : vector<1x8x16x32xbf16> to vector<8x16x32xbf16>
    %5 = arith.extf %4 : vector<8x16x32xbf16> to vector<8x16x32xf32>
    %c0_7 = arith.constant 0 : index
    %c0_8 = arith.constant 0 : index
    %6 = vector.load %arg3[%c0_7, %c0_8] : memref<1x32xf32, #tpu.memory_space<vmem>>, vector<1x32xf32>
    %7 = vector.shape_cast %6 : vector<1x32xf32> to vector<1x1x32xf32>
    %8 = vector.broadcast %7 : vector<1x1x32xf32> to vector<8x16x32xf32>
    %9 = arith.mulf %2, %8 : vector<8x16x32xf32>
    %c0_9 = arith.constant 0 : index
    %c0_10 = arith.constant 0 : index
    %10 = vector.load %arg4[%c0_9, %c0_10] : memref<1x32xf32, #tpu.memory_space<vmem>>, vector<1x32xf32>
    %11 = vector.shape_cast %10 : vector<1x32xf32> to vector<1x1x32xf32>
    %12 = vector.broadcast %11 : vector<1x1x32xf32> to vector<8x16x32xf32>
    %13 = arith.addf %9, %12 : vector<8x16x32xf32>
    %14 = arith.addf %13, %5 : vector<8x16x32xf32>
    %cst = arith.constant 0.000000e+00 : f32
    %15 = vector.broadcast %cst : f32 to vector<8x16x32xf32>
    %16 = arith.maximumf %14, %15 : vector<8x16x32xf32>
    %17 = vector.shape_cast %16 : vector<8x16x32xf32> to vector<128x32xf32>
    %18 = arith.truncf %17 : vector<128x32xf32> to vector<128x32xbf16>
    %c0_11 = arith.constant 0 : index
    %c0_12 = arith.constant 0 : index
    %19 = vector.load %arg6[%c0_11, %c0_12] : memref<32x32xbf16, #tpu.memory_space<vmem>>, vector<32x32xbf16>
    %cst_13 = arith.constant dense<0.000000e+00> : vector<128x32xf32>
    %20 = tpu.matmul %18, %19, %cst_13 {dimension_numbers = #tpu.dot_dimension_numbers<[1], [0], [0], [1], [0, 0, 1, 1], [], []>} : vector<128x32xbf16>, vector<32x32xbf16>, vector<128x32xf32> -> vector<128x32xf32>
    %cst_14 = arith.constant 0.000000e+00 : f32
    %21 = vector.broadcast %cst_14 : f32 to vector<128x32xf32>
    %22 = arith.maximumf %20, %21 : vector<128x32xf32>
    %23 = arith.truncf %22 : vector<128x32xf32> to vector<128x32xbf16>
    %c0_15 = arith.constant 0 : index
    %c0_16 = arith.constant 0 : index
    %24 = vector.load %arg7[%c0_15, %c0_16] : memref<32x32xbf16, #tpu.memory_space<vmem>>, vector<32x32xbf16>
    %cst_17 = arith.constant dense<0.000000e+00> : vector<128x32xf32>
    %25 = tpu.matmul %23, %24, %cst_17 {dimension_numbers = #tpu.dot_dimension_numbers<[1], [0], [0], [1], [0, 0, 1, 1], [], []>} : vector<128x32xbf16>, vector<32x32xbf16>, vector<128x32xf32> -> vector<128x32xf32>
    %cst_18 = arith.constant 0.000000e+00 : f32
    %26 = vector.broadcast %cst_18 : f32 to vector<128x32xf32>
    %27 = arith.maximumf %25, %26 : vector<128x32xf32>
    %c0_19 = arith.constant 0 : index
    %c0_20 = arith.constant 0 : index
    %28 = vector.load %arg8[%c0_19, %c0_20] : memref<1x32xf32, #tpu.memory_space<vmem>>, vector<1x32xf32>
    %29 = vector.broadcast %28 : vector<1x32xf32> to vector<128x32xf32>
    %30 = arith.mulf %27, %29 : vector<128x32xf32>
    %cst_21 = arith.constant dense<0.000000e+00> : vector<128xf32>
    %31 = vector.multi_reduction <add>, %30, %cst_21 [1] : vector<128x32xf32> to vector<128xf32>
    %32 = vector.shape_cast %31 : vector<128xf32> to vector<8x16xf32>
    %c0_22 = arith.constant 0 : index
    %c0_23 = arith.constant 0 : index
    %c0_24 = arith.constant 0 : index
    %33 = vector.load %arg9[%c0_22, %c0_23, %c0_24] : memref<1x8x16xf32, #tpu.memory_space<vmem>>, vector<1x8x16xf32>
    %34 = vector.shape_cast %33 : vector<1x8x16xf32> to vector<8x16xf32>
    %cst_25 = arith.constant 1.000000e+00 : f32
    %35 = vector.broadcast %cst_25 : f32 to vector<8x16xf32>
    %36 = arith.subf %35, %34 : vector<8x16xf32>
    %37 = arith.mulf %36, %32 : vector<8x16xf32>
    %c0_26 = arith.constant 0 : index
    %c0_27 = arith.constant 0 : index
    %c0_28 = arith.constant 0 : index
    %38 = vector.load %arg10[%c0_26, %c0_27, %c0_28] : memref<1x8x16xf32, #tpu.memory_space<vmem>>, vector<1x8x16xf32>
    %39 = vector.shape_cast %38 : vector<1x8x16xf32> to vector<8x16xf32>
    %40 = arith.mulf %39, %34 : vector<8x16xf32>
    %41 = arith.addf %37, %40 : vector<8x16xf32>
    %c0_29 = arith.constant 0 : index
    %c0_30 = arith.constant 0 : index
    %c0_31 = arith.constant 0 : index
    %42 = vector.load %arg11[%c0_29, %c0_30, %c0_31] : memref<1x8x16xf32, #tpu.memory_space<vmem>>, vector<1x8x16xf32>
    %43 = vector.shape_cast %42 : vector<1x8x16xf32> to vector<8x16xf32>
    %44 = vector.shape_cast %41 : vector<8x16xf32> to vector<1x8x16xf32>
    tpu.vector_store %arg11[%c0_29, %c0_30, %c0_31], %44 {strides = array<i32>} : memref<1x8x16xf32, #tpu.memory_space<vmem>>, vector<1x8x16xf32>,
    return
  }
  func.func @transform_0(%arg0: i32, %arg1: i32) -> (i32, i32, i32, i32) {
    %c0_i32 = arith.constant 0 : i32
    %c0_i32_0 = arith.constant 0 : i32
    %c0_i32_1 = arith.constant 0 : i32
    return %arg0, %arg1, %c0_i32, %c0_i32_0 : i32, i32, i32, i32
  }
  func.func @transform_1(%arg0: i32, %arg1: i32) -> (i32, i32) {
    %c0_i32 = arith.constant 0 : i32
    %c0_i32_0 = arith.constant 0 : i32
    %c0_i32_1 = arith.constant 0 : i32
    return %c0_i32, %c0_i32_0 : i32, i32
  }
  func.func @transform_2(%arg0: i32, %arg1: i32) -> (i32, i32) {
    %c0_i32 = arith.constant 0 : i32
    %c0_i32_0 = arith.constant 0 : i32
    %c0_i32_1 = arith.constant 0 : i32
    return %c0_i32, %c0_i32_0 : i32, i32
  }
  func.func @transform_3(%arg0: i32, %arg1: i32) -> (i32, i32, i32, i32) {
    %c0_i32 = arith.constant 0 : i32
    %c0_i32_0 = arith.constant 0 : i32
    %c0_i32_1 = arith.constant 0 : i32
    return %arg0, %arg1, %c0_i32, %c0_i32_0 : i32, i32, i32, i32
  }
  func.func @transform_4(%arg0: i32, %arg1: i32) -> (i32, i32) {
    %c0_i32 = arith.constant 0 : i32
    %c0_i32_0 = arith.constant 0 : i32
    %c0_i32_1 = arith.constant 0 : i32
    return %c0_i32, %c0_i32_0 : i32, i32
  }
  func.func @transform_5(%arg0: i32, %arg1: i32) -> (i32, i32) {
    %c0_i32 = arith.constant 0 : i32
    %c0_i32_0 = arith.constant 0 : i32
    %c0_i32_1 = arith.constant 0 : i32
    return %c0_i32, %c0_i32_0 : i32, i32
  }
  func.func @transform_6(%arg0: i32, %arg1: i32) -> (i32, i32) {
    %c0_i32 = arith.constant 0 : i32
    %c0_i32_0 = arith.constant 0 : i32
    %c0_i32_1 = arith.constant 0 : i32
    return %c0_i32, %c0_i32_0 : i32, i32
  }
  func.func @transform_7(%arg0: i32, %arg1: i32) -> (i32, i32, i32) {
    %c0_i32 = arith.constant 0 : i32
    %c0_i32_0 = arith.constant 0 : i32
    return %arg0, %arg1, %c0_i32 : i32, i32, i32
  }
  func.func @transform_8(%arg0: i32, %arg1: i32) -> (i32, i32, i32) {
    %c0_i32 = arith.constant 0 : i32
    %c0_i32_0 = arith.constant 0 : i32
    return %arg0, %arg1, %c0_i32 : i32, i32, i32
  }
  func.func @transform_9(%arg0: i32, %arg1: i32) -> (i32, i32, i32) {
    %c0_i32 = arith.constant 0 : i32
    %c0_i32_0 = arith.constant 0 : i32
    return %arg0, %arg1, %c0_i32 : i32, i32, i32
  }
}

module attributes {stable_mosaic.version = 11 : i64} {
  func.func @_tail_kernel(%arg0: i32, %arg1: i32, %arg2: memref<1x8x16x32xbf16, #tpu.memory_space<vmem>>, %arg3: memref<1x32xf32, #tpu.memory_space<vmem>>, %arg4: memref<1x32xf32, #tpu.memory_space<vmem>>, %arg5: memref<1x8x16x32xbf16, #tpu.memory_space<vmem>>, %arg6: memref<32x32xbf16, #tpu.memory_space<vmem>>, %arg7: memref<32x32xbf16, #tpu.memory_space<vmem>>, %arg8: memref<1x32xf32, #tpu.memory_space<vmem>>, %arg9: memref<1x8x16xf32, #tpu.memory_space<vmem>>, %arg10: memref<1x8x16xf32, #tpu.memory_space<vmem>>, %arg11: memref<1x8x16xf32, #tpu.memory_space<vmem>>) attributes {dimension_semantics = [#tpu.dimension_semantics<parallel>, #tpu.dimension_semantics<parallel>], iteration_bounds = array<i64: 2, 2>, scalar_prefetch = 0 : i64, scratch_operands = 0 : i64, tpu.core_type = #tpu.core_type<tc>, window_params = [{transform_indices = @transform_0, window_bounds = array<i64: 1, 8, 16, 32>}, {pipeline_mode = #tpu.pipeline_mode<synchronous>, transform_indices = @transform_1, window_bounds = array<i64: 1, 32>}, {pipeline_mode = #tpu.pipeline_mode<synchronous>, transform_indices = @transform_2, window_bounds = array<i64: 1, 32>}, {transform_indices = @transform_3, window_bounds = array<i64: 1, 8, 16, 32>}, {pipeline_mode = #tpu.pipeline_mode<synchronous>, transform_indices = @transform_4, window_bounds = array<i64: 32, 32>}, {pipeline_mode = #tpu.pipeline_mode<synchronous>, transform_indices = @transform_5, window_bounds = array<i64: 32, 32>}, {pipeline_mode = #tpu.pipeline_mode<synchronous>, transform_indices = @transform_6, window_bounds = array<i64: 1, 32>}, {transform_indices = @transform_7, window_bounds = array<i64: 1, 8, 16>}, {transform_indices = @transform_8, window_bounds = array<i64: 1, 8, 16>}, {transform_indices = @transform_9, window_bounds = array<i64: 1, 8, 16>}]} {
    %c0 = arith.constant 0 : index
    %c0_0 = arith.constant 0 : index
    %c0_1 = arith.constant 0 : index
    %c0_2 = arith.constant 0 : index
    %0 = vector.load %arg2[%c0, %c0_0, %c0_1, %c0_2] : memref<1x8x16x32xbf16, #tpu.memory_space<vmem>>, vector<1x8x16x32xbf16>
    %1 = vector.shape_cast %0 : vector<1x8x16x32xbf16> to vector<8x16x32xbf16>
    %2 = arith.extf %1 : vector<8x16x32xbf16> to vector<8x16x32xf32>
    %c0_3 = arith.constant 0 : index
    %c0_4 = arith.constant 0 : index
    %c0_5 = arith.constant 0 : index
    %c0_6 = arith.constant 0 : index
    %3 = vector.load %arg5[%c0_3, %c0_4, %c0_5, %c0_6] : memref<1x8x16x32xbf16, #tpu.memory_space<vmem>>, vector<1x8x16x32xbf16>
    %4 = vector.shape_cast %3 : vector<1x8x16x32xbf16> to vector<8x16x32xbf16>
    %5 = arith.extf %4 : vector<8x16x32xbf16> to vector<8x16x32xf32>
    %c0_7 = arith.constant 0 : index
    %c0_8 = arith.constant 0 : index
    %6 = vector.load %arg3[%c0_7, %c0_8] : memref<1x32xf32, #tpu.memory_space<vmem>>, vector<1x32xf32>
    %7 = vector.shape_cast %6 : vector<1x32xf32> to vector<1x1x32xf32>
    %8 = vector.broadcast %7 : vector<1x1x32xf32> to vector<8x16x32xf32>
    %9 = arith.mulf %2, %8 : vector<8x16x32xf32>
    %c0_9 = arith.constant 0 : index
    %c0_10 = arith.constant 0 : index
    %10 = vector.load %arg4[%c0_9, %c0_10] : memref<1x32xf32, #tpu.memory_space<vmem>>, vector<1x32xf32>
    %11 = vector.shape_cast %10 : vector<1x32xf32> to vector<1x1x32xf32>
    %12 = vector.broadcast %11 : vector<1x1x32xf32> to vector<8x16x32xf32>
    %13 = arith.addf %9, %12 : vector<8x16x32xf32>
    %14 = arith.addf %13, %5 : vector<8x16x32xf32>
    %cst = arith.constant 0.000000e+00 : f32
    %15 = vector.broadcast %cst : f32 to vector<8x16x32xf32>
    %16 = arith.maximumf %14, %15 : vector<8x16x32xf32>
    %17 = vector.shape_cast %16 : vector<8x16x32xf32> to vector<128x32xf32>
    %18 = arith.truncf %17 : vector<128x32xf32> to vector<128x32xbf16>
    %c0_11 = arith.constant 0 : index
    %c0_12 = arith.constant 0 : index
    %19 = vector.load %arg6[%c0_11, %c0_12] : memref<32x32xbf16, #tpu.memory_space<vmem>>, vector<32x32xbf16>
    %cst_13 = arith.constant dense<0.000000e+00> : vector<128x32xf32>
    %20 = tpu.matmul %18, %19, %cst_13 {dimension_numbers = #tpu.dot_dimension_numbers<[1], [0], [0], [1], [0, 0, 1, 1], [], []>} : vector<128x32xbf16>, vector<32x32xbf16>, vector<128x32xf32> -> vector<128x32xf32>
    %cst_14 = arith.constant 0.000000e+00 : f32
    %21 = vector.broadcast %cst_14 : f32 to vector<128x32xf32>
    %22 = arith.maximumf %20, %21 : vector<128x32xf32>
    %23 = arith.truncf %22 : vector<128x32xf32> to vector<128x32xbf16>
    %c0_15 = arith.constant 0 : index
    %c0_16 = arith.constant 0 : index
    %24 = vector.load %arg7[%c0_15, %c0_16] : memref<32x32xbf16, #tpu.memory_space<vmem>>, vector<32x32xbf16>
    %cst_17 = arith.constant dense<0.000000e+00> : vector<128x32xf32>
    %25 = tpu.matmul %23, %24, %cst_17 {dimension_numbers = #tpu.dot_dimension_numbers<[1], [0], [0], [1], [0, 0, 1, 1], [], []>} : vector<128x32xbf16>, vector<32x32xbf16>, vector<128x32xf32> -> vector<128x32xf32>
    %cst_18 = arith.constant 0.000000e+00 : f32
    %26 = vector.broadcast %cst_18 : f32 to vector<128x32xf32>
    %27 = arith.maximumf %25, %26 : vector<128x32xf32>
    %c0_19 = arith.constant 0 : index
    %c0_20 = arith.constant 0 : index
    %28 = vector.load %arg8[%c0_19, %c0_20] : memref<1x32xf32, #tpu.memory_space<vmem>>, vector<1x32xf32>
    %29 = vector.broadcast %28 : vector<1x32xf32> to vector<128x32xf32>
    %30 = arith.mulf %27, %29 : vector<128x32xf32>
    %cst_21 = arith.constant dense<0.000000e+00> : vector<128xf32>
    %31 = vector.multi_reduction <add>, %30, %cst_21 [1] : vector<128x32xf32> to vector<128xf32>
    %32 = vector.shape_cast %31 : vector<128xf32> to vector<8x16xf32>
    %c0_22 = arith.constant 0 : index
    %c0_23 = arith.constant 0 : index
    %c0_24 = arith.constant 0 : index
    %33 = vector.load %arg9[%c0_22, %c0_23, %c0_24] : memref<1x8x16xf32, #tpu.memory_space<vmem>>, vector<1x8x16xf32>
    %34 = vector.shape_cast %33 : vector<1x8x16xf32> to vector<8x16xf32>
    %cst_25 = arith.constant 1.000000e+00 : f32
    %35 = vector.broadcast %cst_25 : f32 to vector<8x16xf32>
    %36 = arith.subf %35, %34 : vector<8x16xf32>
    %37 = arith.mulf %36, %32 : vector<8x16xf32>
    %c0_26 = arith.constant 0 : index
    %c0_27 = arith.constant 0 : index
    %c0_28 = arith.constant 0 : index
    %38 = vector.load %arg10[%c0_26, %c0_27, %c0_28] : memref<1x8x16xf32, #tpu.memory_space<vmem>>, vector<1x8x16xf32>
    %39 = vector.shape_cast %38 : vector<1x8x16xf32> to vector<8x16xf32>
    %40 = arith.mulf %39, %34 : vector<8x16xf32>
    %41 = arith.addf %37, %40 : vector<8x16xf32>
    %c0_29 = arith.constant 0 : index
    %c0_30 = arith.constant 0 : index
    %c0_31 = arith.constant 0 : index
    %42 = vector.load %arg11[%c0_29, %c0_30, %c0_31] : memref<1x8x16xf32, #tpu.memory_space<vmem>>, vector<1x8x16xf32>
    %43 = vector.shape_cast %42 : vector<1x8x16xf32> to vector<8x16xf32>
    %44 = vector.shape_cast %41 : vector<8x16xf32> to vector<1x8x16xf32>
    tpu.vector_store %arg11[%c0_29, %c0_30, %c0_31], %44 {strides = array<i32>} : memref<1x8x16xf32, #tpu.memory_space<vmem>>, vector<1x8x16xf32>,
    return
  }
  func.func @transform_0(%arg0: i32, %arg1: i32) -> (i32, i32, i32, i32) {
    %c0_i32 = arith.constant 0 : i32
    %c0_i32_0 = arith.constant 0 : i32
    %c0_i32_1 = arith.constant 0 : i32
    return %arg0, %arg1, %c0_i32, %c0_i32_0 : i32, i32, i32, i32
  }
  func.func @transform_1(%arg0: i32, %arg1: i32) -> (i32, i32) {
    %c0_i32 = arith.constant 0 : i32
    %c0_i32_0 = arith.constant 0 : i32
    %c0_i32_1 = arith.constant 0 : i32
    return %c0_i32, %c0_i32_0 : i32, i32
  }
  func.func @transform_2(%arg0: i32, %arg1: i32) -> (i32, i32) {
    %c0_i32 = arith.constant 0 : i32
    %c0_i32_0 = arith.constant 0 : i32
    %c0_i32_1 = arith.constant 0 : i32
    return %c0_i32, %c0_i32_0 : i32, i32
  }
  func.func @transform_3(%arg0: i32, %arg1: i32) -> (i32, i32, i32, i32) {
    %c0_i32 = arith.constant 0 : i32
    %c0_i32_0 = arith.constant 0 : i32
    %c0_i32_1 = arith.constant 0 : i32
    return %arg0, %arg1, %c0_i32, %c0_i32_0 : i32, i32, i32, i32
  }
  func.func @transform_4(%arg0: i32, %arg1: i32) -> (i32, i32) {
    %c0_i32 = arith.constant 0 : i32
    %c0_i32_0 = arith.constant 0 : i32
    %c0_i32_1 = arith.constant 0 : i32
    return %c0_i32, %c0_i32_0 : i32, i32
  }
  func.func @transform_5(%arg0: i32, %arg1: i32) -> (i32, i32) {
    %c0_i32 = arith.constant 0 : i32
    %c0_i32_0 = arith.constant 0 : i32
    %c0_i32_1 = arith.constant 0 : i32
    return %c0_i32, %c0_i32_0 : i32, i32
  }
  func.func @transform_6(%arg0: i32, %arg1: i32) -> (i32, i32) {
    %c0_i32 = arith.constant 0 : i32
    %c0_i32_0 = arith.constant 0 : i32
    %c0_i32_1 = arith.constant 0 : i32
    return %c0_i32, %c0_i32_0 : i32, i32
  }
  func.func @transform_7(%arg0: i32, %arg1: i32) -> (i32, i32, i32) {
    %c0_i32 = arith.constant 0 : i32
    %c0_i32_0 = arith.constant 0 : i32
    return %arg0, %arg1, %c0_i32 : i32, i32, i32
  }
  func.func @transform_8(%arg0: i32, %arg1: i32) -> (i32, i32, i32) {
    %c0_i32 = arith.constant 0 : i32
    %c0_i32_0 = arith.constant 0 : i32
    return %arg0, %arg1, %c0_i32 : i32, i32, i32
  }
  func.func @transform_9(%arg0: i32, %arg1: i32) -> (i32, i32, i32) {
    %c0_i32 = arith.constant 0 : i32
    %c0_i32_0 = arith.constant 0 : i32
    return %arg0, %arg1, %c0_i32 : i32, i32, i32
  }
}

</mosaic_0001>

<bundles_post_ra>
// kernel: resnet_dc_forward.10
= control target key start
LH: loop header
LB: loop body
LE: loop exit
PB: predicated region body
PF: predicated region fallthrough
CT: control target
= control target key end

     0   :  { %s2271_s21 = smov 0   ;;  %s2273_s22 = smov 0   ;;  %s3021_s0 = inlined_call_operand.vmem [shape: f32[2,16,16,1], index: 0, kind: input, shape index: {}, may-alias: {0,1,2}]   ;;  %s3022_s1 = inlined_call_operand.vmem [shape: f32[2,16,16,1], index: 1, kind: input, shape index: {}, may-alias: {0,1,2}]   ;;  %s3023_s2 = inlined_call_operand.vmem [shape: f32[2,16,16,1], index: 2, kind: input, shape index: {}, may-alias: {0,1,2}]   ;;  %s3024_s3 = inlined_call_operand.vmem [shape: bf16[9,32], index: 3, kind: input, shape index: {}]   ;;  %s3025_s4 = inlined_call_operand.vmem [shape: bf16[2,16,16,32], index: 4, kind: output, shape index: {0}]   ;;  %s3026_s5 = inlined_call_operand.vmem [shape: f32[2,2,8,32], index: 5, kind: output, shape index: {1}]   ;;  %s3027_s6 = inlined_call_operand.vmem [shape: f32[2,2,8,32], index: 6, kind: output, shape index: {2}]  }
   0x1   :  { %s2275_s23 = smov 0   ;;  %s2277_s24 = smov 0  }
   0x2   :  { %s2279_s25 = smov 0  }
   0x3 LB: > { %s26_s26 = sadd.s32 1, %s2225_s23  ;;  %s29_s27 = sadd.s32 1, %s2229_s24  ;;  %s2233_s25 = sphi %s2279_s25, %s17_s25   ;;  %s2229_s24 = sphi %s2277_s24, %s3062_s24   ;;  %s2225_s23 = sphi %s2275_s23, %s3061_s23   ;;  %s2221_s22 = sphi %s2273_s22, %s3060_s22   ;;  %s2217_s21 = sphi %s2271_s21, %s3059_s21  }
   0x4   : > { %p27_p0 = scmp.ge.s32.totalorder %s26_s26, 2  ;;  %p1935_p1 = scmp.ge.s32.totalorder %s2233_s25, 1 }
   0x5   : > { %p307_p2 = scmp.lt.s32.totalorder %s2233_s25, 5 }
   0x6   : > { %s3064_s26 = smov (%p27_p0, %s26_s26), 0  ;;  %s3066_s27 = smov (!%p27_p0, %s29_s27), %s2229_s24 }
   0x7   : > { %p308_p3 = pnand %p1935_p1, %p307_p2  ;;  %p31_p4 = scmp.ge.s32.totalorder %s3066_s27, 2 }
   0x9   : > { %s3068_s27 = smov (%p31_p4, %s3066_s27), 0  ;;  %311 = sbr.rel (%p308_p3) target bundleno = 321 (0x141), region = 36 }
   0xe   : > { %s2304_s28 = sshll.u32 %s2217_s21, 3  ;;  %p390_p5 = scmp.lt.s32.totalorder %s2221_s22, 1  ;;  %v2235_v0 = vmov 0   ;;  %vm595_vm0 = vsmask.f32 256  ;;  %vm594_vm1 = vcmask 1040384  }
   0xf   : > { %2054 = vset.pattern.permute.xlu1 %v2235_v0  ;;  %2048 = vset.pattern.permute.xlu0 %v2235_v0  ;;  %p392_p6 = scmp.lt.s32.totalorder %s2304_s28, 15  ;;  %s1941_s29 = sadd.s32 4294967295, %s2304_s28  ;;  %vm2345_vm2 = vmand %vm594_vm1, %vm595_vm0  ;;  %vm751_vm3 = vsmask.f32 7424  ;;  %vm1004_vm4 = vcmask 1046528   ;;  %vm1503_vm5 = vcmask 261120  }
  0x10   : > { %s3070_s22 = smov (!%p390_p5, %s2221_s22), 1  ;;  %p402_p7 = scmp.gt.s32.totalorder %s1941_s29, 0  ;;  %vm1673_vm6 = vcmask 257024  }
  0x11   : > { %s393_s30 = scalar_select %p392_p6, %s2304_s28, 15 }
  0x12   : > { %s2312_s7 = sshll.u32 %s3070_s22, 5  ;;  %p482_p8 = scmp.gt.s32.totalorder %s2217_s21, 0 }
  0x13   : > { %s1937_s8 = sshll.u32 %s393_s30, 1  ;;  %p1942_p9 = scmp.lt.s32.totalorder %s1941_s29, 15 }
  0x14   : > { %s2315_s9 = sadd.s32 %s2312_s7, %s1937_s8  ;;  %s1990_s8 = sadd.s32 8, %s2304_s28 }
  0x15   : > { %s1939_s10 = sshll.u32 %s2315_s9, 3  ;;  %p2438_p10 = scmp.lt.s32.totalorder %s1990_s8, 15 }
  0x16   : > { %s2322_s13 = scalar_lea.vmem %s3021_s0, %s1939_s10  ;;  %p447_p11 = scmp.lt.s32.totalorder %s2217_s21, 1 }
  0x17   : > { %v464_v1 = vld [vmem:[%s2322_s13 + $0x10] sm:$0xff]  ;;  %v465_v2 = vld [vmem:[%s2322_s13 + $0x18] sm:$0xff]  ;;  %v462_v3 = vld [vmem:[%s2322_s13] sm:$0xff]  ;;  %s403_s14 = scalar_select %p402_p7, %s1941_s29, 0 }
  0x18   : > { %v496_v4 = vpack.c.bf16 %v465_v2, %v464_v1  ;;  %v463_v5 = vld [vmem:[%s2322_s13 + $0x8] sm:$0xff]  ;;  %v466_v6 = vld [vmem:[%s2322_s13 + $0x20] sm:$0xff]  ;;  %s2330_s15 = scalar_select %p482_p8, 1, 0  ;;  %v468_v10 = vld [vmem:[%s2322_s13 + $0x30] sm:$0xff] }
  0x19   : > { %v467_v7 = vld [vmem:[%s2322_s13 + $0x28] sm:$0xff]  ;;  %v495_v8 = vpack.c.bf16 %v463_v5, %v462_v3  ;;  %v469_v11 = vld [vmem:[%s2322_s13 + $0x38] sm:$0xff]  ;;  %v470_v12 = vld [vmem:[%s2322_s13 + $0x40] sm:$0xff]  ;;  %s3072_s14 = smov (!%p1942_p9, %s403_s14), 15  ;;  %s3074_s8 = smov (!%p2438_p10, %s1990_s8), 15 }
  0x1a   : > { %v497_v9 = vpack.c.bf16 %v467_v7, %v466_v6  ;;  %v519_v13 = vshrl.u32 %v496_v4, 16  ;;  %v522_v14 = vshll.u32 %v496_v4, 16  ;;  %v498_v15 = vpack.c.bf16 %v469_v11, %v468_v10  ;;  %v471_v16 = vld [vmem:[%s2322_s13 + $0x48] sm:$0xff]  ;;  %v472_v17 = vld [vmem:[%s2322_s13 + $0x50] sm:$0xff]  ;;  %v473_v18 = vld [vmem:[%s2322_s13 + $0x58] sm:$0xff]  ;;  %s1947_s16 = sshll.u32 %s3072_s14, 1  ;;  %s484_s30 = scvt.s32.f32 %s2330_s15 }
  0x1b   : > { %v512_v19 = vshrl.u32 %v495_v8, 16  ;;  %v515_v20 = vshll.u32 %v495_v8, 16  ;;  %v474_v23 = vld [vmem:[%s2322_s13 + $0x60] sm:$0xff]  ;;  %v475_v24 = vld [vmem:[%s2322_s13 + $0x68] sm:$0xff]  ;;  %v499_v28 = vpack.c.bf16 %v471_v16, %v470_v12  ;;  %v500_v32 = vpack.c.bf16 %v473_v18, %v472_v17  ;;  %s410_s17 = sadd.s32 %s1947_s16, %s2312_s7  ;;  %s3076_s8 = smov (!%p2438_p10, %s3074_s8), 15 }
  0x1c   : > { %v526_v21 = vshrl.u32 %v497_v9, 16  ;;  %v529_v22 = vshll.u32 %v497_v9, 16  ;;  %v2341_v25 = vrot.slane %v519_v13, 7  ;;  %v533_v26 = vshrl.u32 %v498_v15, 16  ;;  %s1949_s18 = sshll.u32 %s410_s17, 3  ;;  %s2471_s28 = sshll.u32 %s3076_s8, 1 }
  0x1d   : > { %v536_v27 = vshll.u32 %v498_v15, 16  ;;  %v514_v30 = vrot.slane %v512_v19, 7  ;;  %v501_v33 = vpack.c.bf16 %v475_v24, %v474_v23  ;;  %v540_v36 = vshrl.u32 %v499_v28, 16  ;;  %s412_s29 = scalar_lea.vmem %s3022_s1, %s1949_s18  ;;  %s427_s11 = sadd.s32 %s2471_s28, %s2312_s7 }
  0x1e   : > { %v2349_v31 = vrot.slane %v526_v21, 7  ;;  %v524_v34 = vor.u32 %v522_v14, %v2341_v25  ;;  %v2353_v35 = vrot.slane %v533_v26, 7  ;;  %v543_v37 = vshll.u32 %v499_v28, 16  ;;  %v478_v62 = vld [vmem:[%s412_s29] sm:$0xff]  ;;  %v479_v63 = vld [vmem:[%s412_s29 + $0x8] sm:$0xff]  ;;  %s1956_s14 = sshll.u32 %s427_s11, 3 }
  0x1f   : > { %v517_v38 = vor.u32 %v515_v20, %v514_v30  ;;  %v547_v40 = vshrl.u32 %v500_v32, 16  ;;  %v550_v41 = vshll.u32 %v500_v32, 16  ;;  %v2361_v44 = vrot.slane %v540_v36, 7  ;;  %s2487_s12 = scalar_select %p447_p11, 1, 0 }
  0x20   : > { %v531_v39 = vor.u32 %v529_v22, %v2349_v31  ;;  %v2358_v42 = vsel %vm2345_vm2, 0, %v524_v34  ;;  %v538_v43 = vor.u32 %v536_v27, %v2353_v35  ;;  %v554_v45 = vshrl.u32 %v501_v33, 16  ;;  %s429_s16 = scalar_lea.vmem %s3023_s2, %s1956_s14  ;;  %s3078_s21 = smov (!%p447_p11, %s2217_s21), 1 }
  0x21   : > { %v621_v46 = vunpack.c.l.bf16 %v2358_v42  ;;  %v622_v47 = vunpack.c.h.bf16 %v2358_v42  ;;  %v2367_v48 = vsel %vm2345_vm2, 0, %v517_v38  ;;  %v545_v56 = vor.u32 %v543_v37, %v2361_v44  ;;  %s490_s17 = scvt.s32.f32 %s2487_s12  ;;  %s1960_s12 = sshll.u32 %s2315_s9, 2 }
  0x22   : > { %v2371_v49 = vsel %vm2345_vm2, 0, %v531_v39  ;;  %v619_v50 = vunpack.c.l.bf16 %v2367_v48  ;;  %v620_v51 = vunpack.c.h.bf16 %v2367_v48  ;;  %v2383_v55 = vsel %vm2345_vm2, 0, %v538_v43  ;;  %s2722_s7 = scalar_lea.vmem %s3025_s4, %s1960_s12  ;;  %s1961_s15 = sshll.u32 %s3070_s22, 1 }
  0x23   : > { %v623_v52 = vunpack.c.l.bf16 %v2371_v49  ;;  %v624_v53 = vunpack.c.h.bf16 %v2371_v49  ;;  %v2055_v54 = vpack.i.bf16 %v622_v47, %v621_v46  ;;  %v2386_v57 = vrot.slane %v547_v40, 7  ;;  %s2942_s22 = sadd.s32 %s1961_s15, %s3078_s21 }
  0x24   : > { %v2049_v58 = vpack.i.bf16 %v620_v51, %v619_v50  ;;  %v625_v60 = vunpack.c.l.bf16 %v2383_v55  ;;  %v626_v61 = vunpack.c.h.bf16 %v2383_v55  ;;  %v2392_v0 = vsel %vm2345_vm2, 0, %v545_v56 }
  0x25   : > { %v2060_v59 = vpack.i.bf16 %v624_v53, %v623_v52  ;;  %2056 = vperm.xlu1 %2054, %v2055_v54   ;;  %v552_v1 = vor.u32 %v550_v41, %v2386_v57  ;;  %v2395_v2 = vrot.slane %v554_v45, 7  ;;  %v557_v3 = vshll.u32 %v501_v33, 16 }
  0x26   : > { %2050 = vperm.xlu0 %2048, %v2049_v58   ;;  %v2065_v4 = vpack.i.bf16 %v626_v61, %v625_v60  ;;  %v627_v5 = vunpack.c.l.bf16 %v2392_v0  ;;  %v628_v6 = vunpack.c.h.bf16 %v2392_v0  ;;  %v485_v7 = vstv %s484_s30 }
  0x27   : > { %v2401_v8 = vsel %vm2345_vm2, 0, %v552_v1  ;;  %v559_v9 = vor.u32 %v557_v3, %v2395_v2  ;;  %v486_v10 = vmul.f32 %v485_v7, %v478_v62  ;;  %v487_v11 = vmul.f32 %v485_v7, %v479_v63 }
  0x28   : > { %v2070_v12 = vpack.i.bf16 %v628_v6, %v627_v5  ;;  %v629_v13 = vunpack.c.l.bf16 %v2401_v8  ;;  %v630_v14 = vunpack.c.h.bf16 %v2401_v8  ;;  %v608_v15 = vsel %vm2345_vm2, %v514_v30, 0 }
  0x29   : > { %2061 = vperm.xlu1 %2054, %v2060_v59   ;;  %v2410_v16 = vsel %vm2345_vm2, 0, %v559_v9  ;;  %v494_v17 = vpack.c.bf16 %v487_v11, %v486_v10  ;;  %v765_v18 = vshrl.u32 %v2367_v48, 16  ;;  %v767_v19 = vshll.u32 %v2367_v48, 16 }
  0x2a   : > { %2066 = vperm.xlu0 %2048, %v2065_v4   ;;  %v2075_v20 = vpack.i.bf16 %v630_v14, %v629_v13  ;;  %v631_v21 = vunpack.c.l.bf16 %v2410_v16  ;;  %v632_v22 = vunpack.c.h.bf16 %v2410_v16  ;;  %v772_v23 = vshll.u32 %v608_v15, 16 }
  0x2b   : > { %v505_v24 = vshrl.u32 %v494_v17, 16  ;;  %v508_v26 = vshll.u32 %v494_v17, 16  ;;  %v769_v27 = vrot.slane %v767_v19, 1  ;;  %v609_v28 = vsel %vm2345_vm2, %v2341_v25, 0 }
  0x2c   : > { %v2080_v30 = vpack.i.bf16 %v632_v22, %v631_v21  ;;  %v774_v32 = vrot.slane %v772_v23, 1  ;;  %v777_v33 = vshrl.u32 %v2358_v42, 16  ;;  %v779_v34 = vshll.u32 %v2358_v42, 16 }
  0x2d   : > { %2071 = vperm.xlu1 %2054, %v2070_v12   ;;  %v507_v36 = vrot.slane %v505_v24, 7  ;;  %v770_v37 = vor.u32 %v769_v27, %v765_v18  ;;  %v784_v38 = vshll.u32 %v609_v28, 16  ;;  %v1008_v39 = vrot.slane %v2367_v48, 1 }
  0x2e   : > { %2076 = vperm.xlu0 %2048, %v2075_v20   ;;  %v781_v40 = vrot.slane %v779_v34, 1  ;;  %v1009_v41 = vrot.slane %v608_v15, 1  ;;  %v2425_v25 = vsel %vm2345_vm2, %v2349_v31, 0  ;;  %v789_v43 = vshrl.u32 %v2371_v49, 16 }
  0x2f   : > { %v510_v45 = vor.u32 %v508_v26, %v507_v36  ;;  %v775_v46 = vsel %vm751_vm3, %v770_v37, %v774_v32  ;;  %v607_v47 = vsel %vm2345_vm2, %v507_v36, 0  ;;  %v786_v50 = vrot.slane %v784_v38, 1 }
  0x30   : > { %v858_v48 = vunpack.c.l.bf16 %v775_v46  ;;  %v859_v51 = vunpack.c.h.bf16 %v775_v46  ;;  %v760_v52 = vshll.u32 %v607_v47, 16  ;;  %v782_v53 = vor.u32 %v781_v40, %v777_v33 }
  0x31   : > { %2081 = vperm.xlu1 %2054, %v2080_v30   ;;  %v597_v31 = vsel %vm2345_vm2, 0, %v510_v45  ;;  %v1010_v54 = vsel %vm1004_vm4, %v1008_v39, %v1009_v41  ;;  %v1006_v56 = vrot.slane %v607_v47, 1  ;;  %v791_v58 = vshll.u32 %v2371_v49, 16 }
  0x32   : > { %v617_v59 = vunpack.c.l.bf16 %v597_v31  ;;  %v618_v60 = vunpack.c.h.bf16 %v597_v31  ;;  %v2090_v61 = vpack.i.bf16 %v859_v51, %v858_v48  ;;  %v753_v62 = vshrl.u32 %v597_v31, 16 }
  0x33   : > { %v755_v63 = vshll.u32 %v597_v31, 16  ;;  %v762_v1 = vrot.slane %v760_v52, 1  ;;  %v787_v3 = vsel %vm751_vm3, %v782_v53, %v786_v50  ;;  %v1039_v4 = vunpack.c.l.bf16 %v1010_v54 }
  0x34   : > { %v2085_v5 = vpack.i.bf16 %v618_v60, %v617_v59  ;;  %v860_v6 = vunpack.c.l.bf16 %v787_v3  ;;  %v1005_v7 = vrot.slane %v597_v31, 1  ;;  %v793_v9 = vrot.slane %v791_v58, 1 }
  0x35   : > { %2091 = vperm.xlu1 %2054, %v2090_v61   ;;  %v757_v10 = vrot.slane %v755_v63, 1  ;;  %v796_v11 = vshll.u32 %v2425_v25, 16  ;;  %v1011_v12 = vrot.slane %v2358_v42, 1  ;;  %v1012_v13 = vrot.slane %v609_v28, 1 }
  0x36   : > { %2086 = vperm.xlu0 %2048, %v2085_v5   ;;  %v2105_v14 = vpack.i.bf16 %v860_v6, %v1039_v4  ;;  %v1007_v15 = vsel %vm1004_vm4, %v1005_v7, %v1006_v56  ;;  %v794_v17 = vor.u32 %v793_v9, %v789_v43  ;;  %v861_v23 = vunpack.c.h.bf16 %v787_v3 }
  0x37   : > { %v758_v18 = vor.u32 %v757_v10, %v753_v62  ;;  %v1037_v19 = vunpack.c.l.bf16 %v1007_v15  ;;  %v1038_v20 = vunpack.c.h.bf16 %v1007_v15  ;;  %v798_v21 = vrot.slane %v796_v11, 1 }
  0x38   : > { %v1013_v22 = vsel %vm1004_vm4, %v1011_v12, %v1012_v13  ;;  %v1040_v42 = vunpack.c.h.bf16 %v1010_v54  ;;  %v611_v24 = vsel %vm2345_vm2, %v2353_v35, 0  ;;  %v801_v30 = vshrl.u32 %v2383_v55, 16 }
  0x39   : > { %v763_v26 = vsel %vm751_vm3, %v758_v18, %v762_v1  ;;  %2106 = vperm.xlu1 %2054, %v2105_v14   ;;  %v799_v27 = vsel %vm751_vm3, %v794_v17, %v798_v21  ;;  %v1041_v28 = vunpack.c.l.bf16 %v1013_v22  ;;  %v2100_v34 = vpack.i.bf16 %v1038_v20, %v1037_v19 }
  0x3a   : > { %v856_v32 = vunpack.c.l.bf16 %v763_v26  ;;  %v857_v33 = vunpack.c.h.bf16 %v763_v26  ;;  %v862_v36 = vunpack.c.l.bf16 %v799_v27  ;;  %v803_v37 = vshll.u32 %v2383_v55, 16 }
  0x3b   : > { %v808_v38 = vshll.u32 %v611_v24, 16  ;;  %v1014_v39 = vrot.slane %v2371_v49, 1  ;;  %v1015_v35 = vrot.slane %v2425_v25, 1  ;;  %v863_v43 = vunpack.c.h.bf16 %v799_v27 }
  0x3c   : > { %v2095_v40 = vpack.i.bf16 %v857_v33, %v856_v32  ;;  %v2115_v41 = vpack.i.bf16 %v862_v36, %v1041_v28  ;;  %v1042_v45 = vunpack.c.h.bf16 %v1013_v22  ;;  %v805_v46 = vrot.slane %v803_v37, 1  ;;  %v476_v33 = vld [vmem:[%s2322_s13 + $0x70] sm:$0xff] }
  0x3d   : > { %v810_v47 = vrot.slane %v808_v38, 1  ;;  %v1016_v50 = vsel %vm1004_vm4, %v1014_v39, %v1015_v35  ;;  %v612_v48 = vsel %vm2345_vm2, %v2361_v44, 0  ;;  %v2110_v51 = vpack.i.bf16 %v861_v23, %v1040_v42  ;;  %v480_v35 = vld [vmem:[%s429_s16] sm:$0xff] }
  0x3e   : > { %2096 = vperm.xlu0 %2048, %v2095_v40   ;;  %2116 = vperm.xlu1 %2054, %v2115_v41   ;;  %v1043_v52 = vunpack.c.l.bf16 %v1016_v50  ;;  %v813_v49 = vshrl.u32 %v2392_v0, 16  ;;  %v815_v25 = vshll.u32 %v2392_v0, 16  ;;  %v806_v53 = vor.u32 %v805_v46, %v801_v30 }
  0x3f   : > { %v820_v31 = vshll.u32 %v612_v48, 16  ;;  %v1017_v54 = vrot.slane %v2383_v55, 1  ;;  %v1018_v56 = vrot.slane %v611_v24, 1  ;;  %v2120_v58 = vpack.i.bf16 %v863_v43, %v1042_v45 }
  0x40   : > { %v817_v44 = vrot.slane %v815_v25, 1  ;;  %v613_v59 = vsel %vm2345_vm2, %v2386_v57, 0  ;;  %v825_v60 = vshrl.u32 %v2401_v8, 16  ;;  %v811_v61 = vsel %vm751_vm3, %v806_v53, %v810_v47  ;;  %v481_v47 = vld [vmem:[%s429_s16 + $0x8] sm:$0xff]  ;;  %s1962_s16 = sshll.u32 %s2942_s22, 3 }
  0x41   : > { %v822_v62 = vrot.slane %v820_v31, 1  ;;  %v1019_v63 = vsel %vm1004_vm4, %v1017_v54, %v1018_v56  ;;  %v827_v1 = vshll.u32 %v2401_v8, 16  ;;  %v864_v55 = vunpack.c.l.bf16 %v811_v61  ;;  %s460_s20 = scalar_lea.vmem %s3027_s6, %s1962_s16 }
  0x42   : > { %2101 = vperm.xlu0 %2048, %v2100_v34   ;;  %v818_v3 = vor.u32 %v817_v44, %v813_v49  ;;  %v1045_v4 = vunpack.c.l.bf16 %v1019_v63  ;;  %v1044_v5 = vunpack.c.h.bf16 %v1016_v50  ;;  %v832_v7 = vshll.u32 %v613_v59, 16  ;;  %v477_v34 = vld [vmem:[%s2322_s13 + $0x78] sm:$0xff]  ;;  %s452_s13 = scalar_lea.vmem %s3026_s5, %s1962_s16 }
  0x43   : > { %v829_v6 = vrot.slane %v827_v1, 1  ;;  %v1020_v57 = vrot.slane %v2392_v0, 1  ;;  %v1021_v9 = vrot.slane %v612_v48, 1  ;;  %v2125_v10 = vpack.i.bf16 %v864_v55, %v1043_v52 }
  0x44   : > { %v823_v11 = vsel %vm751_vm3, %v818_v3, %v822_v62  ;;  %v865_v12 = vunpack.c.h.bf16 %v811_v61  ;;  %v1046_v13 = vunpack.c.h.bf16 %v1019_v63  ;;  %v834_v17 = vrot.slane %v832_v7, 1 }
  0x45   : > { %v866_v14 = vunpack.c.l.bf16 %v823_v11  ;;  %v830_v15 = vor.u32 %v829_v6, %v825_v60  ;;  %v1022_v18 = vsel %vm1004_vm4, %v1020_v57, %v1021_v9  ;;  %2126 = vperm.xlu1 %2054, %v2125_v10   ;;  %v867_v0 = vunpack.c.h.bf16 %v823_v11 }
  0x46   : > { %2111 = vperm.xlu0 %2048, %v2110_v51   ;;  %v1047_v19 = vunpack.c.l.bf16 %v1022_v18  ;;  %v614_v20 = vsel %vm2345_vm2, %v2395_v2, 0  ;;  %v837_v21 = vshrl.u32 %v2410_v16, 16  ;;  %v839_v42 = vshll.u32 %v2410_v16, 16 }
  0x47   : > { %v2135_v22 = vpack.i.bf16 %v866_v14, %v1045_v4  ;;  %v835_v23 = vsel %vm751_vm3, %v830_v15, %v834_v17  ;;  %v844_v24 = vshll.u32 %v614_v20, 16  ;;  %v1023_v27 = vrot.slane %v2401_v8, 1 }
  0x48   : > { %v868_v26 = vunpack.c.l.bf16 %v835_v23  ;;  %v1024_v28 = vrot.slane %v613_v59, 1  ;;  %v2130_v30 = vpack.i.bf16 %v865_v12, %v1044_v5  ;;  %v841_v32 = vrot.slane %v839_v42, 1 }
  0x49   : > { %v846_v2 = vrot.slane %v844_v24, 1  ;;  %2136 = vperm.xlu1 %2054, %v2135_v22   ;;  %v1026_v38 = vrot.slane %v2410_v16, 1  ;;  %v1027_v39 = vrot.slane %v614_v20, 1  ;;  %v2140_v40 = vpack.i.bf16 %v867_v0, %v1046_v13 }
  0x4a   : > { %2121 = vperm.xlu0 %2048, %v2120_v58   ;;  %v2145_v36 = vpack.i.bf16 %v868_v26, %v1047_v19  ;;  %v1025_v37 = vsel %vm1004_vm4, %v1023_v27, %v1024_v28  ;;  %v842_v41 = vor.u32 %v841_v32, %v837_v21  ;;  %v869_v43 = vunpack.c.h.bf16 %v835_v23 }
  0x4b   : > { %v1049_v8 = vunpack.c.l.bf16 %v1025_v37  ;;  %v1028_v45 = vsel %vm1004_vm4, %v1026_v38, %v1027_v39  ;;  %v502_v46 = vpack.c.bf16 %v477_v34, %v476_v33  ;;  %v491_v50 = vstv %s490_s17 }
  0x4c   : > { %v847_v48 = vsel %vm751_vm3, %v842_v41, %v846_v2  ;;  %v1048_v51 = vunpack.c.h.bf16 %v1022_v18  ;;  %v1051_v52 = vunpack.c.l.bf16 %v1028_v45  ;;  %v492_v49 = vmul.f32 %v491_v50, %v480_v35 }
  0x4d   : > { %2146 = vperm.xlu1 %2054, %v2145_v36   ;;  %v870_v25 = vunpack.c.l.bf16 %v847_v48  ;;  %v1052_v16 = vunpack.c.h.bf16 %v1028_v45  ;;  %v561_v53 = vshrl.u32 %v502_v46, 16  ;;  %v564_v31 = vshll.u32 %v502_v46, 16 }
  0x4e   : > { %2131 = vperm.xlu0 %2048, %v2130_v30   ;;  %v493_v54 = vmul.f32 %v491_v50, %v481_v47  ;;  %v871_v44 = vunpack.c.h.bf16 %v847_v48  ;;  %v1050_v59 = vunpack.c.h.bf16 %v1025_v37  ;;  %v2150_v61 = vpack.i.bf16 %v869_v43, %v1048_v51  ;;  %v633_v48 = vld [vmem:[%s3024_s3] sm:$0x1] }
  0x4f   : > { %v2155_v56 = vpack.i.bf16 %v870_v25, %v1049_v8  ;;  %v563_v58 = vrot.slane %v561_v53, 7  ;;  %v2165_v62 = vpack.i.bf16 %v1052_v16, %v1051_v52  ;;  %v715_v50 = vlaneseq  ;;  %v1338_v52 = vld [vmem:[%s3024_s3] sm:$0x8]  ;;  %v1053_v25 = vld [vmem:[%s3024_s3] sm:$0x2] }
  0x50   : > { %v503_v60 = vpack.c.bf16 %v493_v54, %v492_v49  ;;  %v2160_v7 = vpack.i.bf16 %v871_v44, %v1050_v59  ;;  %v1234_v53 = vld [vmem:[%s3024_s3] sm:$0x4]  ;;  %v1339_v54 = vunpack.c.l.bf16 %v1338_v52  ;;  %v1054_v59 = vunpack.c.l.bf16 %v1053_v25 }
  0x51   : > { %2156 = vperm.xlu1 %2054, %v2155_v56   ;;  %v566_v63 = vor.u32 %v564_v31, %v563_v58  ;;  %v615_v1 = vsel %vm2345_vm2, %v563_v58, 0  ;;  %v716_v51 = vshrl.u32 %v715_v50, 7  ;;  %v634_v31 = vunpack.c.l.bf16 %v633_v48  ;;  %v1455_v58 = vld [vmem:[%s3024_s3 + $0x4] sm:$0x1] }
  0x52   : > { %2141 = vperm.xlu0 %2048, %v2140_v40   ;;  %v1227_v55 = vshll.u32 %v615_v1, 16  ;;  %v568_v3 = vshrl.u32 %v503_v60, 16  ;;  %v571_v5 = vshll.u32 %v503_v60, 16  ;;  %v1285_v6 = vrot.slane %v615_v1, 1 }
  0x53   : > { %v605_v4 = vsel %vm2345_vm2, 0, %v566_v63  ;;  %v1352_v56 = vsub.s32 6, %v716_v51  ;;  %v717_v44 = vsub.s32 0, %v716_v51  ;;  %v1185_v60 = vsub.s32 3, %v716_v51 }
  0x54   : > { %v1220_v57 = vshrl.u32 %v605_v4, 16  ;;  %v1222_v9 = vshll.u32 %v605_v4, 16  ;;  %v1171_v10 = vunpack.c.l.bf16 %v605_v4  ;;  %v1172_v11 = vunpack.c.h.bf16 %v605_v4 }
  0x55   : > { %2166 = vperm.xlu1 %2054, %v2165_v62   ;;  %v570_v12 = vrot.slane %v568_v3, 7  ;;  %v1284_v13 = vrot.slane %v605_v4, 1  ;;  %v1229_v15 = vrot.slane %v1227_v55, 1  ;;  %v954_v62 = vsub.s32 1, %v716_v51 }
  0x56   : > { %2151 = vperm.xlu0 %2048, %v2150_v61   ;;  %v1224_v14 = vrot.slane %v1222_v9, 1  ;;  %v2170_v20 = vpack.i.bf16 %v1172_v11, %v1171_v10  ;;  %v1235_v63 = vunpack.c.l.bf16 %v1234_v53  ;;  %v1248_v1 = vsub.s32 4, %v716_v51 }
  0x57   : > { %v573_v17 = vor.u32 %v571_v5, %v570_v12  ;;  %v1286_v18 = vsel %vm1004_vm4, %v1284_v13, %v1285_v6  ;;  %v616_v19 = vsel %vm2345_vm2, %v570_v12, 0  ;;  %v1137_v55 = vsub.s32 2, %v716_v51 }
  0x58   : > { %v1225_v0 = vor.u32 %v1224_v14, %v1220_v57  ;;  %v1288_v22 = vunpack.c.l.bf16 %v1286_v18  ;;  %v1289_v23 = vunpack.c.h.bf16 %v1286_v18  ;;  %v1394_v24 = vshll.u32 %v616_v19, 16 }
  0x59   : > { %v606_v21 = vsel %vm2345_vm2, 0, %v573_v17  ;;  %v1450_v2 = vrot.slane %v616_v19, 1  ;;  %v1302_v3 = vsub.s32 5, %v716_v51  ;;  %v1413_v6 = vsub.s32 7, %v716_v51 }
  0x5a   : > { %2161 = vperm.xlu0 %2048, %v2160_v7   ;;  %v1230_v42 = vsel %vm751_vm3, %v1225_v0, %v1229_v15  ;;  %v1336_v28 = vunpack.c.l.bf16 %v606_v21  ;;  %v1337_v30 = vunpack.c.h.bf16 %v606_v21  ;;  %v1449_v32 = vrot.slane %v606_v21, 1 }
  0x5b   : > { %v1232_v26 = vunpack.c.l.bf16 %v1230_v42  ;;  %v1233_v27 = vunpack.c.h.bf16 %v1230_v42  ;;  %v1387_v33 = vshrl.u32 %v606_v21, 16  ;;  %v1389_v34 = vshll.u32 %v606_v21, 16 }
  0x5c   : > { %v2180_v37 = vpack.i.bf16 %v1289_v23, %v1288_v22  ;;  %v1396_v39 = vrot.slane %v1394_v24, 1  ;;  %v2185_v29 = vpack.i.bf16 %v1337_v30, %v1336_v28  ;;  %v1451_v35 = vsel %vm1004_vm4, %v1449_v32, %v1450_v2 }
  0x5d   : > { %v2175_v36 = vpack.i.bf16 %v1233_v27, %v1232_v26  ;;  %v1391_v38 = vrot.slane %v1389_v34, 1  ;;  %v1453_v43 = vunpack.c.l.bf16 %v1451_v35  ;;  %v1454_v47 = vunpack.c.h.bf16 %v1451_v35 }
  0x5e   : > { %2171 = vperm.xlu0 %2048, %v2170_v20   ;;  %v1456_v7 = vunpack.c.l.bf16 %v1455_v58  ;;  %v2535_v57 = vrot.slane %v1339_v54, %v1352_v56  ;;  %v2537_v10 = vrot.slane %v634_v31, %v717_v44  ;;  %v2539_v11 = vrot.slane %v1054_v59, %v1185_v60 }
  0x5f   : > { %2176 = vperm.xlu1 %2054, %v2175_v36   ;;  %v1392_v40 = vor.u32 %v1391_v38, %v1387_v33  ;;  %v2541_v14 = vrot.slane %v634_v31, %v954_v62  ;;  %v2543_v17 = vrot.slane %v1235_v63, %v1248_v1  ;;  %v2545_v18 = vrot.slane %v1054_v59, %v1137_v55 }
  0x60   : > { %3035 = vst [vmem:[#allocation2_spill] sm:$0xff] %v2535_v57  ;;  %3036 = vst [vmem:[#allocation3_spill] sm:$0xff] %v2539_v11  ;;  %v2547_v19 = vrot.slane %v1235_v63, %v1302_v3  ;;  %v2552_v21 = vrot.slane %v1339_v54, %v1413_v6  ;;  %v2554_v22 = vrot.slane %v1456_v7, %v717_v44 }
  0x61   : > { %v1397_v41 = vsel %vm751_vm3, %v1392_v40, %v1396_v39 }
  0x62   : > { %2181 = vperm.xlu0 %2048, %v2180_v37   ;;  %v1399_v8 = vunpack.c.l.bf16 %v1397_v41  ;;  %v1400_v45 = vunpack.c.h.bf16 %v1397_v41 }
  0x63   : > { %2186 = vperm.xlu1 %2054, %v2185_v29  }
  0x64   : > { %v2190_v46 = vpack.i.bf16 %v1400_v45, %v1399_v8 }
  0x66   : > { %2191 = vperm.xlu0 %2048, %v2190_v46  }
  0x67   : > { %1459 = vperm.xlu1 %2054, %v1453_v43  }
  0x6a   : > { %1464 = vperm.xlu0 %2048, %v1454_v47  }
  0xa0   : > { %v2057_v49 = vpop.permute.xlu1 %2056 }
  0xa1   : > { %v2051_v16 = vpop.permute.xlu0 %2050  ;;  %v2059_v4 = vunpack.i.h.bf16 %v2057_v49  ;;  %v2058_v9 = vunpack.i.l.bf16 %v2057_v49 }
  0xa2   : > { %v2053_v12 = vunpack.i.h.bf16 %v2051_v16  ;;  %v2052_v15 = vunpack.i.l.bf16 %v2051_v16 }
  0xa3   : > { %v2550_v0 = vmul.f32 %v2059_v4, %v2537_v10  ;;  %v2557_v23 = vmul.f32 %v2059_v4, %v2539_v11  ;;  %v2560_v42 = vmul.f32 %v2059_v4, %v2535_v57  ;;  %v2563_v24 = vmul.f32 %v2058_v9, %v2537_v10 }
  0xa4   : > { %v2062_v61 = vpop.permute.xlu1 %2061  ;;  %v2566_v27 = vmul.f32 %v2058_v9, %v2539_v11  ;;  %v2569_v28 = vmul.f32 %v2058_v9, %v2535_v57  ;;  %v2572_v30 = vmul.f32 %v2053_v12, %v2537_v10  ;;  %v2575_v34 = vmul.f32 %v2053_v12, %v2539_v11 }
  0xa5   : > { %v2067_v5 = vpop.permute.xlu0 %2066  ;;  %v2064_v20 = vunpack.i.h.bf16 %v2062_v61  ;;  %v2063_v26 = vunpack.i.l.bf16 %v2062_v61  ;;  %v721_v36 = vmul.f32 %v2052_v15, %v2537_v10  ;;  %v2579_v37 = vmul.f32 %v2052_v15, %v2539_v11 }
  0xa6   : > { %v2069_v32 = vunpack.i.h.bf16 %v2067_v5  ;;  %v2068_v38 = vunpack.i.l.bf16 %v2067_v5 }
  0xa7   : > { %v2582_v39 = vmul.f32 %v2064_v20, %v2537_v10  ;;  %v2585_v29 = vmul.f32 %v2064_v20, %v2539_v11  ;;  %v2588_v41 = vmul.f32 %v2064_v20, %v2535_v57  ;;  %v2591_v43 = vmul.f32 %v2063_v26, %v2537_v10 }
  0xa8   : > { %v2072_v13 = vpop.permute.xlu1 %2071  ;;  %v2594_v8 = vmul.f32 %v2063_v26, %v2539_v11  ;;  %v2597_v45 = vmul.f32 %v2063_v26, %v2535_v57  ;;  %v2600_v46 = vmul.f32 %v2069_v32, %v2537_v10  ;;  %v2603_v47 = vmul.f32 %v2069_v32, %v2539_v11 }
  0xa9   : > { %v2077_v2 = vpop.permute.xlu0 %2076  ;;  %v2074_v35 = vunpack.i.h.bf16 %v2072_v13  ;;  %v2073_v40 = vunpack.i.l.bf16 %v2072_v13  ;;  %v2606_v50 = vmul.f32 %v2069_v32, %v2535_v57  ;;  %v2609_v52 = vmul.f32 %v2068_v38, %v2537_v10 }
  0xaa   : > { %v2079_v48 = vunpack.i.h.bf16 %v2077_v2  ;;  %v2612_v49 = vmul.f32 %v2068_v38, %v2539_v11  ;;  %v2615_v25 = vmul.f32 %v2068_v38, %v2535_v57  ;;  %v2078_v16 = vunpack.i.l.bf16 %v2077_v2 }
  0xab   : > { %v2618_v53 = vmul.f32 %v2074_v35, %v2537_v10  ;;  %v2621_v31 = vmul.f32 %v2074_v35, %v2539_v11  ;;  %v2624_v54 = vmul.f32 %v2074_v35, %v2535_v57  ;;  %v2627_v56 = vmul.f32 %v2073_v40, %v2537_v10 }
  0xac   : > { %v2082_v33 = vpop.permute.xlu1 %2081  ;;  %v2630_v44 = vmul.f32 %v2073_v40, %v2539_v11  ;;  %v2633_v59 = vmul.f32 %v2073_v40, %v2535_v57  ;;  %v2636_v62 = vmul.f32 %v2079_v48, %v2537_v10  ;;  %v2639_v63 = vmul.f32 %v2079_v48, %v2539_v11 }
  0xad   : > { %3037 = vst [vmem:[#allocation4_spill] sm:$0xff] %v2621_v31  ;;  %3038 = vst [vmem:[#allocation5_spill] sm:$0xff] %v2624_v54  ;;  %v2084_v60 = vunpack.i.h.bf16 %v2082_v33  ;;  %v2642_v1 = vmul.f32 %v2079_v48, %v2535_v57  ;;  %v2083_v55 = vunpack.i.l.bf16 %v2082_v33  ;;  %v2645_v4 = vmul.f32 %v2078_v16, %v2537_v10 }
  0xae   : > { %3039 = vst [vmem:[#allocation6_spill] sm:$0xff] %v2636_v62  ;;  %3040 = vst [vmem:[#allocation7_spill] sm:$0xff] %v2639_v63  ;;  %v2649_v9 = vmul.f32 %v2078_v16, %v2539_v11  ;;  %v2652_v20 = vmul.f32 %v2078_v16, %v2535_v57 }
  0xaf   : > { %3041 = vst [vmem:[#allocation8_spill] sm:$0xff] %v2642_v1  ;;  %v2655_v26 = vmul.f32 %v2084_v60, %v2537_v10  ;;  %v2658_v32 = vmul.f32 %v2084_v60, %v2539_v11  ;;  %v2661_v2 = vmul.f32 %v2084_v60, %v2535_v57  ;;  %v2664_v33 = vmul.f32 %v2083_v55, %v2537_v10 }
  0xb0   : > { %v2092_v51 = vpop.permute.xlu1 %2091  ;;  %v2667_v38 = vmul.f32 %v2083_v55, %v2539_v11  ;;  %v2671_v48 = vmul.f32 %v2083_v55, %v2535_v57 }
  0xb1   : > { %v2087_v58 = vpop.permute.xlu0 %2086  ;;  %v2093_v61 = vunpack.i.l.bf16 %v2092_v51  ;;  %v2094_v6 = vunpack.i.h.bf16 %v2092_v51  ;;  %3042 = vst [vmem:[#allocation9_spill] sm:$0xff] %v2655_v26  ;;  %3043 = vst [vmem:[#allocation10_spill] sm:$0xff] %v2658_v32 }
  0xb2   : > { %v2089_v5 = vunpack.i.h.bf16 %v2087_v58  ;;  %v2088_v12 = vunpack.i.l.bf16 %v2087_v58  ;;  %3044 = vst [vmem:[#allocation11_spill] sm:$0xff] %v2661_v2  ;;  %3045 = vst [vmem:[#allocation12_spill] sm:$0xff] %v2667_v38 }
  0xb3   : > { %v958_v7 = vmul.f32 %v2093_v61, %v2541_v14  ;;  %3046 = vst [vmem:[#allocation13_spill] sm:$0xff] %v2671_v48  ;;  %v959_v16 = vmul.f32 %v2094_v6, %v2541_v14 }
  0xb4   : > { %v2107_v3 = vpop.permute.xlu1 %2106  ;;  %v720_v51 = vmul.f32 %v2089_v5, %v2537_v10  ;;  %v719_v2 = vmul.f32 %v2088_v12, %v2537_v10 }
  0xb5   : > { %v2109_v13 = vunpack.i.h.bf16 %v2107_v3  ;;  %v2108_v15 = vunpack.i.l.bf16 %v2107_v3  ;;  %v974_v35 = vadd.f32 %v958_v7, %v721_v36  ;;  %v1251_v36 = vmul.f32 %v2094_v6, %v2543_v17 }
  0xb6   : > { %v1250_v7 = vmul.f32 %v2093_v61, %v2543_v17  ;;  %v975_v48 = vadd.f32 %v959_v16, %v2572_v30 }
  0xb7   : > { %v1141_v40 = vmul.f32 %v2108_v15, %v2545_v18  ;;  %v960_v60 = vmul.f32 %v2109_v13, %v2541_v14  ;;  %v1252_v63 = vmul.f32 %v2109_v13, %v2543_v17  ;;  %v2688_v61 = vmul.f32 %v2109_v13, %v2552_v21 }
  0xb9   : > { %v2097_v58 = vpop.permute.xlu0 %2096  ;;  %v2117_v3 = vpop.permute.xlu1 %2116  ;;  %v1157_v11 = vadd.f32 %v1141_v40, %v974_v35  ;;  %v976_v10 = vadd.f32 %v960_v60, %v2563_v24 }
  0xba   : > { %v2099_v32 = vunpack.i.h.bf16 %v2097_v58  ;;  %v2098_v26 = vunpack.i.l.bf16 %v2097_v58  ;;  %v2119_v1 = vunpack.i.h.bf16 %v2117_v3  ;;  %v2118_v55 = vunpack.i.l.bf16 %v2117_v3 }
  0xbb   : > { %v1205_v62 = vadd.f32 %v2566_v27, %v1157_v11 }
  0xbc   : > { %v957_v57 = vmul.f32 %v2099_v32, %v2541_v14  ;;  %v956_v5 = vmul.f32 %v2098_v26, %v2541_v14  ;;  %v962_v35 = vmul.f32 %v2119_v1, %v2541_v14  ;;  %v1143_v6 = vmul.f32 %v2118_v55, %v2545_v18 }
  0xbd   : > { %v2102_v12 = vpop.permute.xlu0 %2101  ;;  %v1268_v40 = vadd.f32 %v1252_v63, %v1205_v62  ;;  %v1304_v32 = vmul.f32 %v2108_v15, %v2547_v19  ;;  %v1254_v3 = vmul.f32 %v2119_v1, %v2543_v17  ;;  %v1306_v27 = vmul.f32 %v2118_v55, %v2547_v19 }
  0xbe   : > { %v2104_v26 = vunpack.i.h.bf16 %v2102_v12  ;;  %v2103_v58 = vunpack.i.l.bf16 %v2102_v12  ;;  %v1159_v11 = vadd.f32 %v1143_v6, %v976_v10  ;;  %v972_v30 = vadd.f32 %v956_v5, %v719_v2 }
  0xbf   : > { %v973_v24 = vadd.f32 %v957_v57, %v720_v51  ;;  %v1417_v60 = vmul.f32 %v2119_v1, %v2552_v21  ;;  %v978_v13 = vadd.f32 %v962_v35, %v2591_v43  ;;  %v1322_v63 = vadd.f32 %v1306_v27, %v1268_v40 }
  0xc0   : > { %v1140_v16 = vmul.f32 %v2104_v26, %v2545_v18  ;;  %v1139_v38 = vmul.f32 %v2103_v58, %v2545_v18  ;;  %v1207_v62 = vadd.f32 %v2594_v8, %v1159_v11  ;;  %v2127_v12 = vpop.permute.xlu1 %2126  ;;  %v1471_v1 = vmul.f32 %v2118_v55, %v2554_v22 }
  0xc1   : > { %v2112_v15 = vpop.permute.xlu0 %2111  ;;  %v2129_v31 = vunpack.i.h.bf16 %v2127_v12  ;;  %v1372_v57 = vadd.f32 %v2597_v45, %v1322_v63  ;;  %v2128_v51 = vunpack.i.l.bf16 %v2127_v12 }
  0xc2   : > { %v1156_v54 = vadd.f32 %v1140_v16, %v973_v24  ;;  %v2114_v10 = vunpack.i.h.bf16 %v2112_v15  ;;  %v2113_v6 = vunpack.i.l.bf16 %v2112_v15  ;;  %v1155_v2 = vadd.f32 %v1139_v38, %v972_v30 }
  0xc3   : > { %v1270_v43 = vadd.f32 %v1254_v3, %v1207_v62  ;;  %v1433_v26 = vadd.f32 %v1417_v60, %v1372_v57  ;;  %v1256_v30 = vmul.f32 %v2129_v31, %v2543_v17  ;;  %v1145_v24 = vmul.f32 %v2128_v51, %v2545_v18 }
  0xc4   : > { %v1204_v5 = vadd.f32 %v2575_v34, %v1156_v54  ;;  %v961_v8 = vmul.f32 %v2114_v10, %v2541_v14  ;;  %v1253_v35 = vmul.f32 %v2114_v10, %v2543_v17  ;;  %v1203_v40 = vadd.f32 %v2579_v37, %v1155_v2 }
  0xc5   : > { %v1416_v58 = vmul.f32 %v2114_v10, %v2552_v21  ;;  %v1142_v38 = vmul.f32 %v2113_v6, %v2545_v18  ;;  %v1305_v55 = vmul.f32 %v2113_v6, %v2547_v19  ;;  %v964_v34 = vmul.f32 %v2129_v31, %v2541_v14  ;;  %v2122_v54 = vpop.permute.xlu0 %2121 }
  0xc6   : > { %v977_v45 = vadd.f32 %v961_v8, %v2550_v0  ;;  %v1267_v11 = vadd.f32 %v1251_v36, %v1204_v5  ;;  %v1266_v3 = vadd.f32 %v1250_v7, %v1203_v40  ;;  %v1419_v16 = vmul.f32 %v2129_v31, %v2552_v21 }
  0xc7   : > { %v1158_v27 = vadd.f32 %v1142_v38, %v975_v48  ;;  %v1308_v60 = vmul.f32 %v2128_v51, %v2547_v19  ;;  %v1473_v0 = vmul.f32 %v2128_v51, %v2554_v22  ;;  %v1161_v63 = vadd.f32 %v1145_v24, %v978_v13  ;;  %v2137_v51 = vpop.permute.xlu1 %2136 }
  0xc8   : > { %v1321_v37 = vadd.f32 %v1305_v55, %v1267_v11  ;;  %v1320_v36 = vadd.f32 %v1304_v32, %v1266_v3  ;;  %v2124_v15 = vunpack.i.h.bf16 %v2122_v54  ;;  %v2123_v10 = vunpack.i.l.bf16 %v2122_v54 }
  0xc9   : > { %v1206_v62 = vadd.f32 %v2557_v23, %v1158_v27  ;;  %v1324_v48 = vadd.f32 %v1308_v60, %v1270_v43  ;;  %v2717_v12 = vadd.f32 %v1473_v0, %v1433_v26  ;;  %v980_v32 = vadd.f32 %v964_v34, %v2609_v52  ;;  %v2132_v8 = vpop.permute.xlu0 %2131 }
  0xca   : > { %v1371_v7 = vadd.f32 %v2560_v42, %v1321_v37  ;;  %v1370_v31 = vadd.f32 %v2569_v28, %v1320_v36  ;;  %v1209_v23 = vadd.f32 %v2612_v49, %v1161_v63  ;;  %v963_v13 = vmul.f32 %v2124_v15, %v2541_v14 }
  0xcb   : > { %v1269_v6 = vadd.f32 %v1253_v35, %v1206_v62  ;;  %v1374_v2 = vadd.f32 %v2615_v25, %v1324_v48  ;;  %v1993_v57 = vpack.c.bf16 %v2717_v12, %v2717_v12  ;;  %v1507_v28 = vsel %vm1503_vm5, %v2717_v12, 0.0 }
  0xcc   : > { %v1432_v42 = vadd.f32 %v1416_v58, %v1371_v7  ;;  %v1431_v5 = vadd.f32 %v2688_v61, %v1370_v31  ;;  %v1272_v43 = vadd.f32 %v1256_v30, %v1209_v23  ;;  %v979_v52 = vadd.f32 %v963_v13, %v2582_v39 }
  0xcd   : > { %v1435_v49 = vadd.f32 %v1419_v16, %v1374_v2  ;;  %1676 = vst.msk [vmem:[%s2722_s7 + $0x8] sm:$0xf] %vm1673_vm6, %v1993_v57  ;;  %v1255_v35 = vmul.f32 %v2124_v15, %v2543_v17  ;;  %v1144_v25 = vmul.f32 %v2123_v10, %v2545_v18  ;;  %v1307_v40 = vmul.f32 %v2123_v10, %v2547_v19  ;;  %v2147_v57 = vpop.permute.xlu1 %2146 }
  0xce   : > { %v2740_v26 = vadd.f32 %v1471_v1, %v1431_v5  ;;  %v1472_v61 = vmul.f32 %v2123_v10, %v2554_v22  ;;  %v2139_v58 = vunpack.i.h.bf16 %v2137_v51  ;;  %v2138_v38 = vunpack.i.l.bf16 %v2137_v51 }
  0xcf   : > { %v1418_v11 = vmul.f32 %v2124_v15, %v2552_v21  ;;  %v1160_v39 = vadd.f32 %v1144_v25, %v977_v45  ;;  %v1323_v55 = vadd.f32 %v1307_v40, %v1269_v6  ;;  %v2134_v34 = vunpack.i.h.bf16 %v2132_v8 }
  0xd0   : > { %v1991_v54 = vpack.c.bf16 %v2740_v26, %v2740_v26  ;;  %v2746_v3 = vadd.f32 %v1472_v61, %v1432_v42  ;;  %v966_v27 = vmul.f32 %v2139_v58, %v2541_v14  ;;  %v2133_v1 = vunpack.i.l.bf16 %v2132_v8 }
  0xd1   : > { %v1504_v30 = vsel %vm1503_vm5, %v2740_v26, 0.0  ;;  %v1208_v24 = vadd.f32 %v2585_v29, %v1160_v39  ;;  %v1373_v37 = vadd.f32 %v2588_v41, %v1323_v55  ;;  %v1258_v45 = vmul.f32 %v2139_v58, %v2543_v17 }
  0xd2   : > { %1674 = vst.msk [vmem:[%s2722_s7] sm:$0xf] %vm1673_vm6, %v1991_v54  ;;  %v1505_v16 = vsel %vm1503_vm5, %v2746_v3, 0.0  ;;  %v1992_v60 = vpack.c.bf16 %v2746_v3, %v2746_v3  ;;  %v1421_v0 = vmul.f32 %v2139_v58, %v2552_v21  ;;  %v1147_v36 = vmul.f32 %v2138_v38, %v2545_v18 }
  0xd3   : > { %v1271_v62 = vadd.f32 %v1255_v35, %v1208_v24  ;;  %v1434_v63 = vadd.f32 %v1418_v11, %v1373_v37  ;;  %v982_v29 = vadd.f32 %v966_v27, %v2627_v56  ;;  %v1310_v41 = vmul.f32 %v2138_v38, %v2547_v19  ;;  %v2142_v35 = vpop.permute.xlu0 %2141 }
  0xd4   : > { %v1506_v15 = vadd.f32 %v1505_v16, %v1504_v30  ;;  %1675 = vst.msk [vmem:[%s2722_s7 + $0x4] sm:$0xf] %vm1673_vm6, %v1992_v60  ;;  %v1163_v7 = vadd.f32 %v1147_v36, %v980_v32  ;;  %v1475_v48 = vmul.f32 %v2138_v38, %v2554_v22  ;;  %v965_v10 = vmul.f32 %v2134_v34, %v2541_v14  ;;  %v2157_v30 = vpop.permute.xlu1 %2156 }
  0xd5   : > { %v1326_v31 = vadd.f32 %v1310_v41, %v1272_v43  ;;  %v1257_v23 = vmul.f32 %v2134_v34, %v2543_v17  ;;  %v1146_v13 = vmul.f32 %v2133_v1, %v2545_v18  ;;  %v1309_v6 = vmul.f32 %v2133_v1, %v2547_v19 }
  0xd6   : > { %v1211_v42 = vadd.f32 %v2630_v44, %v1163_v7  ;;  %v2772_v56 = vadd.f32 %v1475_v48, %v1435_v49  ;;  %v1420_v2 = vmul.f32 %v2134_v34, %v2552_v21  ;;  %v1474_v32 = vmul.f32 %v2133_v1, %v2554_v22 }
  0xd7   : > { %v1376_v51 = vadd.f32 %v2633_v59, %v1326_v31  ;;  %v981_v5 = vadd.f32 %v965_v10, %v2600_v46  ;;  %v1162_v43 = vadd.f32 %v1146_v13, %v979_v52  ;;  %v1325_v8 = vadd.f32 %v1309_v6, %v1271_v62  ;;  %v2152_v6 = vpop.permute.xlu0 %2151 }
  0xd8   : > { %v1274_v25 = vadd.f32 %v1258_v45, %v1211_v42  ;;  %v1995_v40 = vpack.c.bf16 %v2772_v56, %v2772_v56  ;;  %v2780_v44 = vadd.f32 %v1474_v32, %v1434_v63  ;;  %v1508_v49 = vadd.f32 %v1507_v28, %v1506_v15 }
  0xd9   : > { %v1511_v61 = vsel %vm1503_vm5, %v2772_v56, 0.0  ;;  %v1210_v58 = vadd.f32 %v2603_v47, %v1162_v43  ;;  %v1375_v59 = vadd.f32 %v2606_v50, %v1325_v8  ;;  %v2149_v38 = vunpack.i.h.bf16 %v2147_v57  ;;  %v2167_v8 = vpop.permute.xlu1 %2166 }
  0xda   : > { %1678 = vst.msk [vmem:[%s2722_s7 + $0x10] sm:$0xf] %vm1673_vm6, %v1995_v40  ;;  %v1509_v46 = vsel %vm1503_vm5, %v2780_v44, 0.0  ;;  %v1994_v52 = vpack.c.bf16 %v2780_v44, %v2780_v44  ;;  %v2148_v11 = vunpack.i.l.bf16 %v2147_v57  ;;  %v2144_v39 = vunpack.i.h.bf16 %v2142_v35  ;;  %v3048_v40 = vld [vmem:[#allocation5_spill] sm:$0xff] }
  0xdb   : > { %v1437_v55 = vadd.f32 %v1421_v0, %v1376_v51  ;;  %v1273_v28 = vadd.f32 %v1257_v23, %v1210_v58  ;;  %v1436_v34 = vadd.f32 %v1420_v2, %v1375_v59  ;;  %v968_v54 = vmul.f32 %v2149_v38, %v2541_v14 }
  0xdc   : > { %v1510_v27 = vadd.f32 %v1509_v46, %v1508_v49  ;;  %1677 = vst.msk [vmem:[%s2722_s7 + $0xc] sm:$0xf] %vm1673_vm6, %v1994_v52  ;;  %v1260_v47 = vmul.f32 %v2149_v38, %v2543_v17  ;;  %v1149_v50 = vmul.f32 %v2148_v11, %v2545_v18  ;;  %v1312_v1 = vmul.f32 %v2148_v11, %v2547_v19 }
  0xdd   : > { %v1423_v24 = vmul.f32 %v2149_v38, %v2552_v21  ;;  %v984_v37 = vadd.f32 %v968_v54, %v2645_v4  ;;  %v1477_v45 = vmul.f32 %v2148_v11, %v2554_v22  ;;  %v967_v16 = vmul.f32 %v2144_v39, %v2541_v14 }
  0xde   : > { %v1165_v60 = vadd.f32 %v1149_v50, %v982_v29  ;;  %v1328_v0 = vadd.f32 %v1312_v1, %v1274_v25  ;;  %v1259_v36 = vmul.f32 %v2144_v39, %v2543_v17  ;;  %v2143_v62 = vunpack.i.l.bf16 %v2142_v35  ;;  %v3047_v35 = vld [vmem:[#allocation4_spill] sm:$0xff] }
  0xdf   : > { %v2803_v63 = vadd.f32 %v1477_v45, %v1437_v55  ;;  %v983_v41 = vadd.f32 %v967_v16, %v2618_v53  ;;  %v1422_v15 = vmul.f32 %v2144_v39, %v2552_v21  ;;  %v2159_v7 = vunpack.i.h.bf16 %v2157_v30 }
  0xe0   : > { %v1213_v48 = vadd.f32 %v2649_v9, %v1165_v60  ;;  %v1378_v4 = vadd.f32 %v2652_v20, %v1328_v0  ;;  %v1148_v10 = vmul.f32 %v2143_v62, %v2545_v18  ;;  %v1311_v29 = vmul.f32 %v2143_v62, %v2547_v19  ;;  %v3049_v0 = vld [vmem:[#allocation12_spill] sm:$0xff] }
  0xe1   : > { %v1997_v31 = vpack.c.bf16 %v2803_v63, %v2803_v63  ;;  %v1476_v23 = vmul.f32 %v2143_v62, %v2554_v22  ;;  %v1512_v13 = vadd.f32 %v1511_v61, %v1510_v27  ;;  %v970_v53 = vmul.f32 %v2159_v7, %v2541_v14  ;;  %v2162_v27 = vpop.permute.xlu0 %2161 }
  0xe2   : > { %v1276_v42 = vadd.f32 %v1260_v47, %v1213_v48  ;;  %v1515_v2 = vsel %vm1503_vm5, %v2803_v63, 0.0  ;;  %v1164_v9 = vadd.f32 %v1148_v10, %v981_v5  ;;  %v1327_v32 = vadd.f32 %v1311_v29, %v1273_v28  ;;  %v3051_v10 = vld [vmem:[#allocation6_spill] sm:$0xff] }
  0xe3   : > { %v1439_v20 = vadd.f32 %v1423_v24, %v1378_v4  ;;  %1680 = vst.msk [vmem:[%s2722_s7 + $0x18] sm:$0xf] %vm1673_vm6, %v1997_v31  ;;  %v2819_v57 = vadd.f32 %v1476_v23, %v1436_v34  ;;  %v2822_v51 = vadd.f32 %v970_v53, %v2664_v33  ;;  %v1262_v43 = vmul.f32 %v2159_v7, %v2543_v17  ;;  %v3052_v53 = vld [vmem:[#allocation7_spill] sm:$0xff] }
  0xe4   : > { %v1212_v25 = vadd.f32 %v3047_v35, %v1164_v9  ;;  %v1377_v49 = vadd.f32 %v3048_v40, %v1327_v32  ;;  %v2158_v61 = vunpack.i.l.bf16 %v2157_v30  ;;  %v2154_v58 = vunpack.i.h.bf16 %v2152_v6  ;;  %v2177_v35 = vpop.permute.xlu1 %2176 }
  0xe5   : > { %v1513_v5 = vsel %vm1503_vm5, %v2819_v57, 0.0  ;;  %v1996_v59 = vpack.c.bf16 %v2819_v57, %v2819_v57  ;;  %v1425_v38 = vmul.f32 %v2159_v7, %v2552_v21  ;;  %v2153_v33 = vunpack.i.l.bf16 %v2152_v6 }
  0xe6   : > { %v1275_v46 = vadd.f32 %v1259_v36, %v1212_v25  ;;  %v1514_v52 = vadd.f32 %v1513_v5, %v1512_v13  ;;  %v1151_v11 = vmul.f32 %v2158_v61, %v2545_v18  ;;  %v2169_v39 = vunpack.i.h.bf16 %v2167_v8 }
  0xe7   : > { %v1438_v55 = vadd.f32 %v1422_v15, %v1377_v49  ;;  %1679 = vst.msk [vmem:[%s2722_s7 + $0x14] sm:$0xf] %vm1673_vm6, %v1996_v59  ;;  %v1314_v28 = vmul.f32 %v2158_v61, %v2547_v19  ;;  %v1479_v34 = vmul.f32 %v2158_v61, %v2554_v22  ;;  %v969_v54 = vmul.f32 %v2154_v58, %v2541_v14 }
  0xe8   : > { %v1167_v47 = vadd.f32 %v1151_v11, %v984_v37  ;;  %v1261_v50 = vmul.f32 %v2154_v58, %v2543_v17  ;;  %v1150_v1 = vmul.f32 %v2153_v33, %v2545_v18  ;;  %v1313_v30 = vmul.f32 %v2153_v33, %v2547_v19  ;;  %v3050_v37 = vld [vmem:[#allocation13_spill] sm:$0xff] }
  0xe9   : > { %v1330_v24 = vadd.f32 %v1314_v28, %v1276_v42  ;;  %v2841_v45 = vadd.f32 %v1479_v34, %v1439_v20  ;;  %v1424_v16 = vmul.f32 %v2154_v58, %v2552_v21  ;;  %v1478_v60 = vmul.f32 %v2153_v33, %v2554_v22  ;;  %v3053_v42 = vld [vmem:[#allocation8_spill] sm:$0xff] }
  0xea   : > { %v1215_v36 = vadd.f32 %v3049_v0, %v1167_v47  ;;  %v1166_v62 = vadd.f32 %v1150_v1, %v983_v41  ;;  %v1329_v15 = vadd.f32 %v1313_v30, %v1275_v46  ;;  %v1516_v7 = vadd.f32 %v1515_v2, %v1514_v52  ;;  %v3054_v1 = vld [vmem:[#allocation9_spill] sm:$0xff] }
  0xeb   : > { %v1380_v48 = vadd.f32 %v3050_v37, %v1330_v24  ;;  %v1999_v4 = vpack.c.bf16 %v2841_v45, %v2841_v45  ;;  %v985_v29 = vadd.f32 %v969_v54, %v3051_v10  ;;  %v2850_v31 = vadd.f32 %v1478_v60, %v1438_v55  ;;  %v3056_v10 = vld [vmem:[#allocation11_spill] sm:$0xff] }
  0xec   : > { %v1278_v23 = vadd.f32 %v1262_v43, %v1215_v36  ;;  %v1519_v13 = vsel %vm1503_vm5, %v2841_v45, 0.0  ;;  %v1214_v6 = vadd.f32 %v3052_v53, %v1166_v62  ;;  %v1379_v41 = vadd.f32 %v3053_v42, %v1329_v15  ;;  %v2172_v43 = vpop.permute.xlu0 %2171  ;;  %v3057_v53 = vld [vmem:[#allocation3_spill] sm:$0xff]  ;;  %v2187_v42 = vpop.permute.xlu1 %2186 }
  0xed   : > { %v1441_v9 = vadd.f32 %v1425_v38, %v1380_v48  ;;  %1682 = vst.msk [vmem:[%s2722_s7 + $0x20] sm:$0xf] %vm1673_vm6, %v1999_v4  ;;  %v1517_v2 = vsel %vm1503_vm5, %v2850_v31, 0.0  ;;  %v1998_v32 = vpack.c.bf16 %v2850_v31, %v2850_v31  ;;  %v1154_v20 = vmul.f32 %v2169_v39, %v2545_v18  ;;  %v3055_v48 = vld [vmem:[#allocation10_spill] sm:$0xff] }
  0xee   : > { %v1277_v25 = vadd.f32 %v1261_v50, %v1214_v6  ;;  %v1440_v40 = vadd.f32 %v1424_v16, %v1379_v41  ;;  %v1518_v49 = vadd.f32 %v1517_v2, %v1516_v7  ;;  %v1317_v61 = vmul.f32 %v2169_v39, %v2547_v19 }
  0xef   : > { %1681 = vst.msk [vmem:[%s2722_s7 + $0x1c] sm:$0xf] %vm1673_vm6, %v1998_v32  ;;  %v1482_v58 = vmul.f32 %v2169_v39, %v2554_v22  ;;  %v2168_v5 = vunpack.i.l.bf16 %v2167_v8  ;;  %v2164_v59 = vunpack.i.h.bf16 %v2162_v27  ;;  %v2163_v38 = vunpack.i.l.bf16 %v2162_v27 }
  0xf0   : > { %v1520_v33 = vadd.f32 %v1519_v13, %v1518_v49  ;;  %v2179_v46 = vunpack.i.h.bf16 %v2177_v35  ;;  %v2178_v52 = vunpack.i.l.bf16 %v2177_v35  ;;  %v2174_v11 = vunpack.i.h.bf16 %v2172_v43  ;;  %v2182_v60 = vpop.permute.xlu0 %2181 }
  0xf1   : > { %v1153_v55 = vmul.f32 %v2168_v5, %v2545_v18  ;;  %v1481_v28 = vmul.f32 %v2168_v5, %v2554_v22  ;;  %v971_v34 = vmul.f32 %v2164_v59, %v2541_v14  ;;  %v2173_v54 = vunpack.i.l.bf16 %v2172_v43  ;;  %v3058_v43 = vld [vmem:[#allocation2_spill] sm:$0xff] }
  0xf2   : > { %v1316_v47 = vmul.f32 %v2168_v5, %v2547_v19  ;;  %v1263_v50 = vmul.f32 %v2164_v59, %v2543_v17  ;;  %v1152_v39 = vmul.f32 %v2163_v38, %v2545_v18  ;;  %v1315_v8 = vmul.f32 %v2163_v38, %v2547_v19 }
  0xf3   : > { %v2874_v27 = vadd.f32 %v1481_v28, %v1441_v9  ;;  %v987_v30 = vadd.f32 %v971_v34, %v3054_v1  ;;  %v1426_v24 = vmul.f32 %v2164_v59, %v2552_v21  ;;  %v1480_v16 = vmul.f32 %v2163_v38, %v2554_v22 }
  0xf4   : > { %v1168_v14 = vadd.f32 %v1152_v39, %v985_v29  ;;  %v1331_v0 = vadd.f32 %v1315_v8, %v1277_v25  ;;  %v1265_v36 = vmul.f32 %v2179_v46, %v2543_v17  ;;  %v1428_v62 = vmul.f32 %v2179_v46, %v2552_v21  ;;  %v2192_v46 = vpop.permute.xlu0 %2191 }
  0xf5   : > { %v1523_v18 = vsel %vm1503_vm5, %v2874_v27, 0.0  ;;  %v2001_v15 = vpack.c.bf16 %v2874_v27, %v2874_v27  ;;  %v2885_v7 = vadd.f32 %v1480_v16, %v1440_v40  ;;  %v1264_v37 = vmul.f32 %v2178_v52, %v2543_v17 }
  0xf6   : > { %v1216_v4 = vadd.f32 %v3055_v48, %v1168_v14  ;;  %v1381_v29 = vadd.f32 %v3056_v10, %v1331_v0  ;;  %v1427_v13 = vmul.f32 %v2178_v52, %v2552_v21  ;;  %v1202_v6 = vmul.f32 %v2174_v11, %v3057_v53 }
  0xf7   : > { %1684 = vst.msk [vmem:[%s2722_s7 + $0x28] sm:$0xf] %vm1673_vm6, %v2001_v15  ;;  %v1521_v41 = vsel %vm1503_vm5, %v2885_v7, 0.0  ;;  %v2000_v9 = vpack.c.bf16 %v2885_v7, %v2885_v7  ;;  %v1169_v2 = vadd.f32 %v1153_v55, %v2822_v51  ;;  %v1170_v17 = vadd.f32 %v1154_v20, %v987_v30 }
  0xf8   : > { %v1279_v32 = vadd.f32 %v1263_v50, %v1216_v4  ;;  %v1442_v35 = vadd.f32 %v1426_v24, %v1381_v29  ;;  %v1367_v25 = vmul.f32 %v2174_v11, %v3058_v43  ;;  %v1201_v40 = vmul.f32 %v2173_v54, %v3057_v53 }
  0xf9   : > { %1683 = vst.msk [vmem:[%s2722_s7 + $0x24] sm:$0xf] %vm1673_vm6, %v2000_v9  ;;  %v1218_v49 = vadd.f32 %v1202_v6, %v1170_v17  ;;  %v1332_v5 = vadd.f32 %v1316_v47, %v1278_v23  ;;  %v1366_v59 = vmul.f32 %v2173_v54, %v3058_v43  ;;  %v2189_v38 = vunpack.i.h.bf16 %v2187_v42  ;;  %v1460_v6 = vpop.permute.xlu1 %1459 }
  0xfa   : > { %v2904_v52 = vadd.f32 %v1482_v58, %v1442_v35  ;;  %v1522_v28 = vadd.f32 %v1521_v41, %v1520_v33  ;;  %v1217_v51 = vadd.f32 %v1201_v40, %v1169_v2  ;;  %v1333_v20 = vadd.f32 %v1317_v61, %v1279_v32 }
  0xfb   : > { %v1382_v55 = vadd.f32 %v1366_v59, %v1332_v5  ;;  %v2188_v34 = vunpack.i.l.bf16 %v2187_v42  ;;  %v2184_v50 = vunpack.i.h.bf16 %v2182_v60  ;;  %v2183_v11 = vunpack.i.l.bf16 %v2182_v60 }
  0xfc   : > { %v2002_v39 = vpack.c.bf16 %v2904_v52, %v2904_v52  ;;  %v1383_v8 = vadd.f32 %v1367_v25, %v1333_v20  ;;  %v1369_v23 = vmul.f32 %v2189_v38, %v3058_v43  ;;  %v1280_v47 = vadd.f32 %v1264_v37, %v1217_v51 }
  0xfd   : > { %v1319_v54 = vmul.f32 %v2184_v50, %v2547_v19  ;;  %v1484_v58 = vmul.f32 %v2184_v50, %v2554_v22  ;;  %v1281_v1 = vadd.f32 %v1265_v36, %v1218_v49  ;;  %v1318_v33 = vmul.f32 %v2183_v11, %v2547_v19  ;;  %v1465_v36 = vpop.permute.xlu0 %1464 }
  0xfe   : > { %1685 = vst.msk [vmem:[%s2722_s7 + $0x2c] sm:$0xf] %vm1673_vm6, %v2002_v39  ;;  %v1443_v61 = vadd.f32 %v1427_v13, %v1382_v55  ;;  %v1444_v30 = vadd.f32 %v1428_v62, %v1383_v8  ;;  %v1483_v24 = vmul.f32 %v2183_v11, %v2554_v22  ;;  %v1524_v16 = vadd.f32 %v1523_v18, %v1522_v28 }
  0xff   : > { %v1368_v60 = vmul.f32 %v2188_v34, %v3058_v43  ;;  %v1334_v14 = vadd.f32 %v1318_v33, %v1280_v47  ;;  %v1335_v0 = vadd.f32 %v1319_v54, %v1281_v1  ;;  %v1525_v15 = vsel %vm1503_vm5, %v2904_v52, 0.0 }
 0x100   : > { %v2918_v37 = vadd.f32 %v1483_v24, %v1443_v61  ;;  %v2920_v19 = vadd.f32 %v1484_v58, %v1444_v30  ;;  %v1526_v48 = vadd.f32 %v1525_v15, %v1524_v16  ;;  %v2194_v4 = vunpack.i.h.bf16 %v2192_v46 }
 0x101   : > { %v2193_v62 = vunpack.i.l.bf16 %v2192_v46  ;;  %v1384_v10 = vadd.f32 %v1368_v60, %v1334_v14  ;;  %v1385_v18 = vadd.f32 %v1369_v23, %v1335_v0  ;;  %v1486_v42 = vmul.f32 %v2554_v22, %v1465_v36 }
 0x102   : > { %v1527_v29 = vsel %vm1503_vm5, %v2918_v37, 0.0  ;;  %v2003_v13 = vpack.c.bf16 %v2918_v37, %v2918_v37  ;;  %v2004_v53 = vpack.c.bf16 %v2920_v19, %v2920_v19  ;;  %v1529_v9 = vsel %vm1503_vm5, %v2920_v19, 0.0 }
 0x103   : > { %v1528_v41 = vadd.f32 %v1527_v29, %v1526_v48  ;;  %v1430_v2 = vmul.f32 %v2194_v4, %v2552_v21  ;;  %v1429_v17 = vmul.f32 %v2193_v62, %v2552_v21  ;;  %v1485_v32 = vmul.f32 %v2554_v22, %v1460_v6 }
 0x104   : > { %1686 = vst.msk [vmem:[%s2722_s7 + $0x30] sm:$0xf] %vm1673_vm6, %v2003_v13  ;;  %1687 = vst.msk [vmem:[%s2722_s7 + $0x34] sm:$0xf] %vm1673_vm6, %v2004_v53 }
 0x105   : > { %v1445_v35 = vadd.f32 %v1429_v17, %v1384_v10  ;;  %v1446_v43 = vadd.f32 %v1430_v2, %v1385_v18  ;;  %v1530_v25 = vadd.f32 %v1529_v9, %v1528_v41 }
 0x107   : > { %v2944_v40 = vadd.f32 %v1485_v32, %v1445_v35  ;;  %v2946_v49 = vadd.f32 %v1486_v42, %v1446_v43 }
 0x109   : > { %v2005_v21 = vpack.c.bf16 %v2944_v40, %v2944_v40  ;;  %v1531_v5 = vsel %vm1503_vm5, %v2944_v40, 0.0  ;;  %v2006_v22 = vpack.c.bf16 %v2946_v49, %v2946_v49  ;;  %v1533_v38 = vsel %vm1503_vm5, %v2946_v49, 0.0 }
 0x10a   : > { %v1532_v59 = vadd.f32 %v1531_v5, %v1530_v25 }
 0x10b   : > { %1688 = vst.msk [vmem:[%s2722_s7 + $0x38] sm:$0xf] %vm1673_vm6, %v2005_v21  ;;  %1689 = vst.msk [vmem:[%s2722_s7 + $0x3c] sm:$0xf] %vm1673_vm6, %v2006_v22 }
 0x10c   : > { %v1534_v46 = vadd.f32 %v1533_v38, %v1532_v59 }
 0x10e   : > { %v1535_v28 = vsel %vm1503_vm5, %v1534_v46, 0.0  ;;  %1607 = vst.msk [vmem:[%s452_s13] sm:$0xff] %vm1503_vm5, %v1534_v46 }
 0x10f   : > { %v1536_v51 = vrot.slane %v1535_v28, 4 }
 0x111   : > { %v1537_v20 = vadd.f32 %v1536_v51, %v1535_v28 }
 0x113   : > { %v1538_v55 = vrot.slane %v1537_v20, 2 }
 0x115   : > { %v1539_v34 = vadd.f32 %v1538_v55, %v1537_v20 }
 0x117   : > { %v1540_v50 = vrot.slane %v1539_v34, 1 }
 0x119   : > { %v1541_v11 = vadd.f32 %v1540_v50, %v1539_v34 }
 0x11b   : > { %v1543_v39 = vmul.f32 0.0078125, %v1541_v11 }
 0x11d   : > { %v1544_v8 = vsub.f32 %v2740_v26, %v1543_v39  ;;  %v1545_v23 = vsub.f32 %v2746_v3, %v1543_v39  ;;  %v1549_v47 = vsub.f32 %v2819_v57, %v1543_v39  ;;  %v1550_v54 = vsub.f32 %v2803_v63, %v1543_v39 }
 0x11e   : > { %v1551_v58 = vsub.f32 %v2850_v31, %v1543_v39  ;;  %v1546_v1 = vsub.f32 %v2717_v12, %v1543_v39  ;;  %v1552_v33 = vsub.f32 %v2841_v45, %v1543_v39  ;;  %v1547_v61 = vsub.f32 %v2780_v44, %v1543_v39 }
 0x11f   : > { %v1560_v30 = vmul.f32 %v1544_v8, %v1544_v8  ;;  %v1561_v24 = vmul.f32 %v1545_v23, %v1545_v23  ;;  %v1548_v16 = vsub.f32 %v2772_v56, %v1543_v39  ;;  %v1565_v12 = vmul.f32 %v1549_v47, %v1549_v47 }
 0x120   : > { %v1562_v60 = vmul.f32 %v1546_v1, %v1546_v1  ;;  %v1563_v26 = vmul.f32 %v1547_v61, %v1547_v61  ;;  %v1566_v44 = vmul.f32 %v1550_v54, %v1550_v54  ;;  %v1553_v56 = vsub.f32 %v2885_v7, %v1543_v39 }
 0x121   : > { %v1576_v3 = vsel %vm1503_vm5, %v1560_v30, 0.0  ;;  %v1577_v57 = vsel %vm1503_vm5, %v1561_v24, 0.0  ;;  %v1564_v63 = vmul.f32 %v1548_v16, %v1548_v16  ;;  %v1567_v4 = vmul.f32 %v1551_v58, %v1551_v58 }
 0x122   : > { %v1578_v14 = vadd.f32 %v1577_v57, %v1576_v3  ;;  %v1579_v31 = vsel %vm1503_vm5, %v1562_v60, 0.0  ;;  %v1581_v45 = vsel %vm1503_vm5, %v1563_v26, 0.0  ;;  %v1585_v62 = vsel %vm1503_vm5, %v1565_v12, 0.0 }
 0x123   : > { %v1583_v36 = vsel %vm1503_vm5, %v1564_v63, 0.0  ;;  %v1554_v18 = vsub.f32 %v2874_v27, %v1543_v39  ;;  %v1568_v29 = vmul.f32 %v1552_v33, %v1552_v33  ;;  %v1587_v13 = vsel %vm1503_vm5, %v1566_v44, 0.0 }
 0x124   : > { %v1580_v0 = vadd.f32 %v1579_v31, %v1578_v14  ;;  %v1555_v6 = vsub.f32 %v2904_v52, %v1543_v39  ;;  %v1569_v42 = vmul.f32 %v1553_v56, %v1553_v56  ;;  %v1589_v41 = vsel %vm1503_vm5, %v1567_v4, 0.0 }
 0x125   : > { %v1556_v2 = vsub.f32 %v2918_v37, %v1543_v39  ;;  %v1570_v17 = vmul.f32 %v1554_v18, %v1554_v18  ;;  %v1591_v7 = vsel %vm1503_vm5, %v1568_v29, 0.0  ;;  %v1557_v35 = vsub.f32 %v2920_v19, %v1543_v39 }
 0x126   : > { %v1582_v15 = vadd.f32 %v1581_v45, %v1580_v0  ;;  %v1571_v43 = vmul.f32 %v1555_v6, %v1555_v6  ;;  %v1593_v27 = vsel %vm1503_vm5, %v1569_v42, 0.0  ;;  %v1558_v21 = vsub.f32 %v2944_v40, %v1543_v39 }
 0x127   : > { %v1572_v52 = vmul.f32 %v1556_v2, %v1556_v2  ;;  %v1595_v5 = vsel %vm1503_vm5, %v1570_v17, 0.0  ;;  %v1559_v59 = vsub.f32 %v2946_v49, %v1543_v39  ;;  %v1573_v37 = vmul.f32 %v1557_v35, %v1557_v35 }
 0x128   : > { %v1584_v48 = vadd.f32 %v1583_v36, %v1582_v15  ;;  %v1597_v38 = vsel %vm1503_vm5, %v1571_v43, 0.0  ;;  %v1574_v28 = vmul.f32 %v1558_v21, %v1558_v21 }
 0x129   : > { %v1599_v19 = vsel %vm1503_vm5, %v1572_v52, 0.0  ;;  %v1575_v20 = vmul.f32 %v1559_v59, %v1559_v59  ;;  %v1601_v55 = vsel %vm1503_vm5, %v1573_v37, 0.0 }
 0x12a   : > { %v1586_v10 = vadd.f32 %v1585_v62, %v1584_v48  ;;  %v1603_v40 = vsel %vm1503_vm5, %v1574_v28, 0.0 }
 0x12b   : > { %v1605_v49 = vsel %vm1503_vm5, %v1575_v20, 0.0 }
 0x12c   : > { %v1588_v53 = vadd.f32 %v1587_v13, %v1586_v10 }
 0x12e   : > { %v1590_v9 = vadd.f32 %v1589_v41, %v1588_v53 }
 0x130   : > { %v1592_v32 = vadd.f32 %v1591_v7, %v1590_v9 }
 0x132   : > { %v1594_v25 = vadd.f32 %v1593_v27, %v1592_v32 }
 0x134   : > { %v1596_v22 = vadd.f32 %v1595_v5, %v1594_v25 }
 0x136   : > { %v1598_v46 = vadd.f32 %v1597_v38, %v1596_v22 }
 0x138   : > { %v1600_v51 = vadd.f32 %v1599_v19, %v1598_v46 }
 0x13a   : > { %v1602_v34 = vadd.f32 %v1601_v55, %v1600_v51 }
 0x13c   : > { %v1604_v50 = vadd.f32 %v1603_v40, %v1602_v34 }
 0x13e   : > { %v1606_v11 = vadd.f32 %v1605_v49, %v1604_v50 }
 0x140   : > { %1608 = vst.msk [vmem:[%s460_s20] sm:$0xff] %vm1503_vm5, %v1606_v11 }
 0x141 PF: > { %s17_s25 = sadd.s32 1, %s2233_s25   ;;  %s3059_s21 = smov %s2225_s23 }
 0x142   : > { %p14_p12 = scmp.ge.s32.totalorder %s17_s25, 6   ;;  %s3060_s22 = smov %s2229_s24 }
 0x143   : > { %s3061_s23 = smov %s3064_s26  ;;  %s3062_s24 = smov %s3068_s27 }
 0x144   :  { %16 = sbr.rel (!%p14_p12) target bundleno = 3 (0x3), region = 96 }

// kernel: resnet_dc_forward.14
= control target key start
LH: loop header
LB: loop body
LE: loop exit
PB: predicated region body
PF: predicated region fallthrough
CT: control target
= control target key end

     0   :  { %s1587_s30 = smov 0   ;;  %s1589_s10 = smov 0   ;;  %s1796_s0 = inlined_call_operand.vmem [shape: bf16[2,16,16,32], index: 0, kind: input, shape index: {}]   ;;  %s1797_s1 = inlined_call_operand.vmem [shape: f32[1,32], index: 1, kind: input, shape index: {}]   ;;  %s1798_s2 = inlined_call_operand.vmem [shape: f32[1,32], index: 2, kind: input, shape index: {}]   ;;  %s1799_s3 = inlined_call_operand.vmem [shape: bf16[2,16,16,32], index: 3, kind: input, shape index: {}]   ;;  %s1800_s4 = inlined_call_operand.vmem [shape: bf16[32,32], index: 4, kind: input, shape index: {}]   ;;  %s1801_s5 = inlined_call_operand.vmem [shape: bf16[32,32], index: 5, kind: input, shape index: {}]   ;;  %s1802_s6 = inlined_call_operand.vmem [shape: f32[1,32], index: 6, kind: input, shape index: {}]   ;;  %s1803_s7 = inlined_call_operand.vmem [shape: f32[2,16,16], index: 7, kind: input, shape index: {}]   ;;  %s1804_s8 = inlined_call_operand.vmem [shape: f32[2,16,16], index: 8, kind: input, shape index: {}]   ;;  %s1805_s9 = inlined_call_operand.vmem [shape: f32[2,16,16], index: 9, kind: output, shape index: {}]  }
   0x1   :  { %s1591_s11 = smov 0   ;;  %s1593_s12 = smov 0  }
   0x2   :  { %s1595_s13 = smov 0  }
   0x3 LB: > { %s28_s14 = sadd.s32 1, %s1527_s11  ;;  %s31_s15 = sadd.s32 1, %s1531_s12  ;;  %s1535_s13 = sphi %s1595_s13, %s19_s13   ;;  %s1531_s12 = sphi %s1593_s12, %s1809_s12   ;;  %s1527_s11 = sphi %s1591_s11, %s1808_s11   ;;  %s1523_s10 = sphi %s1589_s10, %s1807_s10   ;;  %s1519_s30 = sphi %s1587_s30, %s1806_s30  }
   0x4   : > { %p29_p0 = scmp.ge.s32.totalorder %s28_s14, 2  ;;  %p1275_p1 = scmp.ge.s32.totalorder %s1535_s13, 1 }
   0x5   : > { %p357_p2 = scmp.lt.s32.totalorder %s1535_s13, 5 }
   0x6   : > { %s1811_s14 = smov (%p29_p0, %s28_s14), 0  ;;  %s1813_s15 = smov (!%p29_p0, %s31_s15), %s1531_s12 }
   0x7   : > { %p358_p3 = pnand %p1275_p1, %p357_p2  ;;  %p33_p4 = scmp.ge.s32.totalorder %s1813_s15, 2 }
   0x8   : > { %s1276_s18 = sshll.u32 (!%p358_p3), %s1519_s30, 3  ;;  %p428_p5 = scmp.lt.s32.totalorder (!%p358_p3), %s1523_s10, 1 }
   0x9   : > { %s1815_s15 = smov (%p33_p4, %s1813_s15), 0  ;;  %361 = sbr.rel (%p358_p3) target bundleno = 616 (0x268), region = 56 }
   0xa   : > { %p430_p6 = scmp.lt.s32.totalorder (!%p358_p3), %s1276_s18, 15  ;;  %p451_p7 = scmp.lt.s32.totalorder (!%p358_p3), %s1519_s30, 1 }
   0xe   : > { %v1493_v0 = vld [vmem:[%s1800_s4 + $0x8] sm:$0xff]   ;;  %v1494_v1 = vld [vmem:[%s1800_s4] sm:$0xff]   ;;  %s1817_s10 = smov (!%p428_p5, %s1523_s10), 1  ;;  %s1819_s18 = smov (!%p430_p6, %s1276_s18), 15  ;;  %vm640_vm0 = vcmask 261120   ;;  %vm1039_vm1 = vcmask 130112  }
   0xf   : > { %1413 = vmatprep.subr.bf16.mxu0 %v1493_v0  ;;  %s1278_s21 = sshll.u32 %s1817_s10, 5  ;;  %s1277_s22 = sshll.u32 %s1819_s18, 1  ;;  %v1642_v2 = vld [vmem:[%s1797_s1] ss:$0 sm:$0xff]  ;;  %vm1104_vm2 = vcmask 1041409   ;;  %vm1106_vm3 = vcmask 1042434  }
  0x10   : > { %1414 = vmatpush3.bf16.msra.mxu0 %v1493_v0  ;;  %s434_s23 = sadd.s32 %s1278_s21, %s1277_s22  ;;  %v1653_v13 = vld [vmem:[%s1798_s2] ss:$0 sm:$0xff]  ;;  %s1821_s30 = smov (!%p451_p7, %s1519_s30), 1  ;;  %vm1108_vm4 = vcmask 1043459   ;;  %vm1110_vm5 = vcmask 1044484   ;;  %vm1112_vm6 = vcmask 1045509  }
  0x11   : > { %1415 = vmatprep.subr.bf16.mxu0 %v1494_v1  ;;  %s1279_s24 = sshll.u32 %s434_s23, 2  ;;  %vm1114_vm7 = vcmask 1046534   ;;  %vm1116_vm8 = vcmask 1047559   ;;  %vm1123_vm9 = vcmask 130048  }
  0x12   : > { %s1632_s27 = scalar_lea.vmem %s1796_s0, %s1279_s24  ;;  %s1637_s16 = scalar_lea.vmem %s1799_s3, %s1279_s24 }
  0x13   : > { %v1316_v3 = vld [vmem:[%s1632_s27] sm:$0xff]   ;;  %v1379_v5 = vld [vmem:[%s1632_s27 + $0x8] sm:$0xff]   ;;  %v1380_v11 = vld [vmem:[%s1632_s27 + $0x10] sm:$0xff]  }
  0x14   : > { %1416 = vmatpush3.bf16.msra.mxu0 %v1494_v1  ;;  %v1348_v4 = vld [vmem:[%s1637_s16] sm:$0xff]   ;;  %v1317_v6 = vunpack.c.l.bf16 %v1316_v3  ;;  %v1318_v7 = vunpack.c.h.bf16 %v1316_v3  ;;  %v1386_v10 = vld [vmem:[%s1637_s16 + $0x8] sm:$0xff]   ;;  %v1387_v12 = vld [vmem:[%s1637_s16 + $0x10] sm:$0xff]   ;;  %v1321_v14 = vunpack.c.l.bf16 %v1379_v5  ;;  %v1322_v15 = vunpack.c.h.bf16 %v1379_v5 }
  0x15   : > { %v1349_v8 = vunpack.c.l.bf16 %v1348_v4  ;;  %v1350_v9 = vunpack.c.h.bf16 %v1348_v4  ;;  %v1353_v16 = vunpack.c.l.bf16 %v1386_v10  ;;  %v1354_v17 = vunpack.c.h.bf16 %v1386_v10  ;;  %v1381_v22 = vld [vmem:[%s1632_s27 + $0x18] sm:$0xff]   ;;  %v1382_v44 = vld [vmem:[%s1632_s27 + $0x20] sm:$0xff]   ;;  %v1383_v58 = vld [vmem:[%s1632_s27 + $0x28] sm:$0xff]  }
  0x16   : > { %v545_v18 = vmul.f32 %v1317_v6, %v1642_v2  ;;  %v546_v19 = vmul.f32 %v1318_v7, %v1642_v2  ;;  %v1325_v20 = vunpack.c.l.bf16 %v1380_v11  ;;  %v1326_v21 = vunpack.c.h.bf16 %v1380_v11  ;;  %v1388_v31 = vld [vmem:[%s1637_s16 + $0x18] sm:$0xff]   ;;  %v1389_v53 = vld [vmem:[%s1637_s16 + $0x20] sm:$0xff]   ;;  %v1390_v63 = vld [vmem:[%s1637_s16 + $0x28] sm:$0xff]  }
  0x17   : > { %v547_v23 = vmul.f32 %v1321_v14, %v1642_v2  ;;  %v548_v24 = vmul.f32 %v1322_v15, %v1642_v2  ;;  %v1357_v25 = vunpack.c.l.bf16 %v1387_v12  ;;  %v1358_v26 = vunpack.c.h.bf16 %v1387_v12  ;;  %v1391_v15 = vld [vmem:[%s1637_s16 + $0x30] sm:$0xff]  }
  0x18   : > { %v568_v27 = vadd.f32 %v1653_v13, %v545_v18  ;;  %v569_v28 = vadd.f32 %v1653_v13, %v546_v19  ;;  %v549_v29 = vmul.f32 %v1325_v20, %v1642_v2  ;;  %v550_v30 = vmul.f32 %v1326_v21, %v1642_v2 }
  0x19   : > { %v570_v32 = vadd.f32 %v1653_v13, %v547_v23  ;;  %v571_v33 = vadd.f32 %v1653_v13, %v548_v24  ;;  %v1329_v34 = vunpack.c.l.bf16 %v1381_v22  ;;  %v1330_v35 = vunpack.c.h.bf16 %v1381_v22  ;;  %v1385_v24 = vld [vmem:[%s1632_s27 + $0x38] sm:$0xff]  }
  0x1a   : > { %v584_v36 = vadd.f32 %v1349_v8, %v568_v27  ;;  %v585_v37 = vadd.f32 %v1350_v9, %v569_v28  ;;  %v572_v38 = vadd.f32 %v1653_v13, %v549_v29  ;;  %v573_v39 = vadd.f32 %v1653_v13, %v550_v30  ;;  %v1384_v9 = vld [vmem:[%s1632_s27 + $0x30] sm:$0xff]   ;;  %v1392_v29 = vld [vmem:[%s1637_s16 + $0x38] sm:$0xff]   ;;  %s1284_s27 = sshll.u32 %s1817_s10, 1 }
  0x1b   : > { %v586_v40 = vadd.f32 %v1353_v16, %v570_v32  ;;  %v587_v41 = vadd.f32 %v1354_v17, %v571_v33  ;;  %v1361_v42 = vunpack.c.l.bf16 %v1388_v31  ;;  %v1362_v43 = vunpack.c.h.bf16 %v1388_v31  ;;  %s454_s28 = sadd.s32 %s1284_s27, %s1821_s30 }
  0x1c   : > { %v600_v45 = vmax.f32 %v584_v36, 0.0  ;;  %v601_v46 = vmax.f32 %v585_v37, 0.0  ;;  %v588_v47 = vadd.f32 %v1357_v25, %v572_v38  ;;  %v589_v48 = vadd.f32 %v1358_v26, %v573_v39  ;;  %s1761_s10 = sshll.u32 %s454_s28, 3 }
  0x1d   : > { %v602_v49 = vmax.f32 %v586_v40, 0.0  ;;  %v603_v50 = vmax.f32 %v587_v41, 0.0  ;;  %v551_v51 = vmul.f32 %v1329_v34, %v1642_v2  ;;  %v552_v52 = vmul.f32 %v1330_v35, %v1642_v2  ;;  %s456_s16 = scalar_lea.vmem %s1803_s7, %s1761_s10  ;;  %s464_s18 = scalar_lea.vmem %s1804_s8, %s1761_s10 }
  0x1e   : > { %v616_v54 = vpack.c.bf16 %v601_v46, %v600_v45  ;;  %v604_v55 = vmax.f32 %v588_v47, 0.0  ;;  %v605_v56 = vmax.f32 %v589_v48, 0.0  ;;  %v1333_v57 = vunpack.c.l.bf16 %v1382_v44  ;;  %s472_s22 = scalar_lea.vmem %s1805_s9, %s1761_s10 }
  0x1f   : > { %v617_v59 = vpack.c.bf16 %v603_v50, %v602_v49  ;;  %v574_v60 = vadd.f32 %v1653_v13, %v551_v51  ;;  %v575_v61 = vadd.f32 %v1653_v13, %v552_v52  ;;  %v1334_v62 = vunpack.c.h.bf16 %v1382_v44 }
  0x20   : > { %1417 = vmatprep.mubr.msk.bf16.mxu0 %vm640_vm0, %v616_v54  ;;  %v618_v0 = vpack.c.bf16 %v605_v56, %v604_v55  ;;  %v1365_v1 = vunpack.c.l.bf16 %v1389_v53  ;;  %v1366_v3 = vunpack.c.h.bf16 %v1389_v53  ;;  %v553_v4 = vmul.f32 %v1333_v57, %v1642_v2 }
  0x21   : > { %1418 = vmatmul.mubr.msk.bf16.vlgmr.msra.gmra.mxu0 %vm640_vm0, %v617_v59  ;;  %v590_v5 = vadd.f32 %v1361_v42, %v574_v60  ;;  %v591_v6 = vadd.f32 %v1362_v43, %v575_v61  ;;  %v554_v7 = vmul.f32 %v1334_v62, %v1642_v2  ;;  %v1337_v8 = vunpack.c.l.bf16 %v1383_v58  ;;  %v1495_v61 = vld [vmem:[%s1801_s5 + $0x8] sm:$0xff]  }
  0x22   : > { %1421 = vmatprep.mubr.msk.bf16.mxu0 %vm640_vm0, %v618_v0  ;;  %v576_v10 = vadd.f32 %v1653_v13, %v553_v4  ;;  %v1338_v11 = vunpack.c.h.bf16 %v1383_v58  ;;  %v1369_v12 = vunpack.c.l.bf16 %v1390_v63  ;;  %v1370_v14 = vunpack.c.h.bf16 %v1390_v63  ;;  %1433 = vmatprep.subr.bf16.mxu1 %v1495_v61 }
  0x23   : > { %v606_v16 = vmax.f32 %v590_v5, 0.0  ;;  %v607_v17 = vmax.f32 %v591_v6, 0.0  ;;  %v577_v18 = vadd.f32 %v1653_v13, %v554_v7  ;;  %v555_v19 = vmul.f32 %v1337_v8, %v1642_v2  ;;  %1434 = vmatpush3.bf16.msra.mxu1 %v1495_v61 }
  0x24   : > { %v592_v20 = vadd.f32 %v1365_v1, %v576_v10  ;;  %v556_v21 = vmul.f32 %v1338_v11, %v1642_v2  ;;  %v1341_v22 = vunpack.c.l.bf16 %v1384_v9  ;;  %v1342_v23 = vunpack.c.h.bf16 %v1384_v9 }
  0x25   : > { %v619_v25 = vpack.c.bf16 %v607_v17, %v606_v16  ;;  %v593_v26 = vadd.f32 %v1366_v3, %v577_v18  ;;  %v578_v27 = vadd.f32 %v1653_v13, %v555_v19  ;;  %v1373_v28 = vunpack.c.l.bf16 %v1391_v15 }
  0x26   : > { %v608_v30 = vmax.f32 %v592_v20, 0.0  ;;  %v579_v31 = vadd.f32 %v1653_v13, %v556_v21  ;;  %v1374_v32 = vunpack.c.h.bf16 %v1391_v15  ;;  %v557_v33 = vmul.f32 %v1341_v22, %v1642_v2 }
  0x27   : > { %v609_v34 = vmax.f32 %v593_v26, 0.0  ;;  %v594_v35 = vadd.f32 %v1369_v12, %v578_v27  ;;  %v558_v36 = vmul.f32 %v1342_v23, %v1642_v2  ;;  %v1345_v37 = vunpack.c.l.bf16 %v1385_v24 }
  0x28   : > { %v595_v38 = vadd.f32 %v1370_v14, %v579_v31  ;;  %v580_v39 = vadd.f32 %v1653_v13, %v557_v33  ;;  %v1346_v40 = vunpack.c.h.bf16 %v1385_v24  ;;  %v1377_v41 = vunpack.c.l.bf16 %v1392_v29 }
  0x29   : > { %1422 = vmatmul.mubr.msk.bf16.gmra.mxu0 %vm640_vm0, %v619_v25  ;;  %v620_v42 = vpack.c.bf16 %v609_v34, %v608_v30  ;;  %v610_v43 = vmax.f32 %v594_v35, 0.0  ;;  %v581_v44 = vadd.f32 %v1653_v13, %v558_v36  ;;  %v1378_v45 = vunpack.c.h.bf16 %v1392_v29 }
  0x2a   : > { %v611_v46 = vmax.f32 %v595_v38, 0.0  ;;  %v596_v47 = vadd.f32 %v1373_v28, %v580_v39  ;;  %v559_v48 = vmul.f32 %v1345_v37, %v1642_v2  ;;  %v560_v49 = vmul.f32 %v1346_v40, %v1642_v2 }
  0x2b   : > { %1425 = vmatprep.mubr.msk.bf16.mxu0 %vm640_vm0, %v620_v42  ;;  %v597_v50 = vadd.f32 %v1374_v32, %v581_v44 }
  0x2c   : > { %v612_v51 = vmax.f32 %v596_v47, 0.0  ;;  %v582_v52 = vadd.f32 %v1653_v13, %v559_v48  ;;  %v583_v53 = vadd.f32 %v1653_v13, %v560_v49  ;;  %v621_v54 = vpack.c.bf16 %v611_v46, %v610_v43  ;;  %v1496_v13 = vld [vmem:[%s1801_s5] sm:$0xff]  }
  0x2d   : > { %v613_v55 = vmax.f32 %v597_v50, 0.0  ;;  %1435 = vmatprep.subr.bf16.mxu1 %v1496_v13 }
  0x2e   : > { %v598_v56 = vadd.f32 %v1377_v41, %v582_v52  ;;  %v599_v57 = vadd.f32 %v1378_v45, %v583_v53  ;;  %1436 = vmatpush3.bf16.msra.mxu1 %v1496_v13  ;;  %v1722_v41 = vld [vmem:[%s1802_s6] ss:$0 sm:$0xff] }
  0x2f   : > { %v622_v58 = vpack.c.bf16 %v613_v55, %v612_v51 }
  0x30   : > { %v614_v59 = vmax.f32 %v598_v56, 0.0  ;;  %v615_v60 = vmax.f32 %v599_v57, 0.0 }
  0x31   : > { %1426 = vmatmul.mubr.msk.bf16.gmra.mxu0 %vm640_vm0, %v621_v54 }
  0x32   : > { %1429 = vmatprep.mubr.msk.bf16.mxu0 %vm640_vm0, %v622_v58  ;;  %v623_v2 = vpack.c.bf16 %v615_v60, %v614_v59 }
  0x39   : > { %1430 = vmatmul.mubr.msk.bf16.gmra.mxu0 %vm640_vm0, %v623_v2 }
  0xe1   : > { %v1419_v62 = vpop.f32.mrf.mxu0 }
  0xe2   : > { %v764_v6 = vmax.f32 %v1419_v62, 0.0 }
  0xe3   : > { %v699_v63 = vpop.f32.mrf.mxu0 }
  0xe4   : > { %v762_v4 = vmax.f32 %v699_v63, 0.0 }
  0xe5   : > { %v1420_v0 = vpop.f32.mrf.mxu0 }
  0xe6   : > { %v765_v1 = vmax.f32 %v1420_v0, 0.0 }
  0xe7   : > { %v702_v3 = vpop.f32.mrf.mxu0 }
  0xe8   : > { %v763_v5 = vmax.f32 %v702_v3, 0.0  ;;  %v779_v9 = vpack.c.bf16 %v765_v1, %v764_v6 }
  0xe9   : > { %v1423_v7 = vpop.f32.mrf.mxu0 }
  0xea   : > { %v778_v8 = vpack.c.bf16 %v763_v5, %v762_v4  ;;  %v768_v17 = vmax.f32 %v1423_v7, 0.0 }
  0xeb   : > { %v715_v10 = vpop.f32.mrf.mxu0 }
  0xec   : > { %1437 = vmatprep.mubr.msk.bf16.mxu1 %vm640_vm0, %v778_v8  ;;  %v766_v15 = vmax.f32 %v715_v10, 0.0 }
  0xed   : > { %v1424_v11 = vpop.f32.mrf.mxu0  ;;  %1438 = vmatmul.mubr.msk.bf16.vlgmr.msra.gmra.mxu1 %vm640_vm0, %v779_v9 }
  0xee   : > { %v769_v12 = vmax.f32 %v1424_v11, 0.0 }
  0xef   : > { %v718_v14 = vpop.f32.mrf.mxu0 }
  0xf0   : > { %v767_v16 = vmax.f32 %v718_v14, 0.0  ;;  %v781_v20 = vpack.c.bf16 %v769_v12, %v768_v17 }
  0xf1   : > { %v1427_v18 = vpop.f32.mrf.mxu0 }
  0xf2   : > { %v780_v19 = vpack.c.bf16 %v767_v16, %v766_v15  ;;  %v772_v27 = vmax.f32 %v1427_v18, 0.0 }
  0xf3   : > { %v731_v21 = vpop.f32.mrf.mxu0 }
  0xf4   : > { %1441 = vmatprep.mubr.msk.bf16.mxu1 %vm640_vm0, %v780_v19  ;;  %v770_v25 = vmax.f32 %v731_v21, 0.0 }
  0xf5   : > { %v1428_v22 = vpop.f32.mrf.mxu0  ;;  %1442 = vmatmul.mubr.msk.bf16.gmra.mxu1 %vm640_vm0, %v781_v20 }
  0xf6   : > { %v773_v23 = vmax.f32 %v1428_v22, 0.0 }
  0xf7   : > { %v734_v24 = vpop.f32.mrf.mxu0 }
  0xf8   : > { %v771_v26 = vmax.f32 %v734_v24, 0.0  ;;  %v783_v30 = vpack.c.bf16 %v773_v23, %v772_v27 }
  0xf9   : > { %v1431_v28 = vpop.f32.mrf.mxu0 }
  0xfa   : > { %v782_v29 = vpack.c.bf16 %v771_v26, %v770_v25  ;;  %v776_v37 = vmax.f32 %v1431_v28, 0.0 }
  0xfb   : > { %v747_v31 = vpop.f32.mrf.mxu0 }
  0xfc   : > { %1445 = vmatprep.mubr.msk.bf16.mxu1 %vm640_vm0, %v782_v29  ;;  %v774_v35 = vmax.f32 %v747_v31, 0.0 }
  0xfd   : > { %v1432_v32 = vpop.f32.mrf.mxu0  ;;  %1446 = vmatmul.mubr.msk.bf16.gmra.mxu1 %vm640_vm0, %v783_v30 }
  0xfe   : > { %v777_v33 = vmax.f32 %v1432_v32, 0.0 }
  0xff   : > { %v750_v34 = vpop.f32.mrf.mxu0 }
 0x100   : > { %v775_v36 = vmax.f32 %v750_v34, 0.0  ;;  %v785_v39 = vpack.c.bf16 %v777_v33, %v776_v37 }
 0x102   : > { %v784_v38 = vpack.c.bf16 %v775_v36, %v774_v35 }
 0x104   : > { %1449 = vmatprep.mubr.msk.bf16.mxu1 %vm640_vm0, %v784_v38 }
 0x105   : > { %1450 = vmatmul.mubr.msk.bf16.gmra.mxu1 %vm640_vm0, %v785_v39 }
 0x1ad   : > { %v1439_v40 = vpop.f32.mrf.mxu1 }
 0x1ae   : > { %v925_v42 = vmax.f32 %v1439_v40, 0.0 }
 0x1af   : > { %v860_v43 = vpop.f32.mrf.mxu1 }
 0x1b0   : > { %v923_v44 = vmax.f32 %v860_v43, 0.0  ;;  %v948_v45 = vmul.f32 %v1722_v41, %v925_v42 }
 0x1b1   : > { %v1440_v46 = vpop.f32.mrf.mxu1 }
 0x1b2   : > { %v926_v47 = vmax.f32 %v1440_v46, 0.0  ;;  %v968_v48 = vsel %vm640_vm0, %v948_v45, 0.0  ;;  %v946_v49 = vmul.f32 %v1722_v41, %v923_v44  ;;  %v1028_v46 = vlaneseq }
 0x1b3   : > { %969 = vadd.xlane.f32.xlu1 %v968_v48  ;;  %v863_v50 = vpop.f32.mrf.mxu1 }
 0x1b4   : > { %v924_v51 = vmax.f32 %v863_v50, 0.0  ;;  %v962_v52 = vsel %vm640_vm0, %v946_v49, 0.0  ;;  %v949_v53 = vmul.f32 %v1722_v41, %v926_v47  ;;  %v1029_v49 = vand.u32 127, %v1028_v46 }
 0x1b5   : > { %963 = vadd.xlane.f32.xlu0 %v962_v52  ;;  %v1443_v54 = vpop.f32.mrf.mxu1 }
 0x1b6   : > { %v929_v55 = vmax.f32 %v1443_v54, 0.0  ;;  %v971_v56 = vsel %vm640_vm0, %v949_v53, 0.0  ;;  %v947_v57 = vmul.f32 %v1722_v41, %v924_v51  ;;  %v1034_v51 = vadd.s32 4294967288, %v1029_v49 }
 0x1b7   : > { %972 = vadd.xlane.f32.xlu1 %v971_v56  ;;  %v876_v58 = vpop.f32.mrf.mxu1 }
 0x1b8   : > { %v927_v59 = vmax.f32 %v876_v58, 0.0  ;;  %v965_v60 = vsel %vm640_vm0, %v947_v57, 0.0  ;;  %v952_v2 = vmul.f32 %v1722_v41, %v929_v55 }
 0x1b9   : > { %966 = vadd.xlane.f32.xlu0 %v965_v60  ;;  %v1444_v61 = vpop.f32.mrf.mxu1 }
 0x1ba   : > { %v930_v13 = vmax.f32 %v1444_v61, 0.0  ;;  %v980_v0 = vsel %vm640_vm0, %v952_v2, 0.0  ;;  %v950_v3 = vmul.f32 %v1722_v41, %v927_v59 }
 0x1bb   : > { %v879_v62 = vpop.f32.mrf.mxu1 }
 0x1bc   : > { %v928_v63 = vmax.f32 %v879_v62, 0.0  ;;  %v953_v1 = vmul.f32 %v1722_v41, %v930_v13  ;;  %v974_v10 = vsel %vm640_vm0, %v950_v3, 0.0 }
 0x1bd   : > { %981 = vadd.xlane.f32.xlu0 %v980_v0  ;;  %v1447_v4 = vpop.f32.mrf.mxu1 }
 0x1be   : > { %v933_v5 = vmax.f32 %v1447_v4, 0.0  ;;  %v983_v6 = vsel %vm640_vm0, %v953_v1, 0.0  ;;  %v951_v7 = vmul.f32 %v1722_v41, %v928_v63 }
 0x1bf   : > { %984 = vadd.xlane.f32.xlu1 %v983_v6  ;;  %v892_v8 = vpop.f32.mrf.mxu1 }
 0x1c0   : > { %v931_v9 = vmax.f32 %v892_v8, 0.0  ;;  %v956_v11 = vmul.f32 %v1722_v41, %v933_v5  ;;  %v977_v15 = vsel %vm640_vm0, %v951_v7, 0.0 }
 0x1c1   : > { %975 = vadd.xlane.f32.xlu0 %v974_v10  ;;  %v1448_v12 = vpop.f32.mrf.mxu1 }
 0x1c2   : > { %v934_v14 = vmax.f32 %v1448_v12, 0.0  ;;  %v992_v18 = vsel %vm640_vm0, %v956_v11, 0.0  ;;  %v954_v20 = vmul.f32 %v1722_v41, %v931_v9 }
 0x1c3   : > { %978 = vadd.xlane.f32.xlu1 %v977_v15  ;;  %v895_v16 = vpop.f32.mrf.mxu1 }
 0x1c4   : > { %v932_v17 = vmax.f32 %v895_v16, 0.0  ;;  %v957_v19 = vmul.f32 %v1722_v41, %v934_v14  ;;  %v986_v27 = vsel %vm640_vm0, %v954_v20, 0.0 }
 0x1c5   : > { %993 = vadd.xlane.f32.xlu0 %v992_v18  ;;  %v1451_v21 = vpop.f32.mrf.mxu1 }
 0x1c6   : > { %v995_v22 = vsel %vm640_vm0, %v957_v19, 0.0  ;;  %v955_v23 = vmul.f32 %v1722_v41, %v932_v17  ;;  %v937_v25 = vmax.f32 %v1451_v21, 0.0  ;;  %v1010_v19 = vld [vmem:[%s456_s16] sm:$0xff] }
 0x1c7   : > { %996 = vadd.xlane.f32.xlu1 %v995_v22  ;;  %v908_v24 = vpop.f32.mrf.mxu1 }
 0x1c8   : > { %v935_v26 = vmax.f32 %v908_v24, 0.0  ;;  %v989_v29 = vsel %vm640_vm0, %v955_v23, 0.0  ;;  %v960_v35 = vmul.f32 %v1722_v41, %v937_v25  ;;  %v1120_v23 = vld [vmem:[%s464_s18] sm:$0xff] }
 0x1c9   : > { %987 = vadd.xlane.f32.xlu0 %v986_v27  ;;  %v1452_v28 = vpop.f32.mrf.mxu1  ;;  %v1011_v27 = vsub.f32 1.0, %v1010_v19 }
 0x1ca   : > { %v958_v30 = vmul.f32 %v1722_v41, %v935_v26  ;;  %v938_v32 = vmax.f32 %v1452_v28, 0.0  ;;  %v1004_v37 = vsel %vm640_vm0, %v960_v35, 0.0 }
 0x1cb   : > { %990 = vadd.xlane.f32.xlu1 %v989_v29  ;;  %v911_v31 = vpop.f32.mrf.mxu1 }
 0x1cc   : > { %v936_v33 = vmax.f32 %v911_v31, 0.0  ;;  %v998_v34 = vsel %vm640_vm0, %v958_v30, 0.0  ;;  %v961_v39 = vmul.f32 %v1722_v41, %v938_v32  ;;  %v1121_v31 = vmul.f32 %v1120_v23, %v1010_v19 }
 0x1cd   : > { %999 = vadd.xlane.f32.xlu0 %v998_v34 }
 0x1ce   : > { %v959_v36 = vmul.f32 %v1722_v41, %v936_v33  ;;  %v1007_v40 = vsel %vm640_vm0, %v961_v39, 0.0  ;;  %v1031_v41 = vshrl.u32 %v1028_v46, 7 }
 0x1d0   : > { %v1001_v38 = vsel %vm640_vm0, %v959_v36, 0.0  ;;  %v1037_v54 = vsub.s32 %v1034_v51, %v1031_v41  ;;  %v1032_v56 = vsub.s32 %v1029_v49, %v1031_v41 }
 0x1d1   : > { %1005 = vadd.xlane.f32.xlu0 %v1004_v37  ;;  %1002 = vadd.xlane.f32.xlu1 %v1001_v38 }
 0x1d5   : > { %1008 = vadd.xlane.f32.xlu1 %v1007_v40 }
 0x23c   : > { %v970_v42 = vpop.xlane.xlu1 %969 }
 0x23d   : > { %v1044_v62 = vrot.slane %v970_v42, %v1032_v56 }
 0x23e   : > { %v964_v43 = vpop.xlane.xlu0 %963 }
 0x23f   : > { %v1033_v60 = vrot.slane %v964_v43, %v1032_v56 }
 0x240   : > { %v973_v45 = vpop.xlane.xlu1 %972 }
 0x241   : > { %v1048_v2 = vrot.slane %v973_v45, %v1037_v54 }
 0x242   : > { %v967_v44 = vpop.xlane.xlu0 %966 }
 0x243   : > { %v1038_v57 = vrot.slane %v967_v44, %v1037_v54  ;;  %v1049_v4 = vsel %vm1039_vm1, %v1048_v2, %v1044_v62 }
 0x245   : > { %v1040_v63 = vsel %vm1039_vm1, %v1038_v57, %v1033_v60 }
 0x246   : > { %v982_v47 = vpop.xlane.xlu0 %981  ;;  %v1105_v6 = vsel %vm1104_vm2, %v1049_v4, %v1040_v63 }
 0x247   : > { %v1062_v8 = vrot.slane %v982_v47, %v1032_v56 }
 0x248   : > { %v985_v48 = vpop.xlane.xlu1 %984 }
 0x249   : > { %v1066_v5 = vrot.slane %v985_v48, %v1037_v54 }
 0x24a   : > { %v976_v50 = vpop.xlane.xlu0 %975 }
 0x24b   : > { %v1053_v61 = vrot.slane %v976_v50, %v1032_v56  ;;  %v1067_v12 = vsel %vm1039_vm1, %v1066_v5, %v1062_v8 }
 0x24c   : > { %v979_v52 = vpop.xlane.xlu1 %978 }
 0x24d   : > { %v1057_v58 = vrot.slane %v979_v52, %v1037_v54 }
 0x24e   : > { %v994_v53 = vpop.xlane.xlu0 %993 }
 0x24f   : > { %v1058_v0 = vsel %vm1039_vm1, %v1057_v58, %v1053_v61  ;;  %v1080_v20 = vrot.slane %v994_v53, %v1032_v56 }
 0x250   : > { %v997_v55 = vpop.xlane.xlu1 %996  ;;  %v1107_v9 = vsel %vm1106_vm3, %v1058_v0, %v1105_v6 }
 0x251   : > { %v1084_v14 = vrot.slane %v997_v55, %v1037_v54  ;;  %v1109_v16 = vsel %vm1108_vm4, %v1067_v12, %v1107_v9 }
 0x252   : > { %v988_v59 = vpop.xlane.xlu0 %987 }
 0x253   : > { %v1071_v7 = vrot.slane %v988_v59, %v1032_v56  ;;  %v1085_v25 = vsel %vm1039_vm1, %v1084_v14, %v1080_v20 }
 0x254   : > { %v991_v13 = vpop.xlane.xlu1 %990 }
 0x255   : > { %v1075_v1 = vrot.slane %v991_v13, %v1037_v54 }
 0x256   : > { %v1000_v3 = vpop.xlane.xlu0 %999 }
 0x257   : > { %v1076_v10 = vsel %vm1039_vm1, %v1075_v1, %v1071_v7  ;;  %v1089_v17 = vrot.slane %v1000_v3, %v1032_v56 }
 0x258   : > { %v1111_v21 = vsel %vm1110_vm5, %v1076_v10, %v1109_v16 }
 0x259   : > { %v1113_v29 = vsel %vm1112_vm6, %v1085_v25, %v1111_v21 }
 0x25a   : > { %v1003_v11 = vpop.xlane.xlu1 %1002  ;;  %v1006_v18 = vpop.xlane.xlu0 %1005 }
 0x25b   : > { %v1093_v15 = vrot.slane %v1003_v11, %v1037_v54  ;;  %v1098_v26 = vrot.slane %v1006_v18, %v1032_v56 }
 0x25d   : > { %v1094_v22 = vsel %vm1039_vm1, %v1093_v15, %v1089_v17 }
 0x25e   : > { %v1009_v24 = vpop.xlane.xlu1 %1008  ;;  %v1115_v30 = vsel %vm1114_vm7, %v1094_v22, %v1113_v29 }
 0x25f   : > { %v1102_v28 = vrot.slane %v1009_v24, %v1037_v54 }
 0x261   : > { %v1103_v32 = vsel %vm1039_vm1, %v1102_v28, %v1098_v26 }
 0x262   : > { %v1117_v33 = vsel %vm1116_vm8, %v1103_v32, %v1115_v30 }
 0x263   : > { %v1119_v34 = vmul.f32 %v1117_v33, %v1011_v27 }
 0x265   : > { %v1122_v35 = vadd.f32 %v1121_v31, %v1119_v34 }
 0x267   : > { %1124 = vst.msk [vmem:[%s472_s22] sm:$0xff] %vm1123_vm9, %v1122_v35 }
 0x268 PF: > { %s19_s13 = sadd.s32 1, %s1535_s13   ;;  %s1806_s30 = smov %s1527_s11 }
 0x269   : > { %p16_p8 = scmp.ge.s32.totalorder %s19_s13, 6   ;;  %s1807_s10 = smov %s1531_s12 }
 0x26a   : > { %s1808_s11 = smov %s1811_s14  ;;  %s1809_s12 = smov %s1815_s15 }
 0x26b   :  { %18 = sbr.rel (!%p16_p8) target bundleno = 3 (0x3), region = 95 }

// kernel: resnet_dc_forward.11
= control target key start
LH: loop header
LB: loop body
LE: loop exit
PB: predicated region body
PF: predicated region fallthrough
CT: control target
= control target key end

     0   :  { %s2355_s27 = smov 0   ;;  %s2357_s28 = smov 0   ;;  %s3144_s0 = inlined_call_operand.vmem [shape: bf16[2,16,16,32], index: 0, kind: input, shape index: {}, may-alias: {0,1,2}]   ;;  %s3145_s1 = inlined_call_operand.vmem [shape: bf16[2,16,16,32], index: 1, kind: input, shape index: {}, may-alias: {0,1,2}]   ;;  %s3146_s2 = inlined_call_operand.vmem [shape: bf16[2,16,16,32], index: 2, kind: input, shape index: {}, may-alias: {0,1,2}]   ;;  %s3147_s3 = inlined_call_operand.vmem [shape: f32[1,32], index: 3, kind: input, shape index: {}]   ;;  %s3148_s4 = inlined_call_operand.vmem [shape: f32[1,32], index: 4, kind: input, shape index: {}]   ;;  %s3149_s5 = inlined_call_operand.vmem [shape: bf16[288,32], index: 5, kind: input, shape index: {}]   ;;  %s3150_s6 = inlined_call_operand.vmem [shape: bf16[2,16,16,32], index: 6, kind: output, shape index: {0}]   ;;  %s3151_s7 = inlined_call_operand.vmem [shape: f32[2,2,8,32], index: 7, kind: output, shape index: {1}]   ;;  %s3152_s8 = inlined_call_operand.vmem [shape: f32[2,2,8,32], index: 8, kind: output, shape index: {2}]  }
   0x1   :  { %s2359_s29 = smov 0   ;;  %s2361_s30 = smov 0  }
   0x2   :  { %s2363_s9 = smov 0  }
   0x3 LB: > { %s28_s10 = sadd.s32 1, %s2297_s29  ;;  %s31_s11 = sadd.s32 1, %s2301_s30  ;;  %s2305_s9 = sphi %s2363_s9, %s19_s9   ;;  %s2301_s30 = sphi %s2361_s30, %s3164_s30   ;;  %s2297_s29 = sphi %s2359_s29, %s3163_s29   ;;  %s2293_s28 = sphi %s2357_s28, %s3162_s28   ;;  %s2289_s27 = sphi %s2355_s27, %s3161_s27  }
   0x4   : > { %p29_p0 = scmp.ge.s32.totalorder %s28_s10, 2  ;;  %p1949_p1 = scmp.ge.s32.totalorder %s2305_s9, 1 }
   0x5   : > { %p357_p2 = scmp.lt.s32.totalorder %s2305_s9, 5 }
   0x6   : > { %s3166_s10 = smov (%p29_p0, %s28_s10), 0  ;;  %s3168_s11 = smov (!%p29_p0, %s31_s11), %s2301_s30 }
   0x7   : > { %p358_p3 = pnand %p1949_p1, %p357_p2  ;;  %p33_p4 = scmp.ge.s32.totalorder %s3168_s11, 2 }
   0x8   : > { %s2388_s12 = sshll.u32 (!%p358_p3), %s2289_s27, 3  ;;  %p444_p5 = scmp.lt.s32.totalorder (!%p358_p3), %s2293_s28, 1 }
   0x9   : > { %s3170_s11 = smov (%p33_p4, %s3168_s11), 0  ;;  %361 = sbr.rel (%p358_p3) target bundleno = 516 (0x204), region = 44 }
   0xa   : > { %p446_p6 = scmp.lt.s32.totalorder (!%p358_p3), %s2388_s12, 15  ;;  %s2407_s21 = sadd.s32 (!%p358_p3), 4294967295, %s2388_s12 }
   0xb   : > { %p456_p7 = scmp.gt.s32.totalorder (!%p358_p3), %s2407_s21, 0  ;;  %s2032_s25 = sadd.s32 (!%p358_p3), 8, %s2388_s12 }
   0xc   : > { %p1956_p8 = scmp.lt.s32.totalorder (!%p358_p3), %s2407_s21, 15  ;;  %p501_p9 = scmp.lt.s32.totalorder (!%p358_p3), %s2289_s27, 1 }
   0xd   : > { %p2472_p10 = scmp.lt.s32.totalorder (!%p358_p3), %s2032_s25, 15  ;;  %s3154_s17 = smov (!%p358_p3), 64  }
   0xe   : > { %s3172_s28 = smov (!%p444_p5, %s2293_s28), 1  ;;  %v2249_v0 = vld [vmem:[%s3149_s5 + $0x78] sm:$0xff]   ;;  %v2413_v2 = vld [vmem:[%s3147_s3] ss:$0 sm:$0xff]  ;;  %vm742_vm0 = vcmask 1040384   ;;  %v2251_v25 = vld [vmem:[%s3149_s5 + $0x70] sm:$0xff]  }
   0xf   : > { %s447_s15 = scalar_select %p446_p6, %s2388_s12, 15  ;;  %v2250_v1 = vld [vmem:[%s3149_s5 + $0x38] sm:$0xff]   ;;  %2190 = vmatprep.subr.bf16.mxu1 %v2249_v0  ;;  %2096 = vmatprep.subr.bf16.mxu0 %v2249_v0  ;;  %v2430_v11 = vld [vmem:[%s3148_s4] ss:$0 sm:$0xff]  ;;  %vm743_vm1 = vsmask.f32 256 }
  0x10   : > { %s2401_s18 = sshll.u32 %s3172_s28, 5  ;;  %2198 = vmatpush3.bf16.msra.mxu1 %v2250_v1  ;;  %2097 = vmatpush3.bf16.msra.mxu0 %v2250_v1  ;;  %v2252_v26 = vld [vmem:[%s3149_s5 + $0x30] sm:$0xff]   ;;  %v2253_v44 = vld [vmem:[%s3149_s5 + $0x68] sm:$0xff]   ;;  %s1975_s23 = sshll.u32 %s3172_s28, 1  ;;  %vm2491_vm2 = vmand %vm742_vm0, %vm743_vm1  ;;  %vm894_vm3 = vcmask 1046528   ;;  %vm1033_vm5 = vcmask 261120  }
  0x11   : > { %s1951_s19 = sshll.u32 %s447_s15, 1  ;;  %2191 = vmatprep.subr.bf16.mxu1 %v2251_v25  ;;  %2098 = vmatprep.subr.bf16.mxu0 %v2251_v25  ;;  %v2254_v45 = vld [vmem:[%s3149_s5 + $0x28] sm:$0xff]   ;;  %s3176_s25 = smov (!%p2472_p10, %s2032_s25), 15  ;;  %vm765_vm4 = vsmask.f32 7424  ;;  %vm1050_vm6 = vcmask 523264  }
  0x12   : > { %s2404_s20 = sadd.s32 %s2401_s18, %s1951_s19  ;;  %s3178_s25 = smov (!%p2472_p10, %s3176_s25), 15  ;;  %vm1067_vm7 = vcmask 785408   ;;  %vm1687_vm8 = vcmask 257024  }
  0x13   : > { %s3153_s22 = sshll.u32 %s2404_s20, 2  ;;  %s2308_s26 = smov 96  }
  0x14   : > { %s2420_s13 = scalar_lea.vmem %s3144_s0, %s3153_s22  ;;  %2199 = vmatpush3.bf16.msra.mxu1 %v2252_v26  ;;  %2099 = vmatpush3.bf16.msra.mxu0 %v2252_v26  ;;  %v2257_v26 = vld [vmem:[%s3149_s5 + $0x58] sm:$0xff]   ;;  %p630_p11 = scmp.gt.s32.totalorder %s2289_s27, 0 }
  0x15   : > { %v2095_v3 = vld [vmem:[%s2420_s13 + $0x38] sm:$0xff]   ;;  %v2089_v4 = vld [vmem:[%s2420_s13 + $0x8] sm:$0xff]   ;;  %v2090_v5 = vld [vmem:[%s2420_s13 + $0x10] sm:$0xff]   ;;  %s2444_s16 = scalar_select %p456_p7, %s2407_s21, 0  ;;  %2192 = vmatprep.subr.bf16.mxu1 %v2253_v44  ;;  %2100 = vmatprep.subr.bf16.mxu0 %v2253_v44 }
  0x16   : > { %v2079_v6 = vunpack.c.l.bf16 %v2095_v3  ;;  %v2080_v7 = vunpack.c.h.bf16 %v2095_v3  ;;  %v2055_v8 = vunpack.c.l.bf16 %v2089_v4  ;;  %v2056_v9 = vunpack.c.h.bf16 %v2089_v4  ;;  %v2050_v10 = vld [vmem:[%s2420_s13] sm:$0xff]   ;;  %v2094_v24 = vld [vmem:[%s2420_s13 + $0x30] sm:$0xff]   ;;  %v2093_v31 = vld [vmem:[%s2420_s13 + $0x28] sm:$0xff]   ;;  %s502_s24 = scalar_select %p501_p9, %s2289_s27, 1 }
  0x17   : > { %v2059_v12 = vunpack.c.l.bf16 %v2090_v5  ;;  %v2060_v13 = vunpack.c.h.bf16 %v2090_v5  ;;  %v2051_v14 = vunpack.c.l.bf16 %v2050_v10  ;;  %v2052_v15 = vunpack.c.h.bf16 %v2050_v10  ;;  %s3174_s16 = smov (!%p1956_p8, %s2444_s16), 15 }
  0x18   : > { %v569_v16 = vmul.f32 %v2079_v6, %v2413_v2  ;;  %v570_v17 = vmul.f32 %v2080_v7, %v2413_v2  ;;  %v557_v18 = vmul.f32 %v2055_v8, %v2413_v2  ;;  %v558_v19 = vmul.f32 %v2056_v9, %v2413_v2  ;;  %2200 = vmatpush3.bf16.msra.mxu1 %v2254_v45  ;;  %s2485_s28 = sadd.s32 %s1975_s23, %s502_s24  ;;  %v2255_v8 = vld [vmem:[%s3149_s5 + $0x60] sm:$0xff]   ;;  %s1961_s12 = sshll.u32 %s3174_s16, 1 }
  0x19   : > { %v559_v20 = vmul.f32 %v2059_v12, %v2413_v2  ;;  %v560_v21 = vmul.f32 %v2060_v13, %v2413_v2  ;;  %v555_v22 = vmul.f32 %v2051_v14, %v2413_v2  ;;  %v556_v23 = vmul.f32 %v2052_v15, %v2413_v2  ;;  %2101 = vmatpush3.bf16.msra.mxu0 %v2254_v45  ;;  %v2256_v9 = vld [vmem:[%s3149_s5 + $0x20] sm:$0xff]   ;;  %s2558_s19 = sadd.s32 %s1961_s12, %s2401_s18  ;;  %s2576_s24 = sshll.u32 %s3178_s25, 1 }
  0x1a   : > { %v592_v27 = vadd.f32 %v2430_v11, %v569_v16  ;;  %v593_v28 = vadd.f32 %v2430_v11, %v570_v17  ;;  %v580_v29 = vadd.f32 %v2430_v11, %v557_v18  ;;  %v581_v30 = vadd.f32 %v2430_v11, %v558_v19  ;;  %2193 = vmatprep.subr.bf16.mxu1 %v2255_v8  ;;  %s1963_s23 = sshll.u32 %s2558_s19, 2  ;;  %s2309_s25 = smov 32  }
  0x1b   : > { %v582_v32 = vadd.f32 %v2430_v11, %v559_v20  ;;  %v583_v33 = vadd.f32 %v2430_v11, %v560_v21  ;;  %v578_v34 = vadd.f32 %v2430_v11, %v555_v22  ;;  %v579_v35 = vadd.f32 %v2430_v11, %v556_v23  ;;  %2102 = vmatprep.subr.bf16.mxu0 %v2255_v8  ;;  %s466_s14 = scalar_lea.vmem %s3145_s1, %s1963_s23  ;;  %s481_s15 = sadd.s32 %s2576_s24, %s2401_s18 }
  0x1c   : > { %v608_v36 = vmax.f32 %v592_v27, 0.0  ;;  %v609_v37 = vmax.f32 %v593_v28, 0.0  ;;  %v596_v38 = vmax.f32 %v580_v29, 0.0  ;;  %v597_v39 = vmax.f32 %v581_v30, 0.0  ;;  %2201 = vmatpush3.bf16.msra.mxu1 %v2256_v9  ;;  %s2619_s18 = scalar_select %p630_p11, 1, 0 }
  0x1d   : > { %v598_v40 = vmax.f32 %v582_v32, 0.0  ;;  %v599_v41 = vmax.f32 %v583_v33, 0.0  ;;  %v594_v42 = vmax.f32 %v578_v34, 0.0  ;;  %v595_v43 = vmax.f32 %v579_v35, 0.0  ;;  %2103 = vmatpush3.bf16.msra.mxu0 %v2256_v9  ;;  %2194 = vmatprep.subr.bf16.mxu1 %v2257_v26  ;;  %v2082_v9 = vld [vmem:[%s466_s14] sm:$0xff]   ;;  %s2625_s22 = sshll.u32 %s481_s15, 2 }
  0x1e   : > { %v650_v46 = vpack.c.bf16 %v609_v37, %v608_v36  ;;  %v644_v47 = vpack.c.bf16 %v597_v39, %v596_v38  ;;  %v2075_v48 = vunpack.c.l.bf16 %v2094_v24  ;;  %v2076_v49 = vunpack.c.h.bf16 %v2094_v24  ;;  %2104 = vmatprep.subr.bf16.mxu0 %v2257_v26  ;;  %v2259_v38 = vld [vmem:[%s3149_s5 + $0x50] sm:$0xff]   ;;  %s483_s15 = scalar_lea.vmem %s3146_s2, %s2625_s22  ;;  %s632_s12 = scvt.s32.f32 %s2619_s18 }
  0x1f   : > { %v645_v50 = vpack.c.bf16 %v599_v41, %v598_v40  ;;  %v643_v51 = vpack.c.bf16 %v595_v43, %v594_v42  ;;  %v2071_v52 = vunpack.c.l.bf16 %v2093_v31  ;;  %v2072_v53 = vunpack.c.h.bf16 %v2093_v31  ;;  %v2258_v31 = vld [vmem:[%s3149_s5 + $0x18] sm:$0xff]   ;;  %v2260_v39 = vld [vmem:[%s3149_s5 + $0x10] sm:$0xff]   ;;  %s2672_s16 = scalar_select %p501_p9, 1, 0 }
  0x20   : > { %v709_v54 = vshrl.u32 %v650_v46, 16  ;;  %v712_v55 = vshll.u32 %v650_v46, 16  ;;  %v667_v56 = vshrl.u32 %v644_v47, 16  ;;  %v670_v57 = vshll.u32 %v644_v47, 16  ;;  %2202 = vmatpush3.bf16.msra.mxu1 %v2258_v31  ;;  %s3159_s18 = smov 64  }
  0x21   : > { %v674_v58 = vshrl.u32 %v645_v50, 16  ;;  %v677_v59 = vshll.u32 %v645_v50, 16  ;;  %v660_v60 = vshrl.u32 %v643_v51, 16  ;;  %v663_v61 = vshll.u32 %v643_v51, 16  ;;  %2105 = vmatpush3.bf16.msra.mxu0 %v2258_v31  ;;  %2195 = vmatprep.subr.bf16.mxu1 %v2259_v38  ;;  %s638_s27 = scvt.s32.f32 %s2672_s16 }
  0x22   : > { %v2487_v62 = vrot.slane %v709_v54, 7  ;;  %v669_v0 = vrot.slane %v667_v56, 7  ;;  %v567_v1 = vmul.f32 %v2075_v48, %v2413_v2  ;;  %v568_v3 = vmul.f32 %v2076_v49, %v2413_v2  ;;  %2106 = vmatprep.subr.bf16.mxu0 %v2259_v38  ;;  %v2261_v56 = vld [vmem:[%s3149_s5 + $0x48] sm:$0xff]  }
  0x23   : > { %v2503_v4 = vrot.slane %v674_v58, 7  ;;  %v662_v5 = vrot.slane %v660_v60, 7  ;;  %v565_v6 = vmul.f32 %v2071_v52, %v2413_v2  ;;  %v566_v7 = vmul.f32 %v2072_v53, %v2413_v2 }
  0x24   : > { %v714_v10 = vor.u32 %v712_v55, %v2487_v62  ;;  %v672_v12 = vor.u32 %v670_v57, %v669_v0  ;;  %v590_v13 = vadd.f32 %v2430_v11, %v567_v1  ;;  %v591_v14 = vadd.f32 %v2430_v11, %v568_v3  ;;  %2203 = vmatpush3.bf16.msra.mxu1 %v2260_v39  ;;  %v2262_v57 = vld [vmem:[%s3149_s5 + $0x8] sm:$0xff]  }
  0x25   : > { %v679_v15 = vor.u32 %v677_v59, %v2503_v4  ;;  %v665_v16 = vor.u32 %v663_v61, %v662_v5  ;;  %v2519_v17 = vsel %vm2491_vm2, %v662_v5, 0  ;;  %v588_v18 = vadd.f32 %v2430_v11, %v565_v6  ;;  %2107 = vmatpush3.bf16.msra.mxu0 %v2260_v39  ;;  %2196 = vmatprep.subr.bf16.mxu1 %v2261_v56 }
  0x26   : > { %v2524_v19 = vsel %vm2491_vm2, 0, %v714_v10  ;;  %v2528_v20 = vsel %vm2491_vm2, 0, %v672_v12  ;;  %v606_v21 = vmax.f32 %v590_v13, 0.0  ;;  %v607_v22 = vmax.f32 %v591_v14, 0.0  ;;  %2108 = vmatprep.subr.bf16.mxu0 %v2261_v56 }
  0x27   : > { %997 = vrot.lane.b32.xlu0 %v2524_v19, %s3154_s17  ;;  %985 = vrot.lane.b32.xlu1 %v2528_v20, %s3154_s17  ;;  %v2537_v23 = vsel %vm2491_vm2, 0, %v679_v15  ;;  %v2541_v24 = vsel %vm2491_vm2, 0, %v665_v16  ;;  %v589_v25 = vadd.f32 %v2430_v11, %v566_v7  ;;  %v899_v29 = vrot.slane %v2519_v17, 1 }
  0x28   : > { %v649_v27 = vpack.c.bf16 %v607_v22, %v606_v21  ;;  %v898_v28 = vrot.slane %v2541_v24, 1  ;;  %v604_v30 = vmax.f32 %v588_v18, 0.0  ;;  %v757_v33 = vsel %vm2491_vm2, %v669_v0, 0  ;;  %2204 = vmatpush3.bf16.msra.mxu1 %v2262_v57  ;;  %v2263_v22 = vld [vmem:[%s3149_s5 + $0x40] sm:$0xff]  }
  0x29   : > { %v605_v32 = vmax.f32 %v589_v25, 0.0  ;;  %v901_v37 = vrot.slane %v2528_v20, 1  ;;  %v902_v42 = vrot.slane %v757_v33, 1  ;;  %v793_v43 = vshll.u32 %v2528_v20, 16  ;;  %2109 = vmatpush3.bf16.msra.mxu0 %v2262_v57  ;;  %v2264_v25 = vld [vmem:[%s3149_s5] sm:$0xff]   ;;  %2197 = vmatprep.subr.bf16.mxu1 %v2263_v22 }
  0x2a   : > { %v702_v34 = vshrl.u32 %v649_v27, 16  ;;  %v705_v35 = vshll.u32 %v649_v27, 16  ;;  %v2572_v41 = vsel %vm894_vm3, %v898_v28, %v899_v29  ;;  %v2581_v46 = vsel %vm2491_vm2, %v2487_v62, 0  ;;  %2110 = vmatprep.subr.bf16.mxu0 %v2263_v22 }
  0x2b   : > { %987 = vrot.lane.b32.xlu0 %v2537_v23, %s3154_s17  ;;  %936 = vrot.lane.b32.xlu1 %v2541_v24, %s2308_s26  ;;  %v648_v36 = vpack.c.bf16 %v605_v32, %v604_v30  ;;  %v955_v47 = vshll.u32 %v2524_v19, 16  ;;  %v965_v50 = vrot.slane %v2524_v19, 1  ;;  %v798_v51 = vshll.u32 %v757_v33, 16  ;;  %s3160_s17 = sshll.u32 %s2404_s20, 2  ;;  %s1976_s20 = sshll.u32 %s2485_s28, 3 }
  0x2c   : > { %v704_v40 = vrot.slane %v702_v34, 7  ;;  %v791_v54 = vshrl.u32 %v2528_v20, 16  ;;  %v795_v55 = vrot.slane %v793_v43, 1  ;;  %v953_v59 = vshrl.u32 %v2524_v19, 16  ;;  %2205 = vmatpush3.bf16.msra.mxu1 %v2264_v25  ;;  %s2955_s21 = scalar_lea.vmem %s3150_s6, %s3160_s17 }
  0x2d   : > { %v695_v44 = vshrl.u32 %v648_v36, 16  ;;  %v698_v45 = vshll.u32 %v648_v36, 16  ;;  %v957_v60 = vrot.slane %v955_v47, 1  ;;  %v781_v61 = vshll.u32 %v2541_v24, 16  ;;  %2111 = vmatpush3.bf16.msra.mxu0 %v2264_v25 }
  0x2e   : > { %v707_v48 = vor.u32 %v705_v35, %v704_v40  ;;  %v2587_v49 = vsel %vm2491_vm2, %v704_v40, 0  ;;  %v960_v3 = vshll.u32 %v2581_v46, 16  ;;  %v2622_v6 = vsel %vm894_vm3, %v901_v37, %v902_v42  ;;  %v2086_v40 = vld [vmem:[%s483_s15] sm:$0xff]   ;;  %s506_s15 = scalar_lea.vmem %s3151_s7, %s1976_s20 }
  0x2f   : > { %968 = vrot.lane.b32.xlu0 %v2572_v41, %s2309_s25  ;;  %v917_v52 = vrot.slane %v2587_v49, 1  ;;  %v697_v53 = vrot.slane %v695_v44, 7  ;;  %v966_v7 = vrot.slane %v2581_v46, 1  ;;  %v800_v8 = vrot.slane %v798_v51, 1 }
  0x30   : > { %v2607_v58 = vsel %vm2491_vm2, 0, %v707_v48  ;;  %v796_v13 = vor.u32 %v795_v55, %v791_v54  ;;  %v779_v14 = vshrl.u32 %v2541_v24, 16  ;;  %v783_v18 = vrot.slane %v781_v61, 1 }
  0x31   : > { %948 = vrot.lane.b32.xlu1 %v2607_v58, %s2308_s26  ;;  %v916_v62 = vrot.slane %v2607_v58, 1  ;;  %v700_v0 = vor.u32 %v698_v45, %v697_v53  ;;  %v761_v1 = vsel %vm2491_vm2, %v697_v53, 0  ;;  %v786_v21 = vshll.u32 %v2519_v17, 16 }
  0x32   : > { %v914_v5 = vrot.slane %v761_v1, 1  ;;  %v846_v26 = vshll.u32 %v761_v1, 16  ;;  %v958_v27 = vor.u32 %v957_v60, %v953_v59  ;;  %v962_v28 = vrot.slane %v960_v3, 1  ;;  %v2091_v59 = vld [vmem:[%s2420_s13 + $0x18] sm:$0xff]   ;;  %v2092_v1 = vld [vmem:[%s2420_s13 + $0x20] sm:$0xff]  }
  0x33   : > { %v2628_v10 = vsel %vm894_vm3, %v916_v62, %v917_v52  ;;  %v2632_v12 = vsel %vm2491_vm2, 0, %v700_v0  ;;  %v2083_v29 = vunpack.c.l.bf16 %v2082_v9  ;;  %v2084_v32 = vunpack.c.h.bf16 %v2082_v9 }
  0x34   : > { %980 = vrot.lane.b32.xlu0 %v2628_v10, %s2309_s25  ;;  %v913_v15 = vrot.slane %v2632_v12, 1  ;;  %v841_v16 = vshll.u32 %v2632_v12, 16  ;;  %v839_v30 = vshrl.u32 %v2632_v12, 16  ;;  %v2658_v33 = vsel %vm894_vm3, %v965_v50, %v966_v7 }
  0x35   : > { %938 = vrot.lane.b32.xlu1 %v2528_v20, %s2308_s26  ;;  %v614_v34 = vmul.f32 %v2083_v29, %v2413_v2  ;;  %v2664_v35 = vsel %vm2491_vm2, %v2503_v4, 0  ;;  %v784_v36 = vor.u32 %v783_v18, %v779_v14  ;;  %v788_v37 = vrot.slane %v786_v21, 1 }
  0x36   : > { %v2653_v17 = vsel %vm894_vm3, %v913_v15, %v914_v5  ;;  %v843_v31 = vrot.slane %v841_v16, 1  ;;  %v615_v38 = vmul.f32 %v2084_v32, %v2413_v2  ;;  %v805_v39 = vshll.u32 %v2537_v23, 16 }
  0x37   : > { %v848_v4 = vrot.slane %v846_v26, 1  ;;  %v2677_v42 = vsel %vm765_vm4, %v796_v13, %v800_v8  ;;  %v2680_v43 = vsel %vm765_vm4, %v958_v27, %v962_v28  ;;  %v616_v44 = vadd.f32 %v2430_v11, %v614_v34 }
  0x38   : > { %970 = vrot.lane.b32.xlu0 %v2622_v6, %s2309_s25  ;;  %v844_v45 = vor.u32 %v843_v31, %v839_v30  ;;  %v617_v46 = vadd.f32 %v2430_v11, %v615_v38  ;;  %v633_v47 = vstv %s632_s12  ;;  %v810_v48 = vshll.u32 %v2664_v35, 16 }
  0x39   : > { %931 = vrot.lane.b32.xlu1 %v2653_v17, %s3159_s18  ;;  %v618_v50 = vmax.f32 %v616_v44, 0.0  ;;  %v803_v51 = vshrl.u32 %v2537_v23, 16  ;;  %v807_v52 = vrot.slane %v805_v39, 1  ;;  %v2087_v53 = vunpack.c.l.bf16 %v2086_v40 }
  0x3a   : > { %v2689_v54 = vsel %vm765_vm4, %v784_v36, %v788_v37  ;;  %v619_v55 = vmax.f32 %v617_v46, 0.0  ;;  %v851_v56 = vshrl.u32 %v2607_v58, 16  ;;  %v2088_v57 = vunpack.c.h.bf16 %v2086_v40 }
  0x3b   : > { %v634_v60 = vmul.f32 %v633_v47, %v618_v50  ;;  %v853_v61 = vshll.u32 %v2607_v58, 16  ;;  %v858_v62 = vshll.u32 %v2587_v49, 16  ;;  %v624_v0 = vmul.f32 %v2087_v53, %v2413_v2 }
  0x3c   : > { %982 = vrot.lane.b32.xlu0 %v2658_v33, %s2309_s25  ;;  %v2701_v3 = vsel %vm765_vm4, %v844_v45, %v848_v4  ;;  %v635_v5 = vmul.f32 %v633_v47, %v619_v55  ;;  %v812_v7 = vrot.slane %v810_v48, 1  ;;  %v625_v8 = vmul.f32 %v2088_v57, %v2413_v2 }
  0x3d   : > { %921 = vrot.lane.b32.xlu1 %v2572_v41, %s3159_s18  ;;  %v808_v9 = vor.u32 %v807_v52, %v803_v51  ;;  %v626_v13 = vadd.f32 %v2430_v11, %v624_v0  ;;  %v2063_v14 = vunpack.c.l.bf16 %v2091_v59  ;;  %v2064_v41 = vunpack.c.h.bf16 %v2091_v59 }
  0x3e   : > { %v642_v15 = vpack.c.bf16 %v635_v5, %v634_v60  ;;  %v627_v49 = vadd.f32 %v2430_v11, %v625_v8  ;;  %v639_v16 = vstv %s638_s27  ;;  %v2067_v18 = vunpack.c.l.bf16 %v2092_v1 }
  0x3f   : > { %v628_v21 = vmax.f32 %v626_v13, 0.0  ;;  %v561_v22 = vmul.f32 %v2063_v14, %v2413_v2  ;;  %v562_v25 = vmul.f32 %v2064_v41, %v2413_v2  ;;  %v2068_v26 = vunpack.c.h.bf16 %v2092_v1 }
  0x40   : > { %1013 = vrot.lane.b32.xlu0 %v2677_v42, %s2308_s26  ;;  %v653_v27 = vshrl.u32 %v642_v15, 16  ;;  %v656_v28 = vshll.u32 %v642_v15, 16  ;;  %v629_v29 = vmax.f32 %v627_v49, 0.0  ;;  %v563_v30 = vmul.f32 %v2067_v18, %v2413_v2 }
  0x41   : > { %874 = vrot.lane.b32.xlu1 %v2701_v3, %s2309_s25  ;;  %v640_v31 = vmul.f32 %v639_v16, %v628_v21  ;;  %v584_v32 = vadd.f32 %v2430_v11, %v561_v22  ;;  %v585_v34 = vadd.f32 %v2430_v11, %v562_v25  ;;  %v564_v36 = vmul.f32 %v2068_v26, %v2413_v2 }
  0x42   : > { %v655_v37 = vrot.slane %v653_v27, 7  ;;  %v855_v38 = vrot.slane %v853_v61, 1  ;;  %v641_v39 = vmul.f32 %v639_v16, %v629_v29  ;;  %v586_v40 = vadd.f32 %v2430_v11, %v563_v30  ;;  %v2751_v29 = vld [vmem:[%s3149_s5 + $0x88] sm:$0xff]  }
  0x43   : > { %v2722_v4 = vsel %vm765_vm4, %v808_v9, %v812_v7  ;;  %v600_v44 = vmax.f32 %v584_v32, 0.0  ;;  %v601_v45 = vmax.f32 %v585_v34, 0.0  ;;  %v587_v46 = vadd.f32 %v2430_v11, %v564_v36  ;;  %2170 = vmatprep.subr.bf16.mxu1 %v2751_v29 }
  0x44   : > { %864 = vrot.lane.b32.xlu0 %v2689_v54, %s2309_s25  ;;  %v658_v47 = vor.u32 %v656_v28, %v655_v37  ;;  %v755_v2 = vsel %vm2491_vm2, %v655_v37, 0  ;;  %v651_v48 = vpack.c.bf16 %v641_v39, %v640_v31  ;;  %v602_v50 = vmax.f32 %v586_v40, 0.0 }
  0x45   : > { %1025 = vrot.lane.b32.xlu1 %v2680_v43, %s2308_s26  ;;  %v896_v51 = vrot.slane %v755_v2, 1  ;;  %v774_v52 = vshll.u32 %v755_v2, 16  ;;  %v646_v53 = vpack.c.bf16 %v601_v45, %v600_v44  ;;  %v603_v55 = vmax.f32 %v587_v46, 0.0 }
  0x46   : > { %v2729_v57 = vsel %vm2491_vm2, 0, %v658_v47  ;;  %v860_v59 = vrot.slane %v858_v62, 1  ;;  %v716_v60 = vshrl.u32 %v651_v48, 16  ;;  %v719_v11 = vshll.u32 %v651_v48, 16 }
  0x47   : > { %v895_v61 = vrot.slane %v2729_v57, 1  ;;  %v856_v0 = vor.u32 %v855_v38, %v851_v56  ;;  %v767_v1 = vshrl.u32 %v2729_v57, 16  ;;  %v769_v5 = vshll.u32 %v2729_v57, 16 }
  0x48   : > { %1015 = vrot.lane.b32.xlu0 %v2722_v4, %s2308_s26  ;;  %v718_v7 = vrot.slane %v716_v60, 7  ;;  %v681_v8 = vshrl.u32 %v646_v53, 16  ;;  %v684_v9 = vshll.u32 %v646_v53, 16  ;;  %v647_v13 = vpack.c.bf16 %v603_v55, %v602_v50 }
  0x49   : > { %v897_v14 = vsel %vm894_vm3, %v895_v61, %v896_v51  ;;  %v771_v41 = vrot.slane %v769_v5, 1  ;;  %v776_v15 = vrot.slane %v774_v52, 1  ;;  %v2743_v18 = vsel %vm765_vm4, %v856_v0, %v860_v59 }
  0x4a   : > { %919 = vrot.lane.b32.xlu1 %v897_v14, %s3159_s18  ;;  %v721_v62 = vor.u32 %v719_v11, %v718_v7  ;;  %v2740_v49 = vsel %vm2491_vm2, %v718_v7, 0  ;;  %v683_v56 = vrot.slane %v681_v8, 7  ;;  %v688_v16 = vshrl.u32 %v647_v13, 16 }
  0x4b   : > { %v772_v21 = vor.u32 %v771_v41, %v767_v1  ;;  %v1009_v22 = vshll.u32 %v2740_v49, 16  ;;  %v691_v28 = vshll.u32 %v647_v13, 16  ;;  %v904_v37 = vrot.slane %v2537_v23, 1 }
  0x4c   : > { %v754_v25 = vsel %vm2491_vm2, 0, %v721_v62  ;;  %v686_v26 = vor.u32 %v684_v9, %v683_v56  ;;  %v690_v27 = vrot.slane %v688_v16, 7  ;;  %v905_v38 = vrot.slane %v2664_v35, 1 }
  0x4d   : > { %v777_v30 = vsel %vm765_vm4, %v772_v21, %v776_v15  ;;  %v1002_v31 = vshrl.u32 %v754_v25, 16  ;;  %v1004_v32 = vshll.u32 %v754_v25, 16  ;;  %v1011_v36 = vrot.slane %v1009_v22, 1 }
  0x4e   : > { %876 = vrot.lane.b32.xlu1 %v2743_v18, %s2309_s25  ;;  %862 = vrot.lane.b32.xlu0 %v777_v30, %s2309_s25  ;;  %v2762_v39 = vsel %vm2491_vm2, 0, %v686_v26  ;;  %v693_v40 = vor.u32 %v691_v28, %v690_v27  ;;  %v760_v44 = vsel %vm2491_vm2, %v690_v27, 0  ;;  %v2775_v47 = vsel %vm894_vm3, %v904_v37, %v905_v38 }
  0x4f   : > { %v1006_v34 = vrot.slane %v1004_v32, 1  ;;  %v817_v2 = vshll.u32 %v2762_v39, 16  ;;  %v759_v48 = vsel %vm2491_vm2, %v683_v56, 0  ;;  %v815_v50 = vshrl.u32 %v2762_v39, 16 }
  0x50   : > { %v2771_v46 = vsel %vm2491_vm2, 0, %v693_v40  ;;  %v822_v52 = vshll.u32 %v759_v48, 16  ;;  %v907_v59 = vrot.slane %v2762_v39, 1  ;;  %v908_v60 = vrot.slane %v759_v48, 1 }
  0x51   : > { %v1007_v45 = vor.u32 %v1006_v34, %v1002_v31  ;;  %v819_v51 = vrot.slane %v817_v2, 1  ;;  %v829_v11 = vshll.u32 %v2771_v46, 16  ;;  %v827_v61 = vshrl.u32 %v2771_v46, 16 }
  0x52   : > { %933 = vrot.lane.b32.xlu1 %v2628_v10, %s3159_s18  ;;  %999 = vrot.lane.b32.xlu0 %v754_v25, %s3159_s18  ;;  %v824_v55 = vrot.slane %v822_v52, 1  ;;  %v834_v1 = vshll.u32 %v760_v44, 16  ;;  %v1030_v8 = vrot.slane %v754_v25, 1  ;;  %v910_v13 = vrot.slane %v2771_v46, 1 }
  0x53   : > { %v1012_v35 = vsel %vm765_vm4, %v1007_v45, %v1011_v36  ;;  %v820_v53 = vor.u32 %v819_v51, %v815_v50  ;;  %v831_v0 = vrot.slane %v829_v11, 1  ;;  %v911_v14 = vrot.slane %v760_v44, 1  ;;  %v2266_v51 = vld [vmem:[%s3149_s5 + $0x80] sm:$0xff]  }
  0x54   : > { %v836_v7 = vrot.slane %v834_v1, 1  ;;  %v1031_v41 = vrot.slane %v2740_v49, 1 }
  0x55   : > { %v2793_v63 = vsel %vm765_vm4, %v820_v53, %v824_v55  ;;  %v832_v5 = vor.u32 %v831_v0, %v827_v61  ;;  %v2826_v62 = vsel %vm894_vm3, %v910_v13, %v911_v14 }
  0x56   : > { %1027 = vrot.lane.b32.xlu1 %v1012_v35, %s2308_s26  ;;  %972 = vrot.lane.b32.xlu0 %v2775_v47, %s2309_s25  ;;  %v2819_v15 = vsel %vm894_vm3, %v1030_v8, %v1031_v41 }
  0x57   : > { %v2814_v9 = vsel %vm765_vm4, %v832_v5, %v836_v7 }
  0x5a   : > { %950 = vrot.lane.b32.xlu1 %v2524_v19, %s2308_s26  ;;  %866 = vrot.lane.b32.xlu0 %v2677_v42, %s2309_s25  ;;  %v2802_v19 = vsel %vm894_vm3, %v907_v59, %v908_v60 }
  0x5e   : > { %923 = vrot.lane.b32.xlu1 %v2622_v6, %s3159_s18  ;;  %989 = vrot.lane.b32.xlu0 %v2762_v39, %s3159_s18 }
  0x62   : > { %940 = vrot.lane.b32.xlu1 %v2537_v23, %s2308_s26  ;;  %1017 = vrot.lane.b32.xlu0 %v2793_v63, %s2308_s26 }
  0x66   : > { %868 = vrot.lane.b32.xlu1 %v2722_v4, %s2309_s25  ;;  %974 = vrot.lane.b32.xlu0 %v2802_v19, %s2309_s25 }
  0x6a   : > { %925 = vrot.lane.b32.xlu1 %v2775_v47, %s3159_s18  ;;  %991 = vrot.lane.b32.xlu0 %v2771_v46, %s3159_s18 }
  0x6e   : > { %942 = vrot.lane.b32.xlu1 %v2762_v39, %s2308_s26  ;;  %1019 = vrot.lane.b32.xlu0 %v2814_v9, %s2308_s26 }
  0x72   : > { %870 = vrot.lane.b32.xlu1 %v2793_v63, %s2309_s25  ;;  %976 = vrot.lane.b32.xlu0 %v2826_v62, %s2309_s25 }
  0x76   : > { %927 = vrot.lane.b32.xlu1 %v2802_v19, %s3159_s18  ;;  %993 = vrot.lane.b32.xlu0 %v2632_v12, %s3159_s18 }
  0x7a   : > { %944 = vrot.lane.b32.xlu1 %v2771_v46, %s2308_s26  ;;  %1021 = vrot.lane.b32.xlu0 %v2701_v3, %s2308_s26 }
  0x7e   : > { %872 = vrot.lane.b32.xlu1 %v2814_v9, %s2309_s25  ;;  %978 = vrot.lane.b32.xlu0 %v2653_v17, %s2309_s25 }
  0x82   : > { %929 = vrot.lane.b32.xlu1 %v2826_v62, %s3159_s18  ;;  %995 = vrot.lane.b32.xlu0 %v2607_v58, %s3159_s18  ;;  %s514_s18 = scalar_lea.vmem %s3152_s8, %s1976_s20 }
  0x86   : > { %946 = vrot.lane.b32.xlu1 %v2632_v12, %s2308_s26  ;;  %1023 = vrot.lane.b32.xlu0 %v2743_v18, %s2308_s26 }
  0x99   : > { %v998_v49 = vpop.permute.xlu0 %997  ;;  %v986_v56 = vpop.permute.xlu1 %985 }
  0x9d   : > { %v988_v16 = vpop.permute.xlu0 %987  ;;  %v937_v21 = vpop.permute.xlu1 %936 }
  0xa1   : > { %v969_v22 = vpop.permute.xlu0 %968 }
  0xa2   : > { %v1094_v32 = vsel %vm1033_vm5, %v2689_v54, %v969_v22 }
  0xa3   : > { %v949_v25 = vpop.permute.xlu1 %948  ;;  %v1117_v37 = vsel %vm1050_vm6, %v1094_v32, %v986_v56 }
  0xa6   : > { %v981_v26 = vpop.permute.xlu0 %980 }
  0xa7   : > { %v939_v27 = vpop.permute.xlu1 %938  ;;  %v1112_v44 = vsel %vm1033_vm5, %v2743_v18, %v981_v26 }
  0xa8   : > { %v1129_v48 = vsel %vm1050_vm6, %v1112_v44, %v998_v49 }
  0xaa   : > { %v971_v28 = vpop.permute.xlu0 %970 }
  0xab   : > { %v932_v30 = vpop.permute.xlu1 %931  ;;  %v1097_v53 = vsel %vm1033_vm5, %v2677_v42, %v971_v28 }
  0xac   : > { %v1119_v0 = vsel %vm1050_vm6, %v1097_v53, %v988_v16 }
  0xae   : > { %v983_v31 = vpop.permute.xlu0 %982 }
  0xaf   : > { %v922_v34 = vpop.permute.xlu1 %921  ;;  %v1115_v42 = vsel %vm1033_vm5, %v2680_v43, %v983_v31 }
  0xb2   : > { %v1014_v36 = vpop.permute.xlu0 %1013 }
  0xb3   : > { %v875_v38 = vpop.permute.xlu1 %874  ;;  %v1133_v40 = vsel %vm1067_vm7, %v1117_v37, %v1014_v36 }
  0xb4   : > { %v1047_v45 = vsel %vm1033_vm5, %v2632_v12, %v875_v38  ;;  %1356 = vmatprep.mubr.bf16.mxu0 %v1133_v40 }
  0xb5   : > { %v1064_v2 = vsel %vm1050_vm6, %v1047_v45, %v932_v30 }
  0xb6   : > { %v865_v35 = vpop.permute.xlu0 %864  ;;  %v1087_v52 = vsel %vm1067_vm7, %v1064_v2, %v949_v25 }
  0xb7   : > { %v1026_v54 = vpop.permute.xlu1 %1025  ;;  %v1037_v7 = vsel %vm1033_vm5, %v2541_v24, %v865_v35 }
  0xb8   : > { %v1151_v50 = vsel %vm1067_vm7, %v1129_v48, %v1026_v54  ;;  %v1054_v14 = vsel %vm1050_vm6, %v1037_v7, %v922_v34 }
  0xb9   : > { %1404 = vmatprep.mubr.bf16.mxu1 %v1151_v50  ;;  %v1072_v56 = vsel %vm1067_vm7, %v1054_v14, %v939_v27 }
  0xba   : > { %1405 = vmatmul.mubr.bf16.vlgmr.msra.gmra.mxu1 %v1087_v52  ;;  %v1016_v12 = vpop.permute.xlu0 %1015 }
  0xbb   : > { %2171 = vmatpush3.bf16.msra.mxu1 %v2751_v29  ;;  %v1136_v5 = vsel %vm1067_vm7, %v1119_v0, %v1016_v12 }
  0xbc   : > { %2172 = vmatprep.subr.bf16.mxu1 %v2266_v51  ;;  %v920_v18 = vpop.permute.xlu1 %919 }
  0xbf   : > { %2173 = vmatpush3.bf16.msra.mxu1 %v2266_v51 }
  0xc0   : > { %v877_v55 = vpop.permute.xlu1 %876  ;;  %v863_v59 = vpop.permute.xlu0 %862 }
  0xc1   : > { %v1035_v60 = vsel %vm1033_vm5, %v2729_v57, %v863_v59  ;;  %v1049_v49 = vsel %vm1033_vm5, %v2607_v58, %v877_v55 }
  0xc2   : > { %v1052_v11 = vsel %vm1050_vm6, %v1035_v60, %v920_v18 }
  0xc3   : > { %v1069_v61 = vsel %vm1067_vm7, %v1052_v11, %v937_v21 }
  0xc4   : > { %v934_v1 = vpop.permute.xlu1 %933  ;;  %v1000_v29 = vpop.permute.xlu0 %999  ;;  %1357 = vmatmul.mubr.bf16.vlgmr.msra.gmra.mxu0 %v1069_v61 }
  0xc5   : > { %1364 = vmatprep.mubr.bf16.mxu0 %v1136_v5  ;;  %v1131_v57 = vsel %vm1050_vm6, %v1115_v42, %v1000_v29  ;;  %v1066_v24 = vsel %vm1050_vm6, %v1049_v49, %v934_v1 }
  0xc8   : > { %v1028_v8 = vpop.permute.xlu1 %1027  ;;  %v973_v13 = vpop.permute.xlu0 %972 }
  0xc9   : > { %v1154_v41 = vsel %vm1067_vm7, %v1131_v57, %v1028_v8  ;;  %v1100_v26 = vsel %vm1033_vm5, %v2722_v4, %v973_v13 }
  0xca   : > { %1412 = vmatprep.mubr.bf16.mxu1 %v1154_v41 }
  0xcc   : > { %v951_v16 = vpop.permute.xlu1 %950  ;;  %v867_v21 = vpop.permute.xlu0 %866  ;;  %1365 = vmatmul.mubr.bf16.gmra.mxu0 %v1072_v56 }
  0xcd   : > { %v1090_v43 = vsel %vm1067_vm7, %v1066_v24, %v951_v16  ;;  %v1039_v58 = vsel %vm1033_vm5, %v2528_v20, %v867_v21 }
  0xce   : > { %1413 = vmatmul.mubr.bf16.gmra.mxu1 %v1090_v43 }
  0xcf   : > { %2174 = vmatprep.mubr.msk.bf16.mxu1 %vm1033_vm5, %v2622_v6 }
  0xd0   : > { %v924_v22 = vpop.permute.xlu1 %923  ;;  %v990_v25 = vpop.permute.xlu0 %989 }
  0xd1   : > { %v1056_v27 = vsel %vm1050_vm6, %v1039_v58, %v924_v22  ;;  %v1121_v28 = vsel %vm1050_vm6, %v1100_v26, %v990_v25 }
  0xd4   : > { %v941_v30 = vpop.permute.xlu1 %940  ;;  %v1018_v31 = vpop.permute.xlu0 %1017 }
  0xd5   : > { %v1139_v32 = vsel %vm1067_vm7, %v1121_v28, %v1018_v31  ;;  %v1075_v34 = vsel %vm1067_vm7, %v1056_v27, %v941_v30 }
  0xd6   : > { %1372 = vmatprep.mubr.bf16.mxu0 %v1139_v32  ;;  %2175 = vmatmul.mubr.msk.bf16.vlgmr.msra.gmra.mxu1 %vm1033_vm5, %v2775_v47 }
  0xd7   : > { %1373 = vmatmul.mubr.bf16.gmra.mxu0 %v1075_v34  ;;  %2178 = vmatprep.mubr.msk.bf16.mxu1 %vm1033_vm5, %v2802_v19 }
  0xd8   : > { %v869_v6 = vpop.permute.xlu1 %868  ;;  %v975_v20 = vpop.permute.xlu0 %974 }
  0xd9   : > { %v1041_v37 = vsel %vm1033_vm5, %v2537_v23, %v869_v6  ;;  %v1103_v38 = vsel %vm1033_vm5, %v2793_v63, %v975_v20 }
  0xdc   : > { %v926_v4 = vpop.permute.xlu1 %925  ;;  %v992_v36 = vpop.permute.xlu0 %991 }
  0xdd   : > { %v1058_v47 = vsel %vm1050_vm6, %v1041_v37, %v926_v4  ;;  %v1123_v19 = vsel %vm1050_vm6, %v1103_v38, %v992_v36 }
  0xde   : > { %2179 = vmatmul.mubr.msk.bf16.gmra.mxu1 %vm1033_vm5, %v2826_v62 }
  0xdf   : > { %2182 = vmatprep.mubr.msk.bf16.mxu1 %vm1033_vm5, %v2653_v17 }
  0xe0   : > { %v943_v40 = vpop.permute.xlu1 %942  ;;  %v1020_v44 = vpop.permute.xlu0 %1019 }
  0xe1   : > { %v1142_v45 = vsel %vm1067_vm7, %v1123_v19, %v1020_v44  ;;  %v1078_v35 = vsel %vm1067_vm7, %v1058_v47, %v943_v40 }
  0xe2   : > { %1380 = vmatprep.mubr.bf16.mxu0 %v1142_v45 }
  0xe3   : > { %1381 = vmatmul.mubr.bf16.gmra.mxu0 %v1078_v35 }
  0xe4   : > { %v871_v62 = vpop.permute.xlu1 %870  ;;  %v977_v23 = vpop.permute.xlu0 %976 }
  0xe5   : > { %v1043_v2 = vsel %vm1033_vm5, %v2762_v39, %v871_v62  ;;  %v1106_v54 = vsel %vm1033_vm5, %v2814_v9, %v977_v23 }
  0xe6   : > { %2183 = vmatmul.mubr.msk.bf16.gmra.mxu1 %vm1033_vm5, %v2628_v10 }
  0xe7   : > { %2186 = vmatprep.mubr.msk.bf16.mxu1 %vm1033_vm5, %v2658_v33 }
  0xe8   : > { %v928_v17 = vpop.permute.xlu1 %927  ;;  %v994_v63 = vpop.permute.xlu0 %993 }
  0xe9   : > { %v1060_v48 = vsel %vm1050_vm6, %v1043_v2, %v928_v17  ;;  %v1125_v50 = vsel %vm1050_vm6, %v1106_v54, %v994_v63 }
  0xec   : > { %v945_v51 = vpop.permute.xlu1 %944  ;;  %v1022_v52 = vpop.permute.xlu0 %1021 }
  0xed   : > { %v1145_v12 = vsel %vm1067_vm7, %v1125_v50, %v1022_v52  ;;  %v1081_v10 = vsel %vm1067_vm7, %v1060_v48, %v945_v51 }
  0xee   : > { %1388 = vmatprep.mubr.bf16.mxu0 %v1145_v12  ;;  %2187 = vmatmul.mubr.msk.bf16.gmra.mxu1 %vm1033_vm5, %v2819_v15 }
  0xef   : > { %1389 = vmatmul.mubr.bf16.gmra.mxu0 %v1081_v10 }
  0xf0   : > { %v873_v33 = vpop.permute.xlu1 %872  ;;  %v979_v39 = vpop.permute.xlu0 %978 }
  0xf1   : > { %v1045_v9 = vsel %vm1033_vm5, %v2771_v46, %v873_v33  ;;  %v1109_v55 = vsel %vm1033_vm5, %v2701_v3, %v979_v39 }
  0xf4   : > { %v930_v18 = vpop.permute.xlu1 %929  ;;  %v996_v53 = vpop.permute.xlu0 %995 }
  0xf5   : > { %v1062_v59 = vsel %vm1050_vm6, %v1045_v9, %v930_v18  ;;  %v1127_v60 = vsel %vm1050_vm6, %v1109_v55, %v996_v53 }
  0xf8   : > { %v947_v11 = vpop.permute.xlu1 %946  ;;  %v1024_v61 = vpop.permute.xlu0 %1023 }
  0xf9   : > { %v1148_v0 = vsel %vm1067_vm7, %v1127_v60, %v1024_v61  ;;  %v1084_v15 = vsel %vm1067_vm7, %v1062_v59, %v947_v11 }
  0xfa   : > { %1396 = vmatprep.mubr.bf16.mxu0 %v1148_v0 }
  0xfb   : > { %1397 = vmatmul.mubr.bf16.gmra.mxu0 %v1084_v15 }
 0x17a   : > { %v2936_v1 = vpop.f32.mrf.mxu1 }
 0x17c   : > { %v2938_v29 = vpop.f32.mrf.mxu1 }
 0x17e   : > { %v2940_v7 = vpop.f32.mrf.mxu1 }
 0x180   : > { %v2942_v57 = vpop.f32.mrf.mxu1 }
 0x184   : > { %v2112_v46 = vpop.f32.mrf.mxu0 }
 0x186   : > { %v2113_v5 = vpop.f32.mrf.mxu0 }
 0x187   : > { %v2114_v22 = vadd.f32 %v2113_v5, %v2112_v46 }
 0x188   : > { %v2115_v3 = vpop.f32.mrf.mxu0 }
 0x18a   : > { %v2116_v42 = vpop.f32.mrf.mxu0 }
 0x18b   : > { %v2117_v34 = vadd.f32 %v2116_v42, %v2115_v3  ;;  %v2150_v42 = vadd.f32 %v2938_v29, %v2936_v1 }
 0x18c   : > { %v2118_v8 = vpop.f32.mrf.mxu0 }
 0x18e   : > { %v2119_v13 = vpop.f32.mrf.mxu0  ;;  %v2154_v14 = vpop.f32.mrf.mxu1 }
 0x18f   : > { %v2120_v16 = vadd.f32 %v2119_v13, %v2118_v8 }
 0x190   : > { %v2155_v41 = vpop.f32.mrf.mxu1  ;;  %v2121_v49 = vpop.f32.mrf.mxu0 }
 0x191   : > { %v2156_v15 = vadd.f32 %v2155_v41, %v2154_v14 }
 0x192   : > { %v2944_v56 = vpop.f32.mrf.mxu1  ;;  %v2122_v21 = vpop.f32.mrf.mxu0 }
 0x193   : > { %v2123_v27 = vadd.f32 %v2122_v21, %v2121_v49 }
 0x194   : > { %v2946_v24 = vpop.f32.mrf.mxu1 }
 0x195   : > { %v2159_v14 = vadd.f32 %v2946_v24, %v2944_v56 }
 0x196   : > { %v2176_v43 = vpop.f32.mrf.mxu1 }
 0x197   : > { %v2948_v25 = vadd.f32 %v2176_v43, %v2120_v16  ;;  %v2124_v26 = vpop.f32.mrf.mxu0 }
 0x198   : > { %v1455_v58 = vpop.f32.mrf.mxu1 }
 0x199   : > { %v2035_v28 = vpack.c.bf16 %v2948_v25, %v2948_v25  ;;  %v2959_v30 = vadd.f32 %v2114_v22, %v1455_v58  ;;  %v2125_v31 = vpop.f32.mrf.mxu0  ;;  %v1521_v11 = vsel %vm1033_vm5, %v2948_v25, 0.0 }
 0x19a   : > { %v2177_v32 = vpop.f32.mrf.mxu1  ;;  %v2126_v19 = vadd.f32 %v2125_v31, %v2124_v26  ;;  %v2153_v26 = vadd.f32 %v2942_v57, %v2940_v7 }
 0x19b   : > { %1690 = vst.msk [vmem:[%s2955_s21 + $0x8] sm:$0xf] %vm1687_vm8, %v2035_v28  ;;  %v2033_v6 = vpack.c.bf16 %v2959_v30, %v2959_v30  ;;  %v2965_v20 = vadd.f32 %v2177_v32, %v2123_v27  ;;  %v2127_v4 = vpop.f32.mrf.mxu0  ;;  %v1518_v33 = vsel %vm1033_vm5, %v2959_v30, 0.0 }
 0x19c   : > { %v1458_v36 = vpop.f32.mrf.mxu1 }
 0x19d   : > { %1688 = vst.msk [vmem:[%s2955_s21] sm:$0xf] %vm1687_vm8, %v2033_v6  ;;  %v2036_v37 = vpack.c.bf16 %v2965_v20, %v2965_v20  ;;  %v2971_v38 = vadd.f32 %v2117_v34, %v1458_v36  ;;  %v2128_v44 = vpop.f32.mrf.mxu0  ;;  %v1523_v49 = vsel %vm1033_vm5, %v2965_v20, 0.0 }
 0x19e   : > { %v2180_v47 = vpop.f32.mrf.mxu1  ;;  %v2129_v23 = vadd.f32 %v2128_v44, %v2127_v4 }
 0x19f   : > { %1691 = vst.msk [vmem:[%s2955_s21 + $0xc] sm:$0xf] %vm1687_vm8, %v2036_v37  ;;  %v2034_v40 = vpack.c.bf16 %v2971_v38, %v2971_v38  ;;  %v1519_v50 = vsel %vm1033_vm5, %v2971_v38, 0.0 }
 0x1a0   : > { %v1471_v45 = vpop.f32.mrf.mxu1  ;;  %v1520_v53 = vadd.f32 %v1519_v50, %v1518_v33 }
 0x1a1   : > { %1689 = vst.msk [vmem:[%s2955_s21 + $0x4] sm:$0xf] %vm1687_vm8, %v2034_v40  ;;  %v2979_v35 = vadd.f32 %v2126_v19, %v1471_v45 }
 0x1a2   : > { %v2181_v62 = vpop.f32.mrf.mxu1  ;;  %v1522_v46 = vadd.f32 %v1521_v11, %v1520_v53 }
 0x1a3   : > { %v2037_v17 = vpack.c.bf16 %v2979_v35, %v2979_v35  ;;  %v2130_v63 = vpop.f32.mrf.mxu0  ;;  %v1525_v27 = vsel %vm1033_vm5, %v2979_v35, 0.0 }
 0x1a4   : > { %v1474_v2 = vpop.f32.mrf.mxu1  ;;  %v1524_v41 = vadd.f32 %v1523_v49, %v1522_v46 }
 0x1a5   : > { %1692 = vst.msk [vmem:[%s2955_s21 + $0x10] sm:$0xf] %vm1687_vm8, %v2037_v17  ;;  %v2985_v54 = vadd.f32 %v2129_v23, %v1474_v2  ;;  %v2131_v48 = vpop.f32.mrf.mxu0 }
 0x1a6   : > { %v2132_v51 = vadd.f32 %v2131_v48, %v2130_v63  ;;  %v2989_v52 = vpop.f32.mrf.mxu1  ;;  %v1526_v32 = vadd.f32 %v1525_v27, %v1524_v41 }
 0x1a7   : > { %v2038_v12 = vpack.c.bf16 %v2985_v54, %v2985_v54  ;;  %v2133_v10 = vpop.f32.mrf.mxu0  ;;  %v1527_v6 = vsel %vm1033_vm5, %v2985_v54, 0.0 }
 0x1a8   : > { %v2995_v39 = vadd.f32 %v2180_v47, %v2132_v51  ;;  %v1487_v18 = vpop.f32.mrf.mxu1  ;;  %v1528_v19 = vadd.f32 %v1527_v6, %v1526_v32 }
 0x1a9   : > { %1693 = vst.msk [vmem:[%s2955_s21 + $0x14] sm:$0xf] %vm1687_vm8, %v2038_v12  ;;  %v2134_v9 = vpop.f32.mrf.mxu0 }
 0x1aa   : > { %v2039_v55 = vpack.c.bf16 %v2995_v39, %v2995_v39  ;;  %v2135_v59 = vadd.f32 %v2134_v9, %v2133_v10  ;;  %v3001_v60 = vpop.f32.mrf.mxu1  ;;  %v1529_v40 = vsel %vm1033_vm5, %v2995_v39, 0.0 }
 0x1ab   : > { %v1530_v23 = vadd.f32 %v1529_v40, %v1528_v19 }
 0x1ac   : > { %1694 = vst.msk [vmem:[%s2955_s21 + $0x18] sm:$0xf] %vm1687_vm8, %v2039_v55  ;;  %v3007_v61 = vadd.f32 %v2181_v62, %v2135_v59  ;;  %v1490_v0 = vpop.f32.mrf.mxu1 }
 0x1ae   : > { %v2040_v5 = vpack.c.bf16 %v3007_v61, %v3007_v61  ;;  %v2188_v3 = vpop.f32.mrf.mxu1  ;;  %v1531_v62 = vsel %vm1033_vm5, %v3007_v61, 0.0 }
 0x1af   : > { %v3013_v8 = vadd.f32 %v2188_v3, %v2156_v15  ;;  %v2136_v13 = vpop.f32.mrf.mxu0  ;;  %v1532_v48 = vadd.f32 %v1531_v62, %v1530_v23 }
 0x1b0   : > { %1695 = vst.msk [vmem:[%s2955_s21 + $0x1c] sm:$0xf] %vm1687_vm8, %v2040_v5  ;;  %v1503_v16 = vpop.f32.mrf.mxu1 }
 0x1b1   : > { %v2047_v21 = vpack.c.bf16 %v3013_v8, %v3013_v8  ;;  %v3023_v43 = vadd.f32 %v2150_v42, %v1503_v16  ;;  %v2137_v1 = vpop.f32.mrf.mxu0 }
 0x1b2   : > { %v2138_v29 = vadd.f32 %v2137_v1, %v2136_v13  ;;  %v2189_v22 = vpop.f32.mrf.mxu1  ;;  %v1545_v13 = vsel %vm1033_vm5, %v3013_v8, 0.0 }
 0x1b3   : > { %1702 = vst.msk [vmem:[%s2955_s21 + $0x38] sm:$0xf] %vm1687_vm8, %v2047_v21  ;;  %v2045_v58 = vpack.c.bf16 %v3023_v43, %v3023_v43  ;;  %v3031_v56 = vadd.f32 %v2189_v22, %v2159_v14  ;;  %v2139_v24 = vpop.f32.mrf.mxu0 }
 0x1b4   : > { %v3035_v28 = vadd.f32 %v2138_v29, %v1487_v18  ;;  %v1506_v31 = vpop.f32.mrf.mxu1 }
 0x1b5   : > { %1700 = vst.msk [vmem:[%s2955_s21 + $0x30] sm:$0xf] %vm1687_vm8, %v2045_v58  ;;  %v2048_v7 = vpack.c.bf16 %v3031_v56, %v3031_v56  ;;  %v3041_v57 = vadd.f32 %v2153_v26, %v1506_v31  ;;  %v2140_v34 = vpop.f32.mrf.mxu0  ;;  %v1547_v49 = vsel %vm1033_vm5, %v3031_v56, 0.0 }
 0x1b6   : > { %v2041_v4 = vpack.c.bf16 %v3035_v28, %v3035_v28  ;;  %v2141_v36 = vadd.f32 %v2140_v34, %v2139_v24  ;;  %v1533_v63 = vsel %vm1033_vm5, %v3035_v28, 0.0 }
 0x1b7   : > { %1703 = vst.msk [vmem:[%s2955_s21 + $0x3c] sm:$0xf] %vm1687_vm8, %v2048_v7  ;;  %v2046_v37 = vpack.c.bf16 %v3041_v57, %v3041_v57  ;;  %v1534_v10 = vadd.f32 %v1533_v63, %v1532_v48  ;;  %v1543_v3 = vsel %vm1033_vm5, %v3041_v57, 0.0 }
 0x1b8   : > { %1696 = vst.msk [vmem:[%s2955_s21 + $0x20] sm:$0xf] %vm1687_vm8, %v2041_v4  ;;  %v3053_v47 = vadd.f32 %v2141_v36, %v1490_v0 }
 0x1b9   : > { %1701 = vst.msk [vmem:[%s2955_s21 + $0x34] sm:$0xf] %vm1687_vm8, %v2046_v37 }
 0x1ba   : > { %v2042_v44 = vpack.c.bf16 %v3053_v47, %v3053_v47  ;;  %v1535_v51 = vsel %vm1033_vm5, %v3053_v47, 0.0 }
 0x1bb   : > { %v2142_v45 = vpop.f32.mrf.mxu0  ;;  %v1536_v55 = vadd.f32 %v1535_v51, %v1534_v10 }
 0x1bc   : > { %1697 = vst.msk [vmem:[%s2955_s21 + $0x24] sm:$0xf] %vm1687_vm8, %v2042_v44 }
 0x1bd   : > { %v2143_v17 = vpop.f32.mrf.mxu0 }
 0x1be   : > { %v2144_v2 = vadd.f32 %v2143_v17, %v2142_v45 }
 0x1bf   : > { %v2145_v50 = vpop.f32.mrf.mxu0 }
 0x1c0   : > { %v1496_v12 = vadd.f32 %v2989_v52, %v2144_v2  ;;  %v1541_v52 = vsel %vm1033_vm5, %v3023_v43, 0.0 }
 0x1c1   : > { %v2146_v33 = vpop.f32.mrf.mxu0 }
 0x1c2   : > { %v1537_v18 = vsel %vm1033_vm5, %v1496_v12, 0.0  ;;  %v2043_v53 = vpack.c.bf16 %v1496_v12, %v1496_v12  ;;  %v2147_v9 = vadd.f32 %v2146_v33, %v2145_v50 }
 0x1c3   : > { %v1538_v11 = vadd.f32 %v1537_v18, %v1536_v55 }
 0x1c4   : > { %1698 = vst.msk [vmem:[%s2955_s21 + $0x28] sm:$0xf] %vm1687_vm8, %v2043_v53  ;;  %v1499_v59 = vadd.f32 %v3001_v60, %v2147_v9 }
 0x1c6   : > { %v1539_v0 = vsel %vm1033_vm5, %v1499_v59, 0.0  ;;  %v2044_v15 = vpack.c.bf16 %v1499_v59, %v1499_v59 }
 0x1c7   : > { %v1540_v46 = vadd.f32 %v1539_v0, %v1538_v11 }
 0x1c8   : > { %1699 = vst.msk [vmem:[%s2955_s21 + $0x2c] sm:$0xf] %vm1687_vm8, %v2044_v15 }
 0x1c9   : > { %v1542_v5 = vadd.f32 %v1541_v52, %v1540_v46 }
 0x1cb   : > { %v1544_v42 = vadd.f32 %v1543_v3, %v1542_v5 }
 0x1cd   : > { %v1546_v60 = vadd.f32 %v1545_v13, %v1544_v42 }
 0x1cf   : > { %v1548_v16 = vadd.f32 %v1547_v49, %v1546_v60 }
 0x1d1   : > { %v1549_v14 = vsel %vm1033_vm5, %v1548_v16, 0.0  ;;  %1621 = vst.msk [vmem:[%s506_s15] sm:$0xff] %vm1033_vm5, %v1548_v16 }
 0x1d2   : > { %v1550_v41 = vrot.slane %v1549_v14, 4 }
 0x1d4   : > { %v1551_v21 = vadd.f32 %v1550_v41, %v1549_v14 }
 0x1d6   : > { %v1552_v1 = vrot.slane %v1551_v21, 2 }
 0x1d8   : > { %v1553_v29 = vadd.f32 %v1552_v1, %v1551_v21 }
 0x1da   : > { %v1554_v22 = vrot.slane %v1553_v29, 1 }
 0x1dc   : > { %v1555_v26 = vadd.f32 %v1554_v22, %v1553_v29 }
 0x1de   : > { %v1557_v58 = vmul.f32 0.0078125, %v1555_v26 }
 0x1e0   : > { %v1558_v24 = vsub.f32 %v2959_v30, %v1557_v58  ;;  %v1559_v27 = vsub.f32 %v2971_v38, %v1557_v58  ;;  %v1560_v31 = vsub.f32 %v2948_v25, %v1557_v58  ;;  %v1561_v32 = vsub.f32 %v2965_v20, %v1557_v58 }
 0x1e1   : > { %v1562_v6 = vsub.f32 %v2979_v35, %v1557_v58  ;;  %v1563_v36 = vsub.f32 %v2985_v54, %v1557_v58  ;;  %v1564_v30 = vsub.f32 %v2995_v39, %v1557_v58  ;;  %v1565_v20 = vsub.f32 %v3007_v61, %v1557_v58 }
 0x1e2   : > { %v1574_v7 = vmul.f32 %v1558_v24, %v1558_v24  ;;  %v1575_v34 = vmul.f32 %v1559_v27, %v1559_v27  ;;  %v1576_v4 = vmul.f32 %v1560_v31, %v1560_v31  ;;  %v1577_v37 = vmul.f32 %v1561_v32, %v1561_v32 }
 0x1e3   : > { %v1578_v38 = vmul.f32 %v1562_v6, %v1562_v6  ;;  %v1579_v62 = vmul.f32 %v1563_v36, %v1563_v36  ;;  %v1566_v54 = vsub.f32 %v3035_v28, %v1557_v58  ;;  %v1580_v17 = vmul.f32 %v1564_v30, %v1564_v30 }
 0x1e4   : > { %v1590_v19 = vsel %vm1033_vm5, %v1574_v7, 0.0  ;;  %v1591_v40 = vsel %vm1033_vm5, %v1575_v34, 0.0  ;;  %v1593_v25 = vsel %vm1033_vm5, %v1576_v4, 0.0  ;;  %v1595_v35 = vsel %vm1033_vm5, %v1577_v37, 0.0 }
 0x1e5   : > { %v1592_v44 = vadd.f32 %v1591_v40, %v1590_v19  ;;  %v1597_v63 = vsel %vm1033_vm5, %v1578_v38, 0.0  ;;  %v1567_v48 = vsub.f32 %v3053_v47, %v1557_v58  ;;  %v1581_v50 = vmul.f32 %v1565_v20, %v1565_v20 }
 0x1e6   : > { %v1599_v39 = vsel %vm1033_vm5, %v1579_v62, 0.0  ;;  %v1568_v10 = vsub.f32 %v1496_v12, %v1557_v58  ;;  %v1582_v33 = vmul.f32 %v1566_v54, %v1566_v54  ;;  %v1601_v61 = vsel %vm1033_vm5, %v1580_v17, 0.0 }
 0x1e7   : > { %v1594_v45 = vadd.f32 %v1593_v25, %v1592_v44  ;;  %v1569_v53 = vsub.f32 %v1499_v59, %v1557_v58  ;;  %v1583_v9 = vmul.f32 %v1567_v48, %v1567_v48  ;;  %v1603_v55 = vsel %vm1033_vm5, %v1581_v50, 0.0 }
 0x1e8   : > { %v1570_v11 = vsub.f32 %v3023_v43, %v1557_v58  ;;  %v1584_v0 = vmul.f32 %v1568_v10, %v1568_v10  ;;  %v1605_v15 = vsel %vm1033_vm5, %v1582_v33, 0.0  ;;  %v1571_v46 = vsub.f32 %v3041_v57, %v1557_v58 }
 0x1e9   : > { %v1596_v23 = vadd.f32 %v1595_v35, %v1594_v45  ;;  %v1585_v52 = vmul.f32 %v1569_v53, %v1569_v53  ;;  %v1607_v12 = vsel %vm1033_vm5, %v1583_v9, 0.0  ;;  %v1572_v3 = vsub.f32 %v3013_v8, %v1557_v58 }
 0x1ea   : > { %v1586_v59 = vmul.f32 %v1570_v11, %v1570_v11  ;;  %v1609_v42 = vsel %vm1033_vm5, %v1584_v0, 0.0  ;;  %v1573_v60 = vsub.f32 %v3031_v56, %v1557_v58  ;;  %v1587_v43 = vmul.f32 %v1571_v46, %v1571_v46 }
 0x1eb   : > { %v1598_v2 = vadd.f32 %v1597_v63, %v1596_v23  ;;  %v1611_v49 = vsel %vm1033_vm5, %v1585_v52, 0.0  ;;  %v1588_v14 = vmul.f32 %v1572_v3, %v1572_v3 }
 0x1ec   : > { %v1613_v57 = vsel %vm1033_vm5, %v1586_v59, 0.0  ;;  %v1589_v21 = vmul.f32 %v1573_v60, %v1573_v60  ;;  %v1615_v1 = vsel %vm1033_vm5, %v1587_v43, 0.0 }
 0x1ed   : > { %v1600_v51 = vadd.f32 %v1599_v39, %v1598_v2  ;;  %v1617_v8 = vsel %vm1033_vm5, %v1588_v14, 0.0 }
 0x1ee   : > { %v1619_v56 = vsel %vm1033_vm5, %v1589_v21, 0.0 }
 0x1ef   : > { %v1602_v18 = vadd.f32 %v1601_v61, %v1600_v51 }
 0x1f1   : > { %v1604_v28 = vadd.f32 %v1603_v55, %v1602_v18 }
 0x1f3   : > { %v1606_v47 = vadd.f32 %v1605_v15, %v1604_v28 }
 0x1f5   : > { %v1608_v5 = vadd.f32 %v1607_v12, %v1606_v47 }
 0x1f7   : > { %v1610_v13 = vadd.f32 %v1609_v42, %v1608_v5 }
 0x1f9   : > { %v1612_v16 = vadd.f32 %v1611_v49, %v1610_v13 }
 0x1fb   : > { %v1614_v41 = vadd.f32 %v1613_v57, %v1612_v16 }
 0x1fd   : > { %v1616_v29 = vadd.f32 %v1615_v1, %v1614_v41 }
 0x1ff   : > { %v1618_v22 = vadd.f32 %v1617_v8, %v1616_v29 }
 0x201   : > { %v1620_v26 = vadd.f32 %v1619_v56, %v1618_v22 }
 0x203   : > { %1622 = vst.msk [vmem:[%s514_s18] sm:$0xff] %vm1033_vm5, %v1620_v26 }
 0x204 PF: > { %s19_s9 = sadd.s32 1, %s2305_s9   ;;  %s3161_s27 = smov %s2297_s29 }
 0x205   : > { %p16_p12 = scmp.ge.s32.totalorder %s19_s9, 6   ;;  %s3162_s28 = smov %s2301_s30 }
 0x206   : > { %s3163_s29 = smov %s3166_s10  ;;  %s3164_s30 = smov %s3170_s11 }
 0x207   :  { %18 = sbr.rel (!%p16_p12) target bundleno = 3 (0x3), region = 104 }

// kernel: resnet_dc_forward.12
= control target key start
LH: loop header
LB: loop body
LE: loop exit
PB: predicated region body
PF: predicated region fallthrough
CT: control target
= control target key end

     0   :  { %s3077_s21 = smov 0   ;;  %s3079_s22 = smov 0   ;;  %s3984_s0 = inlined_call_operand.vmem [shape: bf16[2,16,16,32], index: 0, kind: input, shape index: {}, may-alias: {0,1,2}]   ;;  %s3985_s1 = inlined_call_operand.vmem [shape: bf16[2,16,16,32], index: 1, kind: input, shape index: {}, may-alias: {0,1,2}]   ;;  %s3986_s2 = inlined_call_operand.vmem [shape: bf16[2,16,16,32], index: 2, kind: input, shape index: {}, may-alias: {0,1,2}]   ;;  %s3987_s3 = inlined_call_operand.vmem [shape: f32[2,16,16,1], index: 3, kind: input, shape index: {}, may-alias: {3,4,5}]   ;;  %s3988_s4 = inlined_call_operand.vmem [shape: f32[2,16,16,1], index: 4, kind: input, shape index: {}, may-alias: {3,4,5}]   ;;  %s3989_s5 = inlined_call_operand.vmem [shape: f32[2,16,16,1], index: 5, kind: input, shape index: {}, may-alias: {3,4,5}]   ;;  %s3990_s6 = inlined_call_operand.vmem [shape: f32[1,32], index: 6, kind: input, shape index: {}]   ;;  %s3991_s7 = inlined_call_operand.vmem [shape: f32[1,32], index: 7, kind: input, shape index: {}]   ;;  %s3992_s8 = inlined_call_operand.vmem [shape: bf16[288,32], index: 8, kind: input, shape index: {}]   ;;  %s3993_s9 = inlined_call_operand.vmem [shape: bf16[2,16,16,32], index: 9, kind: output, shape index: {0}]   ;;  %s3994_s10 = inlined_call_operand.vmem [shape: bf16[2,16,16,32], index: 10, kind: output, shape index: {1}]   ;;  %s3995_s11 = inlined_call_operand.vmem [shape: f32[2,2,8,32], index: 11, kind: output, shape index: {2}]   ;;  %s3996_s12 = inlined_call_operand.vmem [shape: f32[2,2,8,32], index: 12, kind: output, shape index: {3}]  }
   0x1   :  { %3997 = sst [smem:[#allocation2_spill]] %s3987_s3  ;;  %s3081_s23 = smov 0  }
   0x2   :  { %s3083_s24 = smov 0   ;;  %s3085_s25 = smov 0  }
   0x3 LB: > { %s32_s26 = sadd.s32 1, %s2998_s23  ;;  %s35_s27 = sadd.s32 1, %s3002_s24  ;;  %s3006_s25 = sphi %s3085_s25, %s23_s25   ;;  %s3002_s24 = sphi %s3083_s24, %s4005_s24   ;;  %s2998_s23 = sphi %s3081_s23, %s4004_s23   ;;  %s2994_s22 = sphi %s3079_s22, %s4003_s22   ;;  %s2990_s21 = sphi %s3077_s21, %s4002_s21  }
   0x4   : > { %p33_p0 = scmp.ge.s32.totalorder %s32_s26, 2  ;;  %p2582_p1 = scmp.ge.s32.totalorder %s3006_s25, 1 }
   0x5   : > { %p543_p2 = scmp.lt.s32.totalorder %s3006_s25, 5 }
   0x6   : > { %s4007_s26 = smov (%p33_p0, %s32_s26), 0  ;;  %s4009_s27 = smov (!%p33_p0, %s35_s27), %s3002_s24 }
   0x7   : > { %p544_p3 = pnand %p2582_p1, %p543_p2  ;;  %p37_p4 = scmp.ge.s32.totalorder %s4009_s27, 2 }
   0x8   : > { %s2583_s28 = sshll.u32 (!%p544_p3), %s2990_s21, 3  ;;  %p684_p5 = scmp.lt.s32.totalorder (!%p544_p3), %s2994_s22, 1 }
   0x9   : > { %s4011_s27 = smov (%p37_p4, %s4009_s27), 0  ;;  %547 = sbr.rel (%p544_p3) target bundleno = 653 (0x28d), region = 56 }
   0xa   : > { %p686_p6 = scmp.lt.s32.totalorder (!%p544_p3), %s2583_s28, 15  ;;  %s2588_s29 = sadd.s32 (!%p544_p3), 4294967295, %s2583_s28 }
   0xb   : > { %p696_p7 = scmp.gt.s32.totalorder (!%p544_p3), %s2588_s29, 0  ;;  %s2710_s16 = sadd.s32 (!%p544_p3), 8, %s2583_s28 }
   0xc   : > { %p2589_p8 = scmp.lt.s32.totalorder (!%p544_p3), %s2588_s29, 15  ;;  %s3998_s3 = sld [smem:[#allocation2_spill]] (!%p544_p3) }
   0xd   : > { %p3124_p9 = scmp.lt.s32.totalorder (!%p544_p3), %s2710_s16, 15  ;;  %p797_p10 = scmp.lt.s32.totalorder (!%p544_p3), %s2990_s21, 1 }
   0xe   : > { %v3008_v0 = vmov 0   ;;  %s4013_s22 = smov (!%p684_p5, %s2994_s22), 1  ;;  %s4015_s29 = smov (!%p696_p7, %s2588_s29), 0  ;;  %v3183_v25 = vld [vmem:[%s3990_s6] ss:$0 sm:$0xff]  ;;  %vm1142_vm0 = vcmask 257024  }
   0xf   : > { %2949 = vset.pattern.permute.xlu0 %v3008_v0  ;;  %2948 = vset.pattern.permute.xlu1 %v3008_v0  ;;  %s687_s30 = scalar_select %p686_p6, %s2583_s28, 15  ;;  %v3191_v31 = vld [vmem:[%s3991_s7] ss:$0 sm:$0xff]  ;;  %vm1251_vm1 = vcmask 1040384   ;;  %vm1252_vm2 = vsmask.f32 256 }
  0x10   : > { %s3113_s13 = sshll.u32 %s4013_s22, 5  ;;  %s4017_s29 = smov (!%p2589_p8, %s4015_s29), 15  ;;  %vm3260_vm3 = vmand %vm1251_vm1, %vm1252_vm2  ;;  %vm1403_vm4 = vcmask 1046528   ;;  %vm1274_vm5 = vsmask.f32 7424  ;;  %vm1542_vm6 = vcmask 261120  }
  0x11   : > { %s2584_s14 = sshll.u32 %s687_s30, 1  ;;  %s4019_s16 = smov (!%p3124_p9, %s2710_s16), 15  ;;  %vm1559_vm7 = vcmask 523264   ;;  %vm1576_vm8 = vcmask 785408  }
  0x12   : > { %s3116_s15 = sadd.s32 %s3113_s13, %s2584_s14  ;;  %s2594_s28 = sshll.u32 %s4017_s29, 1 }
  0x13   : > { %s2607_s17 = sshll.u32 %s3116_s15, 3  ;;  %s3135_s14 = sadd.s32 %s2594_s28, %s3113_s13 }
  0x14   : > { %s3122_s20 = scalar_lea.vmem %s3998_s3, %s2607_s17  ;;  %s2617_s17 = sshll.u32 %s3135_s14, 3 }
  0x15   : > { %v892_v1 = vld [vmem:[%s3122_s20 + $0x10] sm:$0xff]  ;;  %v890_v2 = vld [vmem:[%s3122_s20] sm:$0xff]  ;;  %v893_v3 = vld [vmem:[%s3122_s20 + $0x18] sm:$0xff]  ;;  %s751_s3 = scalar_lea.vmem %s3988_s4, %s2617_s17  ;;  %s4021_s16 = smov (!%p3124_p9, %s4019_s16), 15 }
  0x16   : > { %918 = vperm.xlu1 %2948, %v892_v1   ;;  %908 = vperm.xlu0 %2949, %v890_v2   ;;  %v900_v4 = vld [vmem:[%s3122_s20 + $0x50] sm:$0xff]  ;;  %v891_v5 = vld [vmem:[%s3122_s20 + $0x8] sm:$0xff]  ;;  %v1026_v6 = vld [vmem:[%s751_s3] sm:$0xff]  ;;  %s2601_s29 = sshll.u32 %s4021_s16, 1  ;;  %s2633_s18 = sshll.u32 %s4013_s22, 1 }
  0x17   : > { %v901_v7 = vld [vmem:[%s3122_s20 + $0x58] sm:$0xff]  ;;  %v1027_v8 = vld [vmem:[%s751_s3 + $0x8] sm:$0xff]  ;;  %v904_v10 = vld [vmem:[%s3122_s20 + $0x70] sm:$0xff]  ;;  %s3148_s28 = sadd.s32 %s2601_s29, %s3113_s13  ;;  %s3170_s29 = sshll.u32 %s3116_s15, 2 }
  0x18   : > { %v905_v9 = vld [vmem:[%s3122_s20 + $0x78] sm:$0xff]  ;;  %v895_v11 = vld [vmem:[%s3122_s20 + $0x28] sm:$0xff]  ;;  %v894_v12 = vld [vmem:[%s3122_s20 + $0x20] sm:$0xff]  ;;  %s2624_s3 = sshll.u32 %s3148_s28, 3  ;;  %s3176_s30 = scalar_lea.vmem %s3984_s0, %s3170_s29 }
  0x19   : > { %v903_v13 = vld [vmem:[%s3122_s20 + $0x68] sm:$0xff]  ;;  %v902_v14 = vld [vmem:[%s3122_s20 + $0x60] sm:$0xff]  ;;  %s768_s13 = scalar_lea.vmem %s3989_s5, %s2624_s3  ;;  %v897_v17 = vld [vmem:[%s3122_s20 + $0x38] sm:$0xff]  ;;  %s3207_s16 = scalar_lea.vmem %s3994_s10, %s3170_s29 }
  0x1a   : > { %923 = vperm.xlu1 %2948, %v893_v3   ;;  %958 = vperm.xlu0 %2949, %v900_v4   ;;  %v1051_v15 = vld [vmem:[%s768_s13 + $0x8] sm:$0xff]  ;;  %v1050_v16 = vld [vmem:[%s768_s13] sm:$0xff]  ;;  %v896_v18 = vld [vmem:[%s3122_s20 + $0x30] sm:$0xff]  ;;  %s798_s17 = scalar_select %p797_p10, %s2990_s21, 1 }
  0x1b   : > { %v899_v19 = vld [vmem:[%s3122_s20 + $0x48] sm:$0xff]  ;;  %v898_v20 = vld [vmem:[%s3122_s20 + $0x40] sm:$0xff]  ;;  %v2793_v45 = vld [vmem:[%s3176_s30 + $0x38] sm:$0xff]   ;;  %s2603_s22 = sshll.u32 %s3148_s28, 2  ;;  %p1066_p11 = scmp.gt.s32.totalorder %s2990_s21, 0 }
  0x1c   : > { %s3167_s19 = sadd.s32 %s2633_s18, %s798_s17  ;;  %v2787_v21 = vld [vmem:[%s3176_s30 + $0x8] sm:$0xff]   ;;  %v2748_v22 = vld [vmem:[%s3176_s30] sm:$0xff]   ;;  %s2596_s17 = sshll.u32 %s3135_s14, 2  ;;  %v2788_v48 = vld [vmem:[%s3176_s30 + $0x10] sm:$0xff]   ;;  %v2778_v53 = vunpack.c.h.bf16 %v2793_v45  ;;  %v2777_v58 = vunpack.c.l.bf16 %v2793_v45 }
  0x1d   : > { %v2753_v23 = vunpack.c.l.bf16 %v2787_v21  ;;  %v2749_v24 = vunpack.c.l.bf16 %v2748_v22  ;;  %v2791_v26 = vld [vmem:[%s3176_s30 + $0x28] sm:$0xff]   ;;  %v2754_v29 = vunpack.c.h.bf16 %v2787_v21  ;;  %v2750_v32 = vunpack.c.h.bf16 %v2748_v22  ;;  %s706_s15 = scalar_lea.vmem %s3985_s1, %s2596_s17  ;;  %s723_s18 = scalar_lea.vmem %s3986_s2, %s2603_s22 }
  0x1e   : > { %913 = vperm.xlu1 %2948, %v891_v5   ;;  %1030 = vperm.xlu0 %2949, %v1026_v6   ;;  %v2769_v30 = vunpack.c.l.bf16 %v2791_v26  ;;  %v2770_v40 = vunpack.c.h.bf16 %v2791_v26  ;;  %v2758_v59 = vunpack.c.h.bf16 %v2788_v48  ;;  %v2757_v62 = vunpack.c.l.bf16 %v2788_v48  ;;  %v3228_v3 = vld [vmem:[%s706_s15] sm:$0xff]   ;;  %v2789_v26 = vld [vmem:[%s3176_s30 + $0x18] sm:$0xff]   ;;  %s3009_s17 = smov 64   ;;  %s3010_s22 = smov 96  }
  0x1f   : > { %v853_v27 = vmul.f32 %v2753_v23, %v3183_v25  ;;  %v851_v28 = vmul.f32 %v2749_v24, %v3183_v25  ;;  %v854_v35 = vmul.f32 %v2754_v29, %v3183_v25  ;;  %v852_v39 = vmul.f32 %v2750_v32, %v3183_v25  ;;  %s3283_s3 = scalar_select %p797_p10, 1, 0 }
  0x20   : > { %v861_v36 = vmul.f32 %v2769_v30, %v3183_v25  ;;  %v862_v52 = vmul.f32 %v2770_v40, %v3183_v25  ;;  %v866_v2 = vmul.f32 %v2778_v53, %v3183_v25  ;;  %v2762_v40 = vunpack.c.h.bf16 %v2789_v26  ;;  %s3370_s13 = scalar_select %p1066_p11, 1, 0 }
  0x21   : > { %v876_v33 = vadd.f32 %v3191_v31, %v853_v27  ;;  %v874_v34 = vadd.f32 %v3191_v31, %v851_v28  ;;  %v877_v43 = vadd.f32 %v3191_v31, %v854_v35  ;;  %v875_v51 = vadd.f32 %v3191_v31, %v852_v39  ;;  %s3011_s28 = smov 32   ;;  %s3787_s15 = scalar_lea.vmem %s3993_s9, %s3170_s29 }
  0x22   : > { %963 = vperm.xlu1 %2948, %v901_v7   ;;  %1035 = vperm.xlu0 %2949, %v1027_v8   ;;  %v884_v44 = vadd.f32 %v3191_v31, %v861_v36  ;;  %v885_v1 = vadd.f32 %v3191_v31, %v862_v52  ;;  %v2792_v8 = vld [vmem:[%s3176_s30 + $0x30] sm:$0xff]   ;;  %v2781_v52 = vunpack.c.l.bf16 %v3228_v3  ;;  %s1068_s14 = scvt.s32.f32 %s3370_s13  ;;  %s2634_s29 = sshll.u32 %s3167_s19, 3 }
  0x23   : > { %v2773_v29 = vunpack.c.l.bf16 %v2792_v8  ;;  %s810_s21 = scalar_lea.vmem %s3996_s12, %s2634_s29 }
  0x26   : > { %983 = vperm.xlu1 %2948, %v905_v9   ;;  %978 = vperm.xlu0 %2949, %v904_v10   ;;  %v2782_v9 = vunpack.c.h.bf16 %v3228_v3  ;;  %v865_v10 = vmul.f32 %v2777_v58, %v3183_v25  ;;  %v2955_v3 = vld [vmem:[%s3992_s8 + $0x28] sm:$0xff]  }
  0x28   : > { %v888_v27 = vadd.f32 %v3191_v31, %v865_v10  ;;  %v3277_v53 = vmul.f32 %v2782_v9, %v3183_v25 }
  0x2a   : > { %933 = vperm.xlu1 %2948, %v895_v11   ;;  %928 = vperm.xlu0 %2949, %v894_v12   ;;  %v856_v11 = vmul.f32 %v2758_v59, %v3183_v25  ;;  %v2784_v12 = vld [vmem:[%s723_s18] sm:$0xff]  }
  0x2b   : > { %v2786_v30 = vunpack.c.h.bf16 %v2784_v12  ;;  %v2785_v39 = vunpack.c.l.bf16 %v2784_v12 }
  0x2c   : > { %v879_v28 = vadd.f32 %v3191_v31, %v856_v11 }
  0x2d   : > { %v1046_v59 = vmul.f32 %v2785_v39, %v3183_v25 }
  0x2e   : > { %973 = vperm.xlu1 %2948, %v903_v13   ;;  %968 = vperm.xlu0 %2949, %v902_v14  }
  0x32   : > { %1059 = vperm.xlu1 %2948, %v1051_v15   ;;  %1054 = vperm.xlu0 %2949, %v1050_v16   ;;  %v855_v15 = vmul.f32 %v2757_v62, %v3183_v25  ;;  %v2790_v62 = vld [vmem:[%s3176_s30 + $0x20] sm:$0xff]   ;;  %s1074_s30 = scvt.s32.f32 %s3283_s3 }
  0x33   : > { %v2766_v12 = vunpack.c.h.bf16 %v2790_v62 }
  0x34   : > { %v878_v35 = vadd.f32 %v3191_v31, %v855_v15 }
  0x36   : > { %943 = vperm.xlu1 %2948, %v897_v17   ;;  %938 = vperm.xlu0 %2949, %v896_v18  }
  0x3a   : > { %953 = vperm.xlu1 %2948, %v899_v19   ;;  %948 = vperm.xlu0 %2949, %v898_v20   ;;  %v889_v19 = vadd.f32 %v3191_v31, %v866_v2  ;;  %v2774_v20 = vunpack.c.h.bf16 %v2792_v8 }
  0x91   : > { %v919_v37 = vpop.permute.xlu1 %918  ;;  %v909_v38 = vpop.permute.xlu0 %908 }
  0x92   : > { %v988_v41 = vadd.f32 %v919_v37, %v876_v33  ;;  %v986_v42 = vadd.f32 %v909_v38, %v874_v34  ;;  %v864_v38 = vmul.f32 %v2774_v20, %v3183_v25 }
  0x94   : > { %v1004_v46 = vmax.f32 %v988_v41, 0.0  ;;  %v1002_v47 = vmax.f32 %v986_v42, 0.0  ;;  %v2761_v41 = vunpack.c.l.bf16 %v2789_v26  ;;  %v887_v58 = vadd.f32 %v3191_v31, %v864_v38  ;;  %v2950_v26 = vld [vmem:[%s3992_s8 + $0x78] sm:$0xff]  }
  0x95   : > { %v924_v49 = vpop.permute.xlu1 %923  ;;  %v959_v50 = vpop.permute.xlu0 %958  ;;  %2888 = vmatprep.subr.bf16.mxu1 %v2950_v26  ;;  %2794 = vmatprep.subr.bf16.mxu0 %v2950_v26 }
  0x96   : > { %v2717_v54 = vpack.c.bf16 %v1004_v46, %v1004_v46  ;;  %v2715_v55 = vpack.c.bf16 %v1002_v47, %v1002_v47  ;;  %v989_v56 = vadd.f32 %v924_v49, %v877_v43  ;;  %v996_v57 = vadd.f32 %v959_v50, %v884_v44 }
  0x97   : > { %v863_v49 = vmul.f32 %v2773_v29, %v3183_v25  ;;  %v1047_v50 = vmul.f32 %v2786_v30, %v3183_v25 }
  0x98   : > { %1145 = vst.msk [vmem:[%s3207_s16 + $0x8] sm:$0xf] %vm1142_vm0, %v2717_v54  ;;  %1143 = vst.msk [vmem:[%s3207_s16] sm:$0xf] %vm1142_vm0, %v2715_v55  ;;  %v1005_v60 = vmax.f32 %v989_v56, 0.0  ;;  %v3219_v61 = vmax.f32 %v996_v57, 0.0 }
  0x99   : > { %v914_v63 = vpop.permute.xlu1 %913  ;;  %v3224_v0 = vpop.permute.xlu0 %1030  ;;  %v1049_v8 = vadd.f32 %v3191_v31, %v1047_v50  ;;  %v2953_v50 = vld [vmem:[%s3992_s8 + $0x30] sm:$0xff]  }
  0x9a   : > { %v1079_v4 = vpack.c.bf16 %v1005_v60, %v1004_v46  ;;  %v2718_v5 = vpack.c.bf16 %v1005_v60, %v1005_v60  ;;  %v2725_v6 = vpack.c.bf16 %v3219_v61, %v3219_v61  ;;  %v987_v7 = vadd.f32 %v914_v63, %v875_v51 }
  0x9b   : > { %v858_v60 = vmul.f32 %v2762_v40, %v3183_v25 }
  0x9c   : > { %1146 = vst.msk [vmem:[%s3207_s16 + $0xc] sm:$0xf] %vm1142_vm0, %v2718_v5  ;;  %v1176_v13 = vshrl.u32 %v1079_v4, 16  ;;  %1153 = vst.msk [vmem:[%s3207_s16 + $0x28] sm:$0xf] %vm1142_vm0, %v2725_v6  ;;  %v1003_v14 = vmax.f32 %v987_v7, 0.0  ;;  %v886_v7 = vadd.f32 %v3191_v31, %v863_v49 }
  0x9d   : > { %v1179_v16 = vshll.u32 %v1079_v4, 16  ;;  %v964_v17 = vpop.permute.xlu1 %963  ;;  %v3241_v18 = vpop.permute.xlu0 %1035  ;;  %v857_v4 = vmul.f32 %v2761_v41, %v3183_v25  ;;  %v2952_v49 = vld [vmem:[%s3992_s8 + $0x70] sm:$0xff]  }
  0x9e   : > { %v3244_v21 = vrot.slane %v1176_v13, 7  ;;  %v1078_v22 = vpack.c.bf16 %v1003_v14, %v1002_v47  ;;  %v2716_v23 = vpack.c.bf16 %v1003_v14, %v1003_v14  ;;  %v997_v24 = vadd.f32 %v964_v17, %v885_v1 }
  0x9f   : > { %v881_v17 = vadd.f32 %v3191_v31, %v858_v60 }
  0xa0   : > { %v1181_v32 = vor.u32 %v1179_v16, %v3244_v21  ;;  %1144 = vst.msk [vmem:[%s3207_s16 + $0x4] sm:$0xf] %vm1142_vm0, %v2716_v23  ;;  %v1169_v33 = vshrl.u32 %v1078_v22, 16  ;;  %v3252_v34 = vmax.f32 %v997_v24, 0.0  ;;  %v1172_v43 = vshll.u32 %v1078_v22, 16 }
  0xa1   : > { %v984_v36 = vpop.permute.xlu1 %983  ;;  %v979_v37 = vpop.permute.xlu0 %978  ;;  %v1048_v16 = vadd.f32 %v3191_v31, %v1046_v59  ;;  %v880_v24 = vadd.f32 %v3191_v31, %v857_v4 }
  0xa2   : > { %v3256_v42 = vrot.slane %v1169_v33, 7  ;;  %v2726_v45 = vpack.c.bf16 %v3252_v34, %v3252_v34  ;;  %v1001_v46 = vadd.f32 %v984_v36, %v889_v19  ;;  %v1000_v47 = vadd.f32 %v979_v37, %v888_v27  ;;  %v2951_v27 = vld [vmem:[%s3992_s8 + $0x38] sm:$0xff]  }
  0xa3   : > { %v3268_v48 = vsel %vm3260_vm3, 0, %v1181_v32  ;;  %v2765_v19 = vunpack.c.l.bf16 %v2790_v62  ;;  %v3316_v33 = vpack.c.bf16 %v3252_v34, %v3219_v61  ;;  %v1075_v36 = vstv %s1074_s30  ;;  %2896 = vmatpush3.bf16.msra.mxu1 %v2951_v27  ;;  %2795 = vmatpush3.bf16.msra.mxu0 %v2951_v27  ;;  %v2957_v27 = vld [vmem:[%s3992_s8 + $0x20] sm:$0xff]  }
  0xa4   : > { %v1174_v51 = vor.u32 %v1172_v43, %v3256_v42  ;;  %1154 = vst.msk [vmem:[%s3207_s16 + $0x2c] sm:$0xf] %vm1142_vm0, %v2726_v45  ;;  %v1017_v54 = vmax.f32 %v1001_v46, 0.0  ;;  %1494 = vrot.lane.b32.xlu0 %v3268_v48, %s3009_s17  ;;  %v1016_v55 = vmax.f32 %v1000_v47, 0.0  ;;  %v860_v37 = vmul.f32 %v2766_v12, %v3183_v25  ;;  %2889 = vmatprep.subr.bf16.mxu1 %v2952_v49 }
  0xa5   : > { %v934_v56 = vpop.permute.xlu1 %933  ;;  %v929_v57 = vpop.permute.xlu0 %928  ;;  %v859_v45 = vmul.f32 %v2765_v19, %v3183_v25  ;;  %v1022_v62 = vmul.f32 %v2781_v52, %v3183_v25  ;;  %2796 = vmatprep.subr.bf16.mxu0 %v2952_v49  ;;  %v2954_v25 = vld [vmem:[%s3992_s8 + $0x68] sm:$0xff]  }
  0xa6   : > { %v2730_v63 = vpack.c.bf16 %v1017_v54, %v1017_v54  ;;  %v991_v1 = vadd.f32 %v934_v56, %v879_v28  ;;  %v990_v2 = vadd.f32 %v929_v57, %v878_v35  ;;  %v1085_v5 = vpack.c.bf16 %v1017_v54, %v1016_v55 }
  0xa7   : > { %v2729_v6 = vpack.c.bf16 %v1016_v55, %v1016_v55  ;;  %v3296_v11 = vsel %vm3260_vm3, 0, %v1174_v51  ;;  %v1204_v57 = vshrl.u32 %v3316_v33, 16  ;;  %v883_v4 = vadd.f32 %v3191_v31, %v860_v37  ;;  %2897 = vmatpush3.bf16.msra.mxu1 %v2953_v50  ;;  %2797 = vmatpush3.bf16.msra.mxu0 %v2953_v50 }
  0xa8   : > { %1158 = vst.msk [vmem:[%s3207_s16 + $0x3c] sm:$0xf] %vm1142_vm0, %v2730_v63  ;;  %v1007_v9 = vmax.f32 %v991_v1, 0.0  ;;  %v1006_v10 = vmax.f32 %v990_v2, 0.0  ;;  %v1218_v13 = vshrl.u32 %v1085_v5, 16  ;;  %1445 = vrot.lane.b32.xlu1 %v3296_v11, %s3010_s22  ;;  %v1221_v29 = vshll.u32 %v1085_v5, 16  ;;  %2890 = vmatprep.subr.bf16.mxu1 %v2954_v25 }
  0xa9   : > { %1157 = vst.msk [vmem:[%s3207_s16 + $0x38] sm:$0xf] %vm1142_vm0, %v2729_v6  ;;  %v974_v14 = vpop.permute.xlu1 %973  ;;  %v969_v15 = vpop.permute.xlu0 %968  ;;  %v882_v12 = vadd.f32 %v3191_v31, %v859_v45  ;;  %2798 = vmatprep.subr.bf16.mxu0 %v2954_v25  ;;  %v2959_v45 = vld [vmem:[%s3992_s8 + $0x18] sm:$0xff]  }
  0xaa   : > { %v2720_v20 = vpack.c.bf16 %v1007_v9, %v1007_v9  ;;  %v1080_v22 = vpack.c.bf16 %v1007_v9, %v1006_v10  ;;  %v2719_v23 = vpack.c.bf16 %v1006_v10, %v1006_v10  ;;  %v3312_v28 = vrot.slane %v1218_v13, 7 }
  0xab   : > { %v999_v30 = vadd.f32 %v974_v14, %v887_v58  ;;  %v998_v32 = vadd.f32 %v969_v15, %v886_v7  ;;  %v1206_v13 = vrot.slane %v1204_v57, 7  ;;  %v1025_v14 = vadd.f32 %v3191_v31, %v3277_v53  ;;  %2898 = vmatpush3.bf16.msra.mxu1 %v2955_v3  ;;  %2799 = vmatpush3.bf16.msra.mxu0 %v2955_v3 }
  0xac   : > { %1148 = vst.msk [vmem:[%s3207_s16 + $0x14] sm:$0xf] %vm1142_vm0, %v2720_v20  ;;  %1147 = vst.msk [vmem:[%s3207_s16 + $0x10] sm:$0xf] %vm1142_vm0, %v2719_v23  ;;  %v1183_v35 = vshrl.u32 %v1080_v22, 16  ;;  %v1223_v38 = vor.u32 %v1221_v29, %v3312_v28  ;;  %v1186_v34 = vshll.u32 %v1080_v22, 16 }
  0xad   : > { %v1015_v39 = vmax.f32 %v999_v30, 0.0  ;;  %v1014_v40 = vmax.f32 %v998_v32, 0.0  ;;  %v1060_v41 = vpop.permute.xlu1 %1059  ;;  %v1055_v43 = vpop.permute.xlu0 %1054  ;;  %v1207_v53 = vshll.u32 %v3316_v33, 16 }
  0xae   : > { %v3325_v61 = vrot.slane %v1183_v35, 7  ;;  %v1063_v46 = vadd.f32 %v1060_v41, %v1049_v8  ;;  %v1062_v47 = vadd.f32 %v1055_v43, %v1048_v16  ;;  %v3335_v56 = vsel %vm3260_vm3, 0, %v1223_v38 }
  0xaf   : > { %v2728_v51 = vpack.c.bf16 %v1015_v39, %v1015_v39  ;;  %v1084_v54 = vpack.c.bf16 %v1015_v39, %v1014_v40  ;;  %v2727_v55 = vpack.c.bf16 %v1014_v40, %v1014_v40  ;;  %1506 = vrot.lane.b32.xlu0 %v3335_v56, %s3009_s17  ;;  %v1209_v35 = vor.u32 %v1207_v53, %v1206_v13 }
  0xb0   : > { %v1188_v58 = vor.u32 %v1186_v34, %v3325_v61  ;;  %v1065_v59 = vmax.f32 %v1063_v46, 0.0  ;;  %v1064_v60 = vmax.f32 %v1062_v47, 0.0  ;;  %v3481_v53 = vsel %vm3260_vm3, %v3244_v21, 0  ;;  %v2964_v21 = vld [vmem:[%s3992_s8 + $0x40] sm:$0xff]  }
  0xb1   : > { %1156 = vst.msk [vmem:[%s3207_s16 + $0x34] sm:$0xf] %vm1142_vm0, %v2728_v51  ;;  %1155 = vst.msk [vmem:[%s3207_s16 + $0x30] sm:$0xf] %vm1142_vm0, %v2727_v55  ;;  %v1211_v63 = vshrl.u32 %v1084_v54, 16  ;;  %v944_v1 = vpop.permute.xlu1 %943  ;;  %v939_v2 = vpop.permute.xlu0 %938  ;;  %v1214_v9 = vshll.u32 %v1084_v54, 16  ;;  %v1069_v55 = vstv %s1068_s14 }
  0xb2   : > { %v1077_v5 = vmul.f32 %v1075_v36, %v1065_v59  ;;  %v1076_v6 = vmul.f32 %v1075_v36, %v1064_v60  ;;  %v993_v7 = vadd.f32 %v944_v1, %v881_v17  ;;  %v992_v8 = vadd.f32 %v939_v2, %v880_v24  ;;  %v2960_v1 = vld [vmem:[%s3992_s8 + $0x50] sm:$0xff]  }
  0xb3   : > { %v3356_v52 = vrot.slane %v1211_v63, 7  ;;  %v3360_v10 = vsel %vm3260_vm3, 0, %v1188_v58  ;;  %v1024_v17 = vadd.f32 %v3191_v31, %v1022_v62  ;;  %v2956_v31 = vld [vmem:[%s3992_s8 + $0x60] sm:$0xff]   ;;  %v1039_v36 = vadd.f32 %v3241_v18, %v1025_v14  ;;  %v2958_v18 = vld [vmem:[%s3992_s8 + $0x58] sm:$0xff]  }
  0xb4   : > { %v1009_v15 = vmax.f32 %v993_v7, 0.0  ;;  %v1008_v16 = vmax.f32 %v992_v8, 0.0  ;;  %1496 = vrot.lane.b32.xlu0 %v3360_v10, %s3009_s17  ;;  %v3374_v23 = vpack.c.bf16 %v1077_v5, %v1076_v6  ;;  %2891 = vmatprep.subr.bf16.mxu1 %v2956_v31  ;;  %v3422_v58 = vsel %vm3260_vm3, %v3256_v42, 0  ;;  %v2961_v42 = vld [vmem:[%s3992_s8 + $0x10] sm:$0xff]  }
  0xb5   : > { %v1216_v19 = vor.u32 %v1214_v9, %v3356_v52  ;;  %v954_v20 = vpop.permute.xlu1 %953  ;;  %v949_v22 = vpop.permute.xlu0 %948  ;;  %2899 = vmatpush3.bf16.msra.mxu1 %v2957_v27  ;;  %2800 = vmatprep.subr.bf16.mxu0 %v2956_v31  ;;  %v1038_v40 = vadd.f32 %v3224_v0, %v1024_v17  ;;  %v3406_v0 = vsel %vm3260_vm3, 0, %v1209_v35  ;;  %v1041_v50 = vmax.f32 %v1039_v36, 0.0  ;;  %v2963_v17 = vld [vmem:[%s3992_s8 + $0x8] sm:$0xff]  }
  0xb6   : > { %v2722_v24 = vpack.c.bf16 %v1009_v15, %v1009_v15  ;;  %v1081_v26 = vpack.c.bf16 %v1009_v15, %v1008_v16  ;;  %v2721_v29 = vpack.c.bf16 %v1008_v16, %v1008_v16  ;;  %v995_v30 = vadd.f32 %v954_v20, %v883_v4  ;;  %2801 = vmatpush3.bf16.msra.mxu0 %v2957_v27  ;;  %v2962_v16 = vld [vmem:[%s3992_s8 + $0x48] sm:$0xff]   ;;  %v2965_v27 = vld [vmem:[%s3992_s8] sm:$0xff]  }
  0xb7   : > { %v994_v32 = vadd.f32 %v949_v22, %v882_v12  ;;  %v3384_v33 = vsel %vm3260_vm3, 0, %v1216_v19  ;;  %v1225_v34 = vshrl.u32 %v3374_v23, 16  ;;  %2892 = vmatprep.subr.bf16.mxu1 %v2958_v18  ;;  %2802 = vmatprep.subr.bf16.mxu0 %v2958_v18  ;;  %v1040_v59 = vmax.f32 %v1038_v40, 0.0 }
  0xb8   : > { %1150 = vst.msk [vmem:[%s3207_s16 + $0x1c] sm:$0xf] %vm1142_vm0, %v2722_v24  ;;  %v1190_v37 = vshrl.u32 %v1081_v26, 16  ;;  %1457 = vrot.lane.b32.xlu1 %v3384_v33, %s3010_s22  ;;  %1149 = vst.msk [vmem:[%s3207_s16 + $0x18] sm:$0xf] %vm1142_vm0, %v2721_v29  ;;  %v1011_v38 = vmax.f32 %v995_v30, 0.0  ;;  %v1071_v7 = vmul.f32 %v1069_v55, %v1041_v50 }
  0xb9   : > { %v1010_v39 = vmax.f32 %v994_v32, 0.0  ;;  %v1193_v43 = vshll.u32 %v1081_v26, 16  ;;  %2900 = vmatpush3.bf16.msra.mxu1 %v2959_v45  ;;  %v3430_v62 = vsel %vm3260_vm3, %v1206_v13, 0  ;;  %v1407_v63 = vrot.slane %v3296_v11, 1 }
  0xba   : > { %v1192_v41 = vrot.slane %v1190_v37, 7  ;;  %v2724_v46 = vpack.c.bf16 %v1011_v38, %v1011_v38  ;;  %2803 = vmatpush3.bf16.msra.mxu0 %v2959_v45  ;;  %v1228_v2 = vshll.u32 %v3374_v23, 16  ;;  %v1422_v5 = vrot.slane %v3406_v0, 1  ;;  %2893 = vmatprep.subr.bf16.mxu1 %v2960_v1 }
  0xbb   : > { %v3402_v47 = vpack.c.bf16 %v1011_v38, %v1010_v39  ;;  %v2723_v49 = vpack.c.bf16 %v1010_v39, %v1010_v39  ;;  %v3443_v6 = vrot.slane %v1225_v34, 7  ;;  %v1408_v8 = vrot.slane %v3422_v58, 1  ;;  %2804 = vmatprep.subr.bf16.mxu0 %v2960_v1 }
  0xbc   : > { %v1195_v51 = vor.u32 %v1193_v43, %v1192_v41  ;;  %v3410_v54 = vsel %vm3260_vm3, %v1192_v41, 0  ;;  %1447 = vrot.lane.b32.xlu1 %v3268_v48, %s3010_s22  ;;  %1152 = vst.msk [vmem:[%s3207_s16 + $0x24] sm:$0xf] %vm1142_vm0, %v2724_v46  ;;  %v1423_v3 = vrot.slane %v3430_v62, 1  ;;  %v3456_v9 = vsel %vm3260_vm3, %v3356_v52, 0 }
  0xbd   : > { %1151 = vst.msk [vmem:[%s3207_s16 + $0x20] sm:$0xf] %vm1142_vm0, %v2723_v49  ;;  %v1197_v57 = vshrl.u32 %v3402_v47, 16  ;;  %v1230_v12 = vor.u32 %v1228_v2, %v3443_v6  ;;  %2901 = vmatpush3.bf16.msra.mxu1 %v2961_v42  ;;  %v1070_v13 = vmul.f32 %v1069_v55, %v1040_v59  ;;  %v1409_v14 = vsel %vm1403_vm4, %v1407_v63, %v1408_v8  ;;  %s802_s16 = scalar_lea.vmem %s3995_s11, %s2634_s29 }
  0xbe   : > { %v3426_v60 = vsel %vm3260_vm3, 0, %v1195_v51  ;;  %v1425_v15 = vrot.slane %v3384_v33, 1  ;;  %2805 = vmatpush3.bf16.msra.mxu0 %v2961_v42  ;;  %v3468_v52 = vsel %vm1403_vm4, %v1422_v5, %v1423_v3  ;;  %v1426_v20 = vrot.slane %v3456_v9, 1  ;;  %2894 = vmatprep.subr.bf16.mxu1 %v2962_v16 }
  0xbf   : > { %v1199_v4 = vrot.slane %v1197_v57, 7  ;;  %1498 = vrot.lane.b32.xlu0 %v3426_v60, %s3009_s17  ;;  %v1159_v19 = vpack.c.bf16 %v1071_v7, %v1070_v13  ;;  %v3476_v22 = vsel %vm3260_vm3, 0, %v1230_v12  ;;  %v1350_v23 = vshll.u32 %v3406_v0, 16  ;;  %2806 = vmatprep.subr.bf16.mxu0 %v2962_v16 }
  0xc0   : > { %1459 = vrot.lane.b32.xlu1 %v3335_v56, %s3010_s22  ;;  %v3485_v24 = vsel %vm1403_vm4, %v1425_v15, %v1426_v20  ;;  %v1410_v26 = vrot.slane %v3268_v48, 1  ;;  %v1513_v31 = vshll.u32 %v3476_v22, 16  ;;  %v1200_v30 = vshll.u32 %v3402_v47, 16 }
  0xc1   : > { %v3450_v25 = vsel %vm3260_vm3, %v1199_v4, 0  ;;  %2902 = vmatpush3.bf16.msra.mxu1 %v2963_v17  ;;  %v1162_v29 = vshrl.u32 %v1159_v19, 16  ;;  %v1411_v32 = vrot.slane %v3481_v53, 1  ;;  %v1272_v35 = vsel %vm3260_vm3, %v3312_v28, 0 }
  0xc2   : > { %2807 = vmatpush3.bf16.msra.mxu0 %v2963_v17  ;;  %v1474_v36 = vrot.slane %v3335_v56, 1  ;;  %v1352_v37 = vrot.slane %v1350_v23, 1  ;;  %2895 = vmatprep.subr.bf16.mxu1 %v2964_v21  ;;  %v1202_v38 = vor.u32 %v1200_v30, %v1199_v4  ;;  %v1475_v40 = vrot.slane %v1272_v35, 1 }
  0xc3   : > { %1477 = vrot.lane.b32.xlu0 %v1409_v14, %s3011_s28  ;;  %2808 = vmatprep.subr.bf16.mxu0 %v2964_v21  ;;  %v3505_v39 = vsel %vm1403_vm4, %v1410_v26, %v1411_v32  ;;  %v1348_v41 = vshrl.u32 %v3406_v0, 16  ;;  %v1464_v43 = vshll.u32 %v3335_v56, 16  ;;  %v1515_v28 = vrot.slane %v1513_v31, 1 }
  0xc4   : > { %1440 = vrot.lane.b32.xlu1 %v3468_v52, %s3009_s17  ;;  %v1164_v18 = vrot.slane %v1162_v29, 7  ;;  %v1165_v45 = vshll.u32 %v1159_v19, 16  ;;  %v1355_v34 = vshll.u32 %v3430_v62, 16  ;;  %v3515_v46 = vsel %vm1403_vm4, %v1474_v36, %v1475_v40 }
  0xc5   : > { %2903 = vmatpush3.bf16.msra.mxu1 %v2965_v27  ;;  %v1353_v47 = vor.u32 %v1352_v37, %v1348_v41  ;;  %v3520_v49 = vsel %vm3260_vm3, %v3325_v61, 0  ;;  %v1511_v50 = vshrl.u32 %v3476_v22, 16  ;;  %v1413_v51 = vrot.slane %v3360_v10, 1 }
  0xc6   : > { %2809 = vmatpush3.bf16.msra.mxu0 %v2965_v27  ;;  %v1302_v55 = vshll.u32 %v3268_v48, 16  ;;  %v1273_v57 = vsel %vm3260_vm3, %v3443_v6, 0  ;;  %v3530_v59 = vsel %vm3260_vm3, 0, %v1202_v38  ;;  %v1466_v62 = vrot.slane %v1464_v43, 1 }
  0xc7   : > { %1489 = vrot.lane.b32.xlu0 %v3485_v24, %s3011_s28  ;;  %v1362_v61 = vshll.u32 %v3384_v33, 16  ;;  %v1516_v63 = vor.u32 %v1515_v28, %v1511_v50  ;;  %v1518_v1 = vshll.u32 %v1273_v57, 16  ;;  %v1167_v42 = vor.u32 %v1165_v45, %v1164_v18 }
  0xc8   : > { %1430 = vrot.lane.b32.xlu1 %v1409_v14, %s3009_s17  ;;  %v1357_v2 = vrot.slane %v1355_v34, 1  ;;  %v1414_v4 = vrot.slane %v3520_v49, 1  ;;  %v1462_v5 = vshrl.u32 %v3335_v56, 16  ;;  %v1469_v6 = vshll.u32 %v1272_v35, 16 }
  0xc9   : > { %v1539_v7 = vrot.slane %v3476_v22, 1  ;;  %v1520_v8 = vrot.slane %v1518_v1, 1  ;;  %v1304_v13 = vrot.slane %v1302_v55, 1  ;;  %v1290_v14 = vshll.u32 %v3296_v11, 16 }
  0xca   : > { %v3541_v3 = vsel %vm1274_vm5, %v1353_v47, %v1357_v2  ;;  %v3544_v12 = vsel %vm1403_vm4, %v1413_v51, %v1414_v4  ;;  %v1467_v15 = vor.u32 %v1466_v62, %v1462_v5  ;;  %v1364_v16 = vrot.slane %v1362_v61, 1 }
  0xcb   : > { %1479 = vrot.lane.b32.xlu0 %v3505_v39, %s3011_s28  ;;  %v3550_v56 = vsel %vm1274_vm5, %v1516_v63, %v1520_v8  ;;  %v1540_v17 = vrot.slane %v1273_v57, 1  ;;  %v1300_v19 = vshrl.u32 %v3268_v48, 16  ;;  %v1307_v20 = vshll.u32 %v3481_v53, 16 }
  0xcc   : > { %1442 = vrot.lane.b32.xlu1 %v3485_v24, %s3009_s17  ;;  %v3558_v23 = vsel %vm3260_vm3, 0, %v1167_v42  ;;  %v1471_v26 = vrot.slane %v1469_v6, 1  ;;  %v1360_v31 = vshrl.u32 %v3384_v33, 16  ;;  %v1367_v21 = vshll.u32 %v3456_v9, 16 }
  0xcd   : > { %v3563_v27 = vsel %vm1403_vm4, %v1539_v7, %v1540_v17  ;;  %v1305_v29 = vor.u32 %v1304_v13, %v1300_v19  ;;  %v1292_v30 = vrot.slane %v1290_v14, 1  ;;  %v1314_v32 = vshll.u32 %v3360_v10, 16 }
  0xce   : > { %v3567_v35 = vsel %vm1274_vm5, %v1467_v15, %v1471_v26  ;;  %v1365_v53 = vor.u32 %v1364_v16, %v1360_v31  ;;  %v1278_v36 = vshll.u32 %v3558_v23, 16  ;;  %v1309_v9 = vrot.slane %v1307_v20, 1 }
  0xcf   : > { %1491 = vrot.lane.b32.xlu0 %v3515_v46, %s3011_s28  ;;  %v1288_v37 = vshrl.u32 %v3296_v11, 16  ;;  %v1295_v38 = vshll.u32 %v3422_v58, 16  ;;  %v1369_v40 = vrot.slane %v1367_v21, 1  ;;  %v1264_v43 = vsel %vm3260_vm3, %v1164_v18, 0 }
  0xd0   : > { %1432 = vrot.lane.b32.xlu1 %v3505_v39, %s3009_s17  ;;  %v3577_v41 = vsel %vm1274_vm5, %v1305_v29, %v1309_v9  ;;  %v1404_v34 = vrot.slane %v3558_v23, 1  ;;  %v1280_v47 = vrot.slane %v1278_v36, 1  ;;  %v1312_v50 = vshrl.u32 %v3360_v10, 16 }
  0xd1   : > { %v1293_v28 = vor.u32 %v1292_v30, %v1288_v37  ;;  %v3582_v45 = vsel %vm1274_vm5, %v1365_v53, %v1369_v40  ;;  %v1297_v58 = vrot.slane %v1295_v38, 1  ;;  %v1319_v44 = vshll.u32 %v3520_v49, 16  ;;  %v3602_v49 = vld [vmem:[%s3992_s8 + $0x88] sm:$0xff]  }
  0xd2   : > { %v1405_v18 = vrot.slane %v1264_v43, 1  ;;  %v1276_v51 = vshrl.u32 %v3558_v23, 16  ;;  %v1283_v55 = vshll.u32 %v1264_v43, 16  ;;  %v1326_v61 = vshll.u32 %v3426_v60, 16  ;;  %2868 = vmatprep.subr.bf16.mxu1 %v3602_v49 }
  0xd3   : > { %1481 = vrot.lane.b32.xlu0 %v3544_v12, %s3011_s28  ;;  %v3593_v57 = vsel %vm1274_vm5, %v1293_v28, %v1297_v58  ;;  %v1321_v42 = vrot.slane %v1319_v44, 1  ;;  %v1324_v7 = vshrl.u32 %v3426_v60, 16  ;;  %v1331_v8 = vshll.u32 %v3410_v54, 16 }
  0xd4   : > { %1383 = vrot.lane.b32.xlu1 %v3541_v3, %s3011_s28  ;;  %v1406_v63 = vsel %vm1403_vm4, %v1404_v34, %v1405_v18  ;;  %v1281_v1 = vor.u32 %v1280_v47, %v1276_v51  ;;  %v1285_v2 = vrot.slane %v1283_v55, 1  ;;  %v1328_v5 = vrot.slane %v1326_v61, 1 }
  0xd5   : > { %v1333_v14 = vrot.slane %v1331_v8, 1  ;;  %v1416_v16 = vrot.slane %v3426_v60, 1  ;;  %v1338_v17 = vshll.u32 %v3530_v59, 16  ;;  %v1417_v19 = vrot.slane %v3410_v54, 1 }
  0xd6   : > { %v1286_v6 = vsel %vm1274_vm5, %v1281_v1, %v1285_v2  ;;  %v1329_v13 = vor.u32 %v1328_v5, %v1324_v7  ;;  %v1336_v31 = vshrl.u32 %v3530_v59, 16  ;;  %v1343_v21 = vshll.u32 %v3450_v25, 16 }
  0xd7   : > { %1508 = vrot.lane.b32.xlu0 %v3476_v22, %s3009_s17  ;;  %v1316_v22 = vrot.slane %v1314_v32, 1  ;;  %v3630_v20 = vsel %vm1403_vm4, %v1416_v16, %v1417_v19  ;;  %v1340_v26 = vrot.slane %v1338_v17, 1  ;;  %v1419_v32 = vrot.slane %v3530_v59, 1 }
  0xd8   : > { %1534 = vrot.lane.b32.xlu1 %v3567_v35, %s3010_s22  ;;  %v3620_v15 = vsel %vm1274_vm5, %v1329_v13, %v1333_v14  ;;  %v1345_v54 = vrot.slane %v1343_v21, 1  ;;  %v1420_v53 = vrot.slane %v3450_v25, 1 }
  0xd9   : > { %v1317_v62 = vor.u32 %v1316_v22, %v1312_v50  ;;  %v1341_v29 = vor.u32 %v1340_v26, %v1336_v31 }
  0xda   : > { %v3652_v36 = vsel %vm1403_vm4, %v1419_v32, %v1420_v53 }
  0xdb   : > { %1522 = vrot.lane.b32.xlu0 %v3577_v41, %s3010_s22  ;;  %v3607_v4 = vsel %vm1274_vm5, %v1317_v62, %v1321_v42  ;;  %v3643_v30 = vsel %vm1274_vm5, %v1341_v29, %v1345_v54 }
  0xdc   : > { %1385 = vrot.lane.b32.xlu1 %v3582_v45, %s3011_s28 }
  0xdf   : > { %1373 = vrot.lane.b32.xlu0 %v3593_v57, %s3011_s28 }
  0xe0   : > { %1428 = vrot.lane.b32.xlu1 %v1406_v63, %s3009_s17 }
  0xe3   : > { %1524 = vrot.lane.b32.xlu0 %v3607_v4, %s3010_s22 }
  0xe4   : > { %1371 = vrot.lane.b32.xlu1 %v1286_v6, %s3011_s28 }
  0xe7   : > { %1375 = vrot.lane.b32.xlu0 %v3577_v41, %s3011_s28 }
  0xe8   : > { %1449 = vrot.lane.b32.xlu1 %v3360_v10, %s3010_s22 }
  0xeb   : > { %1526 = vrot.lane.b32.xlu0 %v3620_v15, %s3010_s22 }
  0xec   : > { %1377 = vrot.lane.b32.xlu1 %v3607_v4, %s3011_s28 }
  0xef   : > { %1483 = vrot.lane.b32.xlu0 %v3630_v20, %s3011_s28 }
  0xf0   : > { %1434 = vrot.lane.b32.xlu1 %v3544_v12, %s3009_s17 }
  0xf3   : > { %1500 = vrot.lane.b32.xlu0 %v3530_v59, %s3009_s17 }
  0xf4   : > { %1536 = vrot.lane.b32.xlu1 %v3550_v56, %s3010_s22 }
  0xf7   : > { %1528 = vrot.lane.b32.xlu0 %v3643_v30, %s3010_s22 }
  0xf8   : > { %1451 = vrot.lane.b32.xlu1 %v3426_v60, %s3010_s22 }
  0xfb   : > { %1485 = vrot.lane.b32.xlu0 %v3652_v36, %s3011_s28 }
  0xfc   : > { %1379 = vrot.lane.b32.xlu1 %v3620_v15, %s3011_s28 }
  0xff   : > { %1502 = vrot.lane.b32.xlu0 %v3406_v0, %s3009_s17 }
 0x100   : > { %1436 = vrot.lane.b32.xlu1 %v3630_v20, %s3009_s17 }
 0x103   : > { %1530 = vrot.lane.b32.xlu0 %v3541_v3, %s3010_s22 }
 0x104   : > { %1453 = vrot.lane.b32.xlu1 %v3530_v59, %s3010_s22 }
 0x107   : > { %1487 = vrot.lane.b32.xlu0 %v3468_v52, %s3011_s28 }
 0x108   : > { %1381 = vrot.lane.b32.xlu1 %v3643_v30, %s3011_s28 }
 0x10b   : > { %1504 = vrot.lane.b32.xlu0 %v3384_v33, %s3009_s17 }
 0x10c   : > { %1438 = vrot.lane.b32.xlu1 %v3652_v36, %s3009_s17 }
 0x10f   : > { %1532 = vrot.lane.b32.xlu0 %v3582_v45, %s3010_s22 }
 0x110   : > { %1455 = vrot.lane.b32.xlu1 %v3406_v0, %s3010_s22 }
 0x116   : > { %v1495_v25 = vpop.permute.xlu0 %1494 }
 0x11a   : > { %v1446_v56 = vpop.permute.xlu1 %1445 }
 0x121   : > { %v1507_v9 = vpop.permute.xlu0 %1506 }
 0x126   : > { %v1497_v38 = vpop.permute.xlu0 %1496 }
 0x12a   : > { %v1458_v37 = vpop.permute.xlu1 %1457 }
 0x12e   : > { %v1448_v40 = vpop.permute.xlu1 %1447 }
 0x131   : > { %v1499_v43 = vpop.permute.xlu0 %1498 }
 0x132   : > { %v3678_v28 = vpop.permute.xlu1 %1459 }
 0x135   : > { %v1478_v22 = vpop.permute.xlu0 %1477 }
 0x136   : > { %v1441_v34 = vpop.permute.xlu1 %1440  ;;  %v1603_v2 = vsel %vm1542_vm6, %v3593_v57, %v1478_v22 }
 0x137   : > { %v1626_v13 = vsel %vm1559_vm7, %v1603_v2, %v1495_v25 }
 0x139   : > { %v1490_v47 = vpop.permute.xlu0 %1489 }
 0x13a   : > { %v1431_v58 = vpop.permute.xlu1 %1430  ;;  %v1621_v61 = vsel %vm1542_vm6, %v3582_v45, %v1490_v47  ;;  %v2967_v45 = vld [vmem:[%s3992_s8 + $0x80] sm:$0xff]  }
 0x13b   : > { %v1638_v6 = vsel %vm1559_vm7, %v1621_v61, %v1507_v9 }
 0x13d   : > { %v1480_v50 = vpop.permute.xlu0 %1479 }
 0x13e   : > { %v1443_v44 = vpop.permute.xlu1 %1442  ;;  %v1606_v26 = vsel %vm1542_vm6, %v3577_v41, %v1480_v50 }
 0x141   : > { %v1492_v18 = vpop.permute.xlu0 %1491 }
 0x142   : > { %v1433_v51 = vpop.permute.xlu1 %1432 }
 0x145   : > { %v1482_v55 = vpop.permute.xlu0 %1481 }
 0x146   : > { %v1384_v62 = vpop.permute.xlu1 %1383 }
 0x147   : > { %v1556_v63 = vsel %vm1542_vm6, %v3406_v0, %v1384_v62 }
 0x148   : > { %v1573_v42 = vsel %vm1559_vm7, %v1556_v63, %v1441_v34 }
 0x149   : > { %v1509_v1 = vpop.permute.xlu0 %1508  ;;  %v1596_v0 = vsel %vm1576_vm8, %v1573_v42, %v1458_v37  ;;  %v1609_v37 = vsel %vm1542_vm6, %v3607_v4, %v1482_v55  ;;  %v1624_v4 = vsel %vm1542_vm6, %v3567_v35, %v1492_v18 }
 0x14a   : > { %v1535_v5 = vpop.permute.xlu1 %1534 }
 0x14b   : > { %v1660_v7 = vsel %vm1576_vm8, %v1638_v6, %v1535_v5 }
 0x14c   : > { %1913 = vmatprep.mubr.bf16.mxu1 %v1660_v7 }
 0x14d   : > { %1914 = vmatmul.mubr.bf16.vlgmr.msra.gmra.mxu1 %v1596_v0  ;;  %v1523_v8 = vpop.permute.xlu0 %1522 }
 0x14e   : > { %v1386_v14 = vpop.permute.xlu1 %1385  ;;  %v1642_v16 = vsel %vm1576_vm8, %v1626_v13, %v1523_v8  ;;  %2869 = vmatpush3.bf16.msra.mxu1 %v3602_v49  ;;  %v1628_v49 = vsel %vm1559_vm7, %v1606_v26, %v1497_v38  ;;  %v1630_v38 = vsel %vm1559_vm7, %v1609_v37, %v1499_v43 }
 0x14f   : > { %1865 = vmatprep.mubr.bf16.mxu0 %v1642_v16  ;;  %2870 = vmatprep.subr.bf16.mxu1 %v2967_v45  ;;  %v1558_v47 = vsel %vm1542_vm6, %v3384_v33, %v1386_v14 }
 0x150   : > { %v1575_v55 = vsel %vm1559_vm7, %v1558_v47, %v1443_v44 }
 0x151   : > { %v1374_v57 = vpop.permute.xlu0 %1373 }
 0x152   : > { %v1429_v17 = vpop.permute.xlu1 %1428  ;;  %2871 = vmatpush3.bf16.msra.mxu1 %v2967_v45  ;;  %v1546_v9 = vsel %vm1542_vm6, %v3296_v11, %v1374_v57 }
 0x153   : > { %v1563_v22 = vsel %vm1559_vm7, %v1546_v9, %v1431_v58 }
 0x155   : > { %v1525_v19 = vpop.permute.xlu0 %1524 }
 0x156   : > { %v1372_v31 = vpop.permute.xlu1 %1371  ;;  %v1645_v25 = vsel %vm1576_vm8, %v1628_v49, %v1525_v19 }
 0x157   : > { %v1544_v21 = vsel %vm1542_vm6, %v3558_v23, %v1372_v31 }
 0x158   : > { %v1561_v29 = vsel %vm1559_vm7, %v1544_v21, %v1429_v17 }
 0x159   : > { %v1376_v54 = vpop.permute.xlu0 %1375  ;;  %v1578_v32 = vsel %vm1576_vm8, %v1561_v29, %v1446_v56  ;;  %v1581_v56 = vsel %vm1576_vm8, %v1563_v22, %v1448_v40  ;;  %v1640_v40 = vsel %vm1559_vm7, %v1624_v4, %v1509_v1 }
 0x15a   : > { %v1450_v53 = vpop.permute.xlu1 %1449  ;;  %1866 = vmatmul.mubr.bf16.vlgmr.msra.gmra.mxu0 %v1578_v32  ;;  %v1548_v62 = vsel %vm1542_vm6, %v3268_v48, %v1376_v54  ;;  %v1599_v48 = vsel %vm1576_vm8, %v1575_v55, %v3678_v28 }
 0x15b   : > { %1873 = vmatprep.mubr.bf16.mxu0 %v1645_v25  ;;  %v1565_v61 = vsel %vm1559_vm7, %v1548_v62, %v1433_v51 }
 0x15c   : > { %v1584_v44 = vsel %vm1576_vm8, %v1565_v61, %v1450_v53 }
 0x15d   : > { %v1527_v41 = vpop.permute.xlu0 %1526 }
 0x15e   : > { %v1378_v23 = vpop.permute.xlu1 %1377  ;;  %v1648_v11 = vsel %vm1576_vm8, %v1630_v38, %v1527_v41 }
 0x15f   : > { %v1550_v2 = vsel %vm1542_vm6, %v3360_v10, %v1378_v23 }
 0x161   : > { %v1484_v34 = vpop.permute.xlu0 %1483 }
 0x162   : > { %v1435_v50 = vpop.permute.xlu1 %1434  ;;  %1874 = vmatmul.mubr.bf16.gmra.mxu0 %v1581_v56  ;;  %v1612_v63 = vsel %vm1542_vm6, %v3620_v15, %v1484_v34 }
 0x163   : > { %1881 = vmatprep.mubr.bf16.mxu0 %v1648_v11  ;;  %v1567_v28 = vsel %vm1559_vm7, %v1550_v2, %v1435_v50 }
 0x165   : > { %v1501_v58 = vpop.permute.xlu0 %1500 }
 0x166   : > { %v1537_v43 = vpop.permute.xlu1 %1536  ;;  %v1632_v42 = vsel %vm1559_vm7, %v1612_v63, %v1501_v58 }
 0x167   : > { %v1663_v33 = vsel %vm1576_vm8, %v1640_v40, %v1537_v43 }
 0x168   : > { %1921 = vmatprep.mubr.bf16.mxu1 %v1663_v33 }
 0x169   : > { %1922 = vmatmul.mubr.bf16.gmra.mxu1 %v1599_v48  ;;  %v1529_v35 = vpop.permute.xlu0 %1528 }
 0x16a   : > { %v1452_v18 = vpop.permute.xlu1 %1451  ;;  %2872 = vmatprep.mubr.msk.bf16.mxu1 %vm1542_vm6, %v3505_v39  ;;  %1882 = vmatmul.mubr.bf16.gmra.mxu0 %v1584_v44  ;;  %v1651_v51 = vsel %vm1576_vm8, %v1632_v42, %v1529_v35 }
 0x16b   : > { %1889 = vmatprep.mubr.bf16.mxu0 %v1651_v51  ;;  %v1587_v6 = vsel %vm1576_vm8, %v1567_v28, %v1452_v18 }
 0x16d   : > { %v1486_v1 = vpop.permute.xlu0 %1485 }
 0x16e   : > { %v1380_v15 = vpop.permute.xlu1 %1379  ;;  %v1615_v39 = vsel %vm1542_vm6, %v3643_v30, %v1486_v1 }
 0x171   : > { %2873 = vmatmul.mubr.msk.bf16.vlgmr.msra.gmra.mxu1 %vm1542_vm6, %v3544_v12  ;;  %v1503_v5 = vpop.permute.xlu0 %1502  ;;  %v1552_v12 = vsel %vm1542_vm6, %v3426_v60, %v1380_v15 }
 0x172   : > { %v1437_v7 = vpop.permute.xlu1 %1436  ;;  %2876 = vmatprep.mubr.msk.bf16.mxu1 %vm1542_vm6, %v3630_v20  ;;  %1890 = vmatmul.mubr.bf16.gmra.mxu0 %v1587_v6  ;;  %v1634_v45 = vsel %vm1559_vm7, %v1615_v39, %v1503_v5 }
 0x173   : > { %v1569_v13 = vsel %vm1559_vm7, %v1552_v12, %v1437_v7 }
 0x175   : > { %v1531_v0 = vpop.permute.xlu0 %1530 }
 0x176   : > { %v1454_v10 = vpop.permute.xlu1 %1453  ;;  %v1654_v8 = vsel %vm1576_vm8, %v1634_v45, %v1531_v0 }
 0x177   : > { %1897 = vmatprep.mubr.bf16.mxu0 %v1654_v8  ;;  %v1590_v14 = vsel %vm1576_vm8, %v1569_v13, %v1454_v10 }
 0x179   : > { %2877 = vmatmul.mubr.msk.bf16.gmra.mxu1 %vm1542_vm6, %v3652_v36  ;;  %v1488_v20 = vpop.permute.xlu0 %1487 }
 0x17a   : > { %v1382_v16 = vpop.permute.xlu1 %1381  ;;  %2880 = vmatprep.mubr.msk.bf16.mxu1 %vm1542_vm6, %v3468_v52  ;;  %1898 = vmatmul.mubr.bf16.gmra.mxu0 %v1590_v14  ;;  %v1618_v17 = vsel %vm1542_vm6, %v3541_v3, %v1488_v20 }
 0x17b   : > { %v1554_v60 = vsel %vm1542_vm6, %v3530_v59, %v1382_v16 }
 0x17d   : > { %v1505_v30 = vpop.permute.xlu0 %1504 }
 0x17e   : > { %v1439_v57 = vpop.permute.xlu1 %1438  ;;  %v1636_v19 = vsel %vm1559_vm7, %v1618_v17, %v1505_v30 }
 0x17f   : > { %v1571_v26 = vsel %vm1559_vm7, %v1554_v60, %v1439_v57 }
 0x181   : > { %2881 = vmatmul.mubr.msk.bf16.gmra.mxu1 %vm1542_vm6, %v3485_v24  ;;  %v1533_v36 = vpop.permute.xlu0 %1532 }
 0x182   : > { %v1456_v31 = vpop.permute.xlu1 %1455  ;;  %2884 = vmatprep.mubr.msk.bf16.mxu1 %vm1542_vm6, %v3515_v46  ;;  %v1657_v52 = vsel %vm1576_vm8, %v1636_v19, %v1533_v36 }
 0x183   : > { %1905 = vmatprep.mubr.bf16.mxu0 %v1657_v52  ;;  %v1593_v3 = vsel %vm1576_vm8, %v1571_v26, %v1456_v31 }
 0x184   : > { %1906 = vmatmul.mubr.bf16.gmra.mxu0 %v1593_v3 }
 0x189   : > { %2885 = vmatmul.mubr.msk.bf16.gmra.mxu1 %vm1542_vm6, %v3563_v27 }
 0x20d   : > { %v3765_v21 = vpop.f32.mrf.mxu1 }
 0x20f   : > { %v3767_v54 = vpop.f32.mrf.mxu1 }
 0x211   : > { %v3769_v53 = vpop.f32.mrf.mxu1 }
 0x213   : > { %v3771_v9 = vpop.f32.mrf.mxu1 }
 0x21a   : > { %v2810_v59 = vpop.f32.mrf.mxu0 }
 0x21c   : > { %v2811_v24 = vpop.f32.mrf.mxu0 }
 0x21d   : > { %v2812_v62 = vadd.f32 %v2811_v24, %v2810_v59 }
 0x21e   : > { %v2813_v29 = vpop.f32.mrf.mxu0 }
 0x220   : > { %v2814_v32 = vpop.f32.mrf.mxu0 }
 0x221   : > { %v2815_v48 = vadd.f32 %v2814_v32, %v2813_v29 }
 0x222   : > { %v2816_v49 = vpop.f32.mrf.mxu0 }
 0x224   : > { %v2817_v46 = vpop.f32.mrf.mxu0 }
 0x225   : > { %v2818_v47 = vadd.f32 %v2817_v46, %v2816_v49 }
 0x226   : > { %v2819_v25 = vpop.f32.mrf.mxu0 }
 0x228   : > { %v2820_v41 = vpop.f32.mrf.mxu0 }
 0x229   : > { %v3773_v37 = vpop.f32.mrf.mxu1  ;;  %v2821_v40 = vadd.f32 %v2820_v41, %v2819_v25 }
 0x22a   : > { %v2822_v27 = vpop.f32.mrf.mxu0 }
 0x22b   : > { %v3775_v23 = vpop.f32.mrf.mxu1 }
 0x22c   : > { %v2823_v22 = vpop.f32.mrf.mxu0 }
 0x22d   : > { %v3777_v34 = vpop.f32.mrf.mxu1  ;;  %v2824_v28 = vadd.f32 %v2823_v22, %v2822_v27 }
 0x22e   : > { %v2825_v56 = vpop.f32.mrf.mxu0 }
 0x22f   : > { %v3779_v38 = vpop.f32.mrf.mxu1 }
 0x230   : > { %v2826_v50 = vpop.f32.mrf.mxu0 }
 0x231   : > { %v2874_v11 = vpop.f32.mrf.mxu1  ;;  %v2827_v17 = vadd.f32 %v2826_v50, %v2825_v56 }
 0x232   : > { %v3781_v4 = vadd.f32 %v2874_v11, %v2818_v47  ;;  %v2828_v58 = vpop.f32.mrf.mxu0 }
 0x233   : > { %v1964_v55 = vpop.f32.mrf.mxu1 }
 0x234   : > { %v2733_v43 = vpack.c.bf16 %v3781_v4, %v3781_v4  ;;  %v3791_v61 = vadd.f32 %v2812_v62, %v1964_v55  ;;  %v2829_v33 = vpop.f32.mrf.mxu0  ;;  %v2030_v12 = vsel %vm1542_vm6, %v3781_v4, 0.0 }
 0x235   : > { %v2875_v63 = vpop.f32.mrf.mxu1  ;;  %v2830_v51 = vadd.f32 %v2829_v33, %v2828_v58 }
 0x236   : > { %2198 = vst.msk [vmem:[%s3787_s15 + $0x8] sm:$0xf] %vm1142_vm0, %v2733_v43  ;;  %v2731_v42 = vpack.c.bf16 %v3791_v61, %v3791_v61  ;;  %v3797_v35 = vadd.f32 %v2875_v63, %v2821_v40  ;;  %v2831_v44 = vpop.f32.mrf.mxu0  ;;  %v2027_v6 = vsel %vm1542_vm6, %v3791_v61, 0.0 }
 0x237   : > { %v1967_v18 = vpop.f32.mrf.mxu1 }
 0x238   : > { %2196 = vst.msk [vmem:[%s3787_s15] sm:$0xf] %vm1142_vm0, %v2731_v42  ;;  %v2734_v1 = vpack.c.bf16 %v3797_v35, %v3797_v35  ;;  %v3803_v15 = vadd.f32 %v2815_v48, %v1967_v18  ;;  %v2832_v2 = vpop.f32.mrf.mxu0  ;;  %v2032_v60 = vsel %vm1542_vm6, %v3797_v35, 0.0  ;;  %v2854_v42 = vadd.f32 %v3775_v23, %v3773_v37 }
 0x239   : > { %v2878_v5 = vpop.f32.mrf.mxu1  ;;  %v2833_v13 = vadd.f32 %v2832_v2, %v2831_v44 }
 0x23a   : > { %2199 = vst.msk [vmem:[%s3787_s15 + $0xc] sm:$0xf] %vm1142_vm0, %v2734_v1  ;;  %v2028_v7 = vsel %vm1542_vm6, %v3803_v15, 0.0  ;;  %v2732_v39 = vpack.c.bf16 %v3803_v15, %v3803_v15  ;;  %v3813_v45 = vadd.f32 %v2878_v5, %v2830_v51  ;;  %v2834_v0 = vpop.f32.mrf.mxu0  ;;  %v2848_v5 = vadd.f32 %v3767_v54, %v3765_v21 }
 0x23b   : > { %v2029_v10 = vadd.f32 %v2028_v7, %v2027_v6  ;;  %v1980_v8 = vpop.f32.mrf.mxu1  ;;  %v2857_v21 = vadd.f32 %v3779_v38, %v3777_v34 }
 0x23c   : > { %2197 = vst.msk [vmem:[%s3787_s15 + $0x4] sm:$0xf] %vm1142_vm0, %v2732_v39  ;;  %v2737_v20 = vpack.c.bf16 %v3813_v45, %v3813_v45  ;;  %v3821_v14 = vadd.f32 %v2824_v28, %v1980_v8  ;;  %v2835_v16 = vpop.f32.mrf.mxu0  ;;  %v2038_v56 = vsel %vm1542_vm6, %v3813_v45, 0.0 }
 0x23d   : > { %v2031_v30 = vadd.f32 %v2030_v12, %v2029_v10  ;;  %v2879_v57 = vpop.f32.mrf.mxu1  ;;  %v2836_v49 = vadd.f32 %v2835_v16, %v2834_v0 }
 0x23e   : > { %2202 = vst.msk [vmem:[%s3787_s15 + $0x18] sm:$0xf] %vm1142_vm0, %v2737_v20  ;;  %v2735_v19 = vpack.c.bf16 %v3821_v14, %v3821_v14  ;;  %v3829_v36 = vadd.f32 %v2879_v57, %v2833_v13  ;;  %v2837_v26 = vpop.f32.mrf.mxu0  ;;  %v2034_v3 = vsel %vm1542_vm6, %v3821_v14, 0.0 }
 0x23f   : > { %v2033_v31 = vadd.f32 %v2032_v60, %v2031_v30  ;;  %v1983_v52 = vpop.f32.mrf.mxu1  ;;  %v2851_v30 = vadd.f32 %v3771_v9, %v3769_v53 }
 0x240   : > { %2200 = vst.msk [vmem:[%s3787_s15 + $0x10] sm:$0xf] %vm1142_vm0, %v2735_v19  ;;  %v2738_v59 = vpack.c.bf16 %v3829_v36, %v3829_v36  ;;  %v3837_v24 = vadd.f32 %v2827_v17, %v1983_v52  ;;  %v2838_v41 = vpop.f32.mrf.mxu0  ;;  %v2040_v58 = vsel %vm1542_vm6, %v3829_v36, 0.0 }
 0x241   : > { %v2035_v29 = vadd.f32 %v2034_v3, %v2033_v31  ;;  %v2882_v32 = vpop.f32.mrf.mxu1  ;;  %v2839_v55 = vadd.f32 %v2838_v41, %v2837_v26 }
 0x242   : > { %2203 = vst.msk [vmem:[%s3787_s15 + $0x1c] sm:$0xf] %vm1142_vm0, %v2738_v59  ;;  %v2036_v46 = vsel %vm1542_vm6, %v3837_v24, 0.0  ;;  %v2736_v25 = vpack.c.bf16 %v3837_v24, %v3837_v24 }
 0x243   : > { %v2037_v27 = vadd.f32 %v2036_v46, %v2035_v29  ;;  %v1996_v22 = vpop.f32.mrf.mxu1 }
 0x244   : > { %2201 = vst.msk [vmem:[%s3787_s15 + $0x14] sm:$0xf] %vm1142_vm0, %v2736_v25  ;;  %v3849_v47 = vadd.f32 %v2836_v49, %v1996_v22  ;;  %v2840_v50 = vpop.f32.mrf.mxu0 }
 0x245   : > { %v2039_v11 = vadd.f32 %v2038_v56, %v2037_v27  ;;  %v2883_v62 = vpop.f32.mrf.mxu1 }
 0x246   : > { %v2739_v40 = vpack.c.bf16 %v3849_v47, %v3849_v47  ;;  %v2841_v43 = vpop.f32.mrf.mxu0  ;;  %v2042_v44 = vsel %vm1542_vm6, %v3849_v47, 0.0 }
 0x247   : > { %v2041_v33 = vadd.f32 %v2040_v58, %v2039_v11  ;;  %v2842_v63 = vadd.f32 %v2841_v43, %v2840_v50  ;;  %v1999_v48 = vpop.f32.mrf.mxu1 }
 0x248   : > { %2204 = vst.msk [vmem:[%s3787_s15 + $0x20] sm:$0xf] %vm1142_vm0, %v2739_v40  ;;  %v3861_v18 = vadd.f32 %v2839_v55, %v1999_v48  ;;  %v2843_v51 = vpop.f32.mrf.mxu0 }
 0x249   : > { %v2043_v1 = vadd.f32 %v2042_v44, %v2041_v33  ;;  %v3863_v2 = vadd.f32 %v2882_v32, %v2842_v63  ;;  %v2886_v28 = vpop.f32.mrf.mxu1 }
 0x24a   : > { %v2044_v37 = vsel %vm1542_vm6, %v3861_v18, 0.0  ;;  %v2740_v23 = vpack.c.bf16 %v3861_v18, %v3861_v18  ;;  %v3871_v6 = vadd.f32 %v2886_v28, %v2854_v42  ;;  %v2844_v7 = vpop.f32.mrf.mxu0 }
 0x24b   : > { %v2046_v39 = vsel %vm1542_vm6, %v3863_v2, 0.0  ;;  %v2741_v0 = vpack.c.bf16 %v3863_v2, %v3863_v2  ;;  %v2045_v10 = vadd.f32 %v2044_v37, %v2043_v1  ;;  %v2845_v8 = vadd.f32 %v2844_v7, %v2843_v51  ;;  %v2012_v12 = vpop.f32.mrf.mxu1 }
 0x24c   : > { %2205 = vst.msk [vmem:[%s3787_s15 + $0x24] sm:$0xf] %vm1142_vm0, %v2740_v23  ;;  %v2745_v54 = vpack.c.bf16 %v3871_v6, %v3871_v6  ;;  %v3883_v13 = vadd.f32 %v2848_v5, %v2012_v12  ;;  %v2054_v32 = vsel %vm1542_vm6, %v3871_v6, 0.0 }
 0x24d   : > { %2206 = vst.msk [vmem:[%s3787_s15 + $0x28] sm:$0xf] %vm1142_vm0, %v2741_v0  ;;  %v3887_v20 = vadd.f32 %v2883_v62, %v2845_v8  ;;  %v2887_v16 = vpop.f32.mrf.mxu1  ;;  %v2047_v57 = vadd.f32 %v2046_v39, %v2045_v10 }
 0x24e   : > { %2210 = vst.msk [vmem:[%s3787_s15 + $0x38] sm:$0xf] %vm1142_vm0, %v2745_v54  ;;  %v2743_v34 = vpack.c.bf16 %v3883_v13, %v3883_v13  ;;  %v3895_v38 = vadd.f32 %v2887_v16, %v2857_v21  ;;  %v2050_v31 = vsel %vm1542_vm6, %v3883_v13, 0.0 }
 0x24f   : > { %v2048_v17 = vsel %vm1542_vm6, %v3887_v20, 0.0  ;;  %v2742_v60 = vpack.c.bf16 %v3887_v20, %v3887_v20  ;;  %v2015_v19 = vpop.f32.mrf.mxu1 }
 0x250   : > { %v2049_v26 = vadd.f32 %v2048_v17, %v2047_v57  ;;  %2208 = vst.msk [vmem:[%s3787_s15 + $0x30] sm:$0xf] %vm1142_vm0, %v2743_v34  ;;  %v2746_v53 = vpack.c.bf16 %v3895_v38, %v3895_v38  ;;  %v3905_v9 = vadd.f32 %v2851_v30, %v2015_v19  ;;  %v2056_v46 = vsel %vm1542_vm6, %v3895_v38, 0.0 }
 0x251   : > { %2207 = vst.msk [vmem:[%s3787_s15 + $0x2c] sm:$0xf] %vm1142_vm0, %v2742_v60 }
 0x252   : > { %v2051_v52 = vadd.f32 %v2050_v31, %v2049_v26  ;;  %2211 = vst.msk [vmem:[%s3787_s15 + $0x3c] sm:$0xf] %vm1142_vm0, %v2746_v53  ;;  %v2744_v3 = vpack.c.bf16 %v3905_v9, %v3905_v9  ;;  %v2052_v59 = vsel %vm1542_vm6, %v3905_v9, 0.0 }
 0x254   : > { %v2053_v29 = vadd.f32 %v2052_v59, %v2051_v52  ;;  %2209 = vst.msk [vmem:[%s3787_s15 + $0x34] sm:$0xf] %vm1142_vm0, %v2744_v3 }
 0x256   : > { %v2055_v49 = vadd.f32 %v2054_v32, %v2053_v29 }
 0x258   : > { %v2057_v25 = vadd.f32 %v2056_v46, %v2055_v49 }
 0x25a   : > { %v2058_v41 = vsel %vm1542_vm6, %v2057_v25, 0.0  ;;  %2130 = vst.msk [vmem:[%s802_s16] sm:$0xff] %vm1542_vm6, %v2057_v25 }
 0x25b   : > { %v2059_v27 = vrot.slane %v2058_v41, 4 }
 0x25d   : > { %v2060_v22 = vadd.f32 %v2059_v27, %v2058_v41 }
 0x25f   : > { %v2061_v56 = vrot.slane %v2060_v22, 2 }
 0x261   : > { %v2062_v50 = vadd.f32 %v2061_v56, %v2060_v22 }
 0x263   : > { %v2063_v11 = vrot.slane %v2062_v50, 1 }
 0x265   : > { %v2064_v62 = vadd.f32 %v2063_v11, %v2062_v50 }
 0x267   : > { %v2066_v58 = vmul.f32 0.0078125, %v2064_v62 }
 0x269   : > { %v2067_v55 = vsub.f32 %v3791_v61, %v2066_v58  ;;  %v2068_v40 = vsub.f32 %v3803_v15, %v2066_v58  ;;  %v2069_v43 = vsub.f32 %v3781_v4, %v2066_v58  ;;  %v2070_v33 = vsub.f32 %v3797_v35, %v2066_v58 }
 0x26a   : > { %v2071_v42 = vsub.f32 %v3821_v14, %v2066_v58  ;;  %v2072_v51 = vsub.f32 %v3837_v24, %v2066_v58  ;;  %v2073_v61 = vsub.f32 %v3813_v45, %v2066_v58  ;;  %v2074_v35 = vsub.f32 %v3829_v36, %v2066_v58 }
 0x26b   : > { %v2083_v63 = vmul.f32 %v2067_v55, %v2067_v55  ;;  %v2084_v48 = vmul.f32 %v2068_v40, %v2068_v40  ;;  %v2085_v44 = vmul.f32 %v2069_v43, %v2069_v43  ;;  %v2086_v1 = vmul.f32 %v2070_v33, %v2070_v33 }
 0x26c   : > { %v2087_v15 = vmul.f32 %v2071_v42, %v2071_v42  ;;  %v2088_v7 = vmul.f32 %v2072_v51, %v2072_v51  ;;  %v2075_v24 = vsub.f32 %v3849_v47, %v2066_v58  ;;  %v2089_v0 = vmul.f32 %v2073_v61, %v2073_v61 }
 0x26d   : > { %v2099_v28 = vsel %vm1542_vm6, %v2083_v63, 0.0  ;;  %v2100_v5 = vsel %vm1542_vm6, %v2084_v48, 0.0  ;;  %v2102_v4 = vsel %vm1542_vm6, %v2085_v44, 0.0  ;;  %v2104_v14 = vsel %vm1542_vm6, %v2086_v1, 0.0 }
 0x26e   : > { %v2101_v37 = vadd.f32 %v2100_v5, %v2099_v28  ;;  %v2106_v10 = vsel %vm1542_vm6, %v2087_v15, 0.0  ;;  %v2076_v12 = vsub.f32 %v3861_v18, %v2066_v58  ;;  %v2090_v21 = vmul.f32 %v2074_v35, %v2074_v35 }
 0x26f   : > { %v2108_v45 = vsel %vm1542_vm6, %v2088_v7, 0.0  ;;  %v2077_v16 = vsub.f32 %v3863_v2, %v2066_v58  ;;  %v2091_v30 = vmul.f32 %v2075_v24, %v2075_v24  ;;  %v2110_v36 = vsel %vm1542_vm6, %v2089_v0, 0.0 }
 0x270   : > { %v2103_v23 = vadd.f32 %v2102_v4, %v2101_v37  ;;  %v2078_v34 = vsub.f32 %v3887_v20, %v2066_v58  ;;  %v2092_v17 = vmul.f32 %v2076_v12, %v2076_v12  ;;  %v2112_v47 = vsel %vm1542_vm6, %v2090_v21, 0.0 }
 0x271   : > { %v2079_v19 = vsub.f32 %v3883_v13, %v2066_v58  ;;  %v2093_v26 = vmul.f32 %v2077_v16, %v2077_v16  ;;  %v2114_v18 = vsel %vm1542_vm6, %v2091_v30, 0.0  ;;  %v2080_v31 = vsub.f32 %v3905_v9, %v2066_v58 }
 0x272   : > { %v2105_v39 = vadd.f32 %v2104_v14, %v2103_v23  ;;  %v2094_v52 = vmul.f32 %v2078_v34, %v2078_v34  ;;  %v2116_v2 = vsel %vm1542_vm6, %v2092_v17, 0.0  ;;  %v2081_v59 = vsub.f32 %v3871_v6, %v2066_v58 }
 0x273   : > { %v2095_v20 = vmul.f32 %v2079_v19, %v2079_v19  ;;  %v2118_v29 = vsel %vm1542_vm6, %v2093_v26, 0.0  ;;  %v2082_v49 = vsub.f32 %v3895_v38, %v2066_v58  ;;  %v2096_v13 = vmul.f32 %v2080_v31, %v2080_v31 }
 0x274   : > { %v2107_v8 = vadd.f32 %v2106_v10, %v2105_v39  ;;  %v2120_v46 = vsel %vm1542_vm6, %v2094_v52, 0.0  ;;  %v2097_v41 = vmul.f32 %v2081_v59, %v2081_v59 }
 0x275   : > { %v2122_v9 = vsel %vm1542_vm6, %v2095_v20, 0.0  ;;  %v2098_v22 = vmul.f32 %v2082_v49, %v2082_v49  ;;  %v2124_v56 = vsel %vm1542_vm6, %v2096_v13, 0.0 }
 0x276   : > { %v2109_v54 = vadd.f32 %v2108_v45, %v2107_v8  ;;  %v2126_v6 = vsel %vm1542_vm6, %v2097_v41, 0.0 }
 0x277   : > { %v2128_v38 = vsel %vm1542_vm6, %v2098_v22, 0.0 }
 0x278   : > { %v2111_v57 = vadd.f32 %v2110_v36, %v2109_v54 }
 0x27a   : > { %v2113_v60 = vadd.f32 %v2112_v47, %v2111_v57 }
 0x27c   : > { %v2115_v53 = vadd.f32 %v2114_v18, %v2113_v60 }
 0x27e   : > { %v2117_v3 = vadd.f32 %v2116_v2, %v2115_v53 }
 0x280   : > { %v2119_v32 = vadd.f32 %v2118_v29, %v2117_v3 }
 0x282   : > { %v2121_v25 = vadd.f32 %v2120_v46, %v2119_v32 }
 0x284   : > { %v2123_v27 = vadd.f32 %v2122_v9, %v2121_v25 }
 0x286   : > { %v2125_v50 = vadd.f32 %v2124_v56, %v2123_v27 }
 0x288   : > { %v2127_v11 = vadd.f32 %v2126_v6, %v2125_v50 }
 0x28a   : > { %v2129_v62 = vadd.f32 %v2128_v38, %v2127_v11 }
 0x28c   : > { %2131 = vst.msk [vmem:[%s810_s21] sm:$0xff] %vm1542_vm6, %v2129_v62 }
 0x28d PF: > { %s23_s25 = sadd.s32 1, %s3006_s25   ;;  %s4002_s21 = smov %s2998_s23 }
 0x28e   : > { %p20_p12 = scmp.ge.s32.totalorder %s23_s25, 6   ;;  %s4003_s22 = smov %s3002_s24 }
 0x28f   : > { %s4004_s23 = smov %s4007_s26  ;;  %s4005_s24 = smov %s4011_s27 }
 0x290   :  { %22 = sbr.rel (!%p20_p12) target bundleno = 3 (0x3), region = 137 }

// kernel: resnet_dc_forward.19
= control target key start
LH: loop header
LB: loop body
LE: loop exit
PB: predicated region body
PF: predicated region fallthrough
CT: control target
= control target key end

     0   :  { %s1952_s0 = inlined_call_operand.vmem [shape: bf16[2,16,16,32], index: 0, kind: input, shape index: {}]   ;;  %s1953_s1 = inlined_call_operand.vmem [shape: f32[1,32], index: 1, kind: input, shape index: {}]   ;;  %s1954_s2 = inlined_call_operand.vmem [shape: f32[1,32], index: 2, kind: input, shape index: {}]   ;;  %s1955_s3 = inlined_call_operand.vmem [shape: bf16[2,16,16,32], index: 3, kind: input, shape index: {}]   ;;  %s1956_s4 = inlined_call_operand.vmem [shape: bf16[32,32], index: 4, kind: input, shape index: {}]   ;;  %s1957_s5 = inlined_call_operand.vmem [shape: bf16[32,32], index: 5, kind: input, shape index: {}]   ;;  %s1958_s6 = inlined_call_operand.vmem [shape: f32[1,32], index: 6, kind: input, shape index: {}]   ;;  %s1959_s7 = inlined_call_operand.vmem [shape: f32[2,16,16], index: 7, kind: input, shape index: {}]   ;;  %s1960_s8 = inlined_call_operand.vmem [shape: f32[2,16,16], index: 8, kind: input, shape index: {}]   ;;  %s1961_s9 = inlined_call_operand.hbm [shape: f32[2,16,16], index: 9, kind: output, shape index: {}]  }
   0x1   :  { %1966 = sst [smem:[#allocation10_spill]] %s1956_s4 }
   0x2   :  { %14 = vsyncpa [#allocation3], 0 }
   0x3   :  { %16 = vsyncpa [#allocation3 + $0x1], 0  ;;  %s1675_s30 = smov 0   ;;  %s1677_s10 = smov 0  }
   0x4   :  { %s1679_s11 = smov 0   ;;  %s1681_s12 = smov 0  }
   0x5   :  { %s1683_s13 = smov 0   ;;  %s1685_s14 = smov 0  }
   0x6   :  { %s1687_s15 = smov 0   ;;  %s1689_s16 = smov 0  }
   0x7 LB: > { %1967 = sst [smem:[#allocation5_spill]] %s1614_s14  ;;  %s1271_s17 = sadd.s32 4294967295, %s1622_s16   ;;  %s1622_s16 = sphi %s1689_s16, %s22_s16   ;;  %s1618_s15 = sphi %s1687_s15, %s1979_s15   ;;  %s1614_s14 = sphi %s1685_s14, %s1978_s14   ;;  %s1610_s13 = sphi %s1683_s13, %s1977_s13   ;;  %s1606_s12 = sphi %s1681_s12, %s1976_s12   ;;  %s1602_s11 = sphi %s1679_s11, %s1982_s11   ;;  %s1598_s10 = sphi %s1677_s10, %s1981_s10   ;;  %s1594_s30 = sphi %s1675_s30, %s1980_s30  }
   0x8   : > { %1968 = sst [smem:[#allocation6_spill]] %s1618_s15  ;;  %s1272_s18 = sadd.s32 4294967294, %s1622_s16  }
   0x9   : > { %s31_s19 = sadd.s32 1, %s1614_s14  ;;  %s34_s20 = sadd.s32 1, %s1618_s15 }
   0xa   : > { %p32_p0 = scmp.ge.s32.totalorder %s31_s19, 2  ;;  %p270_p1 = scmp.ne.s32.totalorder %s1602_s11, %s1598_s10 }
   0xb   : > { %p271_p2 = scmp.eq.s32.totalorder %s1271_s17, 3  ;;  %p276_p5 = scmp.ne.s32.totalorder %s1598_s10, %s1594_s30 }
   0xc   : > { %s1984_s19 = smov (%p32_p0, %s31_s19), 0  ;;  %s1986_s20 = smov (!%p32_p0, %s34_s20), %s1618_s15 }
   0xd   : > { %1969 = sst [smem:[#allocation7_spill]] %s1984_s19  ;;  %s256_s21 = ssub.s32 %s1614_s14, %s1984_s19 }
   0xe   : > { %p1726_p3 = por %p271_p2, %p270_p1  ;;  %p36_p4 = scmp.ge.s32.totalorder %s1986_s20, 2 }
   0xf   : > { %p277_p6 = scmp.eq.s32.totalorder %s1272_s18, 3  ;;  %p1275_p7 = scmp.ge.s32.totalorder %s1622_s16, 1 }
  0x10   : > { %s1988_s20 = smov (%p36_p4, %s1986_s20), 0  ;;  %p360_p9 = scmp.lt.s32.totalorder %s1622_s16, 5 }
  0x11   : > { %1971 = sst [smem:[#allocation8_spill]] %s1988_s20  ;;  %p1735_p8 = por %p277_p6, %p276_p5 }
  0x12   : > { %s255_s24 = ssub.s32 %s1618_s15, %s1988_s20  ;;  %s260_s25 = sadd.s32 1, %s1602_s11 }
  0x13   : > { %s257_s26 = sor.u32 %s256_s21, %s255_s24  ;;  %p361_p10 = pnand %p1275_p7, %p360_p9 }
  0x14   : > { %p258_p11 = scmp.eq.s32.totalorder %s257_s26, 0  ;;  %s1974_s4 = sld [smem:[#allocation10_spill]] (!%p361_p10) }
  0x15   : > { %364 = sbr.rel (%p361_p10) target bundleno = 641 (0x281), region = 56  ;;  %s1277_s17 = sshll.u32 (!%p361_p10), %s1606_s12, 3 }
  0x16   : > { %s1744_s27 = scalar_select %p258_p11, %s1602_s11, %s260_s25  }
  0x17   : > { %p428_p12 = scmp.lt.s32.totalorder (!%p361_p10), %s1610_s13, 1  ;;  %p430_p13 = scmp.lt.s32.totalorder (!%p361_p10), %s1277_s17, 15 }
  0x18   : > { %1973 = sst [smem:[#allocation9_spill]] %s1744_s27  ;;  %p451_p0 = scmp.lt.s32.totalorder (!%p361_p10), %s1606_s12, 1 }
  0x1a   : > { %v1526_v0 = vld [vmem:[%s1974_s4 + $0x8] sm:$0xff]   ;;  %v1527_v1 = vld [vmem:[%s1974_s4] sm:$0xff]   ;;  %s1755_s21 = scalar_select %p428_p12, %s1610_s13, 1  ;;  %vm632_vm0 = vcmask 261120   ;;  %vm1031_vm1 = vcmask 130112   ;;  %vm1096_vm2 = vcmask 1041409  }
  0x1b   : > { %1415 = vmatprep.subr.bf16.mxu0 %v1526_v0  ;;  %s1990_s17 = smov (!%p430_p13, %s1277_s17), 15  ;;  %v1771_v2 = vld [vmem:[%s1953_s1] ss:$0 sm:$0xff]  ;;  %vm1098_vm3 = vcmask 1042434   ;;  %vm1100_vm4 = vcmask 1043459   ;;  %vm1102_vm5 = vcmask 1044484  }
  0x1c   : > { %1416 = vmatpush3.bf16.msra.mxu0 %v1526_v0  ;;  %s1279_s24 = sshll.u32 %s1755_s21, 5  ;;  %s1278_s25 = sshll.u32 %s1990_s17, 1  ;;  %v1782_v13 = vld [vmem:[%s1954_s2] ss:$0 sm:$0xff]  ;;  %vm1104_vm6 = vcmask 1045509   ;;  %vm1106_vm7 = vcmask 1046534  }
  0x1d   : > { %1417 = vmatprep.subr.bf16.mxu0 %v1527_v1  ;;  %s434_s26 = sadd.s32 %s1279_s24, %s1278_s25  ;;  %s424_s17 = sand.u32 1, %s1598_s10   ;;  %vm1108_vm8 = vcmask 1047559   ;;  %vm1115_vm9 = vcmask 130048  }
  0x1e   : > { %s1280_s28 = sshll.u32 %s434_s26, 2  ;;  %s1276_s27 = sshll.u32 %s424_s17, 3 }
  0x1f   : > { %s1761_s15 = scalar_lea.vmem %s1952_s0, %s1280_s28  ;;  %s1766_s4 = scalar_lea.vmem %s1955_s3, %s1280_s28 }
  0x20   : > { %1418 = vmatpush3.bf16.msra.mxu0 %v1527_v1  ;;  %v1318_v3 = vld [vmem:[%s1761_s15] sm:$0xff]   ;;  %v1381_v5 = vld [vmem:[%s1761_s15 + $0x8] sm:$0xff]   ;;  %v1382_v11 = vld [vmem:[%s1761_s15 + $0x10] sm:$0xff]   ;;  %s452_s26 = scalar_select %p451_p0, %s1606_s12, 1 }
  0x21   : > { %v1350_v4 = vld [vmem:[%s1766_s4] sm:$0xff]   ;;  %v1319_v6 = vunpack.c.l.bf16 %v1318_v3  ;;  %v1320_v7 = vunpack.c.h.bf16 %v1318_v3  ;;  %v1388_v10 = vld [vmem:[%s1766_s4 + $0x8] sm:$0xff]   ;;  %v1389_v12 = vld [vmem:[%s1766_s4 + $0x10] sm:$0xff]   ;;  %v1323_v14 = vunpack.c.l.bf16 %v1381_v5  ;;  %v1324_v15 = vunpack.c.h.bf16 %v1381_v5  ;;  %s1285_s28 = sshll.u32 %s1755_s21, 1  ;;  %s1313_s24 = sshll.u32 %s1610_s13, 1 }
  0x22   : > { %v1351_v8 = vunpack.c.l.bf16 %v1350_v4  ;;  %v1352_v9 = vunpack.c.h.bf16 %v1350_v4  ;;  %v1355_v16 = vunpack.c.l.bf16 %v1388_v10  ;;  %v1356_v17 = vunpack.c.h.bf16 %v1388_v10  ;;  %v1383_v22 = vld [vmem:[%s1761_s15 + $0x18] sm:$0xff]   ;;  %v1384_v44 = vld [vmem:[%s1761_s15 + $0x20] sm:$0xff]   ;;  %v1385_v58 = vld [vmem:[%s1761_s15 + $0x28] sm:$0xff]   ;;  %s454_s29 = sadd.s32 %s1285_s28, %s452_s26  ;;  %s1129_s25 = sadd.s32 %s1606_s12, %s1313_s24 }
  0x23   : > { %v537_v18 = vmul.f32 %v1319_v6, %v1771_v2  ;;  %v538_v19 = vmul.f32 %v1320_v7, %v1771_v2  ;;  %v1327_v20 = vunpack.c.l.bf16 %v1382_v11  ;;  %v1328_v21 = vunpack.c.h.bf16 %v1382_v11  ;;  %v1390_v31 = vld [vmem:[%s1766_s4 + $0x18] sm:$0xff]   ;;  %v1391_v53 = vld [vmem:[%s1766_s4 + $0x20] sm:$0xff]   ;;  %v1392_v63 = vld [vmem:[%s1766_s4 + $0x28] sm:$0xff]   ;;  %s1286_s21 = sshll.u32 %s454_s29, 3  ;;  %s1314_s13 = sshll.u32 %s1129_s25, 7 }
  0x24   : > { %v539_v23 = vmul.f32 %v1323_v14, %v1771_v2  ;;  %v540_v24 = vmul.f32 %v1324_v15, %v1771_v2  ;;  %v1359_v25 = vunpack.c.l.bf16 %v1389_v12  ;;  %v1360_v26 = vunpack.c.h.bf16 %v1389_v12  ;;  %v1393_v15 = vld [vmem:[%s1766_s4 + $0x30] sm:$0xff]   ;;  %s456_s20 = scalar_lea.vmem %s1959_s7, %s1286_s21  ;;  %s426_s26 = scalar_lea.vmem [#allocation2], %s1276_s27 }
  0x25   : > { %v560_v27 = vadd.f32 %v1782_v13, %v537_v18  ;;  %v561_v28 = vadd.f32 %v1782_v13, %v538_v19  ;;  %v541_v29 = vmul.f32 %v1327_v20, %v1771_v2  ;;  %v542_v30 = vmul.f32 %v1328_v21, %v1771_v2  ;;  %s1133_s28 = sshll.u32 %s426_s26, 4  ;;  %s1131_s19 = scalar_lea.hbm %s1961_s9, %s1314_s13  ;;  %s1134_s28 = int_to_ptr.vmem [resolvable:$true] %s1133_s28 }
  0x26   : > { %v562_v32 = vadd.f32 %v1782_v13, %v539_v23  ;;  %v563_v33 = vadd.f32 %v1782_v13, %v540_v24  ;;  %v1331_v34 = vunpack.c.l.bf16 %v1383_v22  ;;  %v1332_v35 = vunpack.c.h.bf16 %v1383_v22  ;;  %v1387_v24 = vld [vmem:[%s1761_s15 + $0x38] sm:$0xff]   ;;  %s1118_s12 = scalar_lea.sflag [#allocation3], %s424_s17  ;;  %s1530_s18 = scalar_lea.vmem %s1134_s28, 128 }
  0x27   : > { %v576_v36 = vadd.f32 %v1351_v8, %v560_v27  ;;  %v577_v37 = vadd.f32 %v1352_v9, %v561_v28  ;;  %v564_v38 = vadd.f32 %v1782_v13, %v541_v29  ;;  %v565_v39 = vadd.f32 %v1782_v13, %v542_v30  ;;  %v1386_v9 = vld [vmem:[%s1761_s15 + $0x30] sm:$0xff]   ;;  %v1394_v29 = vld [vmem:[%s1766_s4 + $0x38] sm:$0xff]   ;;  %s464_s15 = scalar_lea.vmem %s1960_s8, %s1286_s21  ;;  %p1531_p1 = scmp.ne.s32.totalorder %s1134_s28, %s1530_s18 }
  0x28   : > { %v578_v40 = vadd.f32 %v1355_v16, %v562_v32  ;;  %v579_v41 = vadd.f32 %v1356_v17, %v563_v33  ;;  %v1363_v42 = vunpack.c.l.bf16 %v1390_v31  ;;  %v1364_v43 = vunpack.c.h.bf16 %v1390_v31 }
  0x29   : > { %v592_v45 = vmax.f32 %v576_v36, 0.0  ;;  %v593_v46 = vmax.f32 %v577_v37, 0.0  ;;  %v580_v47 = vadd.f32 %v1359_v25, %v564_v38  ;;  %v581_v48 = vadd.f32 %v1360_v26, %v565_v39  ;;  %p1532_p2 = pnand %p1531_p1, %p1726_p3 }
  0x2a   : > { %v594_v49 = vmax.f32 %v578_v40, 0.0  ;;  %v595_v50 = vmax.f32 %v579_v41, 0.0  ;;  %v543_v51 = vmul.f32 %v1331_v34, %v1771_v2  ;;  %v544_v52 = vmul.f32 %v1332_v35, %v1771_v2 }
  0x2b   : > { %v608_v54 = vpack.c.bf16 %v593_v46, %v592_v45  ;;  %v596_v55 = vmax.f32 %v580_v47, 0.0  ;;  %v597_v56 = vmax.f32 %v581_v48, 0.0  ;;  %v1335_v57 = vunpack.c.l.bf16 %v1384_v44  ;;  %p1533_p4 = pneg %p1532_p2 }
  0x2c   : > { %v609_v59 = vpack.c.bf16 %v595_v50, %v594_v49  ;;  %v566_v60 = vadd.f32 %v1782_v13, %v543_v51  ;;  %v567_v61 = vadd.f32 %v1782_v13, %v544_v52  ;;  %v1336_v62 = vunpack.c.h.bf16 %v1384_v44 }
  0x2d   : > { %1419 = vmatprep.mubr.msk.bf16.mxu0 %vm632_vm0, %v608_v54  ;;  %v610_v0 = vpack.c.bf16 %v597_v56, %v596_v55  ;;  %v1367_v1 = vunpack.c.l.bf16 %v1391_v53  ;;  %v1368_v3 = vunpack.c.h.bf16 %v1391_v53  ;;  %v545_v4 = vmul.f32 %v1335_v57, %v1771_v2 }
  0x2e   : > { %1420 = vmatmul.mubr.msk.bf16.vlgmr.msra.gmra.mxu0 %vm632_vm0, %v609_v59  ;;  %v582_v5 = vadd.f32 %v1363_v42, %v566_v60  ;;  %v583_v6 = vadd.f32 %v1364_v43, %v567_v61  ;;  %v546_v7 = vmul.f32 %v1336_v62, %v1771_v2  ;;  %v1339_v8 = vunpack.c.l.bf16 %v1385_v58  ;;  %v1528_v61 = vld [vmem:[%s1957_s5 + $0x8] sm:$0xff]  }
  0x2f   : > { %1423 = vmatprep.mubr.msk.bf16.mxu0 %vm632_vm0, %v610_v0  ;;  %v568_v10 = vadd.f32 %v1782_v13, %v545_v4  ;;  %v1340_v11 = vunpack.c.h.bf16 %v1385_v58  ;;  %v1371_v12 = vunpack.c.l.bf16 %v1392_v63  ;;  %v1372_v14 = vunpack.c.h.bf16 %v1392_v63  ;;  %1435 = vmatprep.subr.bf16.mxu1 %v1528_v61 }
  0x30   : > { %v598_v16 = vmax.f32 %v582_v5, 0.0  ;;  %v599_v17 = vmax.f32 %v583_v6, 0.0  ;;  %v569_v18 = vadd.f32 %v1782_v13, %v546_v7  ;;  %v547_v19 = vmul.f32 %v1339_v8, %v1771_v2  ;;  %1436 = vmatpush3.bf16.msra.mxu1 %v1528_v61 }
  0x31   : > { %v584_v20 = vadd.f32 %v1367_v1, %v568_v10  ;;  %v548_v21 = vmul.f32 %v1340_v11, %v1771_v2  ;;  %v1343_v22 = vunpack.c.l.bf16 %v1386_v9  ;;  %v1344_v23 = vunpack.c.h.bf16 %v1386_v9 }
  0x32   : > { %v611_v25 = vpack.c.bf16 %v599_v17, %v598_v16  ;;  %v585_v26 = vadd.f32 %v1368_v3, %v569_v18  ;;  %v570_v27 = vadd.f32 %v1782_v13, %v547_v19  ;;  %v1375_v28 = vunpack.c.l.bf16 %v1393_v15 }
  0x33   : > { %v600_v30 = vmax.f32 %v584_v20, 0.0  ;;  %v571_v31 = vadd.f32 %v1782_v13, %v548_v21  ;;  %v1376_v32 = vunpack.c.h.bf16 %v1393_v15  ;;  %v549_v33 = vmul.f32 %v1343_v22, %v1771_v2 }
  0x34   : > { %v601_v34 = vmax.f32 %v585_v26, 0.0  ;;  %v586_v35 = vadd.f32 %v1371_v12, %v570_v27  ;;  %v550_v36 = vmul.f32 %v1344_v23, %v1771_v2  ;;  %v1347_v37 = vunpack.c.l.bf16 %v1387_v24 }
  0x35   : > { %v587_v38 = vadd.f32 %v1372_v14, %v571_v31  ;;  %v572_v39 = vadd.f32 %v1782_v13, %v549_v33  ;;  %v1348_v40 = vunpack.c.h.bf16 %v1387_v24  ;;  %v1379_v41 = vunpack.c.l.bf16 %v1394_v29 }
  0x36   : > { %1424 = vmatmul.mubr.msk.bf16.gmra.mxu0 %vm632_vm0, %v611_v25  ;;  %v612_v42 = vpack.c.bf16 %v601_v34, %v600_v30  ;;  %v602_v43 = vmax.f32 %v586_v35, 0.0  ;;  %v573_v44 = vadd.f32 %v1782_v13, %v550_v36  ;;  %v1380_v45 = vunpack.c.h.bf16 %v1394_v29 }
  0x37   : > { %v603_v46 = vmax.f32 %v587_v38, 0.0  ;;  %v588_v47 = vadd.f32 %v1375_v28, %v572_v39  ;;  %v551_v48 = vmul.f32 %v1347_v37, %v1771_v2  ;;  %v552_v49 = vmul.f32 %v1348_v40, %v1771_v2 }
  0x38   : > { %1427 = vmatprep.mubr.msk.bf16.mxu0 %vm632_vm0, %v612_v42  ;;  %v589_v50 = vadd.f32 %v1376_v32, %v573_v44 }
  0x39   : > { %v604_v51 = vmax.f32 %v588_v47, 0.0  ;;  %v574_v52 = vadd.f32 %v1782_v13, %v551_v48  ;;  %v575_v53 = vadd.f32 %v1782_v13, %v552_v49  ;;  %v613_v54 = vpack.c.bf16 %v603_v46, %v602_v43  ;;  %v1529_v13 = vld [vmem:[%s1957_s5] sm:$0xff]  }
  0x3a   : > { %v605_v55 = vmax.f32 %v589_v50, 0.0  ;;  %1437 = vmatprep.subr.bf16.mxu1 %v1529_v13 }
  0x3b   : > { %v590_v56 = vadd.f32 %v1379_v41, %v574_v52  ;;  %v591_v57 = vadd.f32 %v1380_v45, %v575_v53  ;;  %1438 = vmatpush3.bf16.msra.mxu1 %v1529_v13  ;;  %v1851_v41 = vld [vmem:[%s1958_s6] ss:$0 sm:$0xff] }
  0x3c   : > { %v614_v58 = vpack.c.bf16 %v605_v55, %v604_v51 }
  0x3d   : > { %v606_v59 = vmax.f32 %v590_v56, 0.0  ;;  %v607_v60 = vmax.f32 %v591_v57, 0.0 }
  0x3e   : > { %1428 = vmatmul.mubr.msk.bf16.gmra.mxu0 %vm632_vm0, %v613_v54 }
  0x3f   : > { %1431 = vmatprep.mubr.msk.bf16.mxu0 %vm632_vm0, %v614_v58  ;;  %v615_v2 = vpack.c.bf16 %v607_v60, %v606_v59 }
  0x46   : > { %1432 = vmatmul.mubr.msk.bf16.gmra.mxu0 %vm632_vm0, %v615_v2 }
  0xee   : > { %v1421_v62 = vpop.f32.mrf.mxu0 }
  0xef   : > { %v756_v6 = vmax.f32 %v1421_v62, 0.0 }
  0xf0   : > { %v691_v63 = vpop.f32.mrf.mxu0 }
  0xf1   : > { %v754_v4 = vmax.f32 %v691_v63, 0.0 }
  0xf2   : > { %v1422_v0 = vpop.f32.mrf.mxu0 }
  0xf3   : > { %v757_v1 = vmax.f32 %v1422_v0, 0.0 }
  0xf4   : > { %v694_v3 = vpop.f32.mrf.mxu0 }
  0xf5   : > { %v755_v5 = vmax.f32 %v694_v3, 0.0  ;;  %v771_v9 = vpack.c.bf16 %v757_v1, %v756_v6 }
  0xf6   : > { %v1425_v7 = vpop.f32.mrf.mxu0 }
  0xf7   : > { %v770_v8 = vpack.c.bf16 %v755_v5, %v754_v4  ;;  %v760_v17 = vmax.f32 %v1425_v7, 0.0 }
  0xf8   : > { %v707_v10 = vpop.f32.mrf.mxu0 }
  0xf9   : > { %1439 = vmatprep.mubr.msk.bf16.mxu1 %vm632_vm0, %v770_v8  ;;  %v758_v15 = vmax.f32 %v707_v10, 0.0 }
  0xfa   : > { %v1426_v11 = vpop.f32.mrf.mxu0  ;;  %1440 = vmatmul.mubr.msk.bf16.vlgmr.msra.gmra.mxu1 %vm632_vm0, %v771_v9 }
  0xfb   : > { %v761_v12 = vmax.f32 %v1426_v11, 0.0 }
  0xfc   : > { %v710_v14 = vpop.f32.mrf.mxu0 }
  0xfd   : > { %v759_v16 = vmax.f32 %v710_v14, 0.0  ;;  %v773_v20 = vpack.c.bf16 %v761_v12, %v760_v17 }
  0xfe   : > { %v1429_v18 = vpop.f32.mrf.mxu0 }
  0xff   : > { %v772_v19 = vpack.c.bf16 %v759_v16, %v758_v15  ;;  %v764_v27 = vmax.f32 %v1429_v18, 0.0 }
 0x100   : > { %v723_v21 = vpop.f32.mrf.mxu0 }
 0x101   : > { %1443 = vmatprep.mubr.msk.bf16.mxu1 %vm632_vm0, %v772_v19  ;;  %v762_v25 = vmax.f32 %v723_v21, 0.0 }
 0x102   : > { %v1430_v22 = vpop.f32.mrf.mxu0  ;;  %1444 = vmatmul.mubr.msk.bf16.gmra.mxu1 %vm632_vm0, %v773_v20 }
 0x103   : > { %v765_v23 = vmax.f32 %v1430_v22, 0.0 }
 0x104   : > { %v726_v24 = vpop.f32.mrf.mxu0 }
 0x105   : > { %v763_v26 = vmax.f32 %v726_v24, 0.0  ;;  %v775_v30 = vpack.c.bf16 %v765_v23, %v764_v27 }
 0x106   : > { %v1433_v28 = vpop.f32.mrf.mxu0 }
 0x107   : > { %v774_v29 = vpack.c.bf16 %v763_v26, %v762_v25  ;;  %v768_v37 = vmax.f32 %v1433_v28, 0.0 }
 0x108   : > { %v739_v31 = vpop.f32.mrf.mxu0 }
 0x109   : > { %1447 = vmatprep.mubr.msk.bf16.mxu1 %vm632_vm0, %v774_v29  ;;  %v766_v35 = vmax.f32 %v739_v31, 0.0 }
 0x10a   : > { %v1434_v32 = vpop.f32.mrf.mxu0  ;;  %1448 = vmatmul.mubr.msk.bf16.gmra.mxu1 %vm632_vm0, %v775_v30 }
 0x10b   : > { %v769_v33 = vmax.f32 %v1434_v32, 0.0 }
 0x10c   : > { %v742_v34 = vpop.f32.mrf.mxu0 }
 0x10d   : > { %v767_v36 = vmax.f32 %v742_v34, 0.0  ;;  %v777_v39 = vpack.c.bf16 %v769_v33, %v768_v37 }
 0x10f   : > { %v776_v38 = vpack.c.bf16 %v767_v36, %v766_v35 }
 0x111   : > { %1451 = vmatprep.mubr.msk.bf16.mxu1 %vm632_vm0, %v776_v38 }
 0x112   : > { %1452 = vmatmul.mubr.msk.bf16.gmra.mxu1 %vm632_vm0, %v777_v39 }
 0x1ba   : > { %v1441_v40 = vpop.f32.mrf.mxu1 }
 0x1bb   : > { %v917_v42 = vmax.f32 %v1441_v40, 0.0 }
 0x1bc   : > { %v852_v43 = vpop.f32.mrf.mxu1 }
 0x1bd   : > { %v915_v44 = vmax.f32 %v852_v43, 0.0  ;;  %v940_v45 = vmul.f32 %v1851_v41, %v917_v42 }
 0x1be   : > { %v1442_v46 = vpop.f32.mrf.mxu1 }
 0x1bf   : > { %v918_v47 = vmax.f32 %v1442_v46, 0.0  ;;  %v960_v48 = vsel %vm632_vm0, %v940_v45, 0.0  ;;  %v938_v49 = vmul.f32 %v1851_v41, %v915_v44  ;;  %v1020_v46 = vlaneseq }
 0x1c0   : > { %961 = vadd.xlane.f32.xlu1 %v960_v48  ;;  %v855_v50 = vpop.f32.mrf.mxu1 }
 0x1c1   : > { %v916_v51 = vmax.f32 %v855_v50, 0.0  ;;  %v954_v52 = vsel %vm632_vm0, %v938_v49, 0.0  ;;  %v941_v53 = vmul.f32 %v1851_v41, %v918_v47  ;;  %v1021_v49 = vand.u32 127, %v1020_v46 }
 0x1c2   : > { %955 = vadd.xlane.f32.xlu0 %v954_v52  ;;  %v1445_v54 = vpop.f32.mrf.mxu1 }
 0x1c3   : > { %v921_v55 = vmax.f32 %v1445_v54, 0.0  ;;  %v963_v56 = vsel %vm632_vm0, %v941_v53, 0.0  ;;  %v939_v57 = vmul.f32 %v1851_v41, %v916_v51  ;;  %v1026_v51 = vadd.s32 4294967288, %v1021_v49 }
 0x1c4   : > { %964 = vadd.xlane.f32.xlu1 %v963_v56  ;;  %v868_v58 = vpop.f32.mrf.mxu1 }
 0x1c5   : > { %v919_v59 = vmax.f32 %v868_v58, 0.0  ;;  %v957_v60 = vsel %vm632_vm0, %v939_v57, 0.0  ;;  %v944_v2 = vmul.f32 %v1851_v41, %v921_v55 }
 0x1c6   : > { %958 = vadd.xlane.f32.xlu0 %v957_v60  ;;  %v1446_v61 = vpop.f32.mrf.mxu1 }
 0x1c7   : > { %v922_v13 = vmax.f32 %v1446_v61, 0.0  ;;  %v972_v0 = vsel %vm632_vm0, %v944_v2, 0.0  ;;  %v942_v3 = vmul.f32 %v1851_v41, %v919_v59 }
 0x1c8   : > { %v871_v62 = vpop.f32.mrf.mxu1 }
 0x1c9   : > { %v920_v63 = vmax.f32 %v871_v62, 0.0  ;;  %v945_v1 = vmul.f32 %v1851_v41, %v922_v13  ;;  %v966_v10 = vsel %vm632_vm0, %v942_v3, 0.0 }
 0x1ca   : > { %973 = vadd.xlane.f32.xlu0 %v972_v0  ;;  %v1449_v4 = vpop.f32.mrf.mxu1 }
 0x1cb   : > { %v925_v5 = vmax.f32 %v1449_v4, 0.0  ;;  %v975_v6 = vsel %vm632_vm0, %v945_v1, 0.0  ;;  %v943_v7 = vmul.f32 %v1851_v41, %v920_v63 }
 0x1cc   : > { %976 = vadd.xlane.f32.xlu1 %v975_v6  ;;  %v884_v8 = vpop.f32.mrf.mxu1 }
 0x1cd   : > { %v923_v9 = vmax.f32 %v884_v8, 0.0  ;;  %v948_v11 = vmul.f32 %v1851_v41, %v925_v5  ;;  %v969_v15 = vsel %vm632_vm0, %v943_v7, 0.0 }
 0x1ce   : > { %967 = vadd.xlane.f32.xlu0 %v966_v10  ;;  %v1450_v12 = vpop.f32.mrf.mxu1 }
 0x1cf   : > { %v926_v14 = vmax.f32 %v1450_v12, 0.0  ;;  %v984_v18 = vsel %vm632_vm0, %v948_v11, 0.0  ;;  %v946_v20 = vmul.f32 %v1851_v41, %v923_v9 }
 0x1d0   : > { %970 = vadd.xlane.f32.xlu1 %v969_v15  ;;  %v887_v16 = vpop.f32.mrf.mxu1 }
 0x1d1   : > { %v924_v17 = vmax.f32 %v887_v16, 0.0  ;;  %v949_v19 = vmul.f32 %v1851_v41, %v926_v14  ;;  %v978_v27 = vsel %vm632_vm0, %v946_v20, 0.0 }
 0x1d2   : > { %985 = vadd.xlane.f32.xlu0 %v984_v18  ;;  %v1453_v21 = vpop.f32.mrf.mxu1 }
 0x1d3   : > { %v987_v22 = vsel %vm632_vm0, %v949_v19, 0.0  ;;  %v947_v23 = vmul.f32 %v1851_v41, %v924_v17  ;;  %v929_v25 = vmax.f32 %v1453_v21, 0.0  ;;  %v1002_v19 = vld [vmem:[%s456_s20] sm:$0xff]  ;;  %s1624_s20 = smov [#allocation2]  }
 0x1d4   : > { %988 = vadd.xlane.f32.xlu1 %v987_v22  ;;  %v900_v24 = vpop.f32.mrf.mxu1  ;;  %s1534_s4 = sshll.u32 %s1624_s20, 4  ;;  %s1535_s4 = int_to_ptr.vmem [resolvable:$false] %s1534_s4 }
 0x1d5   : > { %v927_v26 = vmax.f32 %v900_v24, 0.0  ;;  %v981_v29 = vsel %vm632_vm0, %v947_v23, 0.0  ;;  %v952_v35 = vmul.f32 %v1851_v41, %v929_v25  ;;  %v1112_v24 = vld [vmem:[%s464_s15] sm:$0xff]  ;;  %s1536_s14 = scalar_lea.vmem %s1535_s4, 256  ;;  %p1537_p5 = scmp.lt.s32.totalorder %s1134_s28, %s1535_s4 }
 0x1d6   : > { %979 = vadd.xlane.f32.xlu0 %v978_v27  ;;  %v1454_v28 = vpop.f32.mrf.mxu1  ;;  %v1003_v27 = vsub.f32 1.0, %v1002_v19  ;;  %p1538_p6 = scmp.lt.s32.totalorder %s1536_s14, %s1530_s18 }
 0x1d7   : > { %v950_v30 = vmul.f32 %v1851_v41, %v927_v26  ;;  %v930_v32 = vmax.f32 %v1454_v28, 0.0  ;;  %v996_v37 = vsel %vm632_vm0, %v952_v35, 0.0 }
 0x1d8   : > { %982 = vadd.xlane.f32.xlu1 %v981_v29  ;;  %v903_v31 = vpop.f32.mrf.mxu1  ;;  %p1539_p7 = por %p1538_p6, %p1537_p5 }
 0x1d9   : > { %v928_v33 = vmax.f32 %v903_v31, 0.0  ;;  %v990_v34 = vsel %vm632_vm0, %v950_v30, 0.0  ;;  %v953_v39 = vmul.f32 %v1851_v41, %v930_v32  ;;  %v1113_v32 = vmul.f32 %v1112_v24, %v1002_v19 }
 0x1da   : > { %991 = vadd.xlane.f32.xlu0 %v990_v34  ;;  %p1540_p9 = pnand %p1539_p7, %p1533_p4 }
 0x1db   : > { %v951_v36 = vmul.f32 %v1851_v41, %v928_v33  ;;  %v999_v40 = vsel %vm632_vm0, %v953_v39, 0.0  ;;  %v1023_v41 = vshrl.u32 %v1020_v46, 7 }
 0x1dd   : > { %v993_v38 = vsel %vm632_vm0, %v951_v36, 0.0  ;;  %v1029_v54 = vsub.s32 %v1026_v51, %v1023_v41  ;;  %v1024_v56 = vsub.s32 %v1021_v49, %v1023_v41 }
 0x1de   : > { %997 = vadd.xlane.f32.xlu0 %v996_v37  ;;  %994 = vadd.xlane.f32.xlu1 %v993_v38 }
 0x1e2   : > { %1000 = vadd.xlane.f32.xlu1 %v999_v40 }
 0x249   : > { %v962_v42 = vpop.xlane.xlu1 %961 }
 0x24a   : > { %v1036_v62 = vrot.slane %v962_v42, %v1024_v56 }
 0x24b   : > { %v956_v43 = vpop.xlane.xlu0 %955 }
 0x24c   : > { %v1025_v60 = vrot.slane %v956_v43, %v1024_v56 }
 0x24d   : > { %v965_v45 = vpop.xlane.xlu1 %964 }
 0x24e   : > { %v1040_v2 = vrot.slane %v965_v45, %v1029_v54 }
 0x24f   : > { %v959_v44 = vpop.xlane.xlu0 %958 }
 0x250   : > { %v1030_v57 = vrot.slane %v959_v44, %v1029_v54  ;;  %v1041_v4 = vsel %vm1031_vm1, %v1040_v2, %v1036_v62 }
 0x252   : > { %v1032_v63 = vsel %vm1031_vm1, %v1030_v57, %v1025_v60 }
 0x253   : > { %v974_v47 = vpop.xlane.xlu0 %973  ;;  %v1097_v6 = vsel %vm1096_vm2, %v1041_v4, %v1032_v63 }
 0x254   : > { %v1054_v8 = vrot.slane %v974_v47, %v1024_v56 }
 0x255   : > { %v977_v48 = vpop.xlane.xlu1 %976 }
 0x256   : > { %v1058_v5 = vrot.slane %v977_v48, %v1029_v54 }
 0x257   : > { %v968_v50 = vpop.xlane.xlu0 %967 }
 0x258   : > { %v1045_v61 = vrot.slane %v968_v50, %v1024_v56  ;;  %v1059_v12 = vsel %vm1031_vm1, %v1058_v5, %v1054_v8 }
 0x259   : > { %v971_v52 = vpop.xlane.xlu1 %970 }
 0x25a   : > { %v1049_v58 = vrot.slane %v971_v52, %v1029_v54 }
 0x25b   : > { %v986_v53 = vpop.xlane.xlu0 %985 }
 0x25c   : > { %v1050_v0 = vsel %vm1031_vm1, %v1049_v58, %v1045_v61  ;;  %v1072_v20 = vrot.slane %v986_v53, %v1024_v56 }
 0x25d   : > { %v989_v55 = vpop.xlane.xlu1 %988  ;;  %v1099_v9 = vsel %vm1098_vm3, %v1050_v0, %v1097_v6 }
 0x25e   : > { %v1076_v14 = vrot.slane %v989_v55, %v1029_v54  ;;  %v1101_v16 = vsel %vm1100_vm4, %v1059_v12, %v1099_v9 }
 0x25f   : > { %v980_v59 = vpop.xlane.xlu0 %979 }
 0x260   : > { %v1063_v7 = vrot.slane %v980_v59, %v1024_v56  ;;  %v1077_v25 = vsel %vm1031_vm1, %v1076_v14, %v1072_v20 }
 0x261   : > { %v983_v13 = vpop.xlane.xlu1 %982 }
 0x262   : > { %v1067_v1 = vrot.slane %v983_v13, %v1029_v54 }
 0x263   : > { %v992_v3 = vpop.xlane.xlu0 %991 }
 0x264   : > { %v1068_v10 = vsel %vm1031_vm1, %v1067_v1, %v1063_v7  ;;  %v1081_v17 = vrot.slane %v992_v3, %v1024_v56 }
 0x265   : > { %v1103_v21 = vsel %vm1102_vm5, %v1068_v10, %v1101_v16 }
 0x266   : > { %v1105_v29 = vsel %vm1104_vm6, %v1077_v25, %v1103_v21 }
 0x267   : > { %v995_v11 = vpop.xlane.xlu1 %994  ;;  %v998_v18 = vpop.xlane.xlu0 %997 }
 0x268   : > { %v1085_v15 = vrot.slane %v995_v11, %v1029_v54  ;;  %v1090_v26 = vrot.slane %v998_v18, %v1024_v56 }
 0x26a   : > { %v1086_v22 = vsel %vm1031_vm1, %v1085_v15, %v1081_v17 }
 0x26b   : > { %v1001_v23 = vpop.xlane.xlu1 %1000  ;;  %v1107_v30 = vsel %vm1106_vm7, %v1086_v22, %v1105_v29 }
 0x26c   : > { %v1094_v28 = vrot.slane %v1001_v23, %v1029_v54 }
 0x26e   : > { %v1095_v31 = vsel %vm1031_vm1, %v1094_v28, %v1090_v26 }
 0x26f   : > { %v1109_v33 = vsel %vm1108_vm8, %v1095_v31, %v1107_v30 }
 0x270   : > { %v1111_v34 = vmul.f32 %v1109_v33, %v1003_v27 }
 0x272   : > { %v1114_v35 = vadd.f32 %v1113_v32, %v1111_v34 }
 0x274   : > { %1116 = vst.msk [vmem:[%s426_s26] sm:$0xff] %vm1115_vm9, %v1114_v35 }
 0x275   : > { %1543 = shalt.err (!%p1540_p9)
}
 0x276   : > { %s1544_s15 = scalar_lea.hbm %s1131_s19, 128  ;;  %s1548_s24 = scalar_lea.hbm %s1961_s9, 512 }
 0x277   : > { %p1545_p10 = scmp.ne.s32.totalorder %s1131_s19, %s1544_s15  ;;  %p1549_p13 = scmp.lt.s32.totalorder %s1131_s19, %s1961_s9 }
 0x278   : > { %p1550_p0 = scmp.lt.s32.totalorder %s1548_s24, %s1544_s15 }
 0x279   : > { %p1546_p11 = pnand %p1545_p10, %p1726_p3 }
 0x27a   : > { %p1551_p1 = por %p1550_p0, %p1549_p13 }
 0x27b   : > { %p1547_p12 = pneg %p1546_p11 }
 0x27d   : > { %p1552_p2 = pnand %p1551_p1, %p1547_p12 }
 0x27f   : > { %1555 = shalt.err (!%p1552_p2)
}
 0x280   : > { %1455 = dma.vmem_to_hbm [thread:$0]  (%p1726_p3), %s1134_s28, 128, %s1131_s19, %s1118_s12  }
 0x281 PF: > { %p1461_p4 = scmp.ge.s32.totalorder %s1622_s16, 2  ;;  %s1145_s26 = sand.u32 1, %s1594_s30  }
 0x282   : > { %s1146_s29 = scalar_lea.sflag [#allocation3], %s1145_s26 }
 0x283   : > { %p1458_p5 = pnand %p1461_p4, %p1735_p8 }
 0x285   : > { %p1459_p6 = pneg %p1458_p5 }
 0x287   : > { %1589 = dma.done.wait (%p1459_p6), %s1146_s29, 128  }
 0x288   : > { %1591 = vsyncadd (%p1459_p6), %s1146_s29, 4294967168  ;;  %s22_s16 = sadd.s32 1, %s1622_s16   ;;  %s1975_s21 = sld [smem:[#allocation9_spill]] }
 0x289   : > { %p19_p7 = scmp.ge.s32.totalorder %s22_s16, 6   ;;  %s1976_s12 = sld [smem:[#allocation5_spill]] }
 0x28a   : > { %s1977_s13 = sld [smem:[#allocation6_spill]]  ;;  %s1980_s30 = smov %s1598_s10 }
 0x28b   : > { %s1978_s14 = sld [smem:[#allocation7_spill]]  ;;  %s1981_s10 = smov %s1602_s11 }
 0x28c   : > { %s1979_s15 = sld [smem:[#allocation8_spill]]  ;;  %21 = sbr.rel (!%p19_p7) target bundleno = 7 (0x7), region = 100 }
 0x28e   : > { %s1982_s11 = smov %s1975_s21 }
 0x291   :  { %1151 = vsyncpa [#allocation3], 1 }
 0x292   :  { %1153 = vsyncpa [#allocation3 + $0x1], 1 }

</bundles_post_ra>
